<compile_context>
chip_gen: v5e
topology: v5e:2x2
jax: 0.10.0
libtpu: 0.0.40
codegen_flags: <defaults>
</compile_context>

<pallas_src>
import functools

import jax
import jax.numpy as jnp
from jax import lax
from jax.experimental import pallas as pl
from jax.experimental.pallas import tpu as pltpu


N_OUT = (32, 64, 128)        # backbone channel widths (ActorNet.__init__)
NUM_BLOCKS = (2, 2, 2)       # Res1d blocks per group
GN_EPS = 1e-5                # torch.nn.GroupNorm default eps


# ----------------------------------------------------------------------------
# Host-side constant builders (hoisted out of the kernel, computed once).
# ----------------------------------------------------------------------------
def _upsample_matrix(L_lo):
    """(2*L_lo, L_lo) matrix implementing F.interpolate(scale_factor=2,
    mode='linear', align_corners=False) as a matmul."""
    L_hi = 2 * L_lo
    i = jnp.arange(L_hi, dtype=jnp.int32)
    src = jnp.maximum((i.astype(jnp.float32) + 0.5) * 0.5 - 0.5, 0.0)
    i0 = jnp.floor(src).astype(jnp.int32)
    frac = src - i0.astype(jnp.float32)
    i1 = jnp.minimum(i0 + 1, L_lo - 1)
    j = jnp.arange(L_lo, dtype=jnp.int32)
    return ((j[None, :] == i0[:, None]).astype(jnp.float32) * (1.0 - frac)[:, None]
            + (j[None, :] == i1[:, None]).astype(jnp.float32) * frac[:, None])


def _subsample_matrix(L_in):
    """(L_in//2, L_in) stride-2 even-row selector."""
    L_out = L_in // 2
    return (jnp.arange(L_in)[None, :] == 2 * jnp.arange(L_out)[:, None]
            ).astype(jnp.float32)


def _block_diag(nb, m):
    return jnp.kron(jnp.eye(nb, dtype=jnp.float32), m)


def _make_consts(nb, T):
    """All data-independent matrices used by the fused kernel; block-diagonal
    over the `nb` samples folded into the sublane (row) axis."""
    c = {}
    for L in (T, T // 2, T // 4):
        rows = jnp.arange(nb * L)
        seg = (rows[None, :] // L == jnp.arange(nb)[:, None]).astype(jnp.float32)
        c[f'seg_{L}'] = seg                    # (nb, nb*L)  per-sample sum
        c[f'segT_{L}'] = seg.T                 # (nb*L, nb)  per-sample broadcast
        pos = rows % L
        c[f'km_{L}'] = (pos != 0).astype(jnp.float32)[:, None]      # mask x[l-1] tap
        c[f'kp_{L}'] = (pos != L - 1).astype(jnp.float32)[:, None]  # mask x[l+1] tap
    c[f'sub_{T // 2}'] = _block_diag(nb, _subsample_matrix(T))       # stride-2 group 1
    c[f'sub_{T // 4}'] = _block_diag(nb, _subsample_matrix(T // 2))  # stride-2 group 2
    c[f'up_{T // 2}'] = _block_diag(nb, _upsample_matrix(T // 4))    # FPN x2
    c[f'up_{T}'] = _block_diag(nb, _upsample_matrix(T // 2))         # FPN x2
    c['last'] = (jnp.arange(nb * T)[None, :]
                 == (T * jnp.arange(nb) + T - 1)[:, None]).astype(jnp.float32)
    return c


# ----------------------------------------------------------------------------
# The fused whole-network kernel.
# ----------------------------------------------------------------------------
def _actor_net_kernel(x_ref, *refs, treedef, nb, T):
    *leaf_refs, o_ref = refs
    bundle = jax.tree_util.tree_unflatten(treedef, list(leaf_refs))
    net = bundle['net']
    cv = {k: r[...] for k, r in bundle['const'].items()}   # tiny consts, load once

    def conv3(x, w_ref, L):
        # Conv1d(k=3, pad=1, bias=False) on batch-folded rows x:(nb*L, Cin).
        # pltpu.roll follows jnp.roll semantics: row l of xm holds x[l-1],
        # row l of xp holds x[l+1]; sample-boundary rows are zeroed by the
        # precomputed masks (zero padding).
        R = nb * L
        xm = pltpu.roll(x, 1, axis=0) * cv[f'km_{L}']
        xp = pltpu.roll(x, R - 1, axis=0) * cv[f'kp_{L}']
        return (jnp.dot(xm, w_ref[0], preferred_element_type=jnp.float32)
                + jnp.dot(x, w_ref[1], preferred_element_type=jnp.float32)
                + jnp.dot(xp, w_ref[2], preferred_element_type=jnp.float32))

    def group_norm(y, L, g_ref, b_ref):
        # GroupNorm(num_groups=1): per-sample stats over all (L, C) in one pass.
        seg, segT = cv[f'seg_{L}'], cv[f'segT_{L}']
        s1 = jnp.dot(seg, y, preferred_element_type=jnp.float32)       # (nb, C)
        s2 = jnp.dot(seg, y * y, preferred_element_type=jnp.float32)   # (nb, C)
        inv_cnt = 1.0 / float(L * y.shape[1])
        mean = jnp.sum(s1, axis=1, keepdims=True) * inv_cnt            # (nb, 1)
        var = jnp.sum(s2, axis=1, keepdims=True) * inv_cnt - mean * mean
        rstd = lax.rsqrt(var + GN_EPS)
        mean_r = jnp.dot(segT, mean, preferred_element_type=jnp.float32)  # (nb*L, 1)
        rstd_r = jnp.dot(segT, rstd, preferred_element_type=jnp.float32)
        return (y - mean_r) * rstd_r * g_ref[...] + b_ref[...]

    def res1d(x, L_in, p, stride, act):
        L_out = L_in // stride
        h = conv3(x, p['w1'], L_in)
        if stride == 2:                        # even-row subsample (precomputed)
            h = jnp.dot(cv[f'sub_{L_out}'], h, preferred_element_type=jnp.float32)
        h = jnp.maximum(group_norm(h, L_out, p['g1'], p['b1']), 0.0)
        h = group_norm(conv3(h, p['w2'], L_out), L_out, p['g2'], p['b2'])
        if 'wd' in p:                          # downsample: 1x1 (strided) conv + GN
            idn = x
            if stride == 2:
                idn = jnp.dot(cv[f'sub_{L_out}'], idn,
                              preferred_element_type=jnp.float32)
            idn = jnp.dot(idn, p['wd'][...], preferred_element_type=jnp.float32)
            idn = group_norm(idn, L_out, p['gd'], p['bd'])
        else:
            idn = x
        out = h + idn
        if act:
            out = jnp.maximum(out, 0.0)
        return out, L_out

    def lateral(x, L, p):                      # Conv1d(act=False): conv + GN
        return group_norm(conv3(x, p['w'], L), L, p['g'], p['b'])

    # ---- backbone: 3 groups of Res1d (stride 2 at the head of groups 1, 2) ----
    x = x_ref[...].astype(jnp.float32)         # (nb*T, 3)
    L = T
    feats = []
    for gi, group in enumerate(net['groups']):
        for bi, blk in enumerate(group):
            x, L = res1d(x, L, blk, 2 if (gi > 0 and bi == 0) else 1, act=True)
        feats.append((x, L))

    # ---- FPN top-down: lateral(top) -> upsample x2 (linear) -> += lateral(i) ----
    out = lateral(feats[-1][0], feats[-1][1], net['lateral'][-1])
    for i in (1, 0):
        xi, Li = feats[i]
        out = jnp.dot(cv[f'up_{Li}'], out, preferred_element_type=jnp.float32)
        out = out + lateral(xi, Li, net['lateral'][i])

    # ---- output Res1d (act=False) and the final [:, :, -1] gather ----
    out, _ = res1d(out, T, net['output'], stride=1, act=False)
    o_ref[...] = jnp.dot(cv['last'], out,
                         preferred_element_type=jnp.float32).astype(o_ref.dtype)


# ----------------------------------------------------------------------------
# Wrapper: one pallas_call for the whole network.
# ----------------------------------------------------------------------------
def actor_net_forward(params, actors_ncl, *, batch_block=None):
    """actors_ncl: (N, 3, T) in PyTorch NCL layout.  Returns (N, n_actor).

    The whole network runs as ONE pallas_call.  By default all N samples are
    folded into the sublane axis (single grid step; best on v5e/v6e).  Pass
    batch_block=1 to expose a size-N "parallel" grid axis instead (lets the
    two TensorCores of a v7x chip split the batch).
    """
    N, c_in, T = actors_ncl.shape
    assert T % 4 == 0, "T must be divisible by 4 (two stride-2 stages, two x2 upsamples)"
    nb = N if batch_block is None else int(batch_block)
    assert N % nb == 0, "batch_block must divide the batch size"
    n_actor = params['output']['g1'].shape[-1]

    # NCL -> NLC -> batch folded into rows (plain-JAX layout glue).
    x_rows = jnp.transpose(actors_ncl, (0, 2, 1)).reshape(N * T, c_in)

    bundle = {'net': params, 'const': _make_consts(nb, T)}
    leaves, treedef = jax.tree_util.tree_flatten(bundle)

    kernel = functools.partial(_actor_net_kernel, treedef=treedef, nb=nb, T=T)

    def _invariant_spec(leaf):
        # Full-array block, constant index_map: stays resident in VMEM, no
        # per-grid-step re-DMA of weights / constants.
        return pl.BlockSpec(leaf.shape, lambda b, _nd=leaf.ndim: (0,) * _nd)

    return pl.pallas_call(
        kernel,
        out_shape=jax.ShapeDtypeStruct((N, n_actor), jnp.float32),
        grid=(N // nb,),
        in_specs=[pl.BlockSpec((nb * T, c_in), lambda b: (b, 0))]
                 + [_invariant_spec(leaf) for leaf in leaves],
        out_specs=pl.BlockSpec((nb, n_actor), lambda b: (b, 0)),
        compiler_params=pltpu.CompilerParams(dimension_semantics=("parallel",)),
    )(x_rows, *leaves)


# ----------------------------------------------------------------------------
# Deterministic parameter init (shapes follow ActorNet.__init__).
# ----------------------------------------------------------------------------
def _conv3_w(key, c_in, c_out):
    # == torch Conv1d weight (C_out, C_in, 3) transposed to (3, C_in, C_out)
    # (tap-major: tap 0 multiplies x[l-1], tap 1 x[l], tap 2 x[l+1]).
    return 0.1 * jax.random.normal(key, (3, c_in, c_out), jnp.float32)


def _conv1_w(key, c_in, c_out):
    # == torch 1x1 Conv1d weight (C_out, C_in, 1) stored as (C_in, C_out).
    return 0.1 * jax.random.normal(key, (c_in, c_out), jnp.float32)


def init_params(key, n_actor=32):
    n_in = 3
    keys = iter(jax.random.split(key, 64))
    params = {'groups': [], 'lateral': []}

    for i, nblk in enumerate(NUM_BLOCKS):
        group = []
        for j in range(nblk):
            c_in = n_in if j == 0 else N_OUT[i]
            c_out = N_OUT[i]
            stride = 2 if (i > 0 and j == 0) else 1
            blk = {
                'w1': _conv3_w(next(keys), c_in, c_out),
                'g1': jnp.ones((1, c_out), jnp.float32),
                'b1': jnp.zeros((1, c_out), jnp.float32),
                'w2': _conv3_w(next(keys), c_out, c_out),
                'g2': jnp.ones((1, c_out), jnp.float32),
                'b2': jnp.zeros((1, c_out), jnp.float32),
            }
            if stride != 1 or c_in != c_out:       # torch Res1d downsample branch
                blk['wd'] = _conv1_w(next(keys), c_in, c_out)
                blk['gd'] = jnp.ones((1, c_out), jnp.float32)
                blk['bd'] = jnp.zeros((1, c_out), jnp.float32)
            group.append(blk)
        params['groups'].append(group)
        n_in = N_OUT[i]

    for i in range(len(N_OUT)):
        params['lateral'].append({
            'w': _conv3_w(next(keys), N_OUT[i], n_actor),
            'g': jnp.ones((1, n_actor), jnp.float32),
            'b': jnp.zeros((1, n_actor), jnp.float32),
        })

    params['output'] = {
        'w1': _conv3_w(next(keys), n_actor, n_actor),
        'g1': jnp.ones((1, n_actor), jnp.float32),
        'b1': jnp.zeros((1, n_actor), jnp.float32),
        'w2': _conv3_w(next(keys), n_actor, n_actor),
        'g2': jnp.ones((1, n_actor), jnp.float32),
        'b2': jnp.zeros((1, n_actor), jnp.float32),
    }
    return params


if __name__ == "__main__":
    key = jax.random.PRNGKey(0)
    pkey, xkey = jax.random.split(key)

    n_actor = 32                      # config['n_actor'] (kept small)
    N, C_IN, T = 2, 3, 16             # small shapes; T divisible by 4

    params = init_params(pkey, n_actor=n_actor)
    actors = jax.random.normal(xkey, (N, C_IN, T), jnp.float32)   # NCL like torch

    fwd = jax.jit(actor_net_forward)
    out = jax.block_until_ready(fwd(params, actors))

    assert out.shape == (N, n_actor), out.shape
    assert bool(jnp.all(jnp.isfinite(out)))
    print("KERNEL_OK")
</pallas_src>

<mosaic_0001>
module attributes {stable_mosaic.version = 11 : i64} {
  func.func @_actor_net_kernel(%arg0: i32, %arg1: memref<32x3xf32, #tpu.memory_space<vmem>>, %arg2: memref<32x1xf32, #tpu.memory_space<vmem>>, %arg3: memref<8x1xf32, #tpu.memory_space<vmem>>, %arg4: memref<16x1xf32, #tpu.memory_space<vmem>>, %arg5: memref<32x1xf32, #tpu.memory_space<vmem>>, %arg6: memref<8x1xf32, #tpu.memory_space<vmem>>, %arg7: memref<16x1xf32, #tpu.memory_space<vmem>>, %arg8: memref<2x32xf32, #tpu.memory_space<vmem>>, %arg9: memref<32x2xf32, #tpu.memory_space<vmem>>, %arg10: memref<8x2xf32, #tpu.memory_space<vmem>>, %arg11: memref<16x2xf32, #tpu.memory_space<vmem>>, %arg12: memref<2x32xf32, #tpu.memory_space<vmem>>, %arg13: memref<2x8xf32, #tpu.memory_space<vmem>>, %arg14: memref<2x16xf32, #tpu.memory_space<vmem>>, %arg15: memref<8x16xf32, #tpu.memory_space<vmem>>, %arg16: memref<16x32xf32, #tpu.memory_space<vmem>>, %arg17: memref<32x16xf32, #tpu.memory_space<vmem>>, %arg18: memref<16x8xf32, #tpu.memory_space<vmem>>, %arg19: memref<1x32xf32, #tpu.memory_space<vmem>>, %arg20: memref<1x32xf32, #tpu.memory_space<vmem>>, %arg21: memref<1x32xf32, #tpu.memory_space<vmem>>, %arg22: memref<1x32xf32, #tpu.memory_space<vmem>>, %arg23: memref<1x32xf32, #tpu.memory_space<vmem>>, %arg24: memref<1x32xf32, #tpu.memory_space<vmem>>, %arg25: memref<3x3x32xf32, #tpu.memory_space<vmem>>, %arg26: memref<3x32x32xf32, #tpu.memory_space<vmem>>, %arg27: memref<3x32xf32, #tpu.memory_space<vmem>>, %arg28: memref<1x32xf32, #tpu.memory_space<vmem>>, %arg29: memref<1x32xf32, #tpu.memory_space<vmem>>, %arg30: memref<1x32xf32, #tpu.memory_space<vmem>>, %arg31: memref<1x32xf32, #tpu.memory_space<vmem>>, %arg32: memref<3x32x32xf32, #tpu.memory_space<vmem>>, %arg33: memref<3x32x32xf32, #tpu.memory_space<vmem>>, %arg34: memref<1x64xf32, #tpu.memory_space<vmem>>, %arg35: memref<1x64xf32, #tpu.memory_space<vmem>>, %arg36: memref<1x64xf32, #tpu.memory_space<vmem>>, %arg37: memref<1x64xf32, #tpu.memory_space<vmem>>, %arg38: memref<1x64xf32, #tpu.memory_space<vmem>>, %arg39: memref<1x64xf32, #tpu.memory_space<vmem>>, %arg40: memref<3x32x64xf32, #tpu.memory_space<vmem>>, %arg41: memref<3x64x64xf32, #tpu.memory_space<vmem>>, %arg42: memref<32x64xf32, #tpu.memory_space<vmem>>, %arg43: memref<1x64xf32, #tpu.memory_space<vmem>>, %arg44: memref<1x64xf32, #tpu.memory_space<vmem>>, %arg45: memref<1x64xf32, #tpu.memory_space<vmem>>, %arg46: memref<1x64xf32, #tpu.memory_space<vmem>>, %arg47: memref<3x64x64xf32, #tpu.memory_space<vmem>>, %arg48: memref<3x64x64xf32, #tpu.memory_space<vmem>>, %arg49: memref<1x128xf32, #tpu.memory_space<vmem>>, %arg50: memref<1x128xf32, #tpu.memory_space<vmem>>, %arg51: memref<1x128xf32, #tpu.memory_space<vmem>>, %arg52: memref<1x128xf32, #tpu.memory_space<vmem>>, %arg53: memref<1x128xf32, #tpu.memory_space<vmem>>, %arg54: memref<1x128xf32, #tpu.memory_space<vmem>>, %arg55: memref<3x64x128xf32, #tpu.memory_space<vmem>>, %arg56: memref<3x128x128xf32, #tpu.memory_space<vmem>>, %arg57: memref<64x128xf32, #tpu.memory_space<vmem>>, %arg58: memref<1x128xf32, #tpu.memory_space<vmem>>, %arg59: memref<1x128xf32, #tpu.memory_space<vmem>>, %arg60: memref<1x128xf32, #tpu.memory_space<vmem>>, %arg61: memref<1x128xf32, #tpu.memory_space<vmem>>, %arg62: memref<3x128x128xf32, #tpu.memory_space<vmem>>, %arg63: memref<3x128x128xf32, #tpu.memory_space<vmem>>, %arg64: memref<1x32xf32, #tpu.memory_space<vmem>>, %arg65: memref<1x32xf32, #tpu.memory_space<vmem>>, %arg66: memref<3x32x32xf32, #tpu.memory_space<vmem>>, %arg67: memref<1x32xf32, #tpu.memory_space<vmem>>, %arg68: memref<1x32xf32, #tpu.memory_space<vmem>>, %arg69: memref<3x64x32xf32, #tpu.memory_space<vmem>>, %arg70: memref<1x32xf32, #tpu.memory_space<vmem>>, %arg71: memref<1x32xf32, #tpu.memory_space<vmem>>, %arg72: memref<3x128x32xf32, #tpu.memory_space<vmem>>, %arg73: memref<1x32xf32, #tpu.memory_space<vmem>>, %arg74: memref<1x32xf32, #tpu.memory_space<vmem>>, %arg75: memref<1x32xf32, #tpu.memory_space<vmem>>, %arg76: memref<1x32xf32, #tpu.memory_space<vmem>>, %arg77: memref<3x32x32xf32, #tpu.memory_space<vmem>>, %arg78: memref<3x32x32xf32, #tpu.memory_space<vmem>>, %arg79: memref<2x32xf32, #tpu.memory_space<vmem>>) attributes {dimension_semantics = [#tpu.dimension_semantics<parallel>], iteration_bounds = array<i64: 1>, scalar_prefetch = 0 : i64, scratch_operands = 0 : i64, tpu.core_type = #tpu.core_type<tc>, window_params = [{transform_indices = @transform_0, window_bounds = array<i64: 32, 3>}, {pipeline_mode = #tpu.pipeline_mode<synchronous>, transform_indices = @transform_1, window_bounds = array<i64: 32, 1>}, {pipeline_mode = #tpu.pipeline_mode<synchronous>, transform_indices = @transform_2, window_bounds = array<i64: 8, 1>}, {pipeline_mode = #tpu.pipeline_mode<synchronous>, transform_indices = @transform_3, window_bounds = array<i64: 16, 1>}, {pipeline_mode = #tpu.pipeline_mode<synchronous>, transform_indices = @transform_4, window_bounds = array<i64: 32, 1>}, {pipeline_mode = #tpu.pipeline_mode<synchronous>, transform_indices = @transform_5, window_bounds = array<i64: 8, 1>}, {pipeline_mode = #tpu.pipeline_mode<synchronous>, transform_indices = @transform_6, window_bounds = array<i64: 16, 1>}, {pipeline_mode = #tpu.pipeline_mode<synchronous>, transform_indices = @transform_7, window_bounds = array<i64: 2, 32>}, {pipeline_mode = #tpu.pipeline_mode<synchronous>, transform_indices = @transform_8, window_bounds = array<i64: 32, 2>}, {pipeline_mode = #tpu.pipeline_mode<synchronous>, transform_indices = @transform_9, window_bounds = array<i64: 8, 2>}, {pipeline_mode = #tpu.pipeline_mode<synchronous>, transform_indices = @transform_10, window_bounds = array<i64: 16, 2>}, {pipeline_mode = #tpu.pipeline_mode<synchronous>, transform_indices = @transform_11, window_bounds = array<i64: 2, 32>}, {pipeline_mode = #tpu.pipeline_mode<synchronous>, transform_indices = @transform_12, window_bounds = array<i64: 2, 8>}, {pipeline_mode = #tpu.pipeline_mode<synchronous>, transform_indices = @transform_13, window_bounds = array<i64: 2, 16>}, {pipeline_mode = #tpu.pipeline_mode<synchronous>, transform_indices = @transform_14, window_bounds = array<i64: 8, 16>}, {pipeline_mode = #tpu.pipeline_mode<synchronous>, transform_indices = @transform_15, window_bounds = array<i64: 16, 32>}, {pipeline_mode = #tpu.pipeline_mode<synchronous>, transform_indices = @transform_16, window_bounds = array<i64: 32, 16>}, {pipeline_mode = #tpu.pipeline_mode<synchronous>, transform_indices = @transform_17, window_bounds = array<i64: 16, 8>}, {pipeline_mode = #tpu.pipeline_mode<synchronous>, transform_indices = @transform_18, window_bounds = array<i64: 1, 32>}, {pipeline_mode = #tpu.pipeline_mode<synchronous>, transform_indices = @transform_19, window_bounds = array<i64: 1, 32>}, {pipeline_mode = #tpu.pipeline_mode<synchronous>, transform_indices = @transform_20, window_bounds = array<i64: 1, 32>}, {pipeline_mode = #tpu.pipeline_mode<synchronous>, transform_indices = @transform_21, window_bounds = array<i64: 1, 32>}, {pipeline_mode = #tpu.pipeline_mode<synchronous>, transform_indices = @transform_22, window_bounds = array<i64: 1, 32>}, {pipeline_mode = #tpu.pipeline_mode<synchronous>, transform_indices = @transform_23, window_bounds = array<i64: 1, 32>}, {pipeline_mode = #tpu.pipeline_mode<synchronous>, transform_indices = @transform_24, window_bounds = array<i64: 3, 3, 32>}, {pipeline_mode = #tpu.pipeline_mode<synchronous>, transform_indices = @transform_25, window_bounds = array<i64: 3, 32, 32>}, {pipeline_mode = #tpu.pipeline_mode<synchronous>, transform_indices = @transform_26, window_bounds = array<i64: 3, 32>}, {pipeline_mode = #tpu.pipeline_mode<synchronous>, transform_indices = @transform_27, window_bounds = array<i64: 1, 32>}, {pipeline_mode = #tpu.pipeline_mode<synchronous>, transform_indices = @transform_28, window_bounds = array<i64: 1, 32>}, {pipeline_mode = #tpu.pipeline_mode<synchronous>, transform_indices = @transform_29, window_bounds = array<i64: 1, 32>}, {pipeline_mode = #tpu.pipeline_mode<synchronous>, transform_indices = @transform_30, window_bounds = array<i64: 1, 32>}, {pipeline_mode = #tpu.pipeline_mode<synchronous>, transform_indices = @transform_31, window_bounds = array<i64: 3, 32, 32>}, {pipeline_mode = #tpu.pipeline_mode<synchronous>, transform_indices = @transform_32, window_bounds = array<i64: 3, 32, 32>}, {pipeline_mode = #tpu.pipeline_mode<synchronous>, transform_indices = @transform_33, window_bounds = array<i64: 1, 64>}, {pipeline_mode = #tpu.pipeline_mode<synchronous>, transform_indices = @transform_34, window_bounds = array<i64: 1, 64>}, {pipeline_mode = #tpu.pipeline_mode<synchronous>, transform_indices = @transform_35, window_bounds = array<i64: 1, 64>}, {pipeline_mode = #tpu.pipeline_mode<synchronous>, transform_indices = @transform_36, window_bounds = array<i64: 1, 64>}, {pipeline_mode = #tpu.pipeline_mode<synchronous>, transform_indices = @transform_37, window_bounds = array<i64: 1, 64>}, {pipeline_mode = #tpu.pipeline_mode<synchronous>, transform_indices = @transform_38, window_bounds = array<i64: 1, 64>}, {pipeline_mode = #tpu.pipeline_mode<synchronous>, transform_indices = @transform_39, window_bounds = array<i64: 3, 32, 64>}, {pipeline_mode = #tpu.pipeline_mode<synchronous>, transform_indices = @transform_40, window_bounds = array<i64: 3, 64, 64>}, {pipeline_mode = #tpu.pipeline_mode<synchronous>, transform_indices = @transform_41, window_bounds = array<i64: 32, 64>}, {pipeline_mode = #tpu.pipeline_mode<synchronous>, transform_indices = @transform_42, window_bounds = array<i64: 1, 64>}, {pipeline_mode = #tpu.pipeline_mode<synchronous>, transform_indices = @transform_43, window_bounds = array<i64: 1, 64>}, {pipeline_mode = #tpu.pipeline_mode<synchronous>, transform_indices = @transform_44, window_bounds = array<i64: 1, 64>}, {pipeline_mode = #tpu.pipeline_mode<synchronous>, transform_indices = @transform_45, window_bounds = array<i64: 1, 64>}, {pipeline_mode = #tpu.pipeline_mode<synchronous>, transform_indices = @transform_46, window_bounds = array<i64: 3, 64, 64>}, {pipeline_mode = #tpu.pipeline_mode<synchronous>, transform_indices = @transform_47, window_bounds = array<i64: 3, 64, 64>}, {pipeline_mode = #tpu.pipeline_mode<synchronous>, transform_indices = @transform_48, window_bounds = array<i64: 1, 128>}, {pipeline_mode = #tpu.pipeline_mode<synchronous>, transform_indices = @transform_49, window_bounds = array<i64: 1, 128>}, {pipeline_mode = #tpu.pipeline_mode<synchronous>, transform_indices = @transform_50, window_bounds = array<i64: 1, 128>}, {pipeline_mode = #tpu.pipeline_mode<synchronous>, transform_indices = @transform_51, window_bounds = array<i64: 1, 128>}, {pipeline_mode = #tpu.pipeline_mode<synchronous>, transform_indices = @transform_52, window_bounds = array<i64: 1, 128>}, {pipeline_mode = #tpu.pipeline_mode<synchronous>, transform_indices = @transform_53, window_bounds = array<i64: 1, 128>}, {pipeline_mode = #tpu.pipeline_mode<synchronous>, transform_indices = @transform_54, window_bounds = array<i64: 3, 64, 128>}, {pipeline_mode = #tpu.pipeline_mode<synchronous>, transform_indices = @transform_55, window_bounds = array<i64: 3, 128, 128>}, {pipeline_mode = #tpu.pipeline_mode<synchronous>, transform_indices = @transform_56, window_bounds = array<i64: 64, 128>}, {pipeline_mode = #tpu.pipeline_mode<synchronous>, transform_indices = @transform_57, window_bounds = array<i64: 1, 128>}, {pipeline_mode = #tpu.pipeline_mode<synchronous>, transform_indices = @transform_58, window_bounds = array<i64: 1, 128>}, {pipeline_mode = #tpu.pipeline_mode<synchronous>, transform_indices = @transform_59, window_bounds = array<i64: 1, 128>}, {pipeline_mode = #tpu.pipeline_mode<synchronous>, transform_indices = @transform_60, window_bounds = array<i64: 1, 128>}, {pipeline_mode = #tpu.pipeline_mode<synchronous>, transform_indices = @transform_61, window_bounds = array<i64: 3, 128, 128>}, {pipeline_mode = #tpu.pipeline_mode<synchronous>, transform_indices = @transform_62, window_bounds = array<i64: 3, 128, 128>}, {pipeline_mode = #tpu.pipeline_mode<synchronous>, transform_indices = @transform_63, window_bounds = array<i64: 1, 32>}, {pipeline_mode = #tpu.pipeline_mode<synchronous>, transform_indices = @transform_64, window_bounds = array<i64: 1, 32>}, {pipeline_mode = #tpu.pipeline_mode<synchronous>, transform_indices = @transform_65, window_bounds = array<i64: 3, 32, 32>}, {pipeline_mode = #tpu.pipeline_mode<synchronous>, transform_indices = @transform_66, window_bounds = array<i64: 1, 32>}, {pipeline_mode = #tpu.pipeline_mode<synchronous>, transform_indices = @transform_67, window_bounds = array<i64: 1, 32>}, {pipeline_mode = #tpu.pipeline_mode<synchronous>, transform_indices = @transform_68, window_bounds = array<i64: 3, 64, 32>}, {pipeline_mode = #tpu.pipeline_mode<synchronous>, transform_indices = @transform_69, window_bounds = array<i64: 1, 32>}, {pipeline_mode = #tpu.pipeline_mode<synchronous>, transform_indices = @transform_70, window_bounds = array<i64: 1, 32>}, {pipeline_mode = #tpu.pipeline_mode<synchronous>, transform_indices = @transform_71, window_bounds = array<i64: 3, 128, 32>}, {pipeline_mode = #tpu.pipeline_mode<synchronous>, transform_indices = @transform_72, window_bounds = array<i64: 1, 32>}, {pipeline_mode = #tpu.pipeline_mode<synchronous>, transform_indices = @transform_73, window_bounds = array<i64: 1, 32>}, {pipeline_mode = #tpu.pipeline_mode<synchronous>, transform_indices = @transform_74, window_bounds = array<i64: 1, 32>}, {pipeline_mode = #tpu.pipeline_mode<synchronous>, transform_indices = @transform_75, window_bounds = array<i64: 1, 32>}, {pipeline_mode = #tpu.pipeline_mode<synchronous>, transform_indices = @transform_76, window_bounds = array<i64: 3, 32, 32>}, {pipeline_mode = #tpu.pipeline_mode<synchronous>, transform_indices = @transform_77, window_bounds = array<i64: 3, 32, 32>}, {transform_indices = @transform_78, window_bounds = array<i64: 2, 32>}]} {
    %c0 = arith.constant 0 : index
    %c0_0 = arith.constant 0 : index
    %0 = vector.load %arg2[%c0, %c0_0] : memref<32x1xf32, #tpu.memory_space<vmem>>, vector<32x1xf32>
    %c0_1 = arith.constant 0 : index
    %c0_2 = arith.constant 0 : index
    %1 = vector.load %arg3[%c0_1, %c0_2] : memref<8x1xf32, #tpu.memory_space<vmem>>, vector<8x1xf32>
    %c0_3 = arith.constant 0 : index
    %c0_4 = arith.constant 0 : index
    %2 = vector.load %arg4[%c0_3, %c0_4] : memref<16x1xf32, #tpu.memory_space<vmem>>, vector<16x1xf32>
    %c0_5 = arith.constant 0 : index
    %c0_6 = arith.constant 0 : index
    %3 = vector.load %arg5[%c0_5, %c0_6] : memref<32x1xf32, #tpu.memory_space<vmem>>, vector<32x1xf32>
    %c0_7 = arith.constant 0 : index
    %c0_8 = arith.constant 0 : index
    %4 = vector.load %arg6[%c0_7, %c0_8] : memref<8x1xf32, #tpu.memory_space<vmem>>, vector<8x1xf32>
    %c0_9 = arith.constant 0 : index
    %c0_10 = arith.constant 0 : index
    %5 = vector.load %arg7[%c0_9, %c0_10] : memref<16x1xf32, #tpu.memory_space<vmem>>, vector<16x1xf32>
    %c0_11 = arith.constant 0 : index
    %c0_12 = arith.constant 0 : index
    %6 = vector.load %arg8[%c0_11, %c0_12] : memref<2x32xf32, #tpu.memory_space<vmem>>, vector<2x32xf32>
    %c0_13 = arith.constant 0 : index
    %c0_14 = arith.constant 0 : index
    %7 = vector.load %arg9[%c0_13, %c0_14] : memref<32x2xf32, #tpu.memory_space<vmem>>, vector<32x2xf32>
    %c0_15 = arith.constant 0 : index
    %c0_16 = arith.constant 0 : index
    %8 = vector.load %arg10[%c0_15, %c0_16] : memref<8x2xf32, #tpu.memory_space<vmem>>, vector<8x2xf32>
    %c0_17 = arith.constant 0 : index
    %c0_18 = arith.constant 0 : index
    %9 = vector.load %arg11[%c0_17, %c0_18] : memref<16x2xf32, #tpu.memory_space<vmem>>, vector<16x2xf32>
    %c0_19 = arith.constant 0 : index
    %c0_20 = arith.constant 0 : index
    %10 = vector.load %arg12[%c0_19, %c0_20] : memref<2x32xf32, #tpu.memory_space<vmem>>, vector<2x32xf32>
    %c0_21 = arith.constant 0 : index
    %c0_22 = arith.constant 0 : index
    %11 = vector.load %arg13[%c0_21, %c0_22] : memref<2x8xf32, #tpu.memory_space<vmem>>, vector<2x8xf32>
    %c0_23 = arith.constant 0 : index
    %c0_24 = arith.constant 0 : index
    %12 = vector.load %arg14[%c0_23, %c0_24] : memref<2x16xf32, #tpu.memory_space<vmem>>, vector<2x16xf32>
    %c0_25 = arith.constant 0 : index
    %c0_26 = arith.constant 0 : index
    %13 = vector.load %arg15[%c0_25, %c0_26] : memref<8x16xf32, #tpu.memory_space<vmem>>, vector<8x16xf32>
    %c0_27 = arith.constant 0 : index
    %c0_28 = arith.constant 0 : index
    %14 = vector.load %arg16[%c0_27, %c0_28] : memref<16x32xf32, #tpu.memory_space<vmem>>, vector<16x32xf32>
    %c0_29 = arith.constant 0 : index
    %c0_30 = arith.constant 0 : index
    %15 = vector.load %arg17[%c0_29, %c0_30] : memref<32x16xf32, #tpu.memory_space<vmem>>, vector<32x16xf32>
    %c0_31 = arith.constant 0 : index
    %c0_32 = arith.constant 0 : index
    %16 = vector.load %arg18[%c0_31, %c0_32] : memref<16x8xf32, #tpu.memory_space<vmem>>, vector<16x8xf32>
    %c0_33 = arith.constant 0 : index
    %c0_34 = arith.constant 0 : index
    %17 = vector.load %arg1[%c0_33, %c0_34] : memref<32x3xf32, #tpu.memory_space<vmem>>, vector<32x3xf32>
    %c1_i32 = arith.constant 1 : i32
    %18 = tpu.dynamic_rotate %17 by %c1_i32 dim 0 : vector<32x3xf32>, i32 -> vector<32x3xf32>
    %19 = vector.broadcast %0 : vector<32x1xf32> to vector<32x3xf32>
    %20 = arith.mulf %18, %19 : vector<32x3xf32>
    %c31_i32 = arith.constant 31 : i32
    %21 = tpu.dynamic_rotate %17 by %c31_i32 dim 0 : vector<32x3xf32>, i32 -> vector<32x3xf32>
    %22 = vector.broadcast %3 : vector<32x1xf32> to vector<32x3xf32>
    %23 = arith.mulf %21, %22 : vector<32x3xf32>
    %c0_35 = arith.constant 0 : index
    %c0_36 = arith.constant 0 : index
    %c0_37 = arith.constant 0 : index
    %24 = vector.load %arg25[%c0_35, %c0_36, %c0_37] : memref<3x3x32xf32, #tpu.memory_space<vmem>>, vector<1x3x32xf32>
    %25 = vector.shape_cast %24 : vector<1x3x32xf32> to vector<3x32xf32>
    %cst = arith.constant dense<0.000000e+00> : vector<32x32xf32>
    %26 = tpu.matmul %20, %25, %cst {dimension_numbers = #tpu.dot_dimension_numbers<[1], [0], [0], [1], [0, 0, 1, 1], [], []>} : vector<32x3xf32>, vector<3x32xf32>, vector<32x32xf32> -> vector<32x32xf32>
    %c1 = arith.constant 1 : index
    %c0_38 = arith.constant 0 : index
    %c0_39 = arith.constant 0 : index
    %27 = vector.load %arg25[%c1, %c0_38, %c0_39] : memref<3x3x32xf32, #tpu.memory_space<vmem>>, vector<1x3x32xf32>
    %28 = vector.shape_cast %27 : vector<1x3x32xf32> to vector<3x32xf32>
    %cst_40 = arith.constant dense<0.000000e+00> : vector<32x32xf32>
    %29 = tpu.matmul %17, %28, %cst_40 {dimension_numbers = #tpu.dot_dimension_numbers<[1], [0], [0], [1], [0, 0, 1, 1], [], []>} : vector<32x3xf32>, vector<3x32xf32>, vector<32x32xf32> -> vector<32x32xf32>
    %30 = arith.addf %26, %29 : vector<32x32xf32>
    %c2 = arith.constant 2 : index
    %c0_41 = arith.constant 0 : index
    %c0_42 = arith.constant 0 : index
    %31 = vector.load %arg25[%c2, %c0_41, %c0_42] : memref<3x3x32xf32, #tpu.memory_space<vmem>>, vector<1x3x32xf32>
    %32 = vector.shape_cast %31 : vector<1x3x32xf32> to vector<3x32xf32>
    %cst_43 = arith.constant dense<0.000000e+00> : vector<32x32xf32>
    %33 = tpu.matmul %23, %32, %cst_43 {dimension_numbers = #tpu.dot_dimension_numbers<[1], [0], [0], [1], [0, 0, 1, 1], [], []>} : vector<32x3xf32>, vector<3x32xf32>, vector<32x32xf32> -> vector<32x32xf32>
    %34 = arith.addf %30, %33 : vector<32x32xf32>
    %cst_44 = arith.constant dense<0.000000e+00> : vector<2x32xf32>
    %35 = tpu.matmul %10, %34, %cst_44 {dimension_numbers = #tpu.dot_dimension_numbers<[1], [0], [0], [1], [0, 0, 1, 1], [], []>} : vector<2x32xf32>, vector<32x32xf32>, vector<2x32xf32> -> vector<2x32xf32>
    %36 = arith.mulf %34, %34 : vector<32x32xf32>
    %cst_45 = arith.constant dense<0.000000e+00> : vector<2x32xf32>
    %37 = tpu.matmul %10, %36, %cst_45 {dimension_numbers = #tpu.dot_dimension_numbers<[1], [0], [0], [1], [0, 0, 1, 1], [], []>} : vector<2x32xf32>, vector<32x32xf32>, vector<2x32xf32> -> vector<2x32xf32>
    %cst_46 = arith.constant dense<0.000000e+00> : vector<2xf32>
    %38 = vector.multi_reduction <add>, %35, %cst_46 [1] : vector<2x32xf32> to vector<2xf32>
    %39 = vector.shape_cast %38 : vector<2xf32> to vector<2x1xf32>
    %cst_47 = arith.constant 0.001953125 : f32
    %40 = vector.broadcast %cst_47 : f32 to vector<2x1xf32>
    %41 = arith.mulf %39, %40 : vector<2x1xf32>
    %cst_48 = arith.constant dense<0.000000e+00> : vector<2xf32>
    %42 = vector.multi_reduction <add>, %37, %cst_48 [1] : vector<2x32xf32> to vector<2xf32>
    %43 = vector.shape_cast %42 : vector<2xf32> to vector<2x1xf32>
    %cst_49 = arith.constant 0.001953125 : f32
    %44 = vector.broadcast %cst_49 : f32 to vector<2x1xf32>
    %45 = arith.mulf %43, %44 : vector<2x1xf32>
    %46 = arith.mulf %41, %41 : vector<2x1xf32>
    %47 = arith.subf %45, %46 : vector<2x1xf32>
    %cst_50 = arith.constant 9.99999974E-6 : f32
    %48 = vector.broadcast %cst_50 : f32 to vector<2x1xf32>
    %49 = arith.addf %47, %48 : vector<2x1xf32>
    %50 = math.rsqrt %49 : vector<2x1xf32>
    %cst_51 = arith.constant dense<0.000000e+00> : vector<32x1xf32>
    %51 = tpu.matmul %7, %41, %cst_51 {dimension_numbers = #tpu.dot_dimension_numbers<[1], [0], [0], [1], [0, 0, 1, 1], [], []>} : vector<32x2xf32>, vector<2x1xf32>, vector<32x1xf32> -> vector<32x1xf32>
    %cst_52 = arith.constant dense<0.000000e+00> : vector<32x1xf32>
    %52 = tpu.matmul %7, %50, %cst_52 {dimension_numbers = #tpu.dot_dimension_numbers<[1], [0], [0], [1], [0, 0, 1, 1], [], []>} : vector<32x2xf32>, vector<2x1xf32>, vector<32x1xf32> -> vector<32x1xf32>
    %53 = vector.broadcast %51 : vector<32x1xf32> to vector<32x32xf32>
    %54 = arith.subf %34, %53 : vector<32x32xf32>
    %55 = vector.broadcast %52 : vector<32x1xf32> to vector<32x32xf32>
    %56 = arith.mulf %54, %55 : vector<32x32xf32>
    %c0_53 = arith.constant 0 : index
    %c0_54 = arith.constant 0 : index
    %57 = vector.load %arg22[%c0_53, %c0_54] : memref<1x32xf32, #tpu.memory_space<vmem>>, vector<1x32xf32>
    %58 = vector.broadcast %57 : vector<1x32xf32> to vector<32x32xf32>
    %59 = arith.mulf %56, %58 : vector<32x32xf32>
    %c0_55 = arith.constant 0 : index
    %c0_56 = arith.constant 0 : index
    %60 = vector.load %arg19[%c0_55, %c0_56] : memref<1x32xf32, #tpu.memory_space<vmem>>, vector<1x32xf32>
    %61 = vector.broadcast %60 : vector<1x32xf32> to vector<32x32xf32>
    %62 = arith.addf %59, %61 : vector<32x32xf32>
    %cst_57 = arith.constant 0.000000e+00 : f32
    %63 = vector.broadcast %cst_57 : f32 to vector<32x32xf32>
    %64 = arith.maximumf %62, %63 : vector<32x32xf32>
    %c1_i32_58 = arith.constant 1 : i32
    %65 = tpu.dynamic_rotate %64 by %c1_i32_58 dim 0 : vector<32x32xf32>, i32 -> vector<32x32xf32>
    %66 = vector.broadcast %0 : vector<32x1xf32> to vector<32x32xf32>
    %67 = arith.mulf %65, %66 : vector<32x32xf32>
    %c31_i32_59 = arith.constant 31 : i32
    %68 = tpu.dynamic_rotate %64 by %c31_i32_59 dim 0 : vector<32x32xf32>, i32 -> vector<32x32xf32>
    %69 = vector.broadcast %3 : vector<32x1xf32> to vector<32x32xf32>
    %70 = arith.mulf %68, %69 : vector<32x32xf32>
    %c0_60 = arith.constant 0 : index
    %c0_61 = arith.constant 0 : index
    %c0_62 = arith.constant 0 : index
    %71 = vector.load %arg26[%c0_60, %c0_61, %c0_62] : memref<3x32x32xf32, #tpu.memory_space<vmem>>, vector<1x32x32xf32>
    %72 = vector.shape_cast %71 : vector<1x32x32xf32> to vector<32x32xf32>
    %cst_63 = arith.constant dense<0.000000e+00> : vector<32x32xf32>
    %73 = tpu.matmul %67, %72, %cst_63 {dimension_numbers = #tpu.dot_dimension_numbers<[1], [0], [0], [1], [0, 0, 1, 1], [], []>} : vector<32x32xf32>, vector<32x32xf32>, vector<32x32xf32> -> vector<32x32xf32>
    %c1_64 = arith.constant 1 : index
    %c0_65 = arith.constant 0 : index
    %c0_66 = arith.constant 0 : index
    %74 = vector.load %arg26[%c1_64, %c0_65, %c0_66] : memref<3x32x32xf32, #tpu.memory_space<vmem>>, vector<1x32x32xf32>
    %75 = vector.shape_cast %74 : vector<1x32x32xf32> to vector<32x32xf32>
    %cst_67 = arith.constant dense<0.000000e+00> : vector<32x32xf32>
    %76 = tpu.matmul %64, %75, %cst_67 {dimension_numbers = #tpu.dot_dimension_numbers<[1], [0], [0], [1], [0, 0, 1, 1], [], []>} : vector<32x32xf32>, vector<32x32xf32>, vector<32x32xf32> -> vector<32x32xf32>
    %77 = arith.addf %73, %76 : vector<32x32xf32>
    %c2_68 = arith.constant 2 : index
    %c0_69 = arith.constant 0 : index
    %c0_70 = arith.constant 0 : index
    %78 = vector.load %arg26[%c2_68, %c0_69, %c0_70] : memref<3x32x32xf32, #tpu.memory_space<vmem>>, vector<1x32x32xf32>
    %79 = vector.shape_cast %78 : vector<1x32x32xf32> to vector<32x32xf32>
    %cst_71 = arith.constant dense<0.000000e+00> : vector<32x32xf32>
    %80 = tpu.matmul %70, %79, %cst_71 {dimension_numbers = #tpu.dot_dimension_numbers<[1], [0], [0], [1], [0, 0, 1, 1], [], []>} : vector<32x32xf32>, vector<32x32xf32>, vector<32x32xf32> -> vector<32x32xf32>
    %81 = arith.addf %77, %80 : vector<32x32xf32>
    %cst_72 = arith.constant dense<0.000000e+00> : vector<2x32xf32>
    %82 = tpu.matmul %10, %81, %cst_72 {dimension_numbers = #tpu.dot_dimension_numbers<[1], [0], [0], [1], [0, 0, 1, 1], [], []>} : vector<2x32xf32>, vector<32x32xf32>, vector<2x32xf32> -> vector<2x32xf32>
    %83 = arith.mulf %81, %81 : vector<32x32xf32>
    %cst_73 = arith.constant dense<0.000000e+00> : vector<2x32xf32>
    %84 = tpu.matmul %10, %83, %cst_73 {dimension_numbers = #tpu.dot_dimension_numbers<[1], [0], [0], [1], [0, 0, 1, 1], [], []>} : vector<2x32xf32>, vector<32x32xf32>, vector<2x32xf32> -> vector<2x32xf32>
    %cst_74 = arith.constant dense<0.000000e+00> : vector<2xf32>
    %85 = vector.multi_reduction <add>, %82, %cst_74 [1] : vector<2x32xf32> to vector<2xf32>
    %86 = vector.shape_cast %85 : vector<2xf32> to vector<2x1xf32>
    %cst_75 = arith.constant 0.001953125 : f32
    %87 = vector.broadcast %cst_75 : f32 to vector<2x1xf32>
    %88 = arith.mulf %86, %87 : vector<2x1xf32>
    %cst_76 = arith.constant dense<0.000000e+00> : vector<2xf32>
    %89 = vector.multi_reduction <add>, %84, %cst_76 [1] : vector<2x32xf32> to vector<2xf32>
    %90 = vector.shape_cast %89 : vector<2xf32> to vector<2x1xf32>
    %cst_77 = arith.constant 0.001953125 : f32
    %91 = vector.broadcast %cst_77 : f32 to vector<2x1xf32>
    %92 = arith.mulf %90, %91 : vector<2x1xf32>
    %93 = arith.mulf %88, %88 : vector<2x1xf32>
    %94 = arith.subf %92, %93 : vector<2x1xf32>
    %cst_78 = arith.constant 9.99999974E-6 : f32
    %95 = vector.broadcast %cst_78 : f32 to vector<2x1xf32>
    %96 = arith.addf %94, %95 : vector<2x1xf32>
    %97 = math.rsqrt %96 : vector<2x1xf32>
    %cst_79 = arith.constant dense<0.000000e+00> : vector<32x1xf32>
    %98 = tpu.matmul %7, %88, %cst_79 {dimension_numbers = #tpu.dot_dimension_numbers<[1], [0], [0], [1], [0, 0, 1, 1], [], []>} : vector<32x2xf32>, vector<2x1xf32>, vector<32x1xf32> -> vector<32x1xf32>
    %cst_80 = arith.constant dense<0.000000e+00> : vector<32x1xf32>
    %99 = tpu.matmul %7, %97, %cst_80 {dimension_numbers = #tpu.dot_dimension_numbers<[1], [0], [0], [1], [0, 0, 1, 1], [], []>} : vector<32x2xf32>, vector<2x1xf32>, vector<32x1xf32> -> vector<32x1xf32>
    %100 = vector.broadcast %98 : vector<32x1xf32> to vector<32x32xf32>
    %101 = arith.subf %81, %100 : vector<32x32xf32>
    %102 = vector.broadcast %99 : vector<32x1xf32> to vector<32x32xf32>
    %103 = arith.mulf %101, %102 : vector<32x32xf32>
    %c0_81 = arith.constant 0 : index
    %c0_82 = arith.constant 0 : index
    %104 = vector.load %arg23[%c0_81, %c0_82] : memref<1x32xf32, #tpu.memory_space<vmem>>, vector<1x32xf32>
    %105 = vector.broadcast %104 : vector<1x32xf32> to vector<32x32xf32>
    %106 = arith.mulf %103, %105 : vector<32x32xf32>
    %c0_83 = arith.constant 0 : index
    %c0_84 = arith.constant 0 : index
    %107 = vector.load %arg20[%c0_83, %c0_84] : memref<1x32xf32, #tpu.memory_space<vmem>>, vector<1x32xf32>
    %108 = vector.broadcast %107 : vector<1x32xf32> to vector<32x32xf32>
    %109 = arith.addf %106, %108 : vector<32x32xf32>
    %c0_85 = arith.constant 0 : index
    %c0_86 = arith.constant 0 : index
    %110 = vector.load %arg27[%c0_85, %c0_86] : memref<3x32xf32, #tpu.memory_space<vmem>>, vector<3x32xf32>
    %cst_87 = arith.constant dense<0.000000e+00> : vector<32x32xf32>
    %111 = tpu.matmul %17, %110, %cst_87 {dimension_numbers = #tpu.dot_dimension_numbers<[1], [0], [0], [1], [0, 0, 1, 1], [], []>} : vector<32x3xf32>, vector<3x32xf32>, vector<32x32xf32> -> vector<32x32xf32>
    %cst_88 = arith.constant dense<0.000000e+00> : vector<2x32xf32>
    %112 = tpu.matmul %10, %111, %cst_88 {dimension_numbers = #tpu.dot_dimension_numbers<[1], [0], [0], [1], [0, 0, 1, 1], [], []>} : vector<2x32xf32>, vector<32x32xf32>, vector<2x32xf32> -> vector<2x32xf32>
    %113 = arith.mulf %111, %111 : vector<32x32xf32>
    %cst_89 = arith.constant dense<0.000000e+00> : vector<2x32xf32>
    %114 = tpu.matmul %10, %113, %cst_89 {dimension_numbers = #tpu.dot_dimension_numbers<[1], [0], [0], [1], [0, 0, 1, 1], [], []>} : vector<2x32xf32>, vector<32x32xf32>, vector<2x32xf32> -> vector<2x32xf32>
    %cst_90 = arith.constant dense<0.000000e+00> : vector<2xf32>
    %115 = vector.multi_reduction <add>, %112, %cst_90 [1] : vector<2x32xf32> to vector<2xf32>
    %116 = vector.shape_cast %115 : vector<2xf32> to vector<2x1xf32>
    %cst_91 = arith.constant 0.001953125 : f32
    %117 = vector.broadcast %cst_91 : f32 to vector<2x1xf32>
    %118 = arith.mulf %116, %117 : vector<2x1xf32>
    %cst_92 = arith.constant dense<0.000000e+00> : vector<2xf32>
    %119 = vector.multi_reduction <add>, %114, %cst_92 [1] : vector<2x32xf32> to vector<2xf32>
    %120 = vector.shape_cast %119 : vector<2xf32> to vector<2x1xf32>
    %cst_93 = arith.constant 0.001953125 : f32
    %121 = vector.broadcast %cst_93 : f32 to vector<2x1xf32>
    %122 = arith.mulf %120, %121 : vector<2x1xf32>
    %123 = arith.mulf %118, %118 : vector<2x1xf32>
    %124 = arith.subf %122, %123 : vector<2x1xf32>
    %cst_94 = arith.constant 9.99999974E-6 : f32
    %125 = vector.broadcast %cst_94 : f32 to vector<2x1xf32>
    %126 = arith.addf %124, %125 : vector<2x1xf32>
    %127 = math.rsqrt %126 : vector<2x1xf32>
    %cst_95 = arith.constant dense<0.000000e+00> : vector<32x1xf32>
    %128 = tpu.matmul %7, %118, %cst_95 {dimension_numbers = #tpu.dot_dimension_numbers<[1], [0], [0], [1], [0, 0, 1, 1], [], []>} : vector<32x2xf32>, vector<2x1xf32>, vector<32x1xf32> -> vector<32x1xf32>
    %cst_96 = arith.constant dense<0.000000e+00> : vector<32x1xf32>
    %129 = tpu.matmul %7, %127, %cst_96 {dimension_numbers = #tpu.dot_dimension_numbers<[1], [0], [0], [1], [0, 0, 1, 1], [], []>} : vector<32x2xf32>, vector<2x1xf32>, vector<32x1xf32> -> vector<32x1xf32>
    %130 = vector.broadcast %128 : vector<32x1xf32> to vector<32x32xf32>
    %131 = arith.subf %111, %130 : vector<32x32xf32>
    %132 = vector.broadcast %129 : vector<32x1xf32> to vector<32x32xf32>
    %133 = arith.mulf %131, %132 : vector<32x32xf32>
    %c0_97 = arith.constant 0 : index
    %c0_98 = arith.constant 0 : index
    %134 = vector.load %arg24[%c0_97, %c0_98] : memref<1x32xf32, #tpu.memory_space<vmem>>, vector<1x32xf32>
    %135 = vector.broadcast %134 : vector<1x32xf32> to vector<32x32xf32>
    %136 = arith.mulf %133, %135 : vector<32x32xf32>
    %c0_99 = arith.constant 0 : index
    %c0_100 = arith.constant 0 : index
    %137 = vector.load %arg21[%c0_99, %c0_100] : memref<1x32xf32, #tpu.memory_space<vmem>>, vector<1x32xf32>
    %138 = vector.broadcast %137 : vector<1x32xf32> to vector<32x32xf32>
    %139 = arith.addf %136, %138 : vector<32x32xf32>
    %140 = arith.addf %109, %139 : vector<32x32xf32>
    %cst_101 = arith.constant 0.000000e+00 : f32
    %141 = vector.broadcast %cst_101 : f32 to vector<32x32xf32>
    %142 = arith.maximumf %140, %141 : vector<32x32xf32>
    %c1_i32_102 = arith.constant 1 : i32
    %143 = tpu.dynamic_rotate %142 by %c1_i32_102 dim 0 : vector<32x32xf32>, i32 -> vector<32x32xf32>
    %144 = vector.broadcast %0 : vector<32x1xf32> to vector<32x32xf32>
    %145 = arith.mulf %143, %144 : vector<32x32xf32>
    %c31_i32_103 = arith.constant 31 : i32
    %146 = tpu.dynamic_rotate %142 by %c31_i32_103 dim 0 : vector<32x32xf32>, i32 -> vector<32x32xf32>
    %147 = vector.broadcast %3 : vector<32x1xf32> to vector<32x32xf32>
    %148 = arith.mulf %146, %147 : vector<32x32xf32>
    %c0_104 = arith.constant 0 : index
    %c0_105 = arith.constant 0 : index
    %c0_106 = arith.constant 0 : index
    %149 = vector.load %arg32[%c0_104, %c0_105, %c0_106] : memref<3x32x32xf32, #tpu.memory_space<vmem>>, vector<1x32x32xf32>
    %150 = vector.shape_cast %149 : vector<1x32x32xf32> to vector<32x32xf32>
    %cst_107 = arith.constant dense<0.000000e+00> : vector<32x32xf32>
    %151 = tpu.matmul %145, %150, %cst_107 {dimension_numbers = #tpu.dot_dimension_numbers<[1], [0], [0], [1], [0, 0, 1, 1], [], []>} : vector<32x32xf32>, vector<32x32xf32>, vector<32x32xf32> -> vector<32x32xf32>
    %c1_108 = arith.constant 1 : index
    %c0_109 = arith.constant 0 : index
    %c0_110 = arith.constant 0 : index
    %152 = vector.load %arg32[%c1_108, %c0_109, %c0_110] : memref<3x32x32xf32, #tpu.memory_space<vmem>>, vector<1x32x32xf32>
    %153 = vector.shape_cast %152 : vector<1x32x32xf32> to vector<32x32xf32>
    %cst_111 = arith.constant dense<0.000000e+00> : vector<32x32xf32>
    %154 = tpu.matmul %142, %153, %cst_111 {dimension_numbers = #tpu.dot_dimension_numbers<[1], [0], [0], [1], [0, 0, 1, 1], [], []>} : vector<32x32xf32>, vector<32x32xf32>, vector<32x32xf32> -> vector<32x32xf32>
    %155 = arith.addf %151, %154 : vector<32x32xf32>
    %c2_112 = arith.constant 2 : index
    %c0_113 = arith.constant 0 : index
    %c0_114 = arith.constant 0 : index
    %156 = vector.load %arg32[%c2_112, %c0_113, %c0_114] : memref<3x32x32xf32, #tpu.memory_space<vmem>>, vector<1x32x32xf32>
    %157 = vector.shape_cast %156 : vector<1x32x32xf32> to vector<32x32xf32>
    %cst_115 = arith.constant dense<0.000000e+00> : vector<32x32xf32>
    %158 = tpu.matmul %148, %157, %cst_115 {dimension_numbers = #tpu.dot_dimension_numbers<[1], [0], [0], [1], [0, 0, 1, 1], [], []>} : vector<32x32xf32>, vector<32x32xf32>, vector<32x32xf32> -> vector<32x32xf32>
    %159 = arith.addf %155, %158 : vector<32x32xf32>
    %cst_116 = arith.constant dense<0.000000e+00> : vector<2x32xf32>
    %160 = tpu.matmul %10, %159, %cst_116 {dimension_numbers = #tpu.dot_dimension_numbers<[1], [0], [0], [1], [0, 0, 1, 1], [], []>} : vector<2x32xf32>, vector<32x32xf32>, vector<2x32xf32> -> vector<2x32xf32>
    %161 = arith.mulf %159, %159 : vector<32x32xf32>
    %cst_117 = arith.constant dense<0.000000e+00> : vector<2x32xf32>
    %162 = tpu.matmul %10, %161, %cst_117 {dimension_numbers = #tpu.dot_dimension_numbers<[1], [0], [0], [1], [0, 0, 1, 1], [], []>} : vector<2x32xf32>, vector<32x32xf32>, vector<2x32xf32> -> vector<2x32xf32>
    %cst_118 = arith.constant dense<0.000000e+00> : vector<2xf32>
    %163 = vector.multi_reduction <add>, %160, %cst_118 [1] : vector<2x32xf32> to vector<2xf32>
    %164 = vector.shape_cast %163 : vector<2xf32> to vector<2x1xf32>
    %cst_119 = arith.constant 0.001953125 : f32
    %165 = vector.broadcast %cst_119 : f32 to vector<2x1xf32>
    %166 = arith.mulf %164, %165 : vector<2x1xf32>
    %cst_120 = arith.constant dense<0.000000e+00> : vector<2xf32>
    %167 = vector.multi_reduction <add>, %162, %cst_120 [1] : vector<2x32xf32> to vector<2xf32>
    %168 = vector.shape_cast %167 : vector<2xf32> to vector<2x1xf32>
    %cst_121 = arith.constant 0.001953125 : f32
    %169 = vector.broadcast %cst_121 : f32 to vector<2x1xf32>
    %170 = arith.mulf %168, %169 : vector<2x1xf32>
    %171 = arith.mulf %166, %166 : vector<2x1xf32>
    %172 = arith.subf %170, %171 : vector<2x1xf32>
    %cst_122 = arith.constant 9.99999974E-6 : f32
    %173 = vector.broadcast %cst_122 : f32 to vector<2x1xf32>
    %174 = arith.addf %172, %173 : vector<2x1xf32>
    %175 = math.rsqrt %174 : vector<2x1xf32>
    %cst_123 = arith.constant dense<0.000000e+00> : vector<32x1xf32>
    %176 = tpu.matmul %7, %166, %cst_123 {dimension_numbers = #tpu.dot_dimension_numbers<[1], [0], [0], [1], [0, 0, 1, 1], [], []>} : vector<32x2xf32>, vector<2x1xf32>, vector<32x1xf32> -> vector<32x1xf32>
    %cst_124 = arith.constant dense<0.000000e+00> : vector<32x1xf32>
    %177 = tpu.matmul %7, %175, %cst_124 {dimension_numbers = #tpu.dot_dimension_numbers<[1], [0], [0], [1], [0, 0, 1, 1], [], []>} : vector<32x2xf32>, vector<2x1xf32>, vector<32x1xf32> -> vector<32x1xf32>
    %178 = vector.broadcast %176 : vector<32x1xf32> to vector<32x32xf32>
    %179 = arith.subf %159, %178 : vector<32x32xf32>
    %180 = vector.broadcast %177 : vector<32x1xf32> to vector<32x32xf32>
    %181 = arith.mulf %179, %180 : vector<32x32xf32>
    %c0_125 = arith.constant 0 : index
    %c0_126 = arith.constant 0 : index
    %182 = vector.load %arg30[%c0_125, %c0_126] : memref<1x32xf32, #tpu.memory_space<vmem>>, vector<1x32xf32>
    %183 = vector.broadcast %182 : vector<1x32xf32> to vector<32x32xf32>
    %184 = arith.mulf %181, %183 : vector<32x32xf32>
    %c0_127 = arith.constant 0 : index
    %c0_128 = arith.constant 0 : index
    %185 = vector.load %arg28[%c0_127, %c0_128] : memref<1x32xf32, #tpu.memory_space<vmem>>, vector<1x32xf32>
    %186 = vector.broadcast %185 : vector<1x32xf32> to vector<32x32xf32>
    %187 = arith.addf %184, %186 : vector<32x32xf32>
    %cst_129 = arith.constant 0.000000e+00 : f32
    %188 = vector.broadcast %cst_129 : f32 to vector<32x32xf32>
    %189 = arith.maximumf %187, %188 : vector<32x32xf32>
    %c1_i32_130 = arith.constant 1 : i32
    %190 = tpu.dynamic_rotate %189 by %c1_i32_130 dim 0 : vector<32x32xf32>, i32 -> vector<32x32xf32>
    %191 = vector.broadcast %0 : vector<32x1xf32> to vector<32x32xf32>
    %192 = arith.mulf %190, %191 : vector<32x32xf32>
    %c31_i32_131 = arith.constant 31 : i32
    %193 = tpu.dynamic_rotate %189 by %c31_i32_131 dim 0 : vector<32x32xf32>, i32 -> vector<32x32xf32>
    %194 = vector.broadcast %3 : vector<32x1xf32> to vector<32x32xf32>
    %195 = arith.mulf %193, %194 : vector<32x32xf32>
    %c0_132 = arith.constant 0 : index
    %c0_133 = arith.constant 0 : index
    %c0_134 = arith.constant 0 : index
    %196 = vector.load %arg33[%c0_132, %c0_133, %c0_134] : memref<3x32x32xf32, #tpu.memory_space<vmem>>, vector<1x32x32xf32>
    %197 = vector.shape_cast %196 : vector<1x32x32xf32> to vector<32x32xf32>
    %cst_135 = arith.constant dense<0.000000e+00> : vector<32x32xf32>
    %198 = tpu.matmul %192, %197, %cst_135 {dimension_numbers = #tpu.dot_dimension_numbers<[1], [0], [0], [1], [0, 0, 1, 1], [], []>} : vector<32x32xf32>, vector<32x32xf32>, vector<32x32xf32> -> vector<32x32xf32>
    %c1_136 = arith.constant 1 : index
    %c0_137 = arith.constant 0 : index
    %c0_138 = arith.constant 0 : index
    %199 = vector.load %arg33[%c1_136, %c0_137, %c0_138] : memref<3x32x32xf32, #tpu.memory_space<vmem>>, vector<1x32x32xf32>
    %200 = vector.shape_cast %199 : vector<1x32x32xf32> to vector<32x32xf32>
    %cst_139 = arith.constant dense<0.000000e+00> : vector<32x32xf32>
    %201 = tpu.matmul %189, %200, %cst_139 {dimension_numbers = #tpu.dot_dimension_numbers<[1], [0], [0], [1], [0, 0, 1, 1], [], []>} : vector<32x32xf32>, vector<32x32xf32>, vector<32x32xf32> -> vector<32x32xf32>
    %202 = arith.addf %198, %201 : vector<32x32xf32>
    %c2_140 = arith.constant 2 : index
    %c0_141 = arith.constant 0 : index
    %c0_142 = arith.constant 0 : index
    %203 = vector.load %arg33[%c2_140, %c0_141, %c0_142] : memref<3x32x32xf32, #tpu.memory_space<vmem>>, vector<1x32x32xf32>
    %204 = vector.shape_cast %203 : vector<1x32x32xf32> to vector<32x32xf32>
    %cst_143 = arith.constant dense<0.000000e+00> : vector<32x32xf32>
    %205 = tpu.matmul %195, %204, %cst_143 {dimension_numbers = #tpu.dot_dimension_numbers<[1], [0], [0], [1], [0, 0, 1, 1], [], []>} : vector<32x32xf32>, vector<32x32xf32>, vector<32x32xf32> -> vector<32x32xf32>
    %206 = arith.addf %202, %205 : vector<32x32xf32>
    %cst_144 = arith.constant dense<0.000000e+00> : vector<2x32xf32>
    %207 = tpu.matmul %10, %206, %cst_144 {dimension_numbers = #tpu.dot_dimension_numbers<[1], [0], [0], [1], [0, 0, 1, 1], [], []>} : vector<2x32xf32>, vector<32x32xf32>, vector<2x32xf32> -> vector<2x32xf32>
    %208 = arith.mulf %206, %206 : vector<32x32xf32>
    %cst_145 = arith.constant dense<0.000000e+00> : vector<2x32xf32>
    %209 = tpu.matmul %10, %208, %cst_145 {dimension_numbers = #tpu.dot_dimension_numbers<[1], [0], [0], [1], [0, 0, 1, 1], [], []>} : vector<2x32xf32>, vector<32x32xf32>, vector<2x32xf32> -> vector<2x32xf32>
    %cst_146 = arith.constant dense<0.000000e+00> : vector<2xf32>
    %210 = vector.multi_reduction <add>, %207, %cst_146 [1] : vector<2x32xf32> to vector<2xf32>
    %211 = vector.shape_cast %210 : vector<2xf32> to vector<2x1xf32>
    %cst_147 = arith.constant 0.001953125 : f32
    %212 = vector.broadcast %cst_147 : f32 to vector<2x1xf32>
    %213 = arith.mulf %211, %212 : vector<2x1xf32>
    %cst_148 = arith.constant dense<0.000000e+00> : vector<2xf32>
    %214 = vector.multi_reduction <add>, %209, %cst_148 [1] : vector<2x32xf32> to vector<2xf32>
    %215 = vector.shape_cast %214 : vector<2xf32> to vector<2x1xf32>
    %cst_149 = arith.constant 0.001953125 : f32
    %216 = vector.broadcast %cst_149 : f32 to vector<2x1xf32>
    %217 = arith.mulf %215, %216 : vector<2x1xf32>
    %218 = arith.mulf %213, %213 : vector<2x1xf32>
    %219 = arith.subf %217, %218 : vector<2x1xf32>
    %cst_150 = arith.constant 9.99999974E-6 : f32
    %220 = vector.broadcast %cst_150 : f32 to vector<2x1xf32>
    %221 = arith.addf %219, %220 : vector<2x1xf32>
    %222 = math.rsqrt %221 : vector<2x1xf32>
    %cst_151 = arith.constant dense<0.000000e+00> : vector<32x1xf32>
    %223 = tpu.matmul %7, %213, %cst_151 {dimension_numbers = #tpu.dot_dimension_numbers<[1], [0], [0], [1], [0, 0, 1, 1], [], []>} : vector<32x2xf32>, vector<2x1xf32>, vector<32x1xf32> -> vector<32x1xf32>
    %cst_152 = arith.constant dense<0.000000e+00> : vector<32x1xf32>
    %224 = tpu.matmul %7, %222, %cst_152 {dimension_numbers = #tpu.dot_dimension_numbers<[1], [0], [0], [1], [0, 0, 1, 1], [], []>} : vector<32x2xf32>, vector<2x1xf32>, vector<32x1xf32> -> vector<32x1xf32>
    %225 = vector.broadcast %223 : vector<32x1xf32> to vector<32x32xf32>
    %226 = arith.subf %206, %225 : vector<32x32xf32>
    %227 = vector.broadcast %224 : vector<32x1xf32> to vector<32x32xf32>
    %228 = arith.mulf %226, %227 : vector<32x32xf32>
    %c0_153 = arith.constant 0 : index
    %c0_154 = arith.constant 0 : index
    %229 = vector.load %arg31[%c0_153, %c0_154] : memref<1x32xf32, #tpu.memory_space<vmem>>, vector<1x32xf32>
    %230 = vector.broadcast %229 : vector<1x32xf32> to vector<32x32xf32>
    %231 = arith.mulf %228, %230 : vector<32x32xf32>
    %c0_155 = arith.constant 0 : index
    %c0_156 = arith.constant 0 : index
    %232 = vector.load %arg29[%c0_155, %c0_156] : memref<1x32xf32, #tpu.memory_space<vmem>>, vector<1x32xf32>
    %233 = vector.broadcast %232 : vector<1x32xf32> to vector<32x32xf32>
    %234 = arith.addf %231, %233 : vector<32x32xf32>
    %235 = arith.addf %234, %142 : vector<32x32xf32>
    %cst_157 = arith.constant 0.000000e+00 : f32
    %236 = vector.broadcast %cst_157 : f32 to vector<32x32xf32>
    %237 = arith.maximumf %235, %236 : vector<32x32xf32>
    %c1_i32_158 = arith.constant 1 : i32
    %238 = tpu.dynamic_rotate %237 by %c1_i32_158 dim 0 : vector<32x32xf32>, i32 -> vector<32x32xf32>
    %239 = vector.broadcast %0 : vector<32x1xf32> to vector<32x32xf32>
    %240 = arith.mulf %238, %239 : vector<32x32xf32>
    %c31_i32_159 = arith.constant 31 : i32
    %241 = tpu.dynamic_rotate %237 by %c31_i32_159 dim 0 : vector<32x32xf32>, i32 -> vector<32x32xf32>
    %242 = vector.broadcast %3 : vector<32x1xf32> to vector<32x32xf32>
    %243 = arith.mulf %241, %242 : vector<32x32xf32>
    %c0_160 = arith.constant 0 : index
    %c0_161 = arith.constant 0 : index
    %c0_162 = arith.constant 0 : index
    %244 = vector.load %arg40[%c0_160, %c0_161, %c0_162] : memref<3x32x64xf32, #tpu.memory_space<vmem>>, vector<1x32x64xf32>
    %245 = vector.shape_cast %244 : vector<1x32x64xf32> to vector<32x64xf32>
    %cst_163 = arith.constant dense<0.000000e+00> : vector<32x64xf32>
    %246 = tpu.matmul %240, %245, %cst_163 {dimension_numbers = #tpu.dot_dimension_numbers<[1], [0], [0], [1], [0, 0, 1, 1], [], []>} : vector<32x32xf32>, vector<32x64xf32>, vector<32x64xf32> -> vector<32x64xf32>
    %c1_164 = arith.constant 1 : index
    %c0_165 = arith.constant 0 : index
    %c0_166 = arith.constant 0 : index
    %247 = vector.load %arg40[%c1_164, %c0_165, %c0_166] : memref<3x32x64xf32, #tpu.memory_space<vmem>>, vector<1x32x64xf32>
    %248 = vector.shape_cast %247 : vector<1x32x64xf32> to vector<32x64xf32>
    %cst_167 = arith.constant dense<0.000000e+00> : vector<32x64xf32>
    %249 = tpu.matmul %237, %248, %cst_167 {dimension_numbers = #tpu.dot_dimension_numbers<[1], [0], [0], [1], [0, 0, 1, 1], [], []>} : vector<32x32xf32>, vector<32x64xf32>, vector<32x64xf32> -> vector<32x64xf32>
    %250 = arith.addf %246, %249 : vector<32x64xf32>
    %c2_168 = arith.constant 2 : index
    %c0_169 = arith.constant 0 : index
    %c0_170 = arith.constant 0 : index
    %251 = vector.load %arg40[%c2_168, %c0_169, %c0_170] : memref<3x32x64xf32, #tpu.memory_space<vmem>>, vector<1x32x64xf32>
    %252 = vector.shape_cast %251 : vector<1x32x64xf32> to vector<32x64xf32>
    %cst_171 = arith.constant dense<0.000000e+00> : vector<32x64xf32>
    %253 = tpu.matmul %243, %252, %cst_171 {dimension_numbers = #tpu.dot_dimension_numbers<[1], [0], [0], [1], [0, 0, 1, 1], [], []>} : vector<32x32xf32>, vector<32x64xf32>, vector<32x64xf32> -> vector<32x64xf32>
    %254 = arith.addf %250, %253 : vector<32x64xf32>
    %cst_172 = arith.constant dense<0.000000e+00> : vector<16x64xf32>
    %255 = tpu.matmul %14, %254, %cst_172 {dimension_numbers = #tpu.dot_dimension_numbers<[1], [0], [0], [1], [0, 0, 1, 1], [], []>} : vector<16x32xf32>, vector<32x64xf32>, vector<16x64xf32> -> vector<16x64xf32>
    %cst_173 = arith.constant dense<0.000000e+00> : vector<2x64xf32>
    %256 = tpu.matmul %12, %255, %cst_173 {dimension_numbers = #tpu.dot_dimension_numbers<[1], [0], [0], [1], [0, 0, 1, 1], [], []>} : vector<2x16xf32>, vector<16x64xf32>, vector<2x64xf32> -> vector<2x64xf32>
    %257 = arith.mulf %255, %255 : vector<16x64xf32>
    %cst_174 = arith.constant dense<0.000000e+00> : vector<2x64xf32>
    %258 = tpu.matmul %12, %257, %cst_174 {dimension_numbers = #tpu.dot_dimension_numbers<[1], [0], [0], [1], [0, 0, 1, 1], [], []>} : vector<2x16xf32>, vector<16x64xf32>, vector<2x64xf32> -> vector<2x64xf32>
    %cst_175 = arith.constant dense<0.000000e+00> : vector<2xf32>
    %259 = vector.multi_reduction <add>, %256, %cst_175 [1] : vector<2x64xf32> to vector<2xf32>
    %260 = vector.shape_cast %259 : vector<2xf32> to vector<2x1xf32>
    %cst_176 = arith.constant 0.001953125 : f32
    %261 = vector.broadcast %cst_176 : f32 to vector<2x1xf32>
    %262 = arith.mulf %260, %261 : vector<2x1xf32>
    %cst_177 = arith.constant dense<0.000000e+00> : vector<2xf32>
    %263 = vector.multi_reduction <add>, %258, %cst_177 [1] : vector<2x64xf32> to vector<2xf32>
    %264 = vector.shape_cast %263 : vector<2xf32> to vector<2x1xf32>
    %cst_178 = arith.constant 0.001953125 : f32
    %265 = vector.broadcast %cst_178 : f32 to vector<2x1xf32>
    %266 = arith.mulf %264, %265 : vector<2x1xf32>
    %267 = arith.mulf %262, %262 : vector<2x1xf32>
    %268 = arith.subf %266, %267 : vector<2x1xf32>
    %cst_179 = arith.constant 9.99999974E-6 : f32
    %269 = vector.broadcast %cst_179 : f32 to vector<2x1xf32>
    %270 = arith.addf %268, %269 : vector<2x1xf32>
    %271 = math.rsqrt %270 : vector<2x1xf32>
    %cst_180 = arith.constant dense<0.000000e+00> : vector<16x1xf32>
    %272 = tpu.matmul %9, %262, %cst_180 {dimension_numbers = #tpu.dot_dimension_numbers<[1], [0], [0], [1], [0, 0, 1, 1], [], []>} : vector<16x2xf32>, vector<2x1xf32>, vector<16x1xf32> -> vector<16x1xf32>
    %cst_181 = arith.constant dense<0.000000e+00> : vector<16x1xf32>
    %273 = tpu.matmul %9, %271, %cst_181 {dimension_numbers = #tpu.dot_dimension_numbers<[1], [0], [0], [1], [0, 0, 1, 1], [], []>} : vector<16x2xf32>, vector<2x1xf32>, vector<16x1xf32> -> vector<16x1xf32>
    %274 = vector.broadcast %272 : vector<16x1xf32> to vector<16x64xf32>
    %275 = arith.subf %255, %274 : vector<16x64xf32>
    %276 = vector.broadcast %273 : vector<16x1xf32> to vector<16x64xf32>
    %277 = arith.mulf %275, %276 : vector<16x64xf32>
    %c0_182 = arith.constant 0 : index
    %c0_183 = arith.constant 0 : index
    %278 = vector.load %arg37[%c0_182, %c0_183] : memref<1x64xf32, #tpu.memory_space<vmem>>, vector<1x64xf32>
    %279 = vector.broadcast %278 : vector<1x64xf32> to vector<16x64xf32>
    %280 = arith.mulf %277, %279 : vector<16x64xf32>
    %c0_184 = arith.constant 0 : index
    %c0_185 = arith.constant 0 : index
    %281 = vector.load %arg34[%c0_184, %c0_185] : memref<1x64xf32, #tpu.memory_space<vmem>>, vector<1x64xf32>
    %282 = vector.broadcast %281 : vector<1x64xf32> to vector<16x64xf32>
    %283 = arith.addf %280, %282 : vector<16x64xf32>
    %cst_186 = arith.constant 0.000000e+00 : f32
    %284 = vector.broadcast %cst_186 : f32 to vector<16x64xf32>
    %285 = arith.maximumf %283, %284 : vector<16x64xf32>
    %c1_i32_187 = arith.constant 1 : i32
    %286 = tpu.dynamic_rotate %285 by %c1_i32_187 dim 0 : vector<16x64xf32>, i32 -> vector<16x64xf32>
    %287 = vector.broadcast %2 : vector<16x1xf32> to vector<16x64xf32>
    %288 = arith.mulf %286, %287 : vector<16x64xf32>
    %c15_i32 = arith.constant 15 : i32
    %289 = tpu.dynamic_rotate %285 by %c15_i32 dim 0 : vector<16x64xf32>, i32 -> vector<16x64xf32>
    %290 = vector.broadcast %5 : vector<16x1xf32> to vector<16x64xf32>
    %291 = arith.mulf %289, %290 : vector<16x64xf32>
    %c0_188 = arith.constant 0 : index
    %c0_189 = arith.constant 0 : index
    %c0_190 = arith.constant 0 : index
    %292 = vector.load %arg41[%c0_188, %c0_189, %c0_190] : memref<3x64x64xf32, #tpu.memory_space<vmem>>, vector<1x64x64xf32>
    %293 = vector.shape_cast %292 : vector<1x64x64xf32> to vector<64x64xf32>
    %cst_191 = arith.constant dense<0.000000e+00> : vector<16x64xf32>
    %294 = tpu.matmul %288, %293, %cst_191 {dimension_numbers = #tpu.dot_dimension_numbers<[1], [0], [0], [1], [0, 0, 1, 1], [], []>} : vector<16x64xf32>, vector<64x64xf32>, vector<16x64xf32> -> vector<16x64xf32>
    %c1_192 = arith.constant 1 : index
    %c0_193 = arith.constant 0 : index
    %c0_194 = arith.constant 0 : index
    %295 = vector.load %arg41[%c1_192, %c0_193, %c0_194] : memref<3x64x64xf32, #tpu.memory_space<vmem>>, vector<1x64x64xf32>
    %296 = vector.shape_cast %295 : vector<1x64x64xf32> to vector<64x64xf32>
    %cst_195 = arith.constant dense<0.000000e+00> : vector<16x64xf32>
    %297 = tpu.matmul %285, %296, %cst_195 {dimension_numbers = #tpu.dot_dimension_numbers<[1], [0], [0], [1], [0, 0, 1, 1], [], []>} : vector<16x64xf32>, vector<64x64xf32>, vector<16x64xf32> -> vector<16x64xf32>
    %298 = arith.addf %294, %297 : vector<16x64xf32>
    %c2_196 = arith.constant 2 : index
    %c0_197 = arith.constant 0 : index
    %c0_198 = arith.constant 0 : index
    %299 = vector.load %arg41[%c2_196, %c0_197, %c0_198] : memref<3x64x64xf32, #tpu.memory_space<vmem>>, vector<1x64x64xf32>
    %300 = vector.shape_cast %299 : vector<1x64x64xf32> to vector<64x64xf32>
    %cst_199 = arith.constant dense<0.000000e+00> : vector<16x64xf32>
    %301 = tpu.matmul %291, %300, %cst_199 {dimension_numbers = #tpu.dot_dimension_numbers<[1], [0], [0], [1], [0, 0, 1, 1], [], []>} : vector<16x64xf32>, vector<64x64xf32>, vector<16x64xf32> -> vector<16x64xf32>
    %302 = arith.addf %298, %301 : vector<16x64xf32>
    %cst_200 = arith.constant dense<0.000000e+00> : vector<2x64xf32>
    %303 = tpu.matmul %12, %302, %cst_200 {dimension_numbers = #tpu.dot_dimension_numbers<[1], [0], [0], [1], [0, 0, 1, 1], [], []>} : vector<2x16xf32>, vector<16x64xf32>, vector<2x64xf32> -> vector<2x64xf32>
    %304 = arith.mulf %302, %302 : vector<16x64xf32>
    %cst_201 = arith.constant dense<0.000000e+00> : vector<2x64xf32>
    %305 = tpu.matmul %12, %304, %cst_201 {dimension_numbers = #tpu.dot_dimension_numbers<[1], [0], [0], [1], [0, 0, 1, 1], [], []>} : vector<2x16xf32>, vector<16x64xf32>, vector<2x64xf32> -> vector<2x64xf32>
    %cst_202 = arith.constant dense<0.000000e+00> : vector<2xf32>
    %306 = vector.multi_reduction <add>, %303, %cst_202 [1] : vector<2x64xf32> to vector<2xf32>
    %307 = vector.shape_cast %306 : vector<2xf32> to vector<2x1xf32>
    %cst_203 = arith.constant 0.001953125 : f32
    %308 = vector.broadcast %cst_203 : f32 to vector<2x1xf32>
    %309 = arith.mulf %307, %308 : vector<2x1xf32>
    %cst_204 = arith.constant dense<0.000000e+00> : vector<2xf32>
    %310 = vector.multi_reduction <add>, %305, %cst_204 [1] : vector<2x64xf32> to vector<2xf32>
    %311 = vector.shape_cast %310 : vector<2xf32> to vector<2x1xf32>
    %cst_205 = arith.constant 0.001953125 : f32
    %312 = vector.broadcast %cst_205 : f32 to vector<2x1xf32>
    %313 = arith.mulf %311, %312 : vector<2x1xf32>
    %314 = arith.mulf %309, %309 : vector<2x1xf32>
    %315 = arith.subf %313, %314 : vector<2x1xf32>
    %cst_206 = arith.constant 9.99999974E-6 : f32
    %316 = vector.broadcast %cst_206 : f32 to vector<2x1xf32>
    %317 = arith.addf %315, %316 : vector<2x1xf32>
    %318 = math.rsqrt %317 : vector<2x1xf32>
    %cst_207 = arith.constant dense<0.000000e+00> : vector<16x1xf32>
    %319 = tpu.matmul %9, %309, %cst_207 {dimension_numbers = #tpu.dot_dimension_numbers<[1], [0], [0], [1], [0, 0, 1, 1], [], []>} : vector<16x2xf32>, vector<2x1xf32>, vector<16x1xf32> -> vector<16x1xf32>
    %cst_208 = arith.constant dense<0.000000e+00> : vector<16x1xf32>
    %320 = tpu.matmul %9, %318, %cst_208 {dimension_numbers = #tpu.dot_dimension_numbers<[1], [0], [0], [1], [0, 0, 1, 1], [], []>} : vector<16x2xf32>, vector<2x1xf32>, vector<16x1xf32> -> vector<16x1xf32>
    %321 = vector.broadcast %319 : vector<16x1xf32> to vector<16x64xf32>
    %322 = arith.subf %302, %321 : vector<16x64xf32>
    %323 = vector.broadcast %320 : vector<16x1xf32> to vector<16x64xf32>
    %324 = arith.mulf %322, %323 : vector<16x64xf32>
    %c0_209 = arith.constant 0 : index
    %c0_210 = arith.constant 0 : index
    %325 = vector.load %arg38[%c0_209, %c0_210] : memref<1x64xf32, #tpu.memory_space<vmem>>, vector<1x64xf32>
    %326 = vector.broadcast %325 : vector<1x64xf32> to vector<16x64xf32>
    %327 = arith.mulf %324, %326 : vector<16x64xf32>
    %c0_211 = arith.constant 0 : index
    %c0_212 = arith.constant 0 : index
    %328 = vector.load %arg35[%c0_211, %c0_212] : memref<1x64xf32, #tpu.memory_space<vmem>>, vector<1x64xf32>
    %329 = vector.broadcast %328 : vector<1x64xf32> to vector<16x64xf32>
    %330 = arith.addf %327, %329 : vector<16x64xf32>
    %cst_213 = arith.constant dense<0.000000e+00> : vector<16x32xf32>
    %331 = tpu.matmul %14, %237, %cst_213 {dimension_numbers = #tpu.dot_dimension_numbers<[1], [0], [0], [1], [0, 0, 1, 1], [], []>} : vector<16x32xf32>, vector<32x32xf32>, vector<16x32xf32> -> vector<16x32xf32>
    %c0_214 = arith.constant 0 : index
    %c0_215 = arith.constant 0 : index
    %332 = vector.load %arg42[%c0_214, %c0_215] : memref<32x64xf32, #tpu.memory_space<vmem>>, vector<32x64xf32>
    %cst_216 = arith.constant dense<0.000000e+00> : vector<16x64xf32>
    %333 = tpu.matmul %331, %332, %cst_216 {dimension_numbers = #tpu.dot_dimension_numbers<[1], [0], [0], [1], [0, 0, 1, 1], [], []>} : vector<16x32xf32>, vector<32x64xf32>, vector<16x64xf32> -> vector<16x64xf32>
    %cst_217 = arith.constant dense<0.000000e+00> : vector<2x64xf32>
    %334 = tpu.matmul %12, %333, %cst_217 {dimension_numbers = #tpu.dot_dimension_numbers<[1], [0], [0], [1], [0, 0, 1, 1], [], []>} : vector<2x16xf32>, vector<16x64xf32>, vector<2x64xf32> -> vector<2x64xf32>
    %335 = arith.mulf %333, %333 : vector<16x64xf32>
    %cst_218 = arith.constant dense<0.000000e+00> : vector<2x64xf32>
    %336 = tpu.matmul %12, %335, %cst_218 {dimension_numbers = #tpu.dot_dimension_numbers<[1], [0], [0], [1], [0, 0, 1, 1], [], []>} : vector<2x16xf32>, vector<16x64xf32>, vector<2x64xf32> -> vector<2x64xf32>
    %cst_219 = arith.constant dense<0.000000e+00> : vector<2xf32>
    %337 = vector.multi_reduction <add>, %334, %cst_219 [1] : vector<2x64xf32> to vector<2xf32>
    %338 = vector.shape_cast %337 : vector<2xf32> to vector<2x1xf32>
    %cst_220 = arith.constant 0.001953125 : f32
    %339 = vector.broadcast %cst_220 : f32 to vector<2x1xf32>
    %340 = arith.mulf %338, %339 : vector<2x1xf32>
    %cst_221 = arith.constant dense<0.000000e+00> : vector<2xf32>
    %341 = vector.multi_reduction <add>, %336, %cst_221 [1] : vector<2x64xf32> to vector<2xf32>
    %342 = vector.shape_cast %341 : vector<2xf32> to vector<2x1xf32>
    %cst_222 = arith.constant 0.001953125 : f32
    %343 = vector.broadcast %cst_222 : f32 to vector<2x1xf32>
    %344 = arith.mulf %342, %343 : vector<2x1xf32>
    %345 = arith.mulf %340, %340 : vector<2x1xf32>
    %346 = arith.subf %344, %345 : vector<2x1xf32>
    %cst_223 = arith.constant 9.99999974E-6 : f32
    %347 = vector.broadcast %cst_223 : f32 to vector<2x1xf32>
    %348 = arith.addf %346, %347 : vector<2x1xf32>
    %349 = math.rsqrt %348 : vector<2x1xf32>
    %cst_224 = arith.constant dense<0.000000e+00> : vector<16x1xf32>
    %350 = tpu.matmul %9, %340, %cst_224 {dimension_numbers = #tpu.dot_dimension_numbers<[1], [0], [0], [1], [0, 0, 1, 1], [], []>} : vector<16x2xf32>, vector<2x1xf32>, vector<16x1xf32> -> vector<16x1xf32>
    %cst_225 = arith.constant dense<0.000000e+00> : vector<16x1xf32>
    %351 = tpu.matmul %9, %349, %cst_225 {dimension_numbers = #tpu.dot_dimension_numbers<[1], [0], [0], [1], [0, 0, 1, 1], [], []>} : vector<16x2xf32>, vector<2x1xf32>, vector<16x1xf32> -> vector<16x1xf32>
    %352 = vector.broadcast %350 : vector<16x1xf32> to vector<16x64xf32>
    %353 = arith.subf %333, %352 : vector<16x64xf32>
    %354 = vector.broadcast %351 : vector<16x1xf32> to vector<16x64xf32>
    %355 = arith.mulf %353, %354 : vector<16x64xf32>
    %c0_226 = arith.constant 0 : index
    %c0_227 = arith.constant 0 : index
    %356 = vector.load %arg39[%c0_226, %c0_227] : memref<1x64xf32, #tpu.memory_space<vmem>>, vector<1x64xf32>
    %357 = vector.broadcast %356 : vector<1x64xf32> to vector<16x64xf32>
    %358 = arith.mulf %355, %357 : vector<16x64xf32>
    %c0_228 = arith.constant 0 : index
    %c0_229 = arith.constant 0 : index
    %359 = vector.load %arg36[%c0_228, %c0_229] : memref<1x64xf32, #tpu.memory_space<vmem>>, vector<1x64xf32>
    %360 = vector.broadcast %359 : vector<1x64xf32> to vector<16x64xf32>
    %361 = arith.addf %358, %360 : vector<16x64xf32>
    %362 = arith.addf %330, %361 : vector<16x64xf32>
    %cst_230 = arith.constant 0.000000e+00 : f32
    %363 = vector.broadcast %cst_230 : f32 to vector<16x64xf32>
    %364 = arith.maximumf %362, %363 : vector<16x64xf32>
    %c1_i32_231 = arith.constant 1 : i32
    %365 = tpu.dynamic_rotate %364 by %c1_i32_231 dim 0 : vector<16x64xf32>, i32 -> vector<16x64xf32>
    %366 = vector.broadcast %2 : vector<16x1xf32> to vector<16x64xf32>
    %367 = arith.mulf %365, %366 : vector<16x64xf32>
    %c15_i32_232 = arith.constant 15 : i32
    %368 = tpu.dynamic_rotate %364 by %c15_i32_232 dim 0 : vector<16x64xf32>, i32 -> vector<16x64xf32>
    %369 = vector.broadcast %5 : vector<16x1xf32> to vector<16x64xf32>
    %370 = arith.mulf %368, %369 : vector<16x64xf32>
    %c0_233 = arith.constant 0 : index
    %c0_234 = arith.constant 0 : index
    %c0_235 = arith.constant 0 : index
    %371 = vector.load %arg47[%c0_233, %c0_234, %c0_235] : memref<3x64x64xf32, #tpu.memory_space<vmem>>, vector<1x64x64xf32>
    %372 = vector.shape_cast %371 : vector<1x64x64xf32> to vector<64x64xf32>
    %cst_236 = arith.constant dense<0.000000e+00> : vector<16x64xf32>
    %373 = tpu.matmul %367, %372, %cst_236 {dimension_numbers = #tpu.dot_dimension_numbers<[1], [0], [0], [1], [0, 0, 1, 1], [], []>} : vector<16x64xf32>, vector<64x64xf32>, vector<16x64xf32> -> vector<16x64xf32>
    %c1_237 = arith.constant 1 : index
    %c0_238 = arith.constant 0 : index
    %c0_239 = arith.constant 0 : index
    %374 = vector.load %arg47[%c1_237, %c0_238, %c0_239] : memref<3x64x64xf32, #tpu.memory_space<vmem>>, vector<1x64x64xf32>
    %375 = vector.shape_cast %374 : vector<1x64x64xf32> to vector<64x64xf32>
    %cst_240 = arith.constant dense<0.000000e+00> : vector<16x64xf32>
    %376 = tpu.matmul %364, %375, %cst_240 {dimension_numbers = #tpu.dot_dimension_numbers<[1], [0], [0], [1], [0, 0, 1, 1], [], []>} : vector<16x64xf32>, vector<64x64xf32>, vector<16x64xf32> -> vector<16x64xf32>
    %377 = arith.addf %373, %376 : vector<16x64xf32>
    %c2_241 = arith.constant 2 : index
    %c0_242 = arith.constant 0 : index
    %c0_243 = arith.constant 0 : index
    %378 = vector.load %arg47[%c2_241, %c0_242, %c0_243] : memref<3x64x64xf32, #tpu.memory_space<vmem>>, vector<1x64x64xf32>
    %379 = vector.shape_cast %378 : vector<1x64x64xf32> to vector<64x64xf32>
    %cst_244 = arith.constant dense<0.000000e+00> : vector<16x64xf32>
    %380 = tpu.matmul %370, %379, %cst_244 {dimension_numbers = #tpu.dot_dimension_numbers<[1], [0], [0], [1], [0, 0, 1, 1], [], []>} : vector<16x64xf32>, vector<64x64xf32>, vector<16x64xf32> -> vector<16x64xf32>
    %381 = arith.addf %377, %380 : vector<16x64xf32>
    %cst_245 = arith.constant dense<0.000000e+00> : vector<2x64xf32>
    %382 = tpu.matmul %12, %381, %cst_245 {dimension_numbers = #tpu.dot_dimension_numbers<[1], [0], [0], [1], [0, 0, 1, 1], [], []>} : vector<2x16xf32>, vector<16x64xf32>, vector<2x64xf32> -> vector<2x64xf32>
    %383 = arith.mulf %381, %381 : vector<16x64xf32>
    %cst_246 = arith.constant dense<0.000000e+00> : vector<2x64xf32>
    %384 = tpu.matmul %12, %383, %cst_246 {dimension_numbers = #tpu.dot_dimension_numbers<[1], [0], [0], [1], [0, 0, 1, 1], [], []>} : vector<2x16xf32>, vector<16x64xf32>, vector<2x64xf32> -> vector<2x64xf32>
    %cst_247 = arith.constant dense<0.000000e+00> : vector<2xf32>
    %385 = vector.multi_reduction <add>, %382, %cst_247 [1] : vector<2x64xf32> to vector<2xf32>
    %386 = vector.shape_cast %385 : vector<2xf32> to vector<2x1xf32>
    %cst_248 = arith.constant 0.001953125 : f32
    %387 = vector.broadcast %cst_248 : f32 to vector<2x1xf32>
    %388 = arith.mulf %386, %387 : vector<2x1xf32>
    %cst_249 = arith.constant dense<0.000000e+00> : vector<2xf32>
    %389 = vector.multi_reduction <add>, %384, %cst_249 [1] : vector<2x64xf32> to vector<2xf32>
    %390 = vector.shape_cast %389 : vector<2xf32> to vector<2x1xf32>
    %cst_250 = arith.constant 0.001953125 : f32
    %391 = vector.broadcast %cst_250 : f32 to vector<2x1xf32>
    %392 = arith.mulf %390, %391 : vector<2x1xf32>
    %393 = arith.mulf %388, %388 : vector<2x1xf32>
    %394 = arith.subf %392, %393 : vector<2x1xf32>
    %cst_251 = arith.constant 9.99999974E-6 : f32
    %395 = vector.broadcast %cst_251 : f32 to vector<2x1xf32>
    %396 = arith.addf %394, %395 : vector<2x1xf32>
    %397 = math.rsqrt %396 : vector<2x1xf32>
    %cst_252 = arith.constant dense<0.000000e+00> : vector<16x1xf32>
    %398 = tpu.matmul %9, %388, %cst_252 {dimension_numbers = #tpu.dot_dimension_numbers<[1], [0], [0], [1], [0, 0, 1, 1], [], []>} : vector<16x2xf32>, vector<2x1xf32>, vector<16x1xf32> -> vector<16x1xf32>
    %cst_253 = arith.constant dense<0.000000e+00> : vector<16x1xf32>
    %399 = tpu.matmul %9, %397, %cst_253 {dimension_numbers = #tpu.dot_dimension_numbers<[1], [0], [0], [1], [0, 0, 1, 1], [], []>} : vector<16x2xf32>, vector<2x1xf32>, vector<16x1xf32> -> vector<16x1xf32>
    %400 = vector.broadcast %398 : vector<16x1xf32> to vector<16x64xf32>
    %401 = arith.subf %381, %400 : vector<16x64xf32>
    %402 = vector.broadcast %399 : vector<16x1xf32> to vector<16x64xf32>
    %403 = arith.mulf %401, %402 : vector<16x64xf32>
    %c0_254 = arith.constant 0 : index
    %c0_255 = arith.constant 0 : index
    %404 = vector.load %arg45[%c0_254, %c0_255] : memref<1x64xf32, #tpu.memory_space<vmem>>, vector<1x64xf32>
    %405 = vector.broadcast %404 : vector<1x64xf32> to vector<16x64xf32>
    %406 = arith.mulf %403, %405 : vector<16x64xf32>
    %c0_256 = arith.constant 0 : index
    %c0_257 = arith.constant 0 : index
    %407 = vector.load %arg43[%c0_256, %c0_257] : memref<1x64xf32, #tpu.memory_space<vmem>>, vector<1x64xf32>
    %408 = vector.broadcast %407 : vector<1x64xf32> to vector<16x64xf32>
    %409 = arith.addf %406, %408 : vector<16x64xf32>
    %cst_258 = arith.constant 0.000000e+00 : f32
    %410 = vector.broadcast %cst_258 : f32 to vector<16x64xf32>
    %411 = arith.maximumf %409, %410 : vector<16x64xf32>
    %c1_i32_259 = arith.constant 1 : i32
    %412 = tpu.dynamic_rotate %411 by %c1_i32_259 dim 0 : vector<16x64xf32>, i32 -> vector<16x64xf32>
    %413 = vector.broadcast %2 : vector<16x1xf32> to vector<16x64xf32>
    %414 = arith.mulf %412, %413 : vector<16x64xf32>
    %c15_i32_260 = arith.constant 15 : i32
    %415 = tpu.dynamic_rotate %411 by %c15_i32_260 dim 0 : vector<16x64xf32>, i32 -> vector<16x64xf32>
    %416 = vector.broadcast %5 : vector<16x1xf32> to vector<16x64xf32>
    %417 = arith.mulf %415, %416 : vector<16x64xf32>
    %c0_261 = arith.constant 0 : index
    %c0_262 = arith.constant 0 : index
    %c0_263 = arith.constant 0 : index
    %418 = vector.load %arg48[%c0_261, %c0_262, %c0_263] : memref<3x64x64xf32, #tpu.memory_space<vmem>>, vector<1x64x64xf32>
    %419 = vector.shape_cast %418 : vector<1x64x64xf32> to vector<64x64xf32>
    %cst_264 = arith.constant dense<0.000000e+00> : vector<16x64xf32>
    %420 = tpu.matmul %414, %419, %cst_264 {dimension_numbers = #tpu.dot_dimension_numbers<[1], [0], [0], [1], [0, 0, 1, 1], [], []>} : vector<16x64xf32>, vector<64x64xf32>, vector<16x64xf32> -> vector<16x64xf32>
    %c1_265 = arith.constant 1 : index
    %c0_266 = arith.constant 0 : index
    %c0_267 = arith.constant 0 : index
    %421 = vector.load %arg48[%c1_265, %c0_266, %c0_267] : memref<3x64x64xf32, #tpu.memory_space<vmem>>, vector<1x64x64xf32>
    %422 = vector.shape_cast %421 : vector<1x64x64xf32> to vector<64x64xf32>
    %cst_268 = arith.constant dense<0.000000e+00> : vector<16x64xf32>
    %423 = tpu.matmul %411, %422, %cst_268 {dimension_numbers = #tpu.dot_dimension_numbers<[1], [0], [0], [1], [0, 0, 1, 1], [], []>} : vector<16x64xf32>, vector<64x64xf32>, vector<16x64xf32> -> vector<16x64xf32>
    %424 = arith.addf %420, %423 : vector<16x64xf32>
    %c2_269 = arith.constant 2 : index
    %c0_270 = arith.constant 0 : index
    %c0_271 = arith.constant 0 : index
    %425 = vector.load %arg48[%c2_269, %c0_270, %c0_271] : memref<3x64x64xf32, #tpu.memory_space<vmem>>, vector<1x64x64xf32>
    %426 = vector.shape_cast %425 : vector<1x64x64xf32> to vector<64x64xf32>
    %cst_272 = arith.constant dense<0.000000e+00> : vector<16x64xf32>
    %427 = tpu.matmul %417, %426, %cst_272 {dimension_numbers = #tpu.dot_dimension_numbers<[1], [0], [0], [1], [0, 0, 1, 1], [], []>} : vector<16x64xf32>, vector<64x64xf32>, vector<16x64xf32> -> vector<16x64xf32>
    %428 = arith.addf %424, %427 : vector<16x64xf32>
    %cst_273 = arith.constant dense<0.000000e+00> : vector<2x64xf32>
    %429 = tpu.matmul %12, %428, %cst_273 {dimension_numbers = #tpu.dot_dimension_numbers<[1], [0], [0], [1], [0, 0, 1, 1], [], []>} : vector<2x16xf32>, vector<16x64xf32>, vector<2x64xf32> -> vector<2x64xf32>
    %430 = arith.mulf %428, %428 : vector<16x64xf32>
    %cst_274 = arith.constant dense<0.000000e+00> : vector<2x64xf32>
    %431 = tpu.matmul %12, %430, %cst_274 {dimension_numbers = #tpu.dot_dimension_numbers<[1], [0], [0], [1], [0, 0, 1, 1], [], []>} : vector<2x16xf32>, vector<16x64xf32>, vector<2x64xf32> -> vector<2x64xf32>
    %cst_275 = arith.constant dense<0.000000e+00> : vector<2xf32>
    %432 = vector.multi_reduction <add>, %429, %cst_275 [1] : vector<2x64xf32> to vector<2xf32>
    %433 = vector.shape_cast %432 : vector<2xf32> to vector<2x1xf32>
    %cst_276 = arith.constant 0.001953125 : f32
    %434 = vector.broadcast %cst_276 : f32 to vector<2x1xf32>
    %435 = arith.mulf %433, %434 : vector<2x1xf32>
    %cst_277 = arith.constant dense<0.000000e+00> : vector<2xf32>
    %436 = vector.multi_reduction <add>, %431, %cst_277 [1] : vector<2x64xf32> to vector<2xf32>
    %437 = vector.shape_cast %436 : vector<2xf32> to vector<2x1xf32>
    %cst_278 = arith.constant 0.001953125 : f32
    %438 = vector.broadcast %cst_278 : f32 to vector<2x1xf32>
    %439 = arith.mulf %437, %438 : vector<2x1xf32>
    %440 = arith.mulf %435, %435 : vector<2x1xf32>
    %441 = arith.subf %439, %440 : vector<2x1xf32>
    %cst_279 = arith.constant 9.99999974E-6 : f32
    %442 = vector.broadcast %cst_279 : f32 to vector<2x1xf32>
    %443 = arith.addf %441, %442 : vector<2x1xf32>
    %444 = math.rsqrt %443 : vector<2x1xf32>
    %cst_280 = arith.constant dense<0.000000e+00> : vector<16x1xf32>
    %445 = tpu.matmul %9, %435, %cst_280 {dimension_numbers = #tpu.dot_dimension_numbers<[1], [0], [0], [1], [0, 0, 1, 1], [], []>} : vector<16x2xf32>, vector<2x1xf32>, vector<16x1xf32> -> vector<16x1xf32>
    %cst_281 = arith.constant dense<0.000000e+00> : vector<16x1xf32>
    %446 = tpu.matmul %9, %444, %cst_281 {dimension_numbers = #tpu.dot_dimension_numbers<[1], [0], [0], [1], [0, 0, 1, 1], [], []>} : vector<16x2xf32>, vector<2x1xf32>, vector<16x1xf32> -> vector<16x1xf32>
    %447 = vector.broadcast %445 : vector<16x1xf32> to vector<16x64xf32>
    %448 = arith.subf %428, %447 : vector<16x64xf32>
    %449 = vector.broadcast %446 : vector<16x1xf32> to vector<16x64xf32>
    %450 = arith.mulf %448, %449 : vector<16x64xf32>
    %c0_282 = arith.constant 0 : index
    %c0_283 = arith.constant 0 : index
    %451 = vector.load %arg46[%c0_282, %c0_283] : memref<1x64xf32, #tpu.memory_space<vmem>>, vector<1x64xf32>
    %452 = vector.broadcast %451 : vector<1x64xf32> to vector<16x64xf32>
    %453 = arith.mulf %450, %452 : vector<16x64xf32>
    %c0_284 = arith.constant 0 : index
    %c0_285 = arith.constant 0 : index
    %454 = vector.load %arg44[%c0_284, %c0_285] : memref<1x64xf32, #tpu.memory_space<vmem>>, vector<1x64xf32>
    %455 = vector.broadcast %454 : vector<1x64xf32> to vector<16x64xf32>
    %456 = arith.addf %453, %455 : vector<16x64xf32>
    %457 = arith.addf %456, %364 : vector<16x64xf32>
    %cst_286 = arith.constant 0.000000e+00 : f32
    %458 = vector.broadcast %cst_286 : f32 to vector<16x64xf32>
    %459 = arith.maximumf %457, %458 : vector<16x64xf32>
    %c1_i32_287 = arith.constant 1 : i32
    %460 = tpu.dynamic_rotate %459 by %c1_i32_287 dim 0 : vector<16x64xf32>, i32 -> vector<16x64xf32>
    %461 = vector.broadcast %2 : vector<16x1xf32> to vector<16x64xf32>
    %462 = arith.mulf %460, %461 : vector<16x64xf32>
    %c15_i32_288 = arith.constant 15 : i32
    %463 = tpu.dynamic_rotate %459 by %c15_i32_288 dim 0 : vector<16x64xf32>, i32 -> vector<16x64xf32>
    %464 = vector.broadcast %5 : vector<16x1xf32> to vector<16x64xf32>
    %465 = arith.mulf %463, %464 : vector<16x64xf32>
    %c0_289 = arith.constant 0 : index
    %c0_290 = arith.constant 0 : index
    %c0_291 = arith.constant 0 : index
    %466 = vector.load %arg55[%c0_289, %c0_290, %c0_291] : memref<3x64x128xf32, #tpu.memory_space<vmem>>, vector<1x64x128xf32>
    %467 = vector.shape_cast %466 : vector<1x64x128xf32> to vector<64x128xf32>
    %cst_292 = arith.constant dense<0.000000e+00> : vector<16x128xf32>
    %468 = tpu.matmul %462, %467, %cst_292 {dimension_numbers = #tpu.dot_dimension_numbers<[1], [0], [0], [1], [0, 0, 1, 1], [], []>} : vector<16x64xf32>, vector<64x128xf32>, vector<16x128xf32> -> vector<16x128xf32>
    %c1_293 = arith.constant 1 : index
    %c0_294 = arith.constant 0 : index
    %c0_295 = arith.constant 0 : index
    %469 = vector.load %arg55[%c1_293, %c0_294, %c0_295] : memref<3x64x128xf32, #tpu.memory_space<vmem>>, vector<1x64x128xf32>
    %470 = vector.shape_cast %469 : vector<1x64x128xf32> to vector<64x128xf32>
    %cst_296 = arith.constant dense<0.000000e+00> : vector<16x128xf32>
    %471 = tpu.matmul %459, %470, %cst_296 {dimension_numbers = #tpu.dot_dimension_numbers<[1], [0], [0], [1], [0, 0, 1, 1], [], []>} : vector<16x64xf32>, vector<64x128xf32>, vector<16x128xf32> -> vector<16x128xf32>
    %472 = arith.addf %468, %471 : vector<16x128xf32>
    %c2_297 = arith.constant 2 : index
    %c0_298 = arith.constant 0 : index
    %c0_299 = arith.constant 0 : index
    %473 = vector.load %arg55[%c2_297, %c0_298, %c0_299] : memref<3x64x128xf32, #tpu.memory_space<vmem>>, vector<1x64x128xf32>
    %474 = vector.shape_cast %473 : vector<1x64x128xf32> to vector<64x128xf32>
    %cst_300 = arith.constant dense<0.000000e+00> : vector<16x128xf32>
    %475 = tpu.matmul %465, %474, %cst_300 {dimension_numbers = #tpu.dot_dimension_numbers<[1], [0], [0], [1], [0, 0, 1, 1], [], []>} : vector<16x64xf32>, vector<64x128xf32>, vector<16x128xf32> -> vector<16x128xf32>
    %476 = arith.addf %472, %475 : vector<16x128xf32>
    %cst_301 = arith.constant dense<0.000000e+00> : vector<8x128xf32>
    %477 = tpu.matmul %13, %476, %cst_301 {dimension_numbers = #tpu.dot_dimension_numbers<[1], [0], [0], [1], [0, 0, 1, 1], [], []>} : vector<8x16xf32>, vector<16x128xf32>, vector<8x128xf32> -> vector<8x128xf32>
    %cst_302 = arith.constant dense<0.000000e+00> : vector<2x128xf32>
    %478 = tpu.matmul %11, %477, %cst_302 {dimension_numbers = #tpu.dot_dimension_numbers<[1], [0], [0], [1], [0, 0, 1, 1], [], []>} : vector<2x8xf32>, vector<8x128xf32>, vector<2x128xf32> -> vector<2x128xf32>
    %479 = arith.mulf %477, %477 : vector<8x128xf32>
    %cst_303 = arith.constant dense<0.000000e+00> : vector<2x128xf32>
    %480 = tpu.matmul %11, %479, %cst_303 {dimension_numbers = #tpu.dot_dimension_numbers<[1], [0], [0], [1], [0, 0, 1, 1], [], []>} : vector<2x8xf32>, vector<8x128xf32>, vector<2x128xf32> -> vector<2x128xf32>
    %cst_304 = arith.constant dense<0.000000e+00> : vector<2xf32>
    %481 = vector.multi_reduction <add>, %478, %cst_304 [1] : vector<2x128xf32> to vector<2xf32>
    %482 = vector.shape_cast %481 : vector<2xf32> to vector<2x1xf32>
    %cst_305 = arith.constant 0.001953125 : f32
    %483 = vector.broadcast %cst_305 : f32 to vector<2x1xf32>
    %484 = arith.mulf %482, %483 : vector<2x1xf32>
    %cst_306 = arith.constant dense<0.000000e+00> : vector<2xf32>
    %485 = vector.multi_reduction <add>, %480, %cst_306 [1] : vector<2x128xf32> to vector<2xf32>
    %486 = vector.shape_cast %485 : vector<2xf32> to vector<2x1xf32>
    %cst_307 = arith.constant 0.001953125 : f32
    %487 = vector.broadcast %cst_307 : f32 to vector<2x1xf32>
    %488 = arith.mulf %486, %487 : vector<2x1xf32>
    %489 = arith.mulf %484, %484 : vector<2x1xf32>
    %490 = arith.subf %488, %489 : vector<2x1xf32>
    %cst_308 = arith.constant 9.99999974E-6 : f32
    %491 = vector.broadcast %cst_308 : f32 to vector<2x1xf32>
    %492 = arith.addf %490, %491 : vector<2x1xf32>
    %493 = math.rsqrt %492 : vector<2x1xf32>
    %cst_309 = arith.constant dense<0.000000e+00> : vector<8x1xf32>
    %494 = tpu.matmul %8, %484, %cst_309 {dimension_numbers = #tpu.dot_dimension_numbers<[1], [0], [0], [1], [0, 0, 1, 1], [], []>} : vector<8x2xf32>, vector<2x1xf32>, vector<8x1xf32> -> vector<8x1xf32>
    %cst_310 = arith.constant dense<0.000000e+00> : vector<8x1xf32>
    %495 = tpu.matmul %8, %493, %cst_310 {dimension_numbers = #tpu.dot_dimension_numbers<[1], [0], [0], [1], [0, 0, 1, 1], [], []>} : vector<8x2xf32>, vector<2x1xf32>, vector<8x1xf32> -> vector<8x1xf32>
    %496 = vector.broadcast %494 : vector<8x1xf32> to vector<8x128xf32>
    %497 = arith.subf %477, %496 : vector<8x128xf32>
    %498 = vector.broadcast %495 : vector<8x1xf32> to vector<8x128xf32>
    %499 = arith.mulf %497, %498 : vector<8x128xf32>
    %c0_311 = arith.constant 0 : index
    %c0_312 = arith.constant 0 : index
    %500 = vector.load %arg52[%c0_311, %c0_312] : memref<1x128xf32, #tpu.memory_space<vmem>>, vector<1x128xf32>
    %501 = vector.broadcast %500 : vector<1x128xf32> to vector<8x128xf32>
    %502 = arith.mulf %499, %501 : vector<8x128xf32>
    %c0_313 = arith.constant 0 : index
    %c0_314 = arith.constant 0 : index
    %503 = vector.load %arg49[%c0_313, %c0_314] : memref<1x128xf32, #tpu.memory_space<vmem>>, vector<1x128xf32>
    %504 = vector.broadcast %503 : vector<1x128xf32> to vector<8x128xf32>
    %505 = arith.addf %502, %504 : vector<8x128xf32>
    %cst_315 = arith.constant 0.000000e+00 : f32
    %506 = vector.broadcast %cst_315 : f32 to vector<8x128xf32>
    %507 = arith.maximumf %505, %506 : vector<8x128xf32>
    %c1_i32_316 = arith.constant 1 : i32
    %508 = tpu.dynamic_rotate %507 by %c1_i32_316 dim 0 : vector<8x128xf32>, i32 -> vector<8x128xf32>
    %509 = vector.broadcast %1 : vector<8x1xf32> to vector<8x128xf32>
    %510 = arith.mulf %508, %509 : vector<8x128xf32>
    %c7_i32 = arith.constant 7 : i32
    %511 = tpu.dynamic_rotate %507 by %c7_i32 dim 0 : vector<8x128xf32>, i32 -> vector<8x128xf32>
    %512 = vector.broadcast %4 : vector<8x1xf32> to vector<8x128xf32>
    %513 = arith.mulf %511, %512 : vector<8x128xf32>
    %c0_317 = arith.constant 0 : index
    %c0_318 = arith.constant 0 : index
    %c0_319 = arith.constant 0 : index
    %514 = vector.load %arg56[%c0_317, %c0_318, %c0_319] : memref<3x128x128xf32, #tpu.memory_space<vmem>>, vector<1x128x128xf32>
    %515 = vector.shape_cast %514 : vector<1x128x128xf32> to vector<128x128xf32>
    %cst_320 = arith.constant dense<0.000000e+00> : vector<8x128xf32>
    %516 = tpu.matmul %510, %515, %cst_320 {dimension_numbers = #tpu.dot_dimension_numbers<[1], [0], [0], [1], [0, 0, 1, 1], [], []>} : vector<8x128xf32>, vector<128x128xf32>, vector<8x128xf32> -> vector<8x128xf32>
    %c1_321 = arith.constant 1 : index
    %c0_322 = arith.constant 0 : index
    %c0_323 = arith.constant 0 : index
    %517 = vector.load %arg56[%c1_321, %c0_322, %c0_323] : memref<3x128x128xf32, #tpu.memory_space<vmem>>, vector<1x128x128xf32>
    %518 = vector.shape_cast %517 : vector<1x128x128xf32> to vector<128x128xf32>
    %cst_324 = arith.constant dense<0.000000e+00> : vector<8x128xf32>
    %519 = tpu.matmul %507, %518, %cst_324 {dimension_numbers = #tpu.dot_dimension_numbers<[1], [0], [0], [1], [0, 0, 1, 1], [], []>} : vector<8x128xf32>, vector<128x128xf32>, vector<8x128xf32> -> vector<8x128xf32>
    %520 = arith.addf %516, %519 : vector<8x128xf32>
    %c2_325 = arith.constant 2 : index
    %c0_326 = arith.constant 0 : index
    %c0_327 = arith.constant 0 : index
    %521 = vector.load %arg56[%c2_325, %c0_326, %c0_327] : memref<3x128x128xf32, #tpu.memory_space<vmem>>, vector<1x128x128xf32>
    %522 = vector.shape_cast %521 : vector<1x128x128xf32> to vector<128x128xf32>
    %cst_328 = arith.constant dense<0.000000e+00> : vector<8x128xf32>
    %523 = tpu.matmul %513, %522, %cst_328 {dimension_numbers = #tpu.dot_dimension_numbers<[1], [0], [0], [1], [0, 0, 1, 1], [], []>} : vector<8x128xf32>, vector<128x128xf32>, vector<8x128xf32> -> vector<8x128xf32>
    %524 = arith.addf %520, %523 : vector<8x128xf32>
    %cst_329 = arith.constant dense<0.000000e+00> : vector<2x128xf32>
    %525 = tpu.matmul %11, %524, %cst_329 {dimension_numbers = #tpu.dot_dimension_numbers<[1], [0], [0], [1], [0, 0, 1, 1], [], []>} : vector<2x8xf32>, vector<8x128xf32>, vector<2x128xf32> -> vector<2x128xf32>
    %526 = arith.mulf %524, %524 : vector<8x128xf32>
    %cst_330 = arith.constant dense<0.000000e+00> : vector<2x128xf32>
    %527 = tpu.matmul %11, %526, %cst_330 {dimension_numbers = #tpu.dot_dimension_numbers<[1], [0], [0], [1], [0, 0, 1, 1], [], []>} : vector<2x8xf32>, vector<8x128xf32>, vector<2x128xf32> -> vector<2x128xf32>
    %cst_331 = arith.constant dense<0.000000e+00> : vector<2xf32>
    %528 = vector.multi_reduction <add>, %525, %cst_331 [1] : vector<2x128xf32> to vector<2xf32>
    %529 = vector.shape_cast %528 : vector<2xf32> to vector<2x1xf32>
    %cst_332 = arith.constant 0.001953125 : f32
    %530 = vector.broadcast %cst_332 : f32 to vector<2x1xf32>
    %531 = arith.mulf %529, %530 : vector<2x1xf32>
    %cst_333 = arith.constant dense<0.000000e+00> : vector<2xf32>
    %532 = vector.multi_reduction <add>, %527, %cst_333 [1] : vector<2x128xf32> to vector<2xf32>
    %533 = vector.shape_cast %532 : vector<2xf32> to vector<2x1xf32>
    %cst_334 = arith.constant 0.001953125 : f32
    %534 = vector.broadcast %cst_334 : f32 to vector<2x1xf32>
    %535 = arith.mulf %533, %534 : vector<2x1xf32>
    %536 = arith.mulf %531, %531 : vector<2x1xf32>
    %537 = arith.subf %535, %536 : vector<2x1xf32>
    %cst_335 = arith.constant 9.99999974E-6 : f32
    %538 = vector.broadcast %cst_335 : f32 to vector<2x1xf32>
    %539 = arith.addf %537, %538 : vector<2x1xf32>
    %540 = math.rsqrt %539 : vector<2x1xf32>
    %cst_336 = arith.constant dense<0.000000e+00> : vector<8x1xf32>
    %541 = tpu.matmul %8, %531, %cst_336 {dimension_numbers = #tpu.dot_dimension_numbers<[1], [0], [0], [1], [0, 0, 1, 1], [], []>} : vector<8x2xf32>, vector<2x1xf32>, vector<8x1xf32> -> vector<8x1xf32>
    %cst_337 = arith.constant dense<0.000000e+00> : vector<8x1xf32>
    %542 = tpu.matmul %8, %540, %cst_337 {dimension_numbers = #tpu.dot_dimension_numbers<[1], [0], [0], [1], [0, 0, 1, 1], [], []>} : vector<8x2xf32>, vector<2x1xf32>, vector<8x1xf32> -> vector<8x1xf32>
    %543 = vector.broadcast %541 : vector<8x1xf32> to vector<8x128xf32>
    %544 = arith.subf %524, %543 : vector<8x128xf32>
    %545 = vector.broadcast %542 : vector<8x1xf32> to vector<8x128xf32>
    %546 = arith.mulf %544, %545 : vector<8x128xf32>
    %c0_338 = arith.constant 0 : index
    %c0_339 = arith.constant 0 : index
    %547 = vector.load %arg53[%c0_338, %c0_339] : memref<1x128xf32, #tpu.memory_space<vmem>>, vector<1x128xf32>
    %548 = vector.broadcast %547 : vector<1x128xf32> to vector<8x128xf32>
    %549 = arith.mulf %546, %548 : vector<8x128xf32>
    %c0_340 = arith.constant 0 : index
    %c0_341 = arith.constant 0 : index
    %550 = vector.load %arg50[%c0_340, %c0_341] : memref<1x128xf32, #tpu.memory_space<vmem>>, vector<1x128xf32>
    %551 = vector.broadcast %550 : vector<1x128xf32> to vector<8x128xf32>
    %552 = arith.addf %549, %551 : vector<8x128xf32>
    %cst_342 = arith.constant dense<0.000000e+00> : vector<8x64xf32>
    %553 = tpu.matmul %13, %459, %cst_342 {dimension_numbers = #tpu.dot_dimension_numbers<[1], [0], [0], [1], [0, 0, 1, 1], [], []>} : vector<8x16xf32>, vector<16x64xf32>, vector<8x64xf32> -> vector<8x64xf32>
    %c0_343 = arith.constant 0 : index
    %c0_344 = arith.constant 0 : index
    %554 = vector.load %arg57[%c0_343, %c0_344] : memref<64x128xf32, #tpu.memory_space<vmem>>, vector<64x128xf32>
    %cst_345 = arith.constant dense<0.000000e+00> : vector<8x128xf32>
    %555 = tpu.matmul %553, %554, %cst_345 {dimension_numbers = #tpu.dot_dimension_numbers<[1], [0], [0], [1], [0, 0, 1, 1], [], []>} : vector<8x64xf32>, vector<64x128xf32>, vector<8x128xf32> -> vector<8x128xf32>
    %cst_346 = arith.constant dense<0.000000e+00> : vector<2x128xf32>
    %556 = tpu.matmul %11, %555, %cst_346 {dimension_numbers = #tpu.dot_dimension_numbers<[1], [0], [0], [1], [0, 0, 1, 1], [], []>} : vector<2x8xf32>, vector<8x128xf32>, vector<2x128xf32> -> vector<2x128xf32>
    %557 = arith.mulf %555, %555 : vector<8x128xf32>
    %cst_347 = arith.constant dense<0.000000e+00> : vector<2x128xf32>
    %558 = tpu.matmul %11, %557, %cst_347 {dimension_numbers = #tpu.dot_dimension_numbers<[1], [0], [0], [1], [0, 0, 1, 1], [], []>} : vector<2x8xf32>, vector<8x128xf32>, vector<2x128xf32> -> vector<2x128xf32>
    %cst_348 = arith.constant dense<0.000000e+00> : vector<2xf32>
    %559 = vector.multi_reduction <add>, %556, %cst_348 [1] : vector<2x128xf32> to vector<2xf32>
    %560 = vector.shape_cast %559 : vector<2xf32> to vector<2x1xf32>
    %cst_349 = arith.constant 0.001953125 : f32
    %561 = vector.broadcast %cst_349 : f32 to vector<2x1xf32>
    %562 = arith.mulf %560, %561 : vector<2x1xf32>
    %cst_350 = arith.constant dense<0.000000e+00> : vector<2xf32>
    %563 = vector.multi_reduction <add>, %558, %cst_350 [1] : vector<2x128xf32> to vector<2xf32>
    %564 = vector.shape_cast %563 : vector<2xf32> to vector<2x1xf32>
    %cst_351 = arith.constant 0.001953125 : f32
    %565 = vector.broadcast %cst_351 : f32 to vector<2x1xf32>
    %566 = arith.mulf %564, %565 : vector<2x1xf32>
    %567 = arith.mulf %562, %562 : vector<2x1xf32>
    %568 = arith.subf %566, %567 : vector<2x1xf32>
    %cst_352 = arith.constant 9.99999974E-6 : f32
    %569 = vector.broadcast %cst_352 : f32 to vector<2x1xf32>
    %570 = arith.addf %568, %569 : vector<2x1xf32>
    %571 = math.rsqrt %570 : vector<2x1xf32>
    %cst_353 = arith.constant dense<0.000000e+00> : vector<8x1xf32>
    %572 = tpu.matmul %8, %562, %cst_353 {dimension_numbers = #tpu.dot_dimension_numbers<[1], [0], [0], [1], [0, 0, 1, 1], [], []>} : vector<8x2xf32>, vector<2x1xf32>, vector<8x1xf32> -> vector<8x1xf32>
    %cst_354 = arith.constant dense<0.000000e+00> : vector<8x1xf32>
    %573 = tpu.matmul %8, %571, %cst_354 {dimension_numbers = #tpu.dot_dimension_numbers<[1], [0], [0], [1], [0, 0, 1, 1], [], []>} : vector<8x2xf32>, vector<2x1xf32>, vector<8x1xf32> -> vector<8x1xf32>
    %574 = vector.broadcast %572 : vector<8x1xf32> to vector<8x128xf32>
    %575 = arith.subf %555, %574 : vector<8x128xf32>
    %576 = vector.broadcast %573 : vector<8x1xf32> to vector<8x128xf32>
    %577 = arith.mulf %575, %576 : vector<8x128xf32>
    %c0_355 = arith.constant 0 : index
    %c0_356 = arith.constant 0 : index
    %578 = vector.load %arg54[%c0_355, %c0_356] : memref<1x128xf32, #tpu.memory_space<vmem>>, vector<1x128xf32>
    %579 = vector.broadcast %578 : vector<1x128xf32> to vector<8x128xf32>
    %580 = arith.mulf %577, %579 : vector<8x128xf32>
    %c0_357 = arith.constant 0 : index
    %c0_358 = arith.constant 0 : index
    %581 = vector.load %arg51[%c0_357, %c0_358] : memref<1x128xf32, #tpu.memory_space<vmem>>, vector<1x128xf32>
    %582 = vector.broadcast %581 : vector<1x128xf32> to vector<8x128xf32>
    %583 = arith.addf %580, %582 : vector<8x128xf32>
    %584 = arith.addf %552, %583 : vector<8x128xf32>
    %cst_359 = arith.constant 0.000000e+00 : f32
    %585 = vector.broadcast %cst_359 : f32 to vector<8x128xf32>
    %586 = arith.maximumf %584, %585 : vector<8x128xf32>
    %c1_i32_360 = arith.constant 1 : i32
    %587 = tpu.dynamic_rotate %586 by %c1_i32_360 dim 0 : vector<8x128xf32>, i32 -> vector<8x128xf32>
    %588 = vector.broadcast %1 : vector<8x1xf32> to vector<8x128xf32>
    %589 = arith.mulf %587, %588 : vector<8x128xf32>
    %c7_i32_361 = arith.constant 7 : i32
    %590 = tpu.dynamic_rotate %586 by %c7_i32_361 dim 0 : vector<8x128xf32>, i32 -> vector<8x128xf32>
    %591 = vector.broadcast %4 : vector<8x1xf32> to vector<8x128xf32>
    %592 = arith.mulf %590, %591 : vector<8x128xf32>
    %c0_362 = arith.constant 0 : index
    %c0_363 = arith.constant 0 : index
    %c0_364 = arith.constant 0 : index
    %593 = vector.load %arg62[%c0_362, %c0_363, %c0_364] : memref<3x128x128xf32, #tpu.memory_space<vmem>>, vector<1x128x128xf32>
    %594 = vector.shape_cast %593 : vector<1x128x128xf32> to vector<128x128xf32>
    %cst_365 = arith.constant dense<0.000000e+00> : vector<8x128xf32>
    %595 = tpu.matmul %589, %594, %cst_365 {dimension_numbers = #tpu.dot_dimension_numbers<[1], [0], [0], [1], [0, 0, 1, 1], [], []>} : vector<8x128xf32>, vector<128x128xf32>, vector<8x128xf32> -> vector<8x128xf32>
    %c1_366 = arith.constant 1 : index
    %c0_367 = arith.constant 0 : index
    %c0_368 = arith.constant 0 : index
    %596 = vector.load %arg62[%c1_366, %c0_367, %c0_368] : memref<3x128x128xf32, #tpu.memory_space<vmem>>, vector<1x128x128xf32>
    %597 = vector.shape_cast %596 : vector<1x128x128xf32> to vector<128x128xf32>
    %cst_369 = arith.constant dense<0.000000e+00> : vector<8x128xf32>
    %598 = tpu.matmul %586, %597, %cst_369 {dimension_numbers = #tpu.dot_dimension_numbers<[1], [0], [0], [1], [0, 0, 1, 1], [], []>} : vector<8x128xf32>, vector<128x128xf32>, vector<8x128xf32> -> vector<8x128xf32>
    %599 = arith.addf %595, %598 : vector<8x128xf32>
    %c2_370 = arith.constant 2 : index
    %c0_371 = arith.constant 0 : index
    %c0_372 = arith.constant 0 : index
    %600 = vector.load %arg62[%c2_370, %c0_371, %c0_372] : memref<3x128x128xf32, #tpu.memory_space<vmem>>, vector<1x128x128xf32>
    %601 = vector.shape_cast %600 : vector<1x128x128xf32> to vector<128x128xf32>
    %cst_373 = arith.constant dense<0.000000e+00> : vector<8x128xf32>
    %602 = tpu.matmul %592, %601, %cst_373 {dimension_numbers = #tpu.dot_dimension_numbers<[1], [0], [0], [1], [0, 0, 1, 1], [], []>} : vector<8x128xf32>, vector<128x128xf32>, vector<8x128xf32> -> vector<8x128xf32>
    %603 = arith.addf %599, %602 : vector<8x128xf32>
    %cst_374 = arith.constant dense<0.000000e+00> : vector<2x128xf32>
    %604 = tpu.matmul %11, %603, %cst_374 {dimension_numbers = #tpu.dot_dimension_numbers<[1], [0], [0], [1], [0, 0, 1, 1], [], []>} : vector<2x8xf32>, vector<8x128xf32>, vector<2x128xf32> -> vector<2x128xf32>
    %605 = arith.mulf %603, %603 : vector<8x128xf32>
    %cst_375 = arith.constant dense<0.000000e+00> : vector<2x128xf32>
    %606 = tpu.matmul %11, %605, %cst_375 {dimension_numbers = #tpu.dot_dimension_numbers<[1], [0], [0], [1], [0, 0, 1, 1], [], []>} : vector<2x8xf32>, vector<8x128xf32>, vector<2x128xf32> -> vector<2x128xf32>
    %cst_376 = arith.constant dense<0.000000e+00> : vector<2xf32>
    %607 = vector.multi_reduction <add>, %604, %cst_376 [1] : vector<2x128xf32> to vector<2xf32>
    %608 = vector.shape_cast %607 : vector<2xf32> to vector<2x1xf32>
    %cst_377 = arith.constant 0.001953125 : f32
    %609 = vector.broadcast %cst_377 : f32 to vector<2x1xf32>
    %610 = arith.mulf %608, %609 : vector<2x1xf32>
    %cst_378 = arith.constant dense<0.000000e+00> : vector<2xf32>
    %611 = vector.multi_reduction <add>, %606, %cst_378 [1] : vector<2x128xf32> to vector<2xf32>
    %612 = vector.shape_cast %611 : vector<2xf32> to vector<2x1xf32>
    %cst_379 = arith.constant 0.001953125 : f32
    %613 = vector.broadcast %cst_379 : f32 to vector<2x1xf32>
    %614 = arith.mulf %612, %613 : vector<2x1xf32>
    %615 = arith.mulf %610, %610 : vector<2x1xf32>
    %616 = arith.subf %614, %615 : vector<2x1xf32>
    %cst_380 = arith.constant 9.99999974E-6 : f32
    %617 = vector.broadcast %cst_380 : f32 to vector<2x1xf32>
    %618 = arith.addf %616, %617 : vector<2x1xf32>
    %619 = math.rsqrt %618 : vector<2x1xf32>
    %cst_381 = arith.constant dense<0.000000e+00> : vector<8x1xf32>
    %620 = tpu.matmul %8, %610, %cst_381 {dimension_numbers = #tpu.dot_dimension_numbers<[1], [0], [0], [1], [0, 0, 1, 1], [], []>} : vector<8x2xf32>, vector<2x1xf32>, vector<8x1xf32> -> vector<8x1xf32>
    %cst_382 = arith.constant dense<0.000000e+00> : vector<8x1xf32>
    %621 = tpu.matmul %8, %619, %cst_382 {dimension_numbers = #tpu.dot_dimension_numbers<[1], [0], [0], [1], [0, 0, 1, 1], [], []>} : vector<8x2xf32>, vector<2x1xf32>, vector<8x1xf32> -> vector<8x1xf32>
    %622 = vector.broadcast %620 : vector<8x1xf32> to vector<8x128xf32>
    %623 = arith.subf %603, %622 : vector<8x128xf32>
    %624 = vector.broadcast %621 : vector<8x1xf32> to vector<8x128xf32>
    %625 = arith.mulf %623, %624 : vector<8x128xf32>
    %c0_383 = arith.constant 0 : index
    %c0_384 = arith.constant 0 : index
    %626 = vector.load %arg60[%c0_383, %c0_384] : memref<1x128xf32, #tpu.memory_space<vmem>>, vector<1x128xf32>
    %627 = vector.broadcast %626 : vector<1x128xf32> to vector<8x128xf32>
    %628 = arith.mulf %625, %627 : vector<8x128xf32>
    %c0_385 = arith.constant 0 : index
    %c0_386 = arith.constant 0 : index
    %629 = vector.load %arg58[%c0_385, %c0_386] : memref<1x128xf32, #tpu.memory_space<vmem>>, vector<1x128xf32>
    %630 = vector.broadcast %629 : vector<1x128xf32> to vector<8x128xf32>
    %631 = arith.addf %628, %630 : vector<8x128xf32>
    %cst_387 = arith.constant 0.000000e+00 : f32
    %632 = vector.broadcast %cst_387 : f32 to vector<8x128xf32>
    %633 = arith.maximumf %631, %632 : vector<8x128xf32>
    %c1_i32_388 = arith.constant 1 : i32
    %634 = tpu.dynamic_rotate %633 by %c1_i32_388 dim 0 : vector<8x128xf32>, i32 -> vector<8x128xf32>
    %635 = vector.broadcast %1 : vector<8x1xf32> to vector<8x128xf32>
    %636 = arith.mulf %634, %635 : vector<8x128xf32>
    %c7_i32_389 = arith.constant 7 : i32
    %637 = tpu.dynamic_rotate %633 by %c7_i32_389 dim 0 : vector<8x128xf32>, i32 -> vector<8x128xf32>
    %638 = vector.broadcast %4 : vector<8x1xf32> to vector<8x128xf32>
    %639 = arith.mulf %637, %638 : vector<8x128xf32>
    %c0_390 = arith.constant 0 : index
    %c0_391 = arith.constant 0 : index
    %c0_392 = arith.constant 0 : index
    %640 = vector.load %arg63[%c0_390, %c0_391, %c0_392] : memref<3x128x128xf32, #tpu.memory_space<vmem>>, vector<1x128x128xf32>
    %641 = vector.shape_cast %640 : vector<1x128x128xf32> to vector<128x128xf32>
    %cst_393 = arith.constant dense<0.000000e+00> : vector<8x128xf32>
    %642 = tpu.matmul %636, %641, %cst_393 {dimension_numbers = #tpu.dot_dimension_numbers<[1], [0], [0], [1], [0, 0, 1, 1], [], []>} : vector<8x128xf32>, vector<128x128xf32>, vector<8x128xf32> -> vector<8x128xf32>
    %c1_394 = arith.constant 1 : index
    %c0_395 = arith.constant 0 : index
    %c0_396 = arith.constant 0 : index
    %643 = vector.load %arg63[%c1_394, %c0_395, %c0_396] : memref<3x128x128xf32, #tpu.memory_space<vmem>>, vector<1x128x128xf32>
    %644 = vector.shape_cast %643 : vector<1x128x128xf32> to vector<128x128xf32>
    %cst_397 = arith.constant dense<0.000000e+00> : vector<8x128xf32>
    %645 = tpu.matmul %633, %644, %cst_397 {dimension_numbers = #tpu.dot_dimension_numbers<[1], [0], [0], [1], [0, 0, 1, 1], [], []>} : vector<8x128xf32>, vector<128x128xf32>, vector<8x128xf32> -> vector<8x128xf32>
    %646 = arith.addf %642, %645 : vector<8x128xf32>
    %c2_398 = arith.constant 2 : index
    %c0_399 = arith.constant 0 : index
    %c0_400 = arith.constant 0 : index
    %647 = vector.load %arg63[%c2_398, %c0_399, %c0_400] : memref<3x128x128xf32, #tpu.memory_space<vmem>>, vector<1x128x128xf32>
    %648 = vector.shape_cast %647 : vector<1x128x128xf32> to vector<128x128xf32>
    %cst_401 = arith.constant dense<0.000000e+00> : vector<8x128xf32>
    %649 = tpu.matmul %639, %648, %cst_401 {dimension_numbers = #tpu.dot_dimension_numbers<[1], [0], [0], [1], [0, 0, 1, 1], [], []>} : vector<8x128xf32>, vector<128x128xf32>, vector<8x128xf32> -> vector<8x128xf32>
    %650 = arith.addf %646, %649 : vector<8x128xf32>
    %cst_402 = arith.constant dense<0.000000e+00> : vector<2x128xf32>
    %651 = tpu.matmul %11, %650, %cst_402 {dimension_numbers = #tpu.dot_dimension_numbers<[1], [0], [0], [1], [0, 0, 1, 1], [], []>} : vector<2x8xf32>, vector<8x128xf32>, vector<2x128xf32> -> vector<2x128xf32>
    %652 = arith.mulf %650, %650 : vector<8x128xf32>
    %cst_403 = arith.constant dense<0.000000e+00> : vector<2x128xf32>
    %653 = tpu.matmul %11, %652, %cst_403 {dimension_numbers = #tpu.dot_dimension_numbers<[1], [0], [0], [1], [0, 0, 1, 1], [], []>} : vector<2x8xf32>, vector<8x128xf32>, vector<2x128xf32> -> vector<2x128xf32>
    %cst_404 = arith.constant dense<0.000000e+00> : vector<2xf32>
    %654 = vector.multi_reduction <add>, %651, %cst_404 [1] : vector<2x128xf32> to vector<2xf32>
    %655 = vector.shape_cast %654 : vector<2xf32> to vector<2x1xf32>
    %cst_405 = arith.constant 0.001953125 : f32
    %656 = vector.broadcast %cst_405 : f32 to vector<2x1xf32>
    %657 = arith.mulf %655, %656 : vector<2x1xf32>
    %cst_406 = arith.constant dense<0.000000e+00> : vector<2xf32>
    %658 = vector.multi_reduction <add>, %653, %cst_406 [1] : vector<2x128xf32> to vector<2xf32>
    %659 = vector.shape_cast %658 : vector<2xf32> to vector<2x1xf32>
    %cst_407 = arith.constant 0.001953125 : f32
    %660 = vector.broadcast %cst_407 : f32 to vector<2x1xf32>
    %661 = arith.mulf %659, %660 : vector<2x1xf32>
    %662 = arith.mulf %657, %657 : vector<2x1xf32>
    %663 = arith.subf %661, %662 : vector<2x1xf32>
    %cst_408 = arith.constant 9.99999974E-6 : f32
    %664 = vector.broadcast %cst_408 : f32 to vector<2x1xf32>
    %665 = arith.addf %663, %664 : vector<2x1xf32>
    %666 = math.rsqrt %665 : vector<2x1xf32>
    %cst_409 = arith.constant dense<0.000000e+00> : vector<8x1xf32>
    %667 = tpu.matmul %8, %657, %cst_409 {dimension_numbers = #tpu.dot_dimension_numbers<[1], [0], [0], [1], [0, 0, 1, 1], [], []>} : vector<8x2xf32>, vector<2x1xf32>, vector<8x1xf32> -> vector<8x1xf32>
    %cst_410 = arith.constant dense<0.000000e+00> : vector<8x1xf32>
    %668 = tpu.matmul %8, %666, %cst_410 {dimension_numbers = #tpu.dot_dimension_numbers<[1], [0], [0], [1], [0, 0, 1, 1], [], []>} : vector<8x2xf32>, vector<2x1xf32>, vector<8x1xf32> -> vector<8x1xf32>
    %669 = vector.broadcast %667 : vector<8x1xf32> to vector<8x128xf32>
    %670 = arith.subf %650, %669 : vector<8x128xf32>
    %671 = vector.broadcast %668 : vector<8x1xf32> to vector<8x128xf32>
    %672 = arith.mulf %670, %671 : vector<8x128xf32>
    %c0_411 = arith.constant 0 : index
    %c0_412 = arith.constant 0 : index
    %673 = vector.load %arg61[%c0_411, %c0_412] : memref<1x128xf32, #tpu.memory_space<vmem>>, vector<1x128xf32>
    %674 = vector.broadcast %673 : vector<1x128xf32> to vector<8x128xf32>
    %675 = arith.mulf %672, %674 : vector<8x128xf32>
    %c0_413 = arith.constant 0 : index
    %c0_414 = arith.constant 0 : index
    %676 = vector.load %arg59[%c0_413, %c0_414] : memref<1x128xf32, #tpu.memory_space<vmem>>, vector<1x128xf32>
    %677 = vector.broadcast %676 : vector<1x128xf32> to vector<8x128xf32>
    %678 = arith.addf %675, %677 : vector<8x128xf32>
    %679 = arith.addf %678, %586 : vector<8x128xf32>
    %cst_415 = arith.constant 0.000000e+00 : f32
    %680 = vector.broadcast %cst_415 : f32 to vector<8x128xf32>
    %681 = arith.maximumf %679, %680 : vector<8x128xf32>
    %c1_i32_416 = arith.constant 1 : i32
    %682 = tpu.dynamic_rotate %681 by %c1_i32_416 dim 0 : vector<8x128xf32>, i32 -> vector<8x128xf32>
    %683 = vector.broadcast %1 : vector<8x1xf32> to vector<8x128xf32>
    %684 = arith.mulf %682, %683 : vector<8x128xf32>
    %c7_i32_417 = arith.constant 7 : i32
    %685 = tpu.dynamic_rotate %681 by %c7_i32_417 dim 0 : vector<8x128xf32>, i32 -> vector<8x128xf32>
    %686 = vector.broadcast %4 : vector<8x1xf32> to vector<8x128xf32>
    %687 = arith.mulf %685, %686 : vector<8x128xf32>
    %c0_418 = arith.constant 0 : index
    %c0_419 = arith.constant 0 : index
    %c0_420 = arith.constant 0 : index
    %688 = vector.load %arg72[%c0_418, %c0_419, %c0_420] : memref<3x128x32xf32, #tpu.memory_space<vmem>>, vector<1x128x32xf32>
    %689 = vector.shape_cast %688 : vector<1x128x32xf32> to vector<128x32xf32>
    %cst_421 = arith.constant dense<0.000000e+00> : vector<8x32xf32>
    %690 = tpu.matmul %684, %689, %cst_421 {dimension_numbers = #tpu.dot_dimension_numbers<[1], [0], [0], [1], [0, 0, 1, 1], [], []>} : vector<8x128xf32>, vector<128x32xf32>, vector<8x32xf32> -> vector<8x32xf32>
    %c1_422 = arith.constant 1 : index
    %c0_423 = arith.constant 0 : index
    %c0_424 = arith.constant 0 : index
    %691 = vector.load %arg72[%c1_422, %c0_423, %c0_424] : memref<3x128x32xf32, #tpu.memory_space<vmem>>, vector<1x128x32xf32>
    %692 = vector.shape_cast %691 : vector<1x128x32xf32> to vector<128x32xf32>
    %cst_425 = arith.constant dense<0.000000e+00> : vector<8x32xf32>
    %693 = tpu.matmul %681, %692, %cst_425 {dimension_numbers = #tpu.dot_dimension_numbers<[1], [0], [0], [1], [0, 0, 1, 1], [], []>} : vector<8x128xf32>, vector<128x32xf32>, vector<8x32xf32> -> vector<8x32xf32>
    %694 = arith.addf %690, %693 : vector<8x32xf32>
    %c2_426 = arith.constant 2 : index
    %c0_427 = arith.constant 0 : index
    %c0_428 = arith.constant 0 : index
    %695 = vector.load %arg72[%c2_426, %c0_427, %c0_428] : memref<3x128x32xf32, #tpu.memory_space<vmem>>, vector<1x128x32xf32>
    %696 = vector.shape_cast %695 : vector<1x128x32xf32> to vector<128x32xf32>
    %cst_429 = arith.constant dense<0.000000e+00> : vector<8x32xf32>
    %697 = tpu.matmul %687, %696, %cst_429 {dimension_numbers = #tpu.dot_dimension_numbers<[1], [0], [0], [1], [0, 0, 1, 1], [], []>} : vector<8x128xf32>, vector<128x32xf32>, vector<8x32xf32> -> vector<8x32xf32>
    %698 = arith.addf %694, %697 : vector<8x32xf32>
    %cst_430 = arith.constant dense<0.000000e+00> : vector<2x32xf32>
    %699 = tpu.matmul %11, %698, %cst_430 {dimension_numbers = #tpu.dot_dimension_numbers<[1], [0], [0], [1], [0, 0, 1, 1], [], []>} : vector<2x8xf32>, vector<8x32xf32>, vector<2x32xf32> -> vector<2x32xf32>
    %700 = arith.mulf %698, %698 : vector<8x32xf32>
    %cst_431 = arith.constant dense<0.000000e+00> : vector<2x32xf32>
    %701 = tpu.matmul %11, %700, %cst_431 {dimension_numbers = #tpu.dot_dimension_numbers<[1], [0], [0], [1], [0, 0, 1, 1], [], []>} : vector<2x8xf32>, vector<8x32xf32>, vector<2x32xf32> -> vector<2x32xf32>
    %cst_432 = arith.constant dense<0.000000e+00> : vector<2xf32>
    %702 = vector.multi_reduction <add>, %699, %cst_432 [1] : vector<2x32xf32> to vector<2xf32>
    %703 = vector.shape_cast %702 : vector<2xf32> to vector<2x1xf32>
    %cst_433 = arith.constant 7.812500e-03 : f32
    %704 = vector.broadcast %cst_433 : f32 to vector<2x1xf32>
    %705 = arith.mulf %703, %704 : vector<2x1xf32>
    %cst_434 = arith.constant dense<0.000000e+00> : vector<2xf32>
    %706 = vector.multi_reduction <add>, %701, %cst_434 [1] : vector<2x32xf32> to vector<2xf32>
    %707 = vector.shape_cast %706 : vector<2xf32> to vector<2x1xf32>
    %cst_435 = arith.constant 7.812500e-03 : f32
    %708 = vector.broadcast %cst_435 : f32 to vector<2x1xf32>
    %709 = arith.mulf %707, %708 : vector<2x1xf32>
    %710 = arith.mulf %705, %705 : vector<2x1xf32>
    %711 = arith.subf %709, %710 : vector<2x1xf32>
    %cst_436 = arith.constant 9.99999974E-6 : f32
    %712 = vector.broadcast %cst_436 : f32 to vector<2x1xf32>
    %713 = arith.addf %711, %712 : vector<2x1xf32>
    %714 = math.rsqrt %713 : vector<2x1xf32>
    %cst_437 = arith.constant dense<0.000000e+00> : vector<8x1xf32>
    %715 = tpu.matmul %8, %705, %cst_437 {dimension_numbers = #tpu.dot_dimension_numbers<[1], [0], [0], [1], [0, 0, 1, 1], [], []>} : vector<8x2xf32>, vector<2x1xf32>, vector<8x1xf32> -> vector<8x1xf32>
    %cst_438 = arith.constant dense<0.000000e+00> : vector<8x1xf32>
    %716 = tpu.matmul %8, %714, %cst_438 {dimension_numbers = #tpu.dot_dimension_numbers<[1], [0], [0], [1], [0, 0, 1, 1], [], []>} : vector<8x2xf32>, vector<2x1xf32>, vector<8x1xf32> -> vector<8x1xf32>
    %717 = vector.broadcast %715 : vector<8x1xf32> to vector<8x32xf32>
    %718 = arith.subf %698, %717 : vector<8x32xf32>
    %719 = vector.broadcast %716 : vector<8x1xf32> to vector<8x32xf32>
    %720 = arith.mulf %718, %719 : vector<8x32xf32>
    %c0_439 = arith.constant 0 : index
    %c0_440 = arith.constant 0 : index
    %721 = vector.load %arg71[%c0_439, %c0_440] : memref<1x32xf32, #tpu.memory_space<vmem>>, vector<1x32xf32>
    %722 = vector.broadcast %721 : vector<1x32xf32> to vector<8x32xf32>
    %723 = arith.mulf %720, %722 : vector<8x32xf32>
    %c0_441 = arith.constant 0 : index
    %c0_442 = arith.constant 0 : index
    %724 = vector.load %arg70[%c0_441, %c0_442] : memref<1x32xf32, #tpu.memory_space<vmem>>, vector<1x32xf32>
    %725 = vector.broadcast %724 : vector<1x32xf32> to vector<8x32xf32>
    %726 = arith.addf %723, %725 : vector<8x32xf32>
    %cst_443 = arith.constant dense<0.000000e+00> : vector<16x32xf32>
    %727 = tpu.matmul %16, %726, %cst_443 {dimension_numbers = #tpu.dot_dimension_numbers<[1], [0], [0], [1], [0, 0, 1, 1], [], []>} : vector<16x8xf32>, vector<8x32xf32>, vector<16x32xf32> -> vector<16x32xf32>
    %c1_i32_444 = arith.constant 1 : i32
    %728 = tpu.dynamic_rotate %459 by %c1_i32_444 dim 0 : vector<16x64xf32>, i32 -> vector<16x64xf32>
    %729 = vector.broadcast %2 : vector<16x1xf32> to vector<16x64xf32>
    %730 = arith.mulf %728, %729 : vector<16x64xf32>
    %c15_i32_445 = arith.constant 15 : i32
    %731 = tpu.dynamic_rotate %459 by %c15_i32_445 dim 0 : vector<16x64xf32>, i32 -> vector<16x64xf32>
    %732 = vector.broadcast %5 : vector<16x1xf32> to vector<16x64xf32>
    %733 = arith.mulf %731, %732 : vector<16x64xf32>
    %c0_446 = arith.constant 0 : index
    %c0_447 = arith.constant 0 : index
    %c0_448 = arith.constant 0 : index
    %734 = vector.load %arg69[%c0_446, %c0_447, %c0_448] : memref<3x64x32xf32, #tpu.memory_space<vmem>>, vector<1x64x32xf32>
    %735 = vector.shape_cast %734 : vector<1x64x32xf32> to vector<64x32xf32>
    %cst_449 = arith.constant dense<0.000000e+00> : vector<16x32xf32>
    %736 = tpu.matmul %730, %735, %cst_449 {dimension_numbers = #tpu.dot_dimension_numbers<[1], [0], [0], [1], [0, 0, 1, 1], [], []>} : vector<16x64xf32>, vector<64x32xf32>, vector<16x32xf32> -> vector<16x32xf32>
    %c1_450 = arith.constant 1 : index
    %c0_451 = arith.constant 0 : index
    %c0_452 = arith.constant 0 : index
    %737 = vector.load %arg69[%c1_450, %c0_451, %c0_452] : memref<3x64x32xf32, #tpu.memory_space<vmem>>, vector<1x64x32xf32>
    %738 = vector.shape_cast %737 : vector<1x64x32xf32> to vector<64x32xf32>
    %cst_453 = arith.constant dense<0.000000e+00> : vector<16x32xf32>
    %739 = tpu.matmul %459, %738, %cst_453 {dimension_numbers = #tpu.dot_dimension_numbers<[1], [0], [0], [1], [0, 0, 1, 1], [], []>} : vector<16x64xf32>, vector<64x32xf32>, vector<16x32xf32> -> vector<16x32xf32>
    %740 = arith.addf %736, %739 : vector<16x32xf32>
    %c2_454 = arith.constant 2 : index
    %c0_455 = arith.constant 0 : index
    %c0_456 = arith.constant 0 : index
    %741 = vector.load %arg69[%c2_454, %c0_455, %c0_456] : memref<3x64x32xf32, #tpu.memory_space<vmem>>, vector<1x64x32xf32>
    %742 = vector.shape_cast %741 : vector<1x64x32xf32> to vector<64x32xf32>
    %cst_457 = arith.constant dense<0.000000e+00> : vector<16x32xf32>
    %743 = tpu.matmul %733, %742, %cst_457 {dimension_numbers = #tpu.dot_dimension_numbers<[1], [0], [0], [1], [0, 0, 1, 1], [], []>} : vector<16x64xf32>, vector<64x32xf32>, vector<16x32xf32> -> vector<16x32xf32>
    %744 = arith.addf %740, %743 : vector<16x32xf32>
    %cst_458 = arith.constant dense<0.000000e+00> : vector<2x32xf32>
    %745 = tpu.matmul %12, %744, %cst_458 {dimension_numbers = #tpu.dot_dimension_numbers<[1], [0], [0], [1], [0, 0, 1, 1], [], []>} : vector<2x16xf32>, vector<16x32xf32>, vector<2x32xf32> -> vector<2x32xf32>
    %746 = arith.mulf %744, %744 : vector<16x32xf32>
    %cst_459 = arith.constant dense<0.000000e+00> : vector<2x32xf32>
    %747 = tpu.matmul %12, %746, %cst_459 {dimension_numbers = #tpu.dot_dimension_numbers<[1], [0], [0], [1], [0, 0, 1, 1], [], []>} : vector<2x16xf32>, vector<16x32xf32>, vector<2x32xf32> -> vector<2x32xf32>
    %cst_460 = arith.constant dense<0.000000e+00> : vector<2xf32>
    %748 = vector.multi_reduction <add>, %745, %cst_460 [1] : vector<2x32xf32> to vector<2xf32>
    %749 = vector.shape_cast %748 : vector<2xf32> to vector<2x1xf32>
    %cst_461 = arith.constant 3.906250e-03 : f32
    %750 = vector.broadcast %cst_461 : f32 to vector<2x1xf32>
    %751 = arith.mulf %749, %750 : vector<2x1xf32>
    %cst_462 = arith.constant dense<0.000000e+00> : vector<2xf32>
    %752 = vector.multi_reduction <add>, %747, %cst_462 [1] : vector<2x32xf32> to vector<2xf32>
    %753 = vector.shape_cast %752 : vector<2xf32> to vector<2x1xf32>
    %cst_463 = arith.constant 3.906250e-03 : f32
    %754 = vector.broadcast %cst_463 : f32 to vector<2x1xf32>
    %755 = arith.mulf %753, %754 : vector<2x1xf32>
    %756 = arith.mulf %751, %751 : vector<2x1xf32>
    %757 = arith.subf %755, %756 : vector<2x1xf32>
    %cst_464 = arith.constant 9.99999974E-6 : f32
    %758 = vector.broadcast %cst_464 : f32 to vector<2x1xf32>
    %759 = arith.addf %757, %758 : vector<2x1xf32>
    %760 = math.rsqrt %759 : vector<2x1xf32>
    %cst_465 = arith.constant dense<0.000000e+00> : vector<16x1xf32>
    %761 = tpu.matmul %9, %751, %cst_465 {dimension_numbers = #tpu.dot_dimension_numbers<[1], [0], [0], [1], [0, 0, 1, 1], [], []>} : vector<16x2xf32>, vector<2x1xf32>, vector<16x1xf32> -> vector<16x1xf32>
    %cst_466 = arith.constant dense<0.000000e+00> : vector<16x1xf32>
    %762 = tpu.matmul %9, %760, %cst_466 {dimension_numbers = #tpu.dot_dimension_numbers<[1], [0], [0], [1], [0, 0, 1, 1], [], []>} : vector<16x2xf32>, vector<2x1xf32>, vector<16x1xf32> -> vector<16x1xf32>
    %763 = vector.broadcast %761 : vector<16x1xf32> to vector<16x32xf32>
    %764 = arith.subf %744, %763 : vector<16x32xf32>
    %765 = vector.broadcast %762 : vector<16x1xf32> to vector<16x32xf32>
    %766 = arith.mulf %764, %765 : vector<16x32xf32>
    %c0_467 = arith.constant 0 : index
    %c0_468 = arith.constant 0 : index
    %767 = vector.load %arg68[%c0_467, %c0_468] : memref<1x32xf32, #tpu.memory_space<vmem>>, vector<1x32xf32>
    %768 = vector.broadcast %767 : vector<1x32xf32> to vector<16x32xf32>
    %769 = arith.mulf %766, %768 : vector<16x32xf32>
    %c0_469 = arith.constant 0 : index
    %c0_470 = arith.constant 0 : index
    %770 = vector.load %arg67[%c0_469, %c0_470] : memref<1x32xf32, #tpu.memory_space<vmem>>, vector<1x32xf32>
    %771 = vector.broadcast %770 : vector<1x32xf32> to vector<16x32xf32>
    %772 = arith.addf %769, %771 : vector<16x32xf32>
    %773 = arith.addf %727, %772 : vector<16x32xf32>
    %cst_471 = arith.constant dense<0.000000e+00> : vector<32x32xf32>
    %774 = tpu.matmul %15, %773, %cst_471 {dimension_numbers = #tpu.dot_dimension_numbers<[1], [0], [0], [1], [0, 0, 1, 1], [], []>} : vector<32x16xf32>, vector<16x32xf32>, vector<32x32xf32> -> vector<32x32xf32>
    %c1_i32_472 = arith.constant 1 : i32
    %775 = tpu.dynamic_rotate %237 by %c1_i32_472 dim 0 : vector<32x32xf32>, i32 -> vector<32x32xf32>
    %776 = vector.broadcast %0 : vector<32x1xf32> to vector<32x32xf32>
    %777 = arith.mulf %775, %776 : vector<32x32xf32>
    %c31_i32_473 = arith.constant 31 : i32
    %778 = tpu.dynamic_rotate %237 by %c31_i32_473 dim 0 : vector<32x32xf32>, i32 -> vector<32x32xf32>
    %779 = vector.broadcast %3 : vector<32x1xf32> to vector<32x32xf32>
    %780 = arith.mulf %778, %779 : vector<32x32xf32>
    %c0_474 = arith.constant 0 : index
    %c0_475 = arith.constant 0 : index
    %c0_476 = arith.constant 0 : index
    %781 = vector.load %arg66[%c0_474, %c0_475, %c0_476] : memref<3x32x32xf32, #tpu.memory_space<vmem>>, vector<1x32x32xf32>
    %782 = vector.shape_cast %781 : vector<1x32x32xf32> to vector<32x32xf32>
    %cst_477 = arith.constant dense<0.000000e+00> : vector<32x32xf32>
    %783 = tpu.matmul %777, %782, %cst_477 {dimension_numbers = #tpu.dot_dimension_numbers<[1], [0], [0], [1], [0, 0, 1, 1], [], []>} : vector<32x32xf32>, vector<32x32xf32>, vector<32x32xf32> -> vector<32x32xf32>
    %c1_478 = arith.constant 1 : index
    %c0_479 = arith.constant 0 : index
    %c0_480 = arith.constant 0 : index
    %784 = vector.load %arg66[%c1_478, %c0_479, %c0_480] : memref<3x32x32xf32, #tpu.memory_space<vmem>>, vector<1x32x32xf32>
    %785 = vector.shape_cast %784 : vector<1x32x32xf32> to vector<32x32xf32>
    %cst_481 = arith.constant dense<0.000000e+00> : vector<32x32xf32>
    %786 = tpu.matmul %237, %785, %cst_481 {dimension_numbers = #tpu.dot_dimension_numbers<[1], [0], [0], [1], [0, 0, 1, 1], [], []>} : vector<32x32xf32>, vector<32x32xf32>, vector<32x32xf32> -> vector<32x32xf32>
    %787 = arith.addf %783, %786 : vector<32x32xf32>
    %c2_482 = arith.constant 2 : index
    %c0_483 = arith.constant 0 : index
    %c0_484 = arith.constant 0 : index
    %788 = vector.load %arg66[%c2_482, %c0_483, %c0_484] : memref<3x32x32xf32, #tpu.memory_space<vmem>>, vector<1x32x32xf32>
    %789 = vector.shape_cast %788 : vector<1x32x32xf32> to vector<32x32xf32>
    %cst_485 = arith.constant dense<0.000000e+00> : vector<32x32xf32>
    %790 = tpu.matmul %780, %789, %cst_485 {dimension_numbers = #tpu.dot_dimension_numbers<[1], [0], [0], [1], [0, 0, 1, 1], [], []>} : vector<32x32xf32>, vector<32x32xf32>, vector<32x32xf32> -> vector<32x32xf32>
    %791 = arith.addf %787, %790 : vector<32x32xf32>
    %cst_486 = arith.constant dense<0.000000e+00> : vector<2x32xf32>
    %792 = tpu.matmul %10, %791, %cst_486 {dimension_numbers = #tpu.dot_dimension_numbers<[1], [0], [0], [1], [0, 0, 1, 1], [], []>} : vector<2x32xf32>, vector<32x32xf32>, vector<2x32xf32> -> vector<2x32xf32>
    %793 = arith.mulf %791, %791 : vector<32x32xf32>
    %cst_487 = arith.constant dense<0.000000e+00> : vector<2x32xf32>
    %794 = tpu.matmul %10, %793, %cst_487 {dimension_numbers = #tpu.dot_dimension_numbers<[1], [0], [0], [1], [0, 0, 1, 1], [], []>} : vector<2x32xf32>, vector<32x32xf32>, vector<2x32xf32> -> vector<2x32xf32>
    %cst_488 = arith.constant dense<0.000000e+00> : vector<2xf32>
    %795 = vector.multi_reduction <add>, %792, %cst_488 [1] : vector<2x32xf32> to vector<2xf32>
    %796 = vector.shape_cast %795 : vector<2xf32> to vector<2x1xf32>
    %cst_489 = arith.constant 0.001953125 : f32
    %797 = vector.broadcast %cst_489 : f32 to vector<2x1xf32>
    %798 = arith.mulf %796, %797 : vector<2x1xf32>
    %cst_490 = arith.constant dense<0.000000e+00> : vector<2xf32>
    %799 = vector.multi_reduction <add>, %794, %cst_490 [1] : vector<2x32xf32> to vector<2xf32>
    %800 = vector.shape_cast %799 : vector<2xf32> to vector<2x1xf32>
    %cst_491 = arith.constant 0.001953125 : f32
    %801 = vector.broadcast %cst_491 : f32 to vector<2x1xf32>
    %802 = arith.mulf %800, %801 : vector<2x1xf32>
    %803 = arith.mulf %798, %798 : vector<2x1xf32>
    %804 = arith.subf %802, %803 : vector<2x1xf32>
    %cst_492 = arith.constant 9.99999974E-6 : f32
    %805 = vector.broadcast %cst_492 : f32 to vector<2x1xf32>
    %806 = arith.addf %804, %805 : vector<2x1xf32>
    %807 = math.rsqrt %806 : vector<2x1xf32>
    %cst_493 = arith.constant dense<0.000000e+00> : vector<32x1xf32>
    %808 = tpu.matmul %7, %798, %cst_493 {dimension_numbers = #tpu.dot_dimension_numbers<[1], [0], [0], [1], [0, 0, 1, 1], [], []>} : vector<32x2xf32>, vector<2x1xf32>, vector<32x1xf32> -> vector<32x1xf32>
    %cst_494 = arith.constant dense<0.000000e+00> : vector<32x1xf32>
    %809 = tpu.matmul %7, %807, %cst_494 {dimension_numbers = #tpu.dot_dimension_numbers<[1], [0], [0], [1], [0, 0, 1, 1], [], []>} : vector<32x2xf32>, vector<2x1xf32>, vector<32x1xf32> -> vector<32x1xf32>
    %810 = vector.broadcast %808 : vector<32x1xf32> to vector<32x32xf32>
    %811 = arith.subf %791, %810 : vector<32x32xf32>
    %812 = vector.broadcast %809 : vector<32x1xf32> to vector<32x32xf32>
    %813 = arith.mulf %811, %812 : vector<32x32xf32>
    %c0_495 = arith.constant 0 : index
    %c0_496 = arith.constant 0 : index
    %814 = vector.load %arg65[%c0_495, %c0_496] : memref<1x32xf32, #tpu.memory_space<vmem>>, vector<1x32xf32>
    %815 = vector.broadcast %814 : vector<1x32xf32> to vector<32x32xf32>
    %816 = arith.mulf %813, %815 : vector<32x32xf32>
    %c0_497 = arith.constant 0 : index
    %c0_498 = arith.constant 0 : index
    %817 = vector.load %arg64[%c0_497, %c0_498] : memref<1x32xf32, #tpu.memory_space<vmem>>, vector<1x32xf32>
    %818 = vector.broadcast %817 : vector<1x32xf32> to vector<32x32xf32>
    %819 = arith.addf %816, %818 : vector<32x32xf32>
    %820 = arith.addf %774, %819 : vector<32x32xf32>
    %c1_i32_499 = arith.constant 1 : i32
    %821 = tpu.dynamic_rotate %820 by %c1_i32_499 dim 0 : vector<32x32xf32>, i32 -> vector<32x32xf32>
    %822 = vector.broadcast %0 : vector<32x1xf32> to vector<32x32xf32>
    %823 = arith.mulf %821, %822 : vector<32x32xf32>
    %c31_i32_500 = arith.constant 31 : i32
    %824 = tpu.dynamic_rotate %820 by %c31_i32_500 dim 0 : vector<32x32xf32>, i32 -> vector<32x32xf32>
    %825 = vector.broadcast %3 : vector<32x1xf32> to vector<32x32xf32>
    %826 = arith.mulf %824, %825 : vector<32x32xf32>
    %c0_501 = arith.constant 0 : index
    %c0_502 = arith.constant 0 : index
    %c0_503 = arith.constant 0 : index
    %827 = vector.load %arg77[%c0_501, %c0_502, %c0_503] : memref<3x32x32xf32, #tpu.memory_space<vmem>>, vector<1x32x32xf32>
    %828 = vector.shape_cast %827 : vector<1x32x32xf32> to vector<32x32xf32>
    %cst_504 = arith.constant dense<0.000000e+00> : vector<32x32xf32>
    %829 = tpu.matmul %823, %828, %cst_504 {dimension_numbers = #tpu.dot_dimension_numbers<[1], [0], [0], [1], [0, 0, 1, 1], [], []>} : vector<32x32xf32>, vector<32x32xf32>, vector<32x32xf32> -> vector<32x32xf32>
    %c1_505 = arith.constant 1 : index
    %c0_506 = arith.constant 0 : index
    %c0_507 = arith.constant 0 : index
    %830 = vector.load %arg77[%c1_505, %c0_506, %c0_507] : memref<3x32x32xf32, #tpu.memory_space<vmem>>, vector<1x32x32xf32>
    %831 = vector.shape_cast %830 : vector<1x32x32xf32> to vector<32x32xf32>
    %cst_508 = arith.constant dense<0.000000e+00> : vector<32x32xf32>
    %832 = tpu.matmul %820, %831, %cst_508 {dimension_numbers = #tpu.dot_dimension_numbers<[1], [0], [0], [1], [0, 0, 1, 1], [], []>} : vector<32x32xf32>, vector<32x32xf32>, vector<32x32xf32> -> vector<32x32xf32>
    %833 = arith.addf %829, %832 : vector<32x32xf32>
    %c2_509 = arith.constant 2 : index
    %c0_510 = arith.constant 0 : index
    %c0_511 = arith.constant 0 : index
    %834 = vector.load %arg77[%c2_509, %c0_510, %c0_511] : memref<3x32x32xf32, #tpu.memory_space<vmem>>, vector<1x32x32xf32>
    %835 = vector.shape_cast %834 : vector<1x32x32xf32> to vector<32x32xf32>
    %cst_512 = arith.constant dense<0.000000e+00> : vector<32x32xf32>
    %836 = tpu.matmul %826, %835, %cst_512 {dimension_numbers = #tpu.dot_dimension_numbers<[1], [0], [0], [1], [0, 0, 1, 1], [], []>} : vector<32x32xf32>, vector<32x32xf32>, vector<32x32xf32> -> vector<32x32xf32>
    %837 = arith.addf %833, %836 : vector<32x32xf32>
    %cst_513 = arith.constant dense<0.000000e+00> : vector<2x32xf32>
    %838 = tpu.matmul %10, %837, %cst_513 {dimension_numbers = #tpu.dot_dimension_numbers<[1], [0], [0], [1], [0, 0, 1, 1], [], []>} : vector<2x32xf32>, vector<32x32xf32>, vector<2x32xf32> -> vector<2x32xf32>
    %839 = arith.mulf %837, %837 : vector<32x32xf32>
    %cst_514 = arith.constant dense<0.000000e+00> : vector<2x32xf32>
    %840 = tpu.matmul %10, %839, %cst_514 {dimension_numbers = #tpu.dot_dimension_numbers<[1], [0], [0], [1], [0, 0, 1, 1], [], []>} : vector<2x32xf32>, vector<32x32xf32>, vector<2x32xf32> -> vector<2x32xf32>
    %cst_515 = arith.constant dense<0.000000e+00> : vector<2xf32>
    %841 = vector.multi_reduction <add>, %838, %cst_515 [1] : vector<2x32xf32> to vector<2xf32>
    %842 = vector.shape_cast %841 : vector<2xf32> to vector<2x1xf32>
    %cst_516 = arith.constant 0.001953125 : f32
    %843 = vector.broadcast %cst_516 : f32 to vector<2x1xf32>
    %844 = arith.mulf %842, %843 : vector<2x1xf32>
    %cst_517 = arith.constant dense<0.000000e+00> : vector<2xf32>
    %845 = vector.multi_reduction <add>, %840, %cst_517 [1] : vector<2x32xf32> to vector<2xf32>
    %846 = vector.shape_cast %845 : vector<2xf32> to vector<2x1xf32>
    %cst_518 = arith.constant 0.001953125 : f32
    %847 = vector.broadcast %cst_518 : f32 to vector<2x1xf32>
    %848 = arith.mulf %846, %847 : vector<2x1xf32>
    %849 = arith.mulf %844, %844 : vector<2x1xf32>
    %850 = arith.subf %848, %849 : vector<2x1xf32>
    %cst_519 = arith.constant 9.99999974E-6 : f32
    %851 = vector.broadcast %cst_519 : f32 to vector<2x1xf32>
    %852 = arith.addf %850, %851 : vector<2x1xf32>
    %853 = math.rsqrt %852 : vector<2x1xf32>
    %cst_520 = arith.constant dense<0.000000e+00> : vector<32x1xf32>
    %854 = tpu.matmul %7, %844, %cst_520 {dimension_numbers = #tpu.dot_dimension_numbers<[1], [0], [0], [1], [0, 0, 1, 1], [], []>} : vector<32x2xf32>, vector<2x1xf32>, vector<32x1xf32> -> vector<32x1xf32>
    %cst_521 = arith.constant dense<0.000000e+00> : vector<32x1xf32>
    %855 = tpu.matmul %7, %853, %cst_521 {dimension_numbers = #tpu.dot_dimension_numbers<[1], [0], [0], [1], [0, 0, 1, 1], [], []>} : vector<32x2xf32>, vector<2x1xf32>, vector<32x1xf32> -> vector<32x1xf32>
    %856 = vector.broadcast %854 : vector<32x1xf32> to vector<32x32xf32>
    %857 = arith.subf %837, %856 : vector<32x32xf32>
    %858 = vector.broadcast %855 : vector<32x1xf32> to vector<32x32xf32>
    %859 = arith.mulf %857, %858 : vector<32x32xf32>
    %c0_522 = arith.constant 0 : index
    %c0_523 = arith.constant 0 : index
    %860 = vector.load %arg75[%c0_522, %c0_523] : memref<1x32xf32, #tpu.memory_space<vmem>>, vector<1x32xf32>
    %861 = vector.broadcast %860 : vector<1x32xf32> to vector<32x32xf32>
    %862 = arith.mulf %859, %861 : vector<32x32xf32>
    %c0_524 = arith.constant 0 : index
    %c0_525 = arith.constant 0 : index
    %863 = vector.load %arg73[%c0_524, %c0_525] : memref<1x32xf32, #tpu.memory_space<vmem>>, vector<1x32xf32>
    %864 = vector.broadcast %863 : vector<1x32xf32> to vector<32x32xf32>
    %865 = arith.addf %862, %864 : vector<32x32xf32>
    %cst_526 = arith.constant 0.000000e+00 : f32
    %866 = vector.broadcast %cst_526 : f32 to vector<32x32xf32>
    %867 = arith.maximumf %865, %866 : vector<32x32xf32>
    %c1_i32_527 = arith.constant 1 : i32
    %868 = tpu.dynamic_rotate %867 by %c1_i32_527 dim 0 : vector<32x32xf32>, i32 -> vector<32x32xf32>
    %869 = vector.broadcast %0 : vector<32x1xf32> to vector<32x32xf32>
    %870 = arith.mulf %868, %869 : vector<32x32xf32>
    %c31_i32_528 = arith.constant 31 : i32
    %871 = tpu.dynamic_rotate %867 by %c31_i32_528 dim 0 : vector<32x32xf32>, i32 -> vector<32x32xf32>
    %872 = vector.broadcast %3 : vector<32x1xf32> to vector<32x32xf32>
    %873 = arith.mulf %871, %872 : vector<32x32xf32>
    %c0_529 = arith.constant 0 : index
    %c0_530 = arith.constant 0 : index
    %c0_531 = arith.constant 0 : index
    %874 = vector.load %arg78[%c0_529, %c0_530, %c0_531] : memref<3x32x32xf32, #tpu.memory_space<vmem>>, vector<1x32x32xf32>
    %875 = vector.shape_cast %874 : vector<1x32x32xf32> to vector<32x32xf32>
    %cst_532 = arith.constant dense<0.000000e+00> : vector<32x32xf32>
    %876 = tpu.matmul %870, %875, %cst_532 {dimension_numbers = #tpu.dot_dimension_numbers<[1], [0], [0], [1], [0, 0, 1, 1], [], []>} : vector<32x32xf32>, vector<32x32xf32>, vector<32x32xf32> -> vector<32x32xf32>
    %c1_533 = arith.constant 1 : index
    %c0_534 = arith.constant 0 : index
    %c0_535 = arith.constant 0 : index
    %877 = vector.load %arg78[%c1_533, %c0_534, %c0_535] : memref<3x32x32xf32, #tpu.memory_space<vmem>>, vector<1x32x32xf32>
    %878 = vector.shape_cast %877 : vector<1x32x32xf32> to vector<32x32xf32>
    %cst_536 = arith.constant dense<0.000000e+00> : vector<32x32xf32>
    %879 = tpu.matmul %867, %878, %cst_536 {dimension_numbers = #tpu.dot_dimension_numbers<[1], [0], [0], [1], [0, 0, 1, 1], [], []>} : vector<32x32xf32>, vector<32x32xf32>, vector<32x32xf32> -> vector<32x32xf32>
    %880 = arith.addf %876, %879 : vector<32x32xf32>
    %c2_537 = arith.constant 2 : index
    %c0_538 = arith.constant 0 : index
    %c0_539 = arith.constant 0 : index
    %881 = vector.load %arg78[%c2_537, %c0_538, %c0_539] : memref<3x32x32xf32, #tpu.memory_space<vmem>>, vector<1x32x32xf32>
    %882 = vector.shape_cast %881 : vector<1x32x32xf32> to vector<32x32xf32>
    %cst_540 = arith.constant dense<0.000000e+00> : vector<32x32xf32>
    %883 = tpu.matmul %873, %882, %cst_540 {dimension_numbers = #tpu.dot_dimension_numbers<[1], [0], [0], [1], [0, 0, 1, 1], [], []>} : vector<32x32xf32>, vector<32x32xf32>, vector<32x32xf32> -> vector<32x32xf32>
    %884 = arith.addf %880, %883 : vector<32x32xf32>
    %cst_541 = arith.constant dense<0.000000e+00> : vector<2x32xf32>
    %885 = tpu.matmul %10, %884, %cst_541 {dimension_numbers = #tpu.dot_dimension_numbers<[1], [0], [0], [1], [0, 0, 1, 1], [], []>} : vector<2x32xf32>, vector<32x32xf32>, vector<2x32xf32> -> vector<2x32xf32>
    %886 = arith.mulf %884, %884 : vector<32x32xf32>
    %cst_542 = arith.constant dense<0.000000e+00> : vector<2x32xf32>
    %887 = tpu.matmul %10, %886, %cst_542 {dimension_numbers = #tpu.dot_dimension_numbers<[1], [0], [0], [1], [0, 0, 1, 1], [], []>} : vector<2x32xf32>, vector<32x32xf32>, vector<2x32xf32> -> vector<2x32xf32>
    %cst_543 = arith.constant dense<0.000000e+00> : vector<2xf32>
    %888 = vector.multi_reduction <add>, %885, %cst_543 [1] : vector<2x32xf32> to vector<2xf32>
    %889 = vector.shape_cast %888 : vector<2xf32> to vector<2x1xf32>
    %cst_544 = arith.constant 0.001953125 : f32
    %890 = vector.broadcast %cst_544 : f32 to vector<2x1xf32>
    %891 = arith.mulf %889, %890 : vector<2x1xf32>
    %cst_545 = arith.constant dense<0.000000e+00> : vector<2xf32>
    %892 = vector.multi_reduction <add>, %887, %cst_545 [1] : vector<2x32xf32> to vector<2xf32>
    %893 = vector.shape_cast %892 : vector<2xf32> to vector<2x1xf32>
    %cst_546 = arith.constant 0.001953125 : f32
    %894 = vector.broadcast %cst_546 : f32 to vector<2x1xf32>
    %895 = arith.mulf %893, %894 : vector<2x1xf32>
    %896 = arith.mulf %891, %891 : vector<2x1xf32>
    %897 = arith.subf %895, %896 : vector<2x1xf32>
    %cst_547 = arith.constant 9.99999974E-6 : f32
    %898 = vector.broadcast %cst_547 : f32 to vector<2x1xf32>
    %899 = arith.addf %897, %898 : vector<2x1xf32>
    %900 = math.rsqrt %899 : vector<2x1xf32>
    %cst_548 = arith.constant dense<0.000000e+00> : vector<32x1xf32>
    %901 = tpu.matmul %7, %891, %cst_548 {dimension_numbers = #tpu.dot_dimension_numbers<[1], [0], [0], [1], [0, 0, 1, 1], [], []>} : vector<32x2xf32>, vector<2x1xf32>, vector<32x1xf32> -> vector<32x1xf32>
    %cst_549 = arith.constant dense<0.000000e+00> : vector<32x1xf32>
    %902 = tpu.matmul %7, %900, %cst_549 {dimension_numbers = #tpu.dot_dimension_numbers<[1], [0], [0], [1], [0, 0, 1, 1], [], []>} : vector<32x2xf32>, vector<2x1xf32>, vector<32x1xf32> -> vector<32x1xf32>
    %903 = vector.broadcast %901 : vector<32x1xf32> to vector<32x32xf32>
    %904 = arith.subf %884, %903 : vector<32x32xf32>
    %905 = vector.broadcast %902 : vector<32x1xf32> to vector<32x32xf32>
    %906 = arith.mulf %904, %905 : vector<32x32xf32>
    %c0_550 = arith.constant 0 : index
    %c0_551 = arith.constant 0 : index
    %907 = vector.load %arg76[%c0_550, %c0_551] : memref<1x32xf32, #tpu.memory_space<vmem>>, vector<1x32xf32>
    %908 = vector.broadcast %907 : vector<1x32xf32> to vector<32x32xf32>
    %909 = arith.mulf %906, %908 : vector<32x32xf32>
    %c0_552 = arith.constant 0 : index
    %c0_553 = arith.constant 0 : index
    %910 = vector.load %arg74[%c0_552, %c0_553] : memref<1x32xf32, #tpu.memory_space<vmem>>, vector<1x32xf32>
    %911 = vector.broadcast %910 : vector<1x32xf32> to vector<32x32xf32>
    %912 = arith.addf %909, %911 : vector<32x32xf32>
    %913 = arith.addf %912, %820 : vector<32x32xf32>
    %cst_554 = arith.constant dense<0.000000e+00> : vector<2x32xf32>
    %914 = tpu.matmul %6, %913, %cst_554 {dimension_numbers = #tpu.dot_dimension_numbers<[1], [0], [0], [1], [0, 0, 1, 1], [], []>} : vector<2x32xf32>, vector<32x32xf32>, vector<2x32xf32> -> vector<2x32xf32>
    %c0_555 = arith.constant 0 : index
    %c0_556 = arith.constant 0 : index
    %915 = vector.load %arg79[%c0_555, %c0_556] : memref<2x32xf32, #tpu.memory_space<vmem>>, vector<2x32xf32>
    tpu.vector_store %arg79[%c0_555, %c0_556], %914 {strides = array<i32>} : memref<2x32xf32, #tpu.memory_space<vmem>>, vector<2x32xf32>,
    return
  }
  func.func @transform_0(%arg0: i32) -> (i32, i32) {
    %c0_i32 = arith.constant 0 : i32
    %c0_i32_0 = arith.constant 0 : i32
    return %arg0, %c0_i32 : i32, i32
  }
  func.func @transform_1(%arg0: i32) -> (i32, i32) {
    %c0_i32 = arith.constant 0 : i32
    %c0_i32_0 = arith.constant 0 : i32
    %c0_i32_1 = arith.constant 0 : i32
    return %c0_i32, %c0_i32_0 : i32, i32
  }
  func.func @transform_2(%arg0: i32) -> (i32, i32) {
    %c0_i32 = arith.constant 0 : i32
    %c0_i32_0 = arith.constant 0 : i32
    %c0_i32_1 = arith.constant 0 : i32
    return %c0_i32, %c0_i32_0 : i32, i32
  }
  func.func @transform_3(%arg0: i32) -> (i32, i32) {
    %c0_i32 = arith.constant 0 : i32
    %c0_i32_0 = arith.constant 0 : i32
    %c0_i32_1 = arith.constant 0 : i32
    return %c0_i32, %c0_i32_0 : i32, i32
  }
  func.func @transform_4(%arg0: i32) -> (i32, i32) {
    %c0_i32 = arith.constant 0 : i32
    %c0_i32_0 = arith.constant 0 : i32
    %c0_i32_1 = arith.constant 0 : i32
    return %c0_i32, %c0_i32_0 : i32, i32
  }
  func.func @transform_5(%arg0: i32) -> (i32, i32) {
    %c0_i32 = arith.constant 0 : i32
    %c0_i32_0 = arith.constant 0 : i32
    %c0_i32_1 = arith.constant 0 : i32
    return %c0_i32, %c0_i32_0 : i32, i32
  }
  func.func @transform_6(%arg0: i32) -> (i32, i32) {
    %c0_i32 = arith.constant 0 : i32
    %c0_i32_0 = arith.constant 0 : i32
    %c0_i32_1 = arith.constant 0 : i32
    return %c0_i32, %c0_i32_0 : i32, i32
  }
  func.func @transform_7(%arg0: i32) -> (i32, i32) {
    %c0_i32 = arith.constant 0 : i32
    %c0_i32_0 = arith.constant 0 : i32
    %c0_i32_1 = arith.constant 0 : i32
    return %c0_i32, %c0_i32_0 : i32, i32
  }
  func.func @transform_8(%arg0: i32) -> (i32, i32) {
    %c0_i32 = arith.constant 0 : i32
    %c0_i32_0 = arith.constant 0 : i32
    %c0_i32_1 = arith.constant 0 : i32
    return %c0_i32, %c0_i32_0 : i32, i32
  }
  func.func @transform_9(%arg0: i32) -> (i32, i32) {
    %c0_i32 = arith.constant 0 : i32
    %c0_i32_0 = arith.constant 0 : i32
    %c0_i32_1 = arith.constant 0 : i32
    return %c0_i32, %c0_i32_0 : i32, i32
  }
  func.func @transform_10(%arg0: i32) -> (i32, i32) {
    %c0_i32 = arith.constant 0 : i32
    %c0_i32_0 = arith.constant 0 : i32
    %c0_i32_1 = arith.constant 0 : i32
    return %c0_i32, %c0_i32_0 : i32, i32
  }
  func.func @transform_11(%arg0: i32) -> (i32, i32) {
    %c0_i32 = arith.constant 0 : i32
    %c0_i32_0 = arith.constant 0 : i32
    %c0_i32_1 = arith.constant 0 : i32
    return %c0_i32, %c0_i32_0 : i32, i32
  }
  func.func @transform_12(%arg0: i32) -> (i32, i32) {
    %c0_i32 = arith.constant 0 : i32
    %c0_i32_0 = arith.constant 0 : i32
    %c0_i32_1 = arith.constant 0 : i32
    return %c0_i32, %c0_i32_0 : i32, i32
  }
  func.func @transform_13(%arg0: i32) -> (i32, i32) {
    %c0_i32 = arith.constant 0 : i32
    %c0_i32_0 = arith.constant 0 : i32
    %c0_i32_1 = arith.constant 0 : i32
    return %c0_i32, %c0_i32_0 : i32, i32
  }
  func.func @transform_14(%arg0: i32) -> (i32, i32) {
    %c0_i32 = arith.constant 0 : i32
    %c0_i32_0 = arith.constant 0 : i32
    %c0_i32_1 = arith.constant 0 : i32
    return %c0_i32, %c0_i32_0 : i32, i32
  }
  func.func @transform_15(%arg0: i32) -> (i32, i32) {
    %c0_i32 = arith.constant 0 : i32
    %c0_i32_0 = arith.constant 0 : i32
    %c0_i32_1 = arith.constant 0 : i32
    return %c0_i32, %c0_i32_0 : i32, i32
  }
  func.func @transform_16(%arg0: i32) -> (i32, i32) {
    %c0_i32 = arith.constant 0 : i32
    %c0_i32_0 = arith.constant 0 : i32
    %c0_i32_1 = arith.constant 0 : i32
    return %c0_i32, %c0_i32_0 : i32, i32
  }
  func.func @transform_17(%arg0: i32) -> (i32, i32) {
    %c0_i32 = arith.constant 0 : i32
    %c0_i32_0 = arith.constant 0 : i32
    %c0_i32_1 = arith.constant 0 : i32
    return %c0_i32, %c0_i32_0 : i32, i32
  }
  func.func @transform_18(%arg0: i32) -> (i32, i32) {
    %c0_i32 = arith.constant 0 : i32
    %c0_i32_0 = arith.constant 0 : i32
    %c0_i32_1 = arith.constant 0 : i32
    return %c0_i32, %c0_i32_0 : i32, i32
  }
  func.func @transform_19(%arg0: i32) -> (i32, i32) {
    %c0_i32 = arith.constant 0 : i32
    %c0_i32_0 = arith.constant 0 : i32
    %c0_i32_1 = arith.constant 0 : i32
    return %c0_i32, %c0_i32_0 : i32, i32
  }
  func.func @transform_20(%arg0: i32) -> (i32, i32) {
    %c0_i32 = arith.constant 0 : i32
    %c0_i32_0 = arith.constant 0 : i32
    %c0_i32_1 = arith.constant 0 : i32
    return %c0_i32, %c0_i32_0 : i32, i32
  }
  func.func @transform_21(%arg0: i32) -> (i32, i32) {
    %c0_i32 = arith.constant 0 : i32
    %c0_i32_0 = arith.constant 0 : i32
    %c0_i32_1 = arith.constant 0 : i32
    return %c0_i32, %c0_i32_0 : i32, i32
  }
  func.func @transform_22(%arg0: i32) -> (i32, i32) {
    %c0_i32 = arith.constant 0 : i32
    %c0_i32_0 = arith.constant 0 : i32
    %c0_i32_1 = arith.constant 0 : i32
    return %c0_i32, %c0_i32_0 : i32, i32
  }
  func.func @transform_23(%arg0: i32) -> (i32, i32) {
    %c0_i32 = arith.constant 0 : i32
    %c0_i32_0 = arith.constant 0 : i32
    %c0_i32_1 = arith.constant 0 : i32
    return %c0_i32, %c0_i32_0 : i32, i32
  }
  func.func @transform_24(%arg0: i32) -> (i32, i32, i32) {
    %c0_i32 = arith.constant 0 : i32
    %c0_i32_0 = arith.constant 0 : i32
    %c0_i32_1 = arith.constant 0 : i32
    %c0_i32_2 = arith.constant 0 : i32
    return %c0_i32, %c0_i32_0, %c0_i32_1 : i32, i32, i32
  }
  func.func @transform_25(%arg0: i32) -> (i32, i32, i32) {
    %c0_i32 = arith.constant 0 : i32
    %c0_i32_0 = arith.constant 0 : i32
    %c0_i32_1 = arith.constant 0 : i32
    %c0_i32_2 = arith.constant 0 : i32
    return %c0_i32, %c0_i32_0, %c0_i32_1 : i32, i32, i32
  }
  func.func @transform_26(%arg0: i32) -> (i32, i32) {
    %c0_i32 = arith.constant 0 : i32
    %c0_i32_0 = arith.constant 0 : i32
    %c0_i32_1 = arith.constant 0 : i32
    return %c0_i32, %c0_i32_0 : i32, i32
  }
  func.func @transform_27(%arg0: i32) -> (i32, i32) {
    %c0_i32 = arith.constant 0 : i32
    %c0_i32_0 = arith.constant 0 : i32
    %c0_i32_1 = arith.constant 0 : i32
    return %c0_i32, %c0_i32_0 : i32, i32
  }
  func.func @transform_28(%arg0: i32) -> (i32, i32) {
    %c0_i32 = arith.constant 0 : i32
    %c0_i32_0 = arith.constant 0 : i32
    %c0_i32_1 = arith.constant 0 : i32
    return %c0_i32, %c0_i32_0 : i32, i32
  }
  func.func @transform_29(%arg0: i32) -> (i32, i32) {
    %c0_i32 = arith.constant 0 : i32
    %c0_i32_0 = arith.constant 0 : i32
    %c0_i32_1 = arith.constant 0 : i32
    return %c0_i32, %c0_i32_0 : i32, i32
  }
  func.func @transform_30(%arg0: i32) -> (i32, i32) {
    %c0_i32 = arith.constant 0 : i32
    %c0_i32_0 = arith.constant 0 : i32
    %c0_i32_1 = arith.constant 0 : i32
    return %c0_i32, %c0_i32_0 : i32, i32
  }
  func.func @transform_31(%arg0: i32) -> (i32, i32, i32) {
    %c0_i32 = arith.constant 0 : i32
    %c0_i32_0 = arith.constant 0 : i32
    %c0_i32_1 = arith.constant 0 : i32
    %c0_i32_2 = arith.constant 0 : i32
    return %c0_i32, %c0_i32_0, %c0_i32_1 : i32, i32, i32
  }
  func.func @transform_32(%arg0: i32) -> (i32, i32, i32) {
    %c0_i32 = arith.constant 0 : i32
    %c0_i32_0 = arith.constant 0 : i32
    %c0_i32_1 = arith.constant 0 : i32
    %c0_i32_2 = arith.constant 0 : i32
    return %c0_i32, %c0_i32_0, %c0_i32_1 : i32, i32, i32
  }
  func.func @transform_33(%arg0: i32) -> (i32, i32) {
    %c0_i32 = arith.constant 0 : i32
    %c0_i32_0 = arith.constant 0 : i32
    %c0_i32_1 = arith.constant 0 : i32
    return %c0_i32, %c0_i32_0 : i32, i32
  }
  func.func @transform_34(%arg0: i32) -> (i32, i32) {
    %c0_i32 = arith.constant 0 : i32
    %c0_i32_0 = arith.constant 0 : i32
    %c0_i32_1 = arith.constant 0 : i32
    return %c0_i32, %c0_i32_0 : i32, i32
  }
  func.func @transform_35(%arg0: i32) -> (i32, i32) {
    %c0_i32 = arith.constant 0 : i32
    %c0_i32_0 = arith.constant 0 : i32
    %c0_i32_1 = arith.constant 0 : i32
    return %c0_i32, %c0_i32_0 : i32, i32
  }
  func.func @transform_36(%arg0: i32) -> (i32, i32) {
    %c0_i32 = arith.constant 0 : i32
    %c0_i32_0 = arith.constant 0 : i32
    %c0_i32_1 = arith.constant 0 : i32
    return %c0_i32, %c0_i32_0 : i32, i32
  }
  func.func @transform_37(%arg0: i32) -> (i32, i32) {
    %c0_i32 = arith.constant 0 : i32
    %c0_i32_0 = arith.constant 0 : i32
    %c0_i32_1 = arith.constant 0 : i32
    return %c0_i32, %c0_i32_0 : i32, i32
  }
  func.func @transform_38(%arg0: i32) -> (i32, i32) {
    %c0_i32 = arith.constant 0 : i32
    %c0_i32_0 = arith.constant 0 : i32
    %c0_i32_1 = arith.constant 0 : i32
    return %c0_i32, %c0_i32_0 : i32, i32
  }
  func.func @transform_39(%arg0: i32) -> (i32, i32, i32) {
    %c0_i32 = arith.constant 0 : i32
    %c0_i32_0 = arith.constant 0 : i32
    %c0_i32_1 = arith.constant 0 : i32
    %c0_i32_2 = arith.constant 0 : i32
    return %c0_i32, %c0_i32_0, %c0_i32_1 : i32, i32, i32
  }
  func.func @transform_40(%arg0: i32) -> (i32, i32, i32) {
    %c0_i32 = arith.constant 0 : i32
    %c0_i32_0 = arith.constant 0 : i32
    %c0_i32_1 = arith.constant 0 : i32
    %c0_i32_2 = arith.constant 0 : i32
    return %c0_i32, %c0_i32_0, %c0_i32_1 : i32, i32, i32
  }
  func.func @transform_41(%arg0: i32) -> (i32, i32) {
    %c0_i32 = arith.constant 0 : i32
    %c0_i32_0 = arith.constant 0 : i32
    %c0_i32_1 = arith.constant 0 : i32
    return %c0_i32, %c0_i32_0 : i32, i32
  }
  func.func @transform_42(%arg0: i32) -> (i32, i32) {
    %c0_i32 = arith.constant 0 : i32
    %c0_i32_0 = arith.constant 0 : i32
    %c0_i32_1 = arith.constant 0 : i32
    return %c0_i32, %c0_i32_0 : i32, i32
  }
  func.func @transform_43(%arg0: i32) -> (i32, i32) {
    %c0_i32 = arith.constant 0 : i32
    %c0_i32_0 = arith.constant 0 : i32
    %c0_i32_1 = arith.constant 0 : i32
    return %c0_i32, %c0_i32_0 : i32, i32
  }
  func.func @transform_44(%arg0: i32) -> (i32, i32) {
    %c0_i32 = arith.constant 0 : i32
    %c0_i32_0 = arith.constant 0 : i32
    %c0_i32_1 = arith.constant 0 : i32
    return %c0_i32, %c0_i32_0 : i32, i32
  }
  func.func @transform_45(%arg0: i32) -> (i32, i32) {
    %c0_i32 = arith.constant 0 : i32
    %c0_i32_0 = arith.constant 0 : i32
    %c0_i32_1 = arith.constant 0 : i32
    return %c0_i32, %c0_i32_0 : i32, i32
  }
  func.func @transform_46(%arg0: i32) -> (i32, i32, i32) {
    %c0_i32 = arith.constant 0 : i32
    %c0_i32_0 = arith.constant 0 : i32
    %c0_i32_1 = arith.constant 0 : i32
    %c0_i32_2 = arith.constant 0 : i32
    return %c0_i32, %c0_i32_0, %c0_i32_1 : i32, i32, i32
  }
  func.func @transform_47(%arg0: i32) -> (i32, i32, i32) {
    %c0_i32 = arith.constant 0 : i32
    %c0_i32_0 = arith.constant 0 : i32
    %c0_i32_1 = arith.constant 0 : i32
    %c0_i32_2 = arith.constant 0 : i32
    return %c0_i32, %c0_i32_0, %c0_i32_1 : i32, i32, i32
  }
  func.func @transform_48(%arg0: i32) -> (i32, i32) {
    %c0_i32 = arith.constant 0 : i32
    %c0_i32_0 = arith.constant 0 : i32
    %c0_i32_1 = arith.constant 0 : i32
    return %c0_i32, %c0_i32_0 : i32, i32
  }
  func.func @transform_49(%arg0: i32) -> (i32, i32) {
    %c0_i32 = arith.constant 0 : i32
    %c0_i32_0 = arith.constant 0 : i32
    %c0_i32_1 = arith.constant 0 : i32
    return %c0_i32, %c0_i32_0 : i32, i32
  }
  func.func @transform_50(%arg0: i32) -> (i32, i32) {
    %c0_i32 = arith.constant 0 : i32
    %c0_i32_0 = arith.constant 0 : i32
    %c0_i32_1 = arith.constant 0 : i32
    return %c0_i32, %c0_i32_0 : i32, i32
  }
  func.func @transform_51(%arg0: i32) -> (i32, i32) {
    %c0_i32 = arith.constant 0 : i32
    %c0_i32_0 = arith.constant 0 : i32
    %c0_i32_1 = arith.constant 0 : i32
    return %c0_i32, %c0_i32_0 : i32, i32
  }
  func.func @transform_52(%arg0: i32) -> (i32, i32) {
    %c0_i32 = arith.constant 0 : i32
    %c0_i32_0 = arith.constant 0 : i32
    %c0_i32_1 = arith.constant 0 : i32
    return %c0_i32, %c0_i32_0 : i32, i32
  }
  func.func @transform_53(%arg0: i32) -> (i32, i32) {
    %c0_i32 = arith.constant 0 : i32
    %c0_i32_0 = arith.constant 0 : i32
    %c0_i32_1 = arith.constant 0 : i32
    return %c0_i32, %c0_i32_0 : i32, i32
  }
  func.func @transform_54(%arg0: i32) -> (i32, i32, i32) {
    %c0_i32 = arith.constant 0 : i32
    %c0_i32_0 = arith.constant 0 : i32
    %c0_i32_1 = arith.constant 0 : i32
    %c0_i32_2 = arith.constant 0 : i32
    return %c0_i32, %c0_i32_0, %c0_i32_1 : i32, i32, i32
  }
  func.func @transform_55(%arg0: i32) -> (i32, i32, i32) {
    %c0_i32 = arith.constant 0 : i32
    %c0_i32_0 = arith.constant 0 : i32
    %c0_i32_1 = arith.constant 0 : i32
    %c0_i32_2 = arith.constant 0 : i32
    return %c0_i32, %c0_i32_0, %c0_i32_1 : i32, i32, i32
  }
  func.func @transform_56(%arg0: i32) -> (i32, i32) {
    %c0_i32 = arith.constant 0 : i32
    %c0_i32_0 = arith.constant 0 : i32
    %c0_i32_1 = arith.constant 0 : i32
    return %c0_i32, %c0_i32_0 : i32, i32
  }
  func.func @transform_57(%arg0: i32) -> (i32, i32) {
    %c0_i32 = arith.constant 0 : i32
    %c0_i32_0 = arith.constant 0 : i32
    %c0_i32_1 = arith.constant 0 : i32
    return %c0_i32, %c0_i32_0 : i32, i32
  }
  func.func @transform_58(%arg0: i32) -> (i32, i32) {
    %c0_i32 = arith.constant 0 : i32
    %c0_i32_0 = arith.constant 0 : i32
    %c0_i32_1 = arith.constant 0 : i32
    return %c0_i32, %c0_i32_0 : i32, i32
  }
  func.func @transform_59(%arg0: i32) -> (i32, i32) {
    %c0_i32 = arith.constant 0 : i32
    %c0_i32_0 = arith.constant 0 : i32
    %c0_i32_1 = arith.constant 0 : i32
    return %c0_i32, %c0_i32_0 : i32, i32
  }
  func.func @transform_60(%arg0: i32) -> (i32, i32) {
    %c0_i32 = arith.constant 0 : i32
    %c0_i32_0 = arith.constant 0 : i32
    %c0_i32_1 = arith.constant 0 : i32
    return %c0_i32, %c0_i32_0 : i32, i32
  }
  func.func @transform_61(%arg0: i32) -> (i32, i32, i32) {
    %c0_i32 = arith.constant 0 : i32
    %c0_i32_0 = arith.constant 0 : i32
    %c0_i32_1 = arith.constant 0 : i32
    %c0_i32_2 = arith.constant 0 : i32
    return %c0_i32, %c0_i32_0, %c0_i32_1 : i32, i32, i32
  }
  func.func @transform_62(%arg0: i32) -> (i32, i32, i32) {
    %c0_i32 = arith.constant 0 : i32
    %c0_i32_0 = arith.constant 0 : i32
    %c0_i32_1 = arith.constant 0 : i32
    %c0_i32_2 = arith.constant 0 : i32
    return %c0_i32, %c0_i32_0, %c0_i32_1 : i32, i32, i32
  }
  func.func @transform_63(%arg0: i32) -> (i32, i32) {
    %c0_i32 = arith.constant 0 : i32
    %c0_i32_0 = arith.constant 0 : i32
    %c0_i32_1 = arith.constant 0 : i32
    return %c0_i32, %c0_i32_0 : i32, i32
  }
  func.func @transform_64(%arg0: i32) -> (i32, i32) {
    %c0_i32 = arith.constant 0 : i32
    %c0_i32_0 = arith.constant 0 : i32
    %c0_i32_1 = arith.constant 0 : i32
    return %c0_i32, %c0_i32_0 : i32, i32
  }
  func.func @transform_65(%arg0: i32) -> (i32, i32, i32) {
    %c0_i32 = arith.constant 0 : i32
    %c0_i32_0 = arith.constant 0 : i32
    %c0_i32_1 = arith.constant 0 : i32
    %c0_i32_2 = arith.constant 0 : i32
    return %c0_i32, %c0_i32_0, %c0_i32_1 : i32, i32, i32
  }
  func.func @transform_66(%arg0: i32) -> (i32, i32) {
    %c0_i32 = arith.constant 0 : i32
    %c0_i32_0 = arith.constant 0 : i32
    %c0_i32_1 = arith.constant 0 : i32
    return %c0_i32, %c0_i32_0 : i32, i32
  }
  func.func @transform_67(%arg0: i32) -> (i32, i32) {
    %c0_i32 = arith.constant 0 : i32
    %c0_i32_0 = arith.constant 0 : i32
    %c0_i32_1 = arith.constant 0 : i32
    return %c0_i32, %c0_i32_0 : i32, i32
  }
  func.func @transform_68(%arg0: i32) -> (i32, i32, i32) {
    %c0_i32 = arith.constant 0 : i32
    %c0_i32_0 = arith.constant 0 : i32
    %c0_i32_1 = arith.constant 0 : i32
    %c0_i32_2 = arith.constant 0 : i32
    return %c0_i32, %c0_i32_0, %c0_i32_1 : i32, i32, i32
  }
  func.func @transform_69(%arg0: i32) -> (i32, i32) {
    %c0_i32 = arith.constant 0 : i32
    %c0_i32_0 = arith.constant 0 : i32
    %c0_i32_1 = arith.constant 0 : i32
    return %c0_i32, %c0_i32_0 : i32, i32
  }
  func.func @transform_70(%arg0: i32) -> (i32, i32) {
    %c0_i32 = arith.constant 0 : i32
    %c0_i32_0 = arith.constant 0 : i32
    %c0_i32_1 = arith.constant 0 : i32
    return %c0_i32, %c0_i32_0 : i32, i32
  }
  func.func @transform_71(%arg0: i32) -> (i32, i32, i32) {
    %c0_i32 = arith.constant 0 : i32
    %c0_i32_0 = arith.constant 0 : i32
    %c0_i32_1 = arith.constant 0 : i32
    %c0_i32_2 = arith.constant 0 : i32
    return %c0_i32, %c0_i32_0, %c0_i32_1 : i32, i32, i32
  }
  func.func @transform_72(%arg0: i32) -> (i32, i32) {
    %c0_i32 = arith.constant 0 : i32
    %c0_i32_0 = arith.constant 0 : i32
    %c0_i32_1 = arith.constant 0 : i32
    return %c0_i32, %c0_i32_0 : i32, i32
  }
  func.func @transform_73(%arg0: i32) -> (i32, i32) {
    %c0_i32 = arith.constant 0 : i32
    %c0_i32_0 = arith.constant 0 : i32
    %c0_i32_1 = arith.constant 0 : i32
    return %c0_i32, %c0_i32_0 : i32, i32
  }
  func.func @transform_74(%arg0: i32) -> (i32, i32) {
    %c0_i32 = arith.constant 0 : i32
    %c0_i32_0 = arith.constant 0 : i32
    %c0_i32_1 = arith.constant 0 : i32
    return %c0_i32, %c0_i32_0 : i32, i32
  }
  func.func @transform_75(%arg0: i32) -> (i32, i32) {
    %c0_i32 = arith.constant 0 : i32
    %c0_i32_0 = arith.constant 0 : i32
    %c0_i32_1 = arith.constant 0 : i32
    return %c0_i32, %c0_i32_0 : i32, i32
  }
  func.func @transform_76(%arg0: i32) -> (i32, i32, i32) {
    %c0_i32 = arith.constant 0 : i32
    %c0_i32_0 = arith.constant 0 : i32
    %c0_i32_1 = arith.constant 0 : i32
    %c0_i32_2 = arith.constant 0 : i32
    return %c0_i32, %c0_i32_0, %c0_i32_1 : i32, i32, i32
  }
  func.func @transform_77(%arg0: i32) -> (i32, i32, i32) {
    %c0_i32 = arith.constant 0 : i32
    %c0_i32_0 = arith.constant 0 : i32
    %c0_i32_1 = arith.constant 0 : i32
    %c0_i32_2 = arith.constant 0 : i32
    return %c0_i32, %c0_i32_0, %c0_i32_1 : i32, i32, i32
  }
  func.func @transform_78(%arg0: i32) -> (i32, i32) {
    %c0_i32 = arith.constant 0 : i32
    %c0_i32_0 = arith.constant 0 : i32
    return %arg0, %c0_i32 : i32, i32
  }
}

</mosaic_0001>

<bundles_post_ra>
// kernel: actor_net_forward.1
= control target key start
LH: loop header
LB: loop body
LE: loop exit
PB: predicated region body
PF: predicated region fallthrough
CT: control target
= control target key end

     0   :  { %s8806_s6 = smov 1   ;;  %s8807_s10 = smov 2   ;;  %s11114_s0 = inlined_call_operand.smem [shape: u32[79], index: -1, kind: input, shape index: {}] }
   0x1   :  { %s8939_s5 = sld [smem:[%s11114_s0]]   ;;  %s8808_s14 = smov 3  }
   0x2   :  { %s8944_s9 = sld [smem:[%s11114_s0 + %s8806_s6]]   ;;  %s8809_s18 = smov 4  }
   0x3   :  { %s8949_s13 = sld [smem:[%s11114_s0 + %s8807_s10]]   ;;  %s8810_s22 = smov 5  }
   0x4   :  { %s8954_s17 = sld [smem:[%s11114_s0 + %s8808_s14]]   ;;  %s8811_s26 = smov 6  }
   0x5   :  { %s8959_s21 = sld [smem:[%s11114_s0 + %s8809_s18]]   ;;  %s8812_s30 = smov 7  }
   0x6   :  { %s8964_s25 = sld [smem:[%s11114_s0 + %s8810_s22]]   ;;  %s8813_s4 = smov 8  }
   0x7   :  { %11162 = sst [smem:[#allocation88_spill]] %s8939_s5  ;;  %s8814_s10 = smov 9  }
   0x8   :  { %11163 = sst [smem:[#allocation89_spill]] %s8944_s9  ;;  %s8815_s15 = smov 10  }
   0x9   :  { %11164 = sst [smem:[#allocation90_spill]] %s8949_s13  ;;  %s8816_s20 = smov 11  }
   0xa   :  { %11165 = sst [smem:[#allocation91_spill]] %s8954_s17  ;;  %s8818_s1 = smov 13  }
   0xb   :  { %11166 = sst [smem:[#allocation92_spill]] %s8959_s21  ;;  %s8819_s7 = smov 14  }
   0xc   :  { %11167 = sst [smem:[#allocation93_spill]] %s8964_s25  ;;  %s8821_s22 = smov 16  }
   0xd   :  { %s8969_s29 = sld [smem:[%s11114_s0 + %s8811_s26]]   ;;  %s8817_s26 = smov 12  }
   0xe   :  { %s8974_s3 = sld [smem:[%s11114_s0 + %s8812_s30]]   ;;  %s8822_s28 = smov 17  }
   0xf   :  { %s8979_s8 = sld [smem:[%s11114_s0 + %s8813_s4]]  }
  0x10   :  { %s8984_s14 = sld [smem:[%s11114_s0 + %s8814_s10]]  }
  0x11   :  { %s8989_s19 = sld [smem:[%s11114_s0 + %s8815_s15]]   ;;  %s8820_s15 = smov 15  }
  0x12   :  { %s8994_s24 = sld [smem:[%s11114_s0 + %s8816_s20]]  }
  0x13   :  { %11168 = sst [smem:[#allocation94_spill]] %s8969_s29 }
  0x14   :  { %11169 = sst [smem:[#allocation95_spill]] %s8974_s3 }
  0x15   :  { %11170 = sst [smem:[#allocation96_spill]] %s8979_s8 }
  0x16   :  { %11171 = sst [smem:[#allocation97_spill]] %s8984_s14 }
  0x17   :  { %11172 = sst [smem:[#allocation98_spill]] %s8989_s19 }
  0x18   :  { %11173 = sst [smem:[#allocation99_spill]] %s8994_s24 }
  0x19   :  { %s8999_s30 = sld [smem:[%s11114_s0 + %s8817_s26]]  }
  0x1a   :  { %s9004_s6 = sld [smem:[%s11114_s0 + %s8818_s1]]  }
  0x1b   :  { %s9009_s12 = sld [smem:[%s11114_s0 + %s8819_s7]]   ;;  %s8823_s7 = smov 18  }
  0x1c   :  { %s9014_s20 = sld [smem:[%s11114_s0 + %s8820_s15]]   ;;  %s8824_s15 = smov 19  }
  0x1d   :  { %s9019_s27 = sld [smem:[%s11114_s0 + %s8821_s22]]   ;;  %s8825_s22 = smov 20  }
  0x1e   :  { %s9024_s4 = sld [smem:[%s11114_s0 + %s8822_s28]]   ;;  %s8826_s28 = smov 21  }
  0x1f   :  { %11174 = sst [smem:[#allocation100_spill]] %s8999_s30 }
  0x20   :  { %11175 = sst [smem:[#allocation101_spill]] %s9004_s6 }
  0x21   :  { %11176 = sst [smem:[#allocation102_spill]] %s9009_s12 }
  0x22   :  { %11177 = sst [smem:[#allocation103_spill]] %s9014_s20 }
  0x23   :  { %11178 = sst [smem:[#allocation104_spill]] %s9019_s27 }
  0x24   :  { %11179 = sst [smem:[#allocation105_spill]] %s9024_s4 }
  0x25   :  { %s9029_s3 = sld [smem:[%s11114_s0 + %s8823_s7]]   ;;  %s8827_s7 = smov 22  }
  0x26   :  { %s9034_s13 = sld [smem:[%s11114_s0 + %s8824_s15]]   ;;  %s8828_s15 = smov 23  }
  0x27   :  { %s9039_s27 = sld [smem:[%s11114_s0 + %s8825_s22]]   ;;  %s8829_s22 = smov 24  }
  0x28   :  { %s9044_s4 = sld [smem:[%s11114_s0 + %s8826_s28]]   ;;  %s8830_s28 = smov 25  }
  0x29   :  { %s9049_s14 = sld [smem:[%s11114_s0 + %s8827_s7]]   ;;  %s8831_s7 = smov 26  }
  0x2a   :  { %s9054_s25 = sld [smem:[%s11114_s0 + %s8828_s15]]   ;;  %s8832_s15 = smov 27  }
  0x2b   :  { %11180 = sst [smem:[#allocation106_spill]] %s9029_s3 }
  0x2c   :  { %11181 = sst [smem:[#allocation107_spill]] %s9034_s13 }
  0x2d   :  { %11182 = sst [smem:[#allocation108_spill]] %s9039_s27 }
  0x2e   :  { %11183 = sst [smem:[#allocation109_spill]] %s9044_s4 }
  0x2f   :  { %s9059_s30 = sld [smem:[%s11114_s0 + %s8829_s22]]   ;;  %s8833_s22 = smov 28  }
  0x30   :  { %11184 = sst [smem:[#allocation110_spill]] %s9054_s25 }
  0x31   :  { %s9064_s12 = sld [smem:[%s11114_s0 + %s8830_s28]]   ;;  %s8834_s28 = smov 29  }
  0x32   :  { %s9069_s19 = sld [smem:[%s11114_s0 + %s8831_s7]]   ;;  %s8835_s7 = smov 30  }
  0x33   :  { %s9074_s29 = sld [smem:[%s11114_s0 + %s8832_s15]]   ;;  %s8836_s15 = smov 31  }
  0x34   :  { %s9079_s17 = sld [smem:[%s11114_s0 + %s8833_s22]]   ;;  %s8837_s22 = smov 32  }
  0x35   :  { %s9084_s6 = sld [smem:[%s11114_s0 + %s8834_s28]]   ;;  %s8838_s28 = smov 33  }
  0x36   :  { %s9089_s20 = sld [smem:[%s11114_s0 + %s8835_s7]]   ;;  %s8839_s7 = smov 34  }
  0x37   :  { %11185 = sst [smem:[#allocation111_spill]] %s9064_s12 }
  0x38   :  { %11186 = sst [smem:[#allocation112_spill]] %s9069_s19 }
  0x39   :  { %11187 = sst [smem:[#allocation113_spill]] %s9074_s29 }
  0x3a   :  { %s9094_s27 = sld [smem:[%s11114_s0 + %s8836_s15]]   ;;  %s8840_s15 = smov 35  }
  0x3b   :  { %11188 = sst [smem:[#allocation114_spill]] %s9084_s6 }
  0x3c   :  { %s9099_s13 = sld [smem:[%s11114_s0 + %s8837_s22]]   ;;  %s8841_s22 = smov 36  }
  0x3d   :  { %s9104_s19 = sld [smem:[%s11114_s0 + %s8838_s28]]   ;;  %s8842_s28 = smov 37  }
  0x3e   :  { %s9109_s3 = sld [smem:[%s11114_s0 + %s8839_s7]]   ;;  %s8843_s7 = smov 38  }
  0x3f   :  { %s9119_s12 = sld [smem:[%s11114_s0 + %s8841_s22]]   ;;  %s8845_s22 = smov 40  }
  0x40   :  { %11189 = sst [smem:[#allocation115_spill]] %s9094_s27 }
  0x41   :  { %s9114_s27 = sld [smem:[%s11114_s0 + %s8840_s15]]   ;;  %s8844_s15 = smov 39  }
  0x42   :  { %11190 = sst [smem:[#allocation116_spill]] %s9099_s13 }
  0x43   :  { %s9124_s8 = sld [smem:[%s11114_s0 + %s8842_s28]]   ;;  %s8846_s28 = smov 41  }
  0x44   :  { %11191 = sst [smem:[#allocation117_spill]] %s9109_s3 }
  0x45   :  { %11192 = sst [smem:[#allocation118_spill]] %s9119_s12 }
  0x46   :  { %s9129_s24 = sld [smem:[%s11114_s0 + %s8843_s7]]   ;;  %s8847_s7 = smov 42  }
  0x47   :  { %s9134_s5 = sld [smem:[%s11114_s0 + %s8844_s15]]   ;;  %s8848_s15 = smov 43  }
  0x48   :  { %s9139_s21 = sld [smem:[%s11114_s0 + %s8845_s22]]   ;;  %s8849_s22 = smov 44  }
  0x49   :  { %s9144_s9 = sld [smem:[%s11114_s0 + %s8846_s28]]   ;;  %s8850_s28 = smov 45  }
  0x4a   :  { %s9154_s12 = sld [smem:[%s11114_s0 + %s8848_s15]]   ;;  %s8852_s15 = smov 47  }
  0x4c   :  { %11193 = sst [smem:[#allocation119_spill]] %s9129_s24 }
  0x4d   :  { %s9149_s24 = sld [smem:[%s11114_s0 + %s8847_s7]]   ;;  %s8851_s7 = smov 46  }
  0x4e   :  { %11194 = sst [smem:[#allocation120_spill]] %s9139_s21 }
  0x4f   :  { %11195 = sst [smem:[#allocation121_spill]] %s9144_s9 }
  0x50   :  { %11196 = sst [smem:[#allocation122_spill]] %s9154_s12 }
  0x51   :  { %s9159_s21 = sld [smem:[%s11114_s0 + %s8849_s22]]   ;;  %s8853_s22 = smov 48  }
  0x52   :  { %s9164_s9 = sld [smem:[%s11114_s0 + %s8850_s28]]   ;;  %s8854_s28 = smov 49  }
  0x53   :  { %s9169_s3 = sld [smem:[%s11114_s0 + %s8851_s7]]   ;;  %s8855_s7 = smov 50  }
  0x54   :  { %s9174_s12 = sld [smem:[%s11114_s0 + %s8852_s15]]   ;;  %s8856_s15 = smov 51  }
  0x55   :  { %s9179_s13 = sld [smem:[%s11114_s0 + %s8853_s22]]   ;;  %s8857_s22 = smov 52  }
  0x56   :  { %s9189_s6 = sld [smem:[%s11114_s0 + %s8855_s7]]   ;;  %s8859_s7 = smov 54  }
  0x57   :  { %s9199_s29 = sld [smem:[%s11114_s0 + %s8857_s22]]   ;;  %s8861_s22 = smov 56  }
  0x58   :  { %11197 = sst [smem:[#allocation123_spill]] %s9164_s9 }
  0x59   :  { %s9184_s9 = sld [smem:[%s11114_s0 + %s8854_s28]]   ;;  %s8858_s28 = smov 53  }
  0x5a   :  { %11198 = sst [smem:[#allocation124_spill]] %s9174_s12 }
  0x5b   :  { %s9194_s12 = sld [smem:[%s11114_s0 + %s8856_s15]]   ;;  %s8860_s15 = smov 55  }
  0x5c   :  { %s9209_s25 = sld [smem:[%s11114_s0 + %s8859_s7]]   ;;  %s8863_s7 = smov 58  }
  0x5d   :  { %s9219_s4 = sld [smem:[%s11114_s0 + %s8861_s22]]   ;;  %s8865_s22 = smov 60  }
  0x5f   :  { %11199 = sst [smem:[#allocation125_spill]] %s9184_s9 }
  0x60   :  { %s9204_s9 = sld [smem:[%s11114_s0 + %s8858_s28]]   ;;  %s8862_s28 = smov 57  }
  0x61   :  { %11200 = sst [smem:[#allocation126_spill]] %s9194_s12 }
  0x62   :  { %11202 = sst [smem:[#allocation128_spill]] %s9209_s25 }
  0x63   :  { %s9214_s12 = sld [smem:[%s11114_s0 + %s8860_s15]]   ;;  %s8864_s15 = smov 59  }
  0x64   :  { %11204 = sst [smem:[#allocation130_spill]] %s9219_s4 }
  0x65   :  { %s9229_s25 = sld [smem:[%s11114_s0 + %s8863_s7]]   ;;  %s8867_s7 = smov 62  }
  0x66   :  { %11201 = sst [smem:[#allocation127_spill]] %s9204_s9 }
  0x67   :  { %s9224_s9 = sld [smem:[%s11114_s0 + %s8862_s28]]   ;;  %s8866_s28 = smov 61  }
  0x68   :  { %s9239_s4 = sld [smem:[%s11114_s0 + %s8865_s22]]   ;;  %s8869_s22 = smov 64  }
  0x69   :  { %11203 = sst [smem:[#allocation129_spill]] %s9214_s12 }
  0x6a   :  { %s9234_s12 = sld [smem:[%s11114_s0 + %s8864_s15]]   ;;  %s8868_s15 = smov 63  }
  0x6b   :  { %11206 = sst [smem:[#allocation132_spill]] %s9229_s25 }
  0x6c   :  { %s9249_s25 = sld [smem:[%s11114_s0 + %s8867_s7]]   ;;  %s8871_s7 = smov 66  }
  0x6d   :  { %11205 = sst [smem:[#allocation131_spill]] %s9224_s9 }
  0x6e   :  { %11208 = sst [smem:[#allocation134_spill]] %s9239_s4 }
  0x6f   :  { %s9244_s9 = sld [smem:[%s11114_s0 + %s8866_s28]]   ;;  %s8870_s28 = smov 65  }
  0x70   :  { %11207 = sst [smem:[#allocation133_spill]] %s9234_s12 }
  0x71   :  { %s9254_s12 = sld [smem:[%s11114_s0 + %s8868_s15]]   ;;  %s8872_s15 = smov 67  }
  0x72   :  { %11210 = sst [smem:[#allocation136_spill]] %s9249_s25 }
  0x73   :  { %s9259_s4 = sld [smem:[%s11114_s0 + %s8869_s22]]   ;;  %s8873_s22 = smov 68  }
  0x74   :  { %s9269_s25 = sld [smem:[%s11114_s0 + %s8871_s7]]   ;;  %s8875_s7 = smov 70  }
  0x75   :  { %11209 = sst [smem:[#allocation135_spill]] %s9244_s9 }
  0x76   :  { %s9264_s9 = sld [smem:[%s11114_s0 + %s8870_s28]]   ;;  %s8874_s28 = smov 69  }
  0x77   :  { %11211 = sst [smem:[#allocation137_spill]] %s9254_s12 }
  0x78   :  { %s9274_s12 = sld [smem:[%s11114_s0 + %s8872_s15]]   ;;  %s8876_s15 = smov 71  }
  0x79   :  { %11212 = sst [smem:[#allocation138_spill]] %s9259_s4 }
  0x7a   :  { %11214 = sst [smem:[#allocation140_spill]] %s9269_s25 }
  0x7b   :  { %s9279_s4 = sld [smem:[%s11114_s0 + %s8873_s22]]   ;;  %s8877_s22 = smov 72  }
  0x7c   :  { %11213 = sst [smem:[#allocation139_spill]] %s9264_s9 }
  0x7d   :  { %s9284_s9 = sld [smem:[%s11114_s0 + %s8874_s28]]   ;;  %s8878_s28 = smov 73  }
  0x7e   :  { %11215 = sst [smem:[#allocation141_spill]] %s9274_s12 }
  0x7f   :  { %s9289_s25 = sld [smem:[%s11114_s0 + %s8875_s7]]   ;;  %s8879_s7 = smov 74  }
  0x80   :  { %s9294_s12 = sld [smem:[%s11114_s0 + %s8876_s15]]   ;;  %s8880_s15 = smov 75  }
  0x81   :  { %11216 = sst [smem:[#allocation142_spill]] %s9279_s4 }
  0x82   :  { %s9299_s4 = sld [smem:[%s11114_s0 + %s8877_s22]]   ;;  %s8881_s22 = smov 76  }
  0x83   :  { %11217 = sst [smem:[#allocation143_spill]] %s9284_s9 }
  0x84   :  { %s9304_s9 = sld [smem:[%s11114_s0 + %s8878_s28]]   ;;  %s8882_s28 = smov 77  }
  0x85   :  { %11218 = sst [smem:[#allocation144_spill]] %s9289_s25 }
  0x86   :  { %11219 = sst [smem:[#allocation145_spill]] %s9294_s12 }
  0x87   :  { %s9309_s25 = sld [smem:[%s11114_s0 + %s8879_s7]]   ;;  %s8883_s7 = smov 78  }
  0x88   :  { %11220 = sst [smem:[#allocation146_spill]] %s9299_s4 }
  0x89   :  { %s9314_s12 = sld [smem:[%s11114_s0 + %s8880_s15]]  }
  0x8a   :  { %11221 = sst [smem:[#allocation147_spill]] %s9304_s9 }
  0x8b   :  { %s9319_s4 = sld [smem:[%s11114_s0 + %s8881_s22]]  }
  0x8c   :  { %s9324_s9 = sld [smem:[%s11114_s0 + %s8882_s28]]  }
  0x8d   :  { %11222 = sst [smem:[#allocation148_spill]] %s9309_s25 }
  0x8e   :  { %s9329_s25 = sld [smem:[%s11114_s0 + %s8883_s7]]  }
  0x8f   :  { %162 = vsyncpa [#allocation3], 0 }
  0x90   :  { %163 = vsyncpa [#allocation6], 0 }
  0x91   :  { %164 = vsyncpa [#allocation9], 0 }
  0x92   :  { %165 = vsyncpa [#allocation12], 0 }
  0x93   :  { %166 = vsyncpa [#allocation15], 0 }
  0x94   :  { %167 = vsyncpa [#allocation18], 0 }
  0x95   :  { %168 = vsyncpa [#allocation21], 0 }
  0x96   :  { %169 = vsyncpa [#allocation24], 0 }
  0x97   :  { %170 = vsyncpa [#allocation27], 0 }
  0x98   :  { %171 = vsyncpa [#allocation30], 0 }
  0x99   :  { %172 = vsyncpa [#allocation33], 0 }
  0x9a   :  { %173 = vsyncpa [#allocation36], 0 }
  0x9b   :  { %174 = vsyncpa [#allocation39], 0 }
  0x9c   :  { %175 = vsyncpa [#allocation42], 0 }
  0x9d   :  { %176 = vsyncpa [#allocation45], 0 }
  0x9e   :  { %177 = vsyncpa [#allocation48], 0 }
  0x9f   :  { %178 = vsyncpa [#allocation51], 0 }
  0xa0   :  { %179 = vsyncpa [#allocation54], 0 }
  0xa1   :  { %180 = vsyncpa [#allocation57], 0 }
  0xa2   :  { %181 = vsyncpa [#allocation60], 0 }
  0xa3   :  { %182 = vsyncpa [#allocation63], 0  ;;  %s242_s0 = sshll.u32 %s9049_s14, 4  ;;  %s243_s0 = int_to_ptr.hbm [resolvable:$true] %s242_s0 }
  0xa4   :  { %183 = vsyncpa [#allocation4], 0  ;;  %s8884_s15 = smov [#allocation5]   ;;  %s263_s18 = sshll.u32 %s9059_s30, 4  ;;  %s264_s18 = int_to_ptr.hbm [resolvable:$true] %s263_s18 }
  0xa5   :  { %s244_s16 = sshll.u32 %s8884_s15, 4  ;;  %s7754_s22 = sshra.s32 %s243_s0, 4  ;;  %s245_s16 = int_to_ptr.vmem [resolvable:$true] %s244_s16  ;;  %s7755_s22 = int_to_ptr.hbm [resolvable:$true] %s7754_s22 }
  0xa6   :  { %s7756_s23 = scalar_lea.hbm %s7755_s22, 1  ;;  %s7758_s26 = scalar_lea.hbm %s9049_s14, 1 }
  0xa7   :  { %p7757_p0 = scmp.ne.s32.totalorder %s7755_s22, %s7756_s23  ;;  %p7759_p1 = scmp.lt.s32.totalorder %s7755_s22, %s9049_s14 }
  0xa8   :  { %p7760_p2 = scmp.lt.s32.totalorder %s7758_s26, %s7756_s23 }
  0xaa   :  { %p7761_p3 = por %p7760_p2, %p7759_p1 }
  0xac   :  { %p7762_p4 = pnand %p7761_p3, %p7757_p0 }
  0xae   :  { %7765 = shalt.err (!%p7762_p4)
}
  0xaf   :  { %247 = dma.hbm_to_vmem [thread:$0]  %s243_s0, 16, %s245_s16, [#allocation6]  }
  0xb0   :  { %s8885_s28 = smov [#allocation8]   ;;  %s7778_s2 = sshra.s32 %s264_s18, 4  ;;  %s7779_s2 = int_to_ptr.hbm [resolvable:$true] %s7778_s2 }
  0xb1   :  { %s265_s1 = sshll.u32 %s8885_s28, 4  ;;  %s7780_s7 = scalar_lea.hbm %s7779_s2, 12  ;;  %s266_s1 = int_to_ptr.vmem [resolvable:$true] %s265_s1 }
  0xb2   :  { %p7781_p5 = scmp.ne.s32.totalorder %s7779_s2, %s7780_s7  ;;  %s7782_s10 = scalar_lea.hbm %s9059_s30, 12 }
  0xb3   :  { %p7783_p6 = scmp.lt.s32.totalorder %s7779_s2, %s9059_s30  ;;  %p7784_p7 = scmp.lt.s32.totalorder %s7782_s10, %s7780_s7 }
  0xb5   :  { %p7785_p8 = por %p7784_p7, %p7783_p6 }
  0xb7   :  { %p7786_p9 = pnand %p7785_p8, %p7781_p5 }
  0xb9   :  { %7789 = shalt.err (!%p7786_p9)
}
  0xba   :  { %s8886_s14 = smov 64   ;;  %s8887_s11 = smov 4  }
  0xbb   :  { %271 = dma.hbm_to_vmem [thread:$0]  %s264_s18, 192, %s266_s1, [#allocation9], %s8886_s14, %s8886_s14, %s8887_s11  }
  0xbc   :  { %s292_s0 = sshll.u32 %s9079_s17, 4  ;;  %s8888_s15 = smov [#allocation11]   ;;  %s293_s0 = int_to_ptr.hbm [resolvable:$true] %s292_s0 }
  0xbd   :  { %s294_s16 = sshll.u32 %s8888_s15, 4  ;;  %s314_s22 = sshll.u32 %s9089_s20, 4  ;;  %s295_s16 = int_to_ptr.vmem [resolvable:$true] %s294_s16  ;;  %s315_s22 = int_to_ptr.hbm [resolvable:$true] %s314_s22 }
  0xbe   :  { %s7802_s23 = sshra.s32 %s293_s0, 4  ;;  %s7806_s26 = scalar_lea.hbm %s9079_s17, 1  ;;  %s7803_s23 = int_to_ptr.hbm [resolvable:$true] %s7802_s23 }
  0xbf   :  { %s7804_s30 = scalar_lea.hbm %s7803_s23, 1  ;;  %p7807_p11 = scmp.lt.s32.totalorder %s7803_s23, %s9079_s17 }
  0xc0   :  { %p7805_p10 = scmp.ne.s32.totalorder %s7803_s23, %s7804_s30  ;;  %p7808_p12 = scmp.lt.s32.totalorder %s7806_s26, %s7804_s30 }
  0xc2   :  { %p7809_p13 = por %p7808_p12, %p7807_p11 }
  0xc4   :  { %p7810_p0 = pnand %p7809_p13, %p7805_p10 }
  0xc6   :  { %7813 = shalt.err (!%p7810_p0)
}
  0xc7   :  { %297 = dma.hbm_to_vmem [thread:$0]  %s293_s0, 16, %s295_s16, [#allocation12]  }
  0xc8   :  { %s8889_s18 = smov [#allocation14]   ;;  %s340_s1 = sshll.u32 %s9104_s19, 4  ;;  %s341_s1 = int_to_ptr.hbm [resolvable:$true] %s340_s1 }
  0xc9   :  { %s316_s28 = sshll.u32 %s8889_s18, 4  ;;  %s7826_s2 = sshra.s32 %s315_s22, 4  ;;  %s317_s28 = int_to_ptr.vmem [resolvable:$true] %s316_s28  ;;  %s7827_s2 = int_to_ptr.hbm [resolvable:$true] %s7826_s2 }
  0xca   :  { %s7828_s7 = scalar_lea.hbm %s7827_s2, 1  ;;  %s7830_s10 = scalar_lea.hbm %s9089_s20, 1 }
  0xcb   :  { %p7829_p1 = scmp.ne.s32.totalorder %s7827_s2, %s7828_s7  ;;  %p7831_p2 = scmp.lt.s32.totalorder %s7827_s2, %s9089_s20 }
  0xcc   :  { %p7832_p3 = scmp.lt.s32.totalorder %s7830_s10, %s7828_s7 }
  0xce   :  { %p7833_p4 = por %p7832_p3, %p7831_p2 }
  0xd0   :  { %p7834_p5 = pnand %p7833_p4, %p7829_p1 }
  0xd2   :  { %7837 = shalt.err (!%p7834_p5)
}
  0xd3   :  { %319 = dma.hbm_to_vmem [thread:$0]  %s315_s22, 16, %s317_s28, [#allocation15]  }
  0xd4   :  { %s362_s17 = sshll.u32 %s9114_s27, 4  ;;  %s8890_s14 = smov [#allocation17]   ;;  %s363_s17 = int_to_ptr.hbm [resolvable:$true] %s362_s17 }
  0xd5   :  { %s342_s11 = sshll.u32 %s8890_s14, 4  ;;  %s7850_s0 = sshra.s32 %s341_s1, 4  ;;  %s343_s11 = int_to_ptr.vmem [resolvable:$true] %s342_s11  ;;  %s7851_s0 = int_to_ptr.hbm [resolvable:$true] %s7850_s0 }
  0xd6   :  { %s7852_s15 = scalar_lea.hbm %s7851_s0, 1  ;;  %s7854_s16 = scalar_lea.hbm %s9104_s19, 1 }
  0xd7   :  { %p7853_p6 = scmp.ne.s32.totalorder %s7851_s0, %s7852_s15  ;;  %p7855_p7 = scmp.lt.s32.totalorder %s7851_s0, %s9104_s19 }
  0xd8   :  { %p7856_p8 = scmp.lt.s32.totalorder %s7854_s16, %s7852_s15 }
  0xda   :  { %p7857_p9 = por %p7856_p8, %p7855_p7 }
  0xdc   :  { %p7858_p10 = pnand %p7857_p9, %p7853_p6 }
  0xde   :  { %7861 = shalt.err (!%p7858_p10)
}
  0xdf   :  { %345 = dma.hbm_to_vmem [thread:$0]  %s341_s1, 16, %s343_s11, [#allocation18]  }
  0xe0   :  { %s8891_s20 = smov [#allocation20]   ;;  %s384_s23 = sshll.u32 %s9124_s8, 4  ;;  %s385_s23 = int_to_ptr.hbm [resolvable:$true] %s384_s23 }
  0xe1   :  { %s364_s22 = sshll.u32 %s8891_s20, 4  ;;  %s7874_s30 = sshra.s32 %s363_s17, 4  ;;  %s365_s22 = int_to_ptr.vmem [resolvable:$true] %s364_s22  ;;  %s7875_s30 = int_to_ptr.hbm [resolvable:$true] %s7874_s30 }
  0xe2   :  { %s7876_s26 = scalar_lea.hbm %s7875_s30, 1  ;;  %s7878_s18 = scalar_lea.hbm %s9114_s27, 1 }
  0xe3   :  { %p7877_p11 = scmp.ne.s32.totalorder %s7875_s30, %s7876_s26  ;;  %p7879_p12 = scmp.lt.s32.totalorder %s7875_s30, %s9114_s27 }
  0xe4   :  { %p7880_p13 = scmp.lt.s32.totalorder %s7878_s18, %s7876_s26 }
  0xe6   :  { %p7881_p0 = por %p7880_p13, %p7879_p12 }
  0xe8   :  { %p7882_p1 = pnand %p7881_p0, %p7877_p11 }
  0xea   :  { %7885 = shalt.err (!%p7882_p1)
}
  0xeb   :  { %367 = dma.hbm_to_vmem [thread:$0]  %s363_s17, 16, %s365_s22, [#allocation21]  }
  0xec   :  { %s8892_s19 = smov [#allocation23]   ;;  %s405_s1 = sshll.u32 %s9134_s5, 4  ;;  %s406_s1 = int_to_ptr.hbm [resolvable:$true] %s405_s1 }
  0xed   :  { %s386_s28 = sshll.u32 %s8892_s19, 4  ;;  %s7898_s2 = sshra.s32 %s385_s23, 4  ;;  %s387_s28 = int_to_ptr.vmem [resolvable:$true] %s386_s28  ;;  %s7899_s2 = int_to_ptr.hbm [resolvable:$true] %s7898_s2 }
  0xee   :  { %s7900_s7 = scalar_lea.hbm %s7899_s2, 1  ;;  %s7902_s10 = scalar_lea.hbm %s9124_s8, 1 }
  0xef   :  { %p7901_p2 = scmp.ne.s32.totalorder %s7899_s2, %s7900_s7  ;;  %p7903_p3 = scmp.lt.s32.totalorder %s7899_s2, %s9124_s8 }
  0xf0   :  { %p7904_p4 = scmp.lt.s32.totalorder %s7902_s10, %s7900_s7 }
  0xf2   :  { %p7905_p5 = por %p7904_p4, %p7903_p3 }
  0xf4   :  { %p7906_p6 = pnand %p7905_p5, %p7901_p2 }
  0xf6   :  { %7909 = shalt.err (!%p7906_p6)
}
  0xf7   :  { %389 = dma.hbm_to_vmem [thread:$0]  %s385_s23, 16, %s387_s28, [#allocation24]  }
  0xf8   :  { %s8893_s27 = smov [#allocation26]   ;;  %s434_s14 = sshll.u32 %s9149_s24, 4  ;;  %s9354_s14 = int_to_ptr.hbm [resolvable:$true] %s434_s14 }
  0xf9   :  { %s407_s17 = sshll.u32 %s8893_s27, 4  ;;  %s7922_s11 = sshra.s32 %s406_s1, 4  ;;  %s408_s17 = int_to_ptr.vmem [resolvable:$true] %s407_s17  ;;  %s7923_s11 = int_to_ptr.hbm [resolvable:$true] %s7922_s11 }
  0xfa   :  { %s7924_s0 = scalar_lea.hbm %s7923_s11, 96  ;;  %s7926_s8 = scalar_lea.hbm %s9134_s5, 96 }
  0xfb   :  { %p7925_p7 = scmp.ne.s32.totalorder %s7923_s11, %s7924_s0  ;;  %p7927_p8 = scmp.lt.s32.totalorder %s7923_s11, %s9134_s5 }
  0xfc   :  { %p7928_p9 = scmp.lt.s32.totalorder %s7926_s8, %s7924_s0 }
  0xfe   :  { %p7929_p10 = por %p7928_p9, %p7927_p8 }
 0x100   :  { %p7930_p11 = pnand %p7929_p10, %p7925_p7 }
 0x102   :  { %7933 = shalt.err (!%p7930_p11)
}
 0x103   :  { %s8894_s15 = smov 128   ;;  %s8895_s16 = smov 8  }
 0x104   :  { %413 = dma.hbm_to_vmem [thread:$0]  %s406_s1, 1536, %s408_s17, [#allocation27], %s8894_s15, %s8894_s15, %s8895_s16  }
 0x105   :  { %s456_s20 = sshll.u32 %s9159_s21, 4  ;;  %s8896_s22 = smov [#allocation29]   ;;  %s457_s20 = int_to_ptr.hbm [resolvable:$true] %s456_s20 }
 0x106   :  { %s436_s23 = sshll.u32 %s8896_s22, 4  ;;  %s7946_s5 = sshra.s32 %s9354_s14, 4  ;;  %s437_s23 = int_to_ptr.vmem [resolvable:$true] %s436_s23  ;;  %s7947_s5 = int_to_ptr.hbm [resolvable:$true] %s7946_s5 }
 0x107   :  { %s7948_s30 = scalar_lea.hbm %s7947_s5, 1  ;;  %s7950_s26 = scalar_lea.hbm %s9149_s24, 1 }
 0x108   :  { %p7949_p12 = scmp.ne.s32.totalorder %s7947_s5, %s7948_s30  ;;  %p7951_p13 = scmp.lt.s32.totalorder %s7947_s5, %s9149_s24 }
 0x109   :  { %p7952_p0 = scmp.lt.s32.totalorder %s7950_s26, %s7948_s30 }
 0x10b   :  { %p7953_p1 = por %p7952_p0, %p7951_p13 }
 0x10d   :  { %p7954_p2 = pnand %p7953_p1, %p7949_p12 }
 0x10f   :  { %7957 = shalt.err (!%p7954_p2)
}
 0x110   :  { %439 = dma.hbm_to_vmem [thread:$0]  %s9354_s14, 16, %s437_s23, [#allocation30]  }
 0x111   :  { %s8897_s18 = smov [#allocation32]   ;;  %s477_s28 = sshll.u32 %s9169_s3, 4  ;;  %s9367_s28 = int_to_ptr.hbm [resolvable:$true] %s477_s28 }
 0x112   :  { %s458_s19 = sshll.u32 %s8897_s18, 4  ;;  %s7970_s1 = sshra.s32 %s457_s20, 4  ;;  %s459_s19 = int_to_ptr.vmem [resolvable:$true] %s458_s19  ;;  %s7971_s1 = int_to_ptr.hbm [resolvable:$true] %s7970_s1 }
 0x113   :  { %s7972_s2 = scalar_lea.hbm %s7971_s1, 1  ;;  %s7974_s24 = scalar_lea.hbm %s9159_s21, 1 }
 0x114   :  { %p7973_p3 = scmp.ne.s32.totalorder %s7971_s1, %s7972_s2  ;;  %p7975_p4 = scmp.lt.s32.totalorder %s7971_s1, %s9159_s21 }
 0x115   :  { %p7976_p5 = scmp.lt.s32.totalorder %s7974_s24, %s7972_s2 }
 0x117   :  { %p7977_p6 = por %p7976_p5, %p7975_p4 }
 0x119   :  { %p7978_p7 = pnand %p7977_p6, %p7973_p3 }
 0x11b   :  { %7981 = shalt.err (!%p7978_p7)
}
 0x11c   :  { %461 = dma.hbm_to_vmem [thread:$0]  %s457_s20, 16, %s459_s19, [#allocation33]  }
 0x11d   :  { %s504_s7 = sshll.u32 %s9179_s13, 4  ;;  %s8898_s10 = smov [#allocation35]   ;;  %s505_s7 = int_to_ptr.hbm [resolvable:$true] %s504_s7 }
 0x11e   :  { %s479_s27 = sshll.u32 %s8898_s10, 4  ;;  %s7994_s17 = sshra.s32 %s9367_s28, 4  ;;  %s480_s27 = int_to_ptr.vmem [resolvable:$true] %s479_s27  ;;  %s7995_s17 = int_to_ptr.hbm [resolvable:$true] %s7994_s17 }
 0x11f   :  { %s7996_s14 = scalar_lea.hbm %s7995_s17, 192  ;;  %s7998_s11 = scalar_lea.hbm %s9169_s3, 192 }
 0x120   :  { %p7997_p8 = scmp.ne.s32.totalorder %s7995_s17, %s7996_s14  ;;  %p7999_p9 = scmp.lt.s32.totalorder %s7995_s17, %s9169_s3 }
 0x121   :  { %p8000_p10 = scmp.lt.s32.totalorder %s7998_s11, %s7996_s14 }
 0x123   :  { %p8001_p11 = por %p8000_p10, %p7999_p9 }
 0x125   :  { %p8002_p12 = pnand %p8001_p11, %p7997_p8 }
 0x127   :  { %8005 = shalt.err (!%p8002_p12)
}
 0x128   :  { %485 = dma.hbm_to_vmem [thread:$0]  %s9367_s28, 3072, %s480_s27, [#allocation36], %s8894_s15, %s8894_s15, %s8895_s16  }
 0x129   :  { %s8899_s21 = smov [#allocation38]   ;;  %s526_s8 = sshll.u32 %s9189_s6, 4  ;;  %s527_s8 = int_to_ptr.hbm [resolvable:$true] %s526_s8 }
 0x12a   :  { %s506_s0 = sshll.u32 %s8899_s21, 4  ;;  %s8018_s20 = sshra.s32 %s505_s7, 4  ;;  %s507_s0 = int_to_ptr.vmem [resolvable:$true] %s506_s0  ;;  %s8019_s20 = int_to_ptr.hbm [resolvable:$true] %s8018_s20 }
 0x12b   :  { %s8020_s3 = scalar_lea.hbm %s8019_s20, 1  ;;  %s8022_s22 = scalar_lea.hbm %s9179_s13, 1 }
 0x12c   :  { %p8021_p13 = scmp.ne.s32.totalorder %s8019_s20, %s8020_s3  ;;  %p8023_p0 = scmp.lt.s32.totalorder %s8019_s20, %s9179_s13 }
 0x12d   :  { %p8024_p1 = scmp.lt.s32.totalorder %s8022_s22, %s8020_s3 }
 0x12f   :  { %p8025_p2 = por %p8024_p1, %p8023_p0 }
 0x131   :  { %p8026_p3 = pnand %p8025_p2, %p8021_p13 }
 0x133   :  { %8029 = shalt.err (!%p8026_p3)
}
 0x134   :  { %509 = dma.hbm_to_vmem [thread:$0]  %s505_s7, 16, %s507_s0, [#allocation39]  }
 0x135   :  { %s548_s23 = sshll.u32 %s9199_s29, 4  ;;  %s8900_s5 = smov [#allocation41]   ;;  %s549_s23 = int_to_ptr.hbm [resolvable:$true] %s548_s23 }
 0x136   :  { %s528_s30 = sshll.u32 %s8900_s5, 4  ;;  %s8042_s26 = sshra.s32 %s527_s8, 4  ;;  %s529_s30 = int_to_ptr.vmem [resolvable:$true] %s528_s30  ;;  %s8043_s26 = int_to_ptr.hbm [resolvable:$true] %s8042_s26 }
 0x137   :  { %s8044_s18 = scalar_lea.hbm %s8043_s26, 1  ;;  %s8046_s19 = scalar_lea.hbm %s9189_s6, 1 }
 0x138   :  { %p8045_p4 = scmp.ne.s32.totalorder %s8043_s26, %s8044_s18  ;;  %p8047_p5 = scmp.lt.s32.totalorder %s8043_s26, %s9189_s6 }
 0x139   :  { %p8048_p6 = scmp.lt.s32.totalorder %s8046_s19, %s8044_s18 }
 0x13b   :  { %p8049_p7 = por %p8048_p6, %p8047_p5 }
 0x13d   :  { %p8050_p8 = pnand %p8049_p7, %p8045_p4 }
 0x13f   :  { %8053 = shalt.err (!%p8050_p8)
}
 0x140   :  { %531 = dma.hbm_to_vmem [thread:$0]  %s527_s8, 16, %s529_s30, [#allocation42]  }
 0x141   :  { %s11223_s13 = sld [smem:[#allocation128_spill]]  ;;  %s8901_s28 = smov [#allocation44]  }
 0x142   :  { %s550_s1 = sshll.u32 %s8901_s28, 4  ;;  %s8066_s24 = sshra.s32 %s549_s23, 4  ;;  %s551_s1 = int_to_ptr.vmem [resolvable:$true] %s550_s1  ;;  %s8067_s24 = int_to_ptr.hbm [resolvable:$true] %s8066_s24 }
 0x143   :  { %s8068_s7 = scalar_lea.hbm %s8067_s24, 1  ;;  %s8070_s10 = scalar_lea.hbm %s9199_s29, 1 }
 0x144   :  { %p8069_p9 = scmp.ne.s32.totalorder %s8067_s24, %s8068_s7  ;;  %p8071_p10 = scmp.lt.s32.totalorder %s8067_s24, %s9199_s29 }
 0x145   :  { %p8072_p11 = scmp.lt.s32.totalorder %s8070_s10, %s8068_s7 }
 0x147   :  { %s569_s2 = sshll.u32 %s11223_s13, 4  ;;  %p8073_p12 = por %p8072_p11, %p8071_p10  ;;  %s9386_s2 = int_to_ptr.hbm [resolvable:$true] %s569_s2 }
 0x149   :  { %p8074_p13 = pnand %p8073_p12, %p8069_p9 }
 0x14b   :  { %8077 = shalt.err (!%p8074_p13)
}
 0x14c   :  { %553 = dma.hbm_to_vmem [thread:$0]  %s549_s23, 16, %s551_s1, [#allocation45]  }
 0x14d   :  { %s11224_s6 = sld [smem:[#allocation132_spill]]  ;;  %s8902_s17 = smov [#allocation47]  }
 0x14e   :  { %s571_s14 = sshll.u32 %s8902_s17, 4  ;;  %s8090_s11 = sshra.s32 %s9386_s2, 4  ;;  %s572_s14 = int_to_ptr.vmem [resolvable:$true] %s571_s14  ;;  %s8091_s11 = int_to_ptr.hbm [resolvable:$true] %s8090_s11 }
 0x14f   :  { %s8092_s21 = scalar_lea.hbm %s8091_s11, 192  ;;  %s8094_s0 = scalar_lea.hbm %s11223_s13, 192 }
 0x150   :  { %p8093_p0 = scmp.ne.s32.totalorder %s8091_s11, %s8092_s21  ;;  %p8095_p1 = scmp.lt.s32.totalorder %s8091_s11, %s11223_s13 }
 0x151   :  { %p8096_p2 = scmp.lt.s32.totalorder %s8094_s0, %s8092_s21 }
 0x153   :  { %s598_s27 = sshll.u32 %s11224_s6, 4  ;;  %p8097_p3 = por %p8096_p2, %p8095_p1  ;;  %s599_s27 = int_to_ptr.hbm [resolvable:$true] %s598_s27 }
 0x155   :  { %p8098_p4 = pnand %p8097_p3, %p8093_p0 }
 0x157   :  { %8101 = shalt.err (!%p8098_p4)
}
 0x158   :  { %s11225_s29 = sld [smem:[#allocation134_spill]]  ;;  %s8903_s8 = smov [#allocation50]  }
 0x159   :  { %577 = dma.hbm_to_vmem [thread:$0]  %s9386_s2, 3072, %s572_s14, [#allocation48], %s8894_s15, %s8894_s15, %s8895_s16  }
 0x15a   :  { %s600_s20 = sshll.u32 %s8903_s8, 4  ;;  %s8114_s22 = sshra.s32 %s599_s27, 4  ;;  %s601_s20 = int_to_ptr.vmem [resolvable:$true] %s600_s20  ;;  %s8115_s22 = int_to_ptr.hbm [resolvable:$true] %s8114_s22 }
 0x15b   :  { %s8116_s23 = scalar_lea.hbm %s8115_s22, 1  ;;  %s8118_s5 = scalar_lea.hbm %s11224_s6, 1 }
 0x15c   :  { %p8117_p5 = scmp.ne.s32.totalorder %s8115_s22, %s8116_s23  ;;  %p8119_p6 = scmp.lt.s32.totalorder %s8115_s22, %s11224_s6 }
 0x15d   :  { %p8120_p7 = scmp.lt.s32.totalorder %s8118_s5, %s8116_s23 }
 0x15e   :  { %s620_s3 = sshll.u32 %s11225_s29, 4  ;;  %s621_s3 = int_to_ptr.hbm [resolvable:$true] %s620_s3 }
 0x15f   :  { %p8121_p8 = por %p8120_p7, %p8119_p6 }
 0x161   :  { %p8122_p9 = pnand %p8121_p8, %p8117_p5 }
 0x163   :  { %8125 = shalt.err (!%p8122_p9)
}
 0x164   :  { %603 = dma.hbm_to_vmem [thread:$0]  %s599_s27, 16, %s601_s20, [#allocation51]  }
 0x165   :  { %s11226_s30 = sld [smem:[#allocation137_spill]]  ;;  %s8904_s18 = smov [#allocation53]  }
 0x166   :  { %s622_s19 = sshll.u32 %s8904_s18, 4  ;;  %s8138_s13 = sshra.s32 %s621_s3, 4  ;;  %s623_s19 = int_to_ptr.vmem [resolvable:$true] %s622_s19  ;;  %s8139_s13 = int_to_ptr.hbm [resolvable:$true] %s8138_s13 }
 0x167   :  { %s8140_s28 = scalar_lea.hbm %s8139_s13, 1  ;;  %s8142_s1 = scalar_lea.hbm %s11225_s29, 1 }
 0x168   :  { %p8141_p10 = scmp.ne.s32.totalorder %s8139_s13, %s8140_s28  ;;  %p8143_p11 = scmp.lt.s32.totalorder %s8139_s13, %s11225_s29 }
 0x169   :  { %p8144_p12 = scmp.lt.s32.totalorder %s8142_s1, %s8140_s28 }
 0x16b   :  { %s646_s26 = sshll.u32 %s11226_s30, 4  ;;  %p8145_p13 = por %p8144_p12, %p8143_p11  ;;  %s647_s26 = int_to_ptr.hbm [resolvable:$true] %s646_s26 }
 0x16d   :  { %p8146_p0 = pnand %p8145_p13, %p8141_p10 }
 0x16f   :  { %8149 = shalt.err (!%p8146_p0)
}
 0x170   :  { %625 = dma.hbm_to_vmem [thread:$0]  %s621_s3, 16, %s623_s19, [#allocation54]  }
 0x171   :  { %s11227_s2 = sld [smem:[#allocation139_spill]]  ;;  %s8905_s24 = smov [#allocation56]  }
 0x172   :  { %s648_s7 = sshll.u32 %s8905_s24, 4  ;;  %s8162_s6 = sshra.s32 %s647_s26, 4  ;;  %s649_s7 = int_to_ptr.vmem [resolvable:$true] %s648_s7  ;;  %s8163_s6 = int_to_ptr.hbm [resolvable:$true] %s8162_s6 }
 0x173   :  { %s8164_s27 = scalar_lea.hbm %s8163_s6, 1  ;;  %s8166_s17 = scalar_lea.hbm %s11226_s30, 1 }
 0x174   :  { %p8165_p1 = scmp.ne.s32.totalorder %s8163_s6, %s8164_s27  ;;  %p8167_p2 = scmp.lt.s32.totalorder %s8163_s6, %s11226_s30 }
 0x175   :  { %p8168_p3 = scmp.lt.s32.totalorder %s8166_s17, %s8164_s27 }
 0x177   :  { %s667_s10 = sshll.u32 %s11227_s2, 4  ;;  %p8169_p4 = por %p8168_p3, %p8167_p2  ;;  %s9405_s10 = int_to_ptr.hbm [resolvable:$true] %s667_s10 }
 0x179   :  { %p8170_p5 = pnand %p8169_p4, %p8165_p1 }
 0x17b   :  { %8173 = shalt.err (!%p8170_p5)
}
 0x17c   :  { %651 = dma.hbm_to_vmem [thread:$0]  %s647_s26, 16, %s649_s7, [#allocation57]  }
 0x17d   :  { %s709_s14 = sshll.u32 %s9319_s4, 4  ;;  %s8906_s11 = smov [#allocation59]   ;;  %s9410_s14 = int_to_ptr.hbm [resolvable:$true] %s709_s14 }
 0x17e   :  { %s669_s21 = sshll.u32 %s8906_s11, 4  ;;  %s8186_s0 = sshra.s32 %s9405_s10, 4  ;;  %s670_s21 = int_to_ptr.vmem [resolvable:$true] %s669_s21  ;;  %s8187_s0 = int_to_ptr.hbm [resolvable:$true] %s8186_s0 }
 0x17f   :  { %s8188_s29 = scalar_lea.hbm %s8187_s0, 96  ;;  %s8190_s8 = scalar_lea.hbm %s11227_s2, 96 }
 0x180   :  { %p8189_p6 = scmp.ne.s32.totalorder %s8187_s0, %s8188_s29  ;;  %p8191_p7 = scmp.lt.s32.totalorder %s8187_s0, %s11227_s2 }
 0x181   :  { %p8192_p8 = scmp.lt.s32.totalorder %s8190_s8, %s8188_s29 }
 0x183   :  { %p8193_p9 = por %p8192_p8, %p8191_p7 }
 0x185   :  { %p8194_p10 = pnand %p8193_p9, %p8189_p6 }
 0x187   :  { %8197 = shalt.err (!%p8194_p10)
}
 0x188   :  { %s11228_s20 = sld [smem:[#allocation109_spill]]  ;;  %s8907_s3 = smov [#allocation62]  }
 0x189   :  { %675 = dma.hbm_to_vmem [thread:$0]  %s9405_s10, 1536, %s670_s21, [#allocation60], %s8894_s15, %s8894_s15, %s8895_s16  }
 0x18a   :  { %s711_s22 = sshll.u32 %s8907_s3, 4  ;;  %s8210_s5 = sshra.s32 %s9410_s14, 4  ;;  %s712_s22 = int_to_ptr.vmem [resolvable:$true] %s711_s22  ;;  %s8211_s5 = int_to_ptr.hbm [resolvable:$true] %s8210_s5 }
 0x18b   :  { %s8212_s30 = scalar_lea.hbm %s8211_s5, 96  ;;  %s8214_s26 = scalar_lea.hbm %s9319_s4, 96 }
 0x18c   :  { %p8213_p11 = scmp.ne.s32.totalorder %s8211_s5, %s8212_s30  ;;  %p8215_p12 = scmp.lt.s32.totalorder %s8211_s5, %s9319_s4 }
 0x18d   :  { %p8216_p13 = scmp.lt.s32.totalorder %s8214_s26, %s8212_s30 }
 0x18e   :  { %s231_s23 = sshll.u32 %s11228_s20, 4  ;;  %s232_s23 = int_to_ptr.hbm [resolvable:$true] %s231_s23 }
 0x18f   :  { %p8217_p0 = por %p8216_p13, %p8215_p12 }
 0x191   :  { %p8218_p1 = pnand %p8217_p0, %p8213_p11 }
 0x193   :  { %8221 = shalt.err (!%p8218_p1)
}
 0x194   :  { %s11229_s18 = sld [smem:[#allocation110_spill]]  ;;  %s8908_s13 = smov [#allocation2]  }
 0x195   :  { %717 = dma.hbm_to_vmem [thread:$0]  %s9410_s14, 1536, %s712_s22, [#allocation63], %s8894_s15, %s8894_s15, %s8895_s16  }
 0x196   :  { %s233_s28 = sshll.u32 %s8908_s13, 4  ;;  %s8234_s1 = sshra.s32 %s232_s23, 4  ;;  %s234_s28 = int_to_ptr.vmem [resolvable:$true] %s233_s28  ;;  %s8235_s1 = int_to_ptr.hbm [resolvable:$true] %s8234_s1 }
 0x197   :  { %s8236_s4 = scalar_lea.hbm %s8235_s1, 1  ;;  %s8238_s2 = scalar_lea.hbm %s11228_s20, 1 }
 0x198   :  { %p8237_p2 = scmp.ne.s32.totalorder %s8235_s1, %s8236_s4  ;;  %p8239_p3 = scmp.lt.s32.totalorder %s8235_s1, %s11228_s20 }
 0x199   :  { %p8240_p4 = scmp.lt.s32.totalorder %s8238_s2, %s8236_s4 }
 0x19a   :  { %s253_s19 = sshll.u32 %s11229_s18, 4  ;;  %s254_s19 = int_to_ptr.hbm [resolvable:$true] %s253_s19 }
 0x19b   :  { %p8241_p5 = por %p8240_p4, %p8239_p3 }
 0x19d   :  { %p8242_p6 = pnand %p8241_p5, %p8237_p2 }
 0x19f   :  { %8245 = shalt.err (!%p8242_p6)
}
 0x1a0   :  { %236 = dma.hbm_to_vmem [thread:$0]  %s232_s23, 16, %s234_s28, [#allocation3]  }
 0x1a1   :  { %s11230_s24 = sld [smem:[#allocation113_spill]]  ;;  %s8909_s7 = smov [#allocation7]  }
 0x1a2   :  { %s255_s10 = sshll.u32 %s8909_s7, 4  ;;  %s8258_s27 = sshra.s32 %s254_s19, 4  ;;  %s256_s10 = int_to_ptr.vmem [resolvable:$true] %s255_s10  ;;  %s8259_s27 = int_to_ptr.hbm [resolvable:$true] %s8258_s27 }
 0x1a3   :  { %s8260_s17 = scalar_lea.hbm %s8259_s27, 1  ;;  %s8262_s14 = scalar_lea.hbm %s11229_s18, 1 }
 0x1a4   :  { %p8261_p7 = scmp.ne.s32.totalorder %s8259_s27, %s8260_s17  ;;  %p8263_p8 = scmp.lt.s32.totalorder %s8259_s27, %s11229_s18 }
 0x1a5   :  { %p8264_p9 = scmp.lt.s32.totalorder %s8262_s14, %s8260_s17 }
 0x1a7   :  { %s281_s6 = sshll.u32 %s11230_s24, 4  ;;  %p8265_p10 = por %p8264_p9, %p8263_p8  ;;  %s282_s6 = int_to_ptr.hbm [resolvable:$true] %s281_s6 }
 0x1a9   :  { %p8266_p11 = pnand %p8265_p10, %p8261_p7 }
 0x1ab   :  { %8269 = shalt.err (!%p8266_p11)
}
 0x1ac   :  { %258 = dma.hbm_to_vmem [thread:$0]  %s254_s19, 16, %s256_s10, [#allocation6]  }
 0x1ad   :  { %s11231_s11 = sld [smem:[#allocation114_spill]]  ;;  %s8910_s0 = smov [#allocation10]  }
 0x1ae   :  { %s283_s29 = sshll.u32 %s8910_s0, 4  ;;  %s8282_s8 = sshra.s32 %s282_s6, 4  ;;  %s284_s29 = int_to_ptr.vmem [resolvable:$true] %s283_s29  ;;  %s8283_s8 = int_to_ptr.hbm [resolvable:$true] %s8282_s8 }
 0x1af   :  { %s8284_s20 = scalar_lea.hbm %s8283_s8, 1  ;;  %s8286_s3 = scalar_lea.hbm %s11230_s24, 1 }
 0x1b0   :  { %p8285_p12 = scmp.ne.s32.totalorder %s8283_s8, %s8284_s20  ;;  %p8287_p13 = scmp.lt.s32.totalorder %s8283_s8, %s11230_s24 }
 0x1b1   :  { %p8288_p0 = scmp.lt.s32.totalorder %s8286_s3, %s8284_s20 }
 0x1b3   :  { %s303_s21 = sshll.u32 %s11231_s11, 4  ;;  %p8289_p1 = por %p8288_p0, %p8287_p13  ;;  %s304_s21 = int_to_ptr.hbm [resolvable:$true] %s303_s21 }
 0x1b5   :  { %p8290_p2 = pnand %p8289_p1, %p8285_p12 }
 0x1b7   :  { %8293 = shalt.err (!%p8290_p2)
}
 0x1b8   :  { %286 = dma.hbm_to_vmem [thread:$0]  %s282_s6, 16, %s284_s29, [#allocation9]  }
 0x1b9   :  { %s11232_s22 = sld [smem:[#allocation116_spill]]  ;;  %s8911_s23 = smov [#allocation13]  }
 0x1ba   :  { %s305_s5 = sshll.u32 %s8911_s23, 4  ;;  %s8306_s26 = sshra.s32 %s304_s21, 4  ;;  %s306_s5 = int_to_ptr.vmem [resolvable:$true] %s305_s5  ;;  %s8307_s26 = int_to_ptr.hbm [resolvable:$true] %s8306_s26 }
 0x1bb   :  { %s8308_s18 = scalar_lea.hbm %s8307_s26, 1  ;;  %s8310_s19 = scalar_lea.hbm %s11231_s11, 1 }
 0x1bc   :  { %p8309_p3 = scmp.ne.s32.totalorder %s8307_s26, %s8308_s18  ;;  %p8311_p4 = scmp.lt.s32.totalorder %s8307_s26, %s11231_s11 }
 0x1bd   :  { %p8312_p5 = scmp.lt.s32.totalorder %s8310_s19, %s8308_s18 }
 0x1bf   :  { %s326_s30 = sshll.u32 %s11232_s22, 4  ;;  %p8313_p6 = por %p8312_p5, %p8311_p4  ;;  %s9437_s30 = int_to_ptr.hbm [resolvable:$true] %s326_s30 }
 0x1c1   :  { %p8314_p7 = pnand %p8313_p6, %p8309_p3 }
 0x1c3   :  { %8317 = shalt.err (!%p8314_p7)
}
 0x1c4   :  { %308 = dma.hbm_to_vmem [thread:$0]  %s304_s21, 16, %s306_s5, [#allocation12]  }
 0x1c5   :  { %s11233_s13 = sld [smem:[#allocation117_spill]]  ;;  %s8912_s1 = smov [#allocation16]  }
 0x1c6   :  { %s328_s4 = sshll.u32 %s8912_s1, 4  ;;  %s8330_s2 = sshra.s32 %s9437_s30, 4  ;;  %s329_s4 = int_to_ptr.vmem [resolvable:$true] %s328_s4  ;;  %s8331_s2 = int_to_ptr.hbm [resolvable:$true] %s8330_s2 }
 0x1c7   :  { %s8332_s24 = scalar_lea.hbm %s8331_s2, 96  ;;  %s8334_s7 = scalar_lea.hbm %s11232_s22, 96 }
 0x1c8   :  { %p8333_p8 = scmp.ne.s32.totalorder %s8331_s2, %s8332_s24  ;;  %p8335_p9 = scmp.lt.s32.totalorder %s8331_s2, %s11232_s22 }
 0x1c9   :  { %p8336_p10 = scmp.lt.s32.totalorder %s8334_s7, %s8332_s24 }
 0x1cb   :  { %s351_s28 = sshll.u32 %s11233_s13, 4  ;;  %p8337_p11 = por %p8336_p10, %p8335_p9  ;;  %s352_s28 = int_to_ptr.hbm [resolvable:$true] %s351_s28 }
 0x1cd   :  { %p8338_p12 = pnand %p8337_p11, %p8333_p8 }
 0x1cf   :  { %8341 = shalt.err (!%p8338_p12)
}
 0x1d0   :  { %s11234_s10 = sld [smem:[#allocation118_spill]]  ;;  %s8913_s6 = smov [#allocation19]  }
 0x1d1   :  { %334 = dma.hbm_to_vmem [thread:$0]  %s9437_s30, 1536, %s329_s4, [#allocation15], %s8894_s15, %s8894_s15, %s8895_s16  }
 0x1d2   :  { %s353_s27 = sshll.u32 %s8913_s6, 4  ;;  %s8354_s14 = sshra.s32 %s352_s28, 4  ;;  %s354_s27 = int_to_ptr.vmem [resolvable:$true] %s353_s27  ;;  %s8355_s14 = int_to_ptr.hbm [resolvable:$true] %s8354_s14 }
 0x1d3   :  { %s8356_s11 = scalar_lea.hbm %s8355_s14, 1  ;;  %s8358_s21 = scalar_lea.hbm %s11233_s13, 1 }
 0x1d4   :  { %p8357_p13 = scmp.ne.s32.totalorder %s8355_s14, %s8356_s11  ;;  %p8359_p0 = scmp.lt.s32.totalorder %s8355_s14, %s11233_s13 }
 0x1d5   :  { %p8360_p1 = scmp.lt.s32.totalorder %s8358_s21, %s8356_s11 }
 0x1d6   :  { %s373_s17 = sshll.u32 %s11234_s10, 4  ;;  %s374_s17 = int_to_ptr.hbm [resolvable:$true] %s373_s17 }
 0x1d7   :  { %p8361_p2 = por %p8360_p1, %p8359_p0 }
 0x1d9   :  { %p8362_p3 = pnand %p8361_p2, %p8357_p13 }
 0x1db   :  { %8365 = shalt.err (!%p8362_p3)
}
 0x1dc   :  { %356 = dma.hbm_to_vmem [thread:$0]  %s352_s28, 16, %s354_s27, [#allocation18]  }
 0x1dd   :  { %s11235_s0 = sld [smem:[#allocation119_spill]]  ;;  %s8914_s8 = smov [#allocation22]  }
 0x1de   :  { %s375_s20 = sshll.u32 %s8914_s8, 4  ;;  %s8378_s3 = sshra.s32 %s374_s17, 4  ;;  %s376_s20 = int_to_ptr.vmem [resolvable:$true] %s375_s20  ;;  %s8379_s3 = int_to_ptr.hbm [resolvable:$true] %s8378_s3 }
 0x1df   :  { %s8380_s22 = scalar_lea.hbm %s8379_s3, 1  ;;  %s8382_s23 = scalar_lea.hbm %s11234_s10, 1 }
 0x1e0   :  { %p8381_p4 = scmp.ne.s32.totalorder %s8379_s3, %s8380_s22  ;;  %p8383_p5 = scmp.lt.s32.totalorder %s8379_s3, %s11234_s10 }
 0x1e1   :  { %p8384_p6 = scmp.lt.s32.totalorder %s8382_s23, %s8380_s22 }
 0x1e3   :  { %s395_s29 = sshll.u32 %s11235_s0, 4  ;;  %p8385_p7 = por %p8384_p6, %p8383_p5  ;;  %s396_s29 = int_to_ptr.hbm [resolvable:$true] %s395_s29 }
 0x1e5   :  { %p8386_p8 = pnand %p8385_p7, %p8381_p4 }
 0x1e7   :  { %8389 = shalt.err (!%p8386_p8)
}
 0x1e8   :  { %378 = dma.hbm_to_vmem [thread:$0]  %s374_s17, 16, %s376_s20, [#allocation21]  }
 0x1e9   :  { %s11236_s5 = sld [smem:[#allocation121_spill]]  ;;  %s8915_s30 = smov [#allocation25]  }
 0x1ea   :  { %s397_s26 = sshll.u32 %s8915_s30, 4  ;;  %s8402_s19 = sshra.s32 %s396_s29, 4  ;;  %s398_s26 = int_to_ptr.vmem [resolvable:$true] %s397_s26  ;;  %s8403_s19 = int_to_ptr.hbm [resolvable:$true] %s8402_s19 }
 0x1eb   :  { %s8404_s13 = scalar_lea.hbm %s8403_s19, 1  ;;  %s8406_s28 = scalar_lea.hbm %s11235_s0, 1 }
 0x1ec   :  { %p8405_p9 = scmp.ne.s32.totalorder %s8403_s19, %s8404_s13  ;;  %p8407_p10 = scmp.lt.s32.totalorder %s8403_s19, %s11235_s0 }
 0x1ed   :  { %p8408_p11 = scmp.lt.s32.totalorder %s8406_s28, %s8404_s13 }
 0x1ef   :  { %s420_s18 = sshll.u32 %s11236_s5, 4  ;;  %p8409_p12 = por %p8408_p11, %p8407_p10  ;;  %s9456_s18 = int_to_ptr.hbm [resolvable:$true] %s420_s18 }
 0x1f1   :  { %p8410_p13 = pnand %p8409_p12, %p8405_p9 }
 0x1f3   :  { %8413 = shalt.err (!%p8410_p13)
}
 0x1f4   :  { %400 = dma.hbm_to_vmem [thread:$0]  %s396_s29, 16, %s398_s26, [#allocation24]  }
 0x1f5   :  { %s11237_s1 = sld [smem:[#allocation122_spill]]  ;;  %s8916_s2 = smov [#allocation28]  }
 0x1f6   :  { %s422_s24 = sshll.u32 %s8916_s2, 4  ;;  %s8426_s7 = sshra.s32 %s9456_s18, 4  ;;  %s423_s24 = int_to_ptr.vmem [resolvable:$true] %s422_s24  ;;  %s8427_s7 = int_to_ptr.hbm [resolvable:$true] %s8426_s7 }
 0x1f7   :  { %s8428_s10 = scalar_lea.hbm %s8427_s7, 32  ;;  %s8430_s6 = scalar_lea.hbm %s11236_s5, 32 }
 0x1f8   :  { %p8429_p0 = scmp.ne.s32.totalorder %s8427_s7, %s8428_s10  ;;  %p8431_p1 = scmp.lt.s32.totalorder %s8427_s7, %s11236_s5 }
 0x1f9   :  { %p8432_p2 = scmp.lt.s32.totalorder %s8430_s6, %s8428_s10 }
 0x1fb   :  { %s445_s4 = sshll.u32 %s11237_s1, 4  ;;  %p8433_p3 = por %p8432_p2, %p8431_p1  ;;  %s446_s4 = int_to_ptr.hbm [resolvable:$true] %s445_s4 }
 0x1fd   :  { %p8434_p4 = pnand %p8433_p3, %p8429_p0 }
 0x1ff   :  { %8437 = shalt.err (!%p8434_p4)
}
 0x200   :  { %s11238_s27 = sld [smem:[#allocation123_spill]]  ;;  %s8917_s17 = smov [#allocation31]  }
 0x201   :  { %428 = dma.hbm_to_vmem [thread:$0]  %s9456_s18, 512, %s423_s24, [#allocation27], %s8894_s15, %s8894_s15, %s8895_s16  }
 0x202   :  { %s447_s14 = sshll.u32 %s8917_s17, 4  ;;  %s8450_s21 = sshra.s32 %s446_s4, 4  ;;  %s448_s14 = int_to_ptr.vmem [resolvable:$true] %s447_s14  ;;  %s8451_s21 = int_to_ptr.hbm [resolvable:$true] %s8450_s21 }
 0x203   :  { %s8452_s0 = scalar_lea.hbm %s8451_s21, 1  ;;  %s8454_s29 = scalar_lea.hbm %s11237_s1, 1 }
 0x204   :  { %p8453_p5 = scmp.ne.s32.totalorder %s8451_s21, %s8452_s0  ;;  %p8455_p6 = scmp.lt.s32.totalorder %s8451_s21, %s11237_s1 }
 0x205   :  { %p8456_p7 = scmp.lt.s32.totalorder %s8454_s29, %s8452_s0 }
 0x206   :  { %s467_s11 = sshll.u32 %s11238_s27, 4  ;;  %s468_s11 = int_to_ptr.hbm [resolvable:$true] %s467_s11 }
 0x207   :  { %p8457_p8 = por %p8456_p7, %p8455_p6 }
 0x209   :  { %p8458_p9 = pnand %p8457_p8, %p8453_p5 }
 0x20b   :  { %8461 = shalt.err (!%p8458_p9)
}
 0x20c   :  { %450 = dma.hbm_to_vmem [thread:$0]  %s446_s4, 16, %s448_s14, [#allocation30]  }
 0x20d   :  { %s11239_s8 = sld [smem:[#allocation124_spill]]  ;;  %s8918_s3 = smov [#allocation34]  }
 0x20e   :  { %s469_s22 = sshll.u32 %s8918_s3, 4  ;;  %s8474_s23 = sshra.s32 %s468_s11, 4  ;;  %s470_s22 = int_to_ptr.vmem [resolvable:$true] %s469_s22  ;;  %s8475_s23 = int_to_ptr.hbm [resolvable:$true] %s8474_s23 }
 0x20f   :  { %s8476_s5 = scalar_lea.hbm %s8475_s23, 1  ;;  %s8478_s30 = scalar_lea.hbm %s11238_s27, 1 }
 0x210   :  { %p8477_p10 = scmp.ne.s32.totalorder %s8475_s23, %s8476_s5  ;;  %p8479_p11 = scmp.lt.s32.totalorder %s8475_s23, %s11238_s27 }
 0x211   :  { %p8480_p12 = scmp.lt.s32.totalorder %s8478_s30, %s8476_s5 }
 0x213   :  { %s490_s20 = sshll.u32 %s11239_s8, 4  ;;  %p8481_p13 = por %p8480_p12, %p8479_p11  ;;  %s9472_s20 = int_to_ptr.hbm [resolvable:$true] %s490_s20 }
 0x215   :  { %p8482_p0 = pnand %p8481_p13, %p8477_p10 }
 0x217   :  { %8485 = shalt.err (!%p8482_p0)
}
 0x218   :  { %472 = dma.hbm_to_vmem [thread:$0]  %s468_s11, 16, %s470_s22, [#allocation33]  }
 0x219   :  { %s11240_s26 = sld [smem:[#allocation125_spill]]  ;;  %s8919_s18 = smov [#allocation37]  }
 0x21a   :  { %s492_s19 = sshll.u32 %s8919_s18, 4  ;;  %s8498_s28 = sshra.s32 %s9472_s20, 4  ;;  %s493_s19 = int_to_ptr.vmem [resolvable:$true] %s492_s19  ;;  %s8499_s28 = int_to_ptr.hbm [resolvable:$true] %s8498_s28 }
 0x21b   :  { %s8500_s1 = scalar_lea.hbm %s8499_s28, 192  ;;  %s8502_s4 = scalar_lea.hbm %s11239_s8, 192 }
 0x21c   :  { %p8501_p1 = scmp.ne.s32.totalorder %s8499_s28, %s8500_s1  ;;  %p8503_p2 = scmp.lt.s32.totalorder %s8499_s28, %s11239_s8 }
 0x21d   :  { %p8504_p3 = scmp.lt.s32.totalorder %s8502_s4, %s8500_s1 }
 0x21f   :  { %s515_s13 = sshll.u32 %s11240_s26, 4  ;;  %p8505_p4 = por %p8504_p3, %p8503_p2  ;;  %s516_s13 = int_to_ptr.hbm [resolvable:$true] %s515_s13 }
 0x221   :  { %p8506_p5 = pnand %p8505_p4, %p8501_p1 }
 0x223   :  { %8509 = shalt.err (!%p8506_p5)
}
 0x224   :  { %s11241_s2 = sld [smem:[#allocation126_spill]]  ;;  %s8920_s7 = smov [#allocation40]  }
 0x225   :  { %498 = dma.hbm_to_vmem [thread:$0]  %s9472_s20, 3072, %s493_s19, [#allocation36], %s8894_s15, %s8894_s15, %s8895_s16  }
 0x226   :  { %s517_s10 = sshll.u32 %s8920_s7, 4  ;;  %s8522_s6 = sshra.s32 %s516_s13, 4  ;;  %s518_s10 = int_to_ptr.vmem [resolvable:$true] %s517_s10  ;;  %s8523_s6 = int_to_ptr.hbm [resolvable:$true] %s8522_s6 }
 0x227   :  { %s8524_s27 = scalar_lea.hbm %s8523_s6, 1  ;;  %s8526_s17 = scalar_lea.hbm %s11240_s26, 1 }
 0x228   :  { %p8525_p6 = scmp.ne.s32.totalorder %s8523_s6, %s8524_s27  ;;  %p8527_p7 = scmp.lt.s32.totalorder %s8523_s6, %s11240_s26 }
 0x229   :  { %p8528_p8 = scmp.lt.s32.totalorder %s8526_s17, %s8524_s27 }
 0x22a   :  { %s537_s24 = sshll.u32 %s11241_s2, 4  ;;  %s538_s24 = int_to_ptr.hbm [resolvable:$true] %s537_s24 }
 0x22b   :  { %p8529_p9 = por %p8528_p8, %p8527_p7 }
 0x22d   :  { %p8530_p10 = pnand %p8529_p9, %p8525_p6 }
 0x22f   :  { %8533 = shalt.err (!%p8530_p10)
}
 0x230   :  { %520 = dma.hbm_to_vmem [thread:$0]  %s516_s13, 16, %s518_s10, [#allocation39]  }
 0x231   :  { %s11242_s14 = sld [smem:[#allocation127_spill]]  ;;  %s8921_s11 = smov [#allocation43]  }
 0x232   :  { %s539_s21 = sshll.u32 %s8921_s11, 4  ;;  %s8546_s29 = sshra.s32 %s538_s24, 4  ;;  %s540_s21 = int_to_ptr.vmem [resolvable:$true] %s539_s21  ;;  %s8547_s29 = int_to_ptr.hbm [resolvable:$true] %s8546_s29 }
 0x233   :  { %s8548_s8 = scalar_lea.hbm %s8547_s29, 1  ;;  %s8550_s20 = scalar_lea.hbm %s11241_s2, 1 }
 0x234   :  { %p8549_p11 = scmp.ne.s32.totalorder %s8547_s29, %s8548_s8  ;;  %p8551_p12 = scmp.lt.s32.totalorder %s8547_s29, %s11241_s2 }
 0x235   :  { %p8552_p13 = scmp.lt.s32.totalorder %s8550_s20, %s8548_s8 }
 0x237   :  { %s559_s0 = sshll.u32 %s11242_s14, 4  ;;  %p8553_p0 = por %p8552_p13, %p8551_p12  ;;  %s560_s0 = int_to_ptr.hbm [resolvable:$true] %s559_s0 }
 0x239   :  { %p8554_p1 = pnand %p8553_p0, %p8549_p11 }
 0x23b   :  { %8557 = shalt.err (!%p8554_p1)
}
 0x23c   :  { %542 = dma.hbm_to_vmem [thread:$0]  %s538_s24, 16, %s540_s21, [#allocation42]  }
 0x23d   :  { %s11243_s3 = sld [smem:[#allocation131_spill]]  ;;  %s8922_s23 = smov [#allocation46]  }
 0x23e   :  { %s561_s5 = sshll.u32 %s8922_s23, 4  ;;  %s8570_s30 = sshra.s32 %s560_s0, 4  ;;  %s562_s5 = int_to_ptr.vmem [resolvable:$true] %s561_s5  ;;  %s8571_s30 = int_to_ptr.hbm [resolvable:$true] %s8570_s30 }
 0x23f   :  { %s8572_s26 = scalar_lea.hbm %s8571_s30, 1  ;;  %s8574_s18 = scalar_lea.hbm %s11242_s14, 1 }
 0x240   :  { %p8573_p2 = scmp.ne.s32.totalorder %s8571_s30, %s8572_s26  ;;  %p8575_p3 = scmp.lt.s32.totalorder %s8571_s30, %s11242_s14 }
 0x241   :  { %p8576_p4 = scmp.lt.s32.totalorder %s8574_s18, %s8572_s26 }
 0x243   :  { %s587_s22 = sshll.u32 %s11243_s3, 4  ;;  %p8577_p5 = por %p8576_p4, %p8575_p3  ;;  %s588_s22 = int_to_ptr.hbm [resolvable:$true] %s587_s22 }
 0x245   :  { %p8578_p6 = pnand %p8577_p5, %p8573_p2 }
 0x247   :  { %8581 = shalt.err (!%p8578_p6)
}
 0x248   :  { %564 = dma.hbm_to_vmem [thread:$0]  %s560_s0, 16, %s562_s5, [#allocation45]  }
 0x249   :  { %s11244_s19 = sld [smem:[#allocation133_spill]]  ;;  %s8923_s13 = smov [#allocation49]  }
 0x24a   :  { %s589_s28 = sshll.u32 %s8923_s13, 4  ;;  %s8594_s4 = sshra.s32 %s588_s22, 4  ;;  %s590_s28 = int_to_ptr.vmem [resolvable:$true] %s589_s28  ;;  %s8595_s4 = int_to_ptr.hbm [resolvable:$true] %s8594_s4 }
 0x24b   :  { %s8596_s2 = scalar_lea.hbm %s8595_s4, 1  ;;  %s8598_s24 = scalar_lea.hbm %s11243_s3, 1 }
 0x24c   :  { %p8597_p7 = scmp.ne.s32.totalorder %s8595_s4, %s8596_s2  ;;  %p8599_p8 = scmp.lt.s32.totalorder %s8595_s4, %s11243_s3 }
 0x24d   :  { %p8600_p9 = scmp.lt.s32.totalorder %s8598_s24, %s8596_s2 }
 0x24f   :  { %s609_s1 = sshll.u32 %s11244_s19, 4  ;;  %p8601_p10 = por %p8600_p9, %p8599_p8  ;;  %s610_s1 = int_to_ptr.hbm [resolvable:$true] %s609_s1 }
 0x251   :  { %p8602_p11 = pnand %p8601_p10, %p8597_p7 }
 0x253   :  { %8605 = shalt.err (!%p8602_p11)
}
 0x254   :  { %592 = dma.hbm_to_vmem [thread:$0]  %s588_s22, 16, %s590_s28, [#allocation48]  }
 0x255   :  { %s11245_s7 = sld [smem:[#allocation136_spill]]  ;;  %s8924_s6 = smov [#allocation52]  }
 0x256   :  { %s611_s27 = sshll.u32 %s8924_s6, 4  ;;  %s8618_s17 = sshra.s32 %s610_s1, 4  ;;  %s612_s27 = int_to_ptr.vmem [resolvable:$true] %s611_s27  ;;  %s8619_s17 = int_to_ptr.hbm [resolvable:$true] %s8618_s17 }
 0x257   :  { %s8620_s14 = scalar_lea.hbm %s8619_s17, 1  ;;  %s8622_s11 = scalar_lea.hbm %s11244_s19, 1 }
 0x258   :  { %p8621_p12 = scmp.ne.s32.totalorder %s8619_s17, %s8620_s14  ;;  %p8623_p13 = scmp.lt.s32.totalorder %s8619_s17, %s11244_s19 }
 0x259   :  { %p8624_p0 = scmp.lt.s32.totalorder %s8622_s11, %s8620_s14 }
 0x25b   :  { %s632_s10 = sshll.u32 %s11245_s7, 4  ;;  %p8625_p1 = por %p8624_p0, %p8623_p13  ;;  %s9497_s10 = int_to_ptr.hbm [resolvable:$true] %s632_s10 }
 0x25d   :  { %p8626_p2 = pnand %p8625_p1, %p8621_p12 }
 0x25f   :  { %8629 = shalt.err (!%p8626_p2)
}
 0x260   :  { %614 = dma.hbm_to_vmem [thread:$0]  %s610_s1, 16, %s612_s27, [#allocation51]  }
 0x261   :  { %s11246_s21 = sld [smem:[#allocation138_spill]]  ;;  %s8925_s0 = smov [#allocation55]  }
 0x262   :  { %s634_s29 = sshll.u32 %s8925_s0, 4  ;;  %s8642_s20 = sshra.s32 %s9497_s10, 4  ;;  %s635_s29 = int_to_ptr.vmem [resolvable:$true] %s634_s29  ;;  %s8643_s20 = int_to_ptr.hbm [resolvable:$true] %s8642_s20 }
 0x263   :  { %s8644_s3 = scalar_lea.hbm %s8643_s20, 384  ;;  %s8646_s22 = scalar_lea.hbm %s11245_s7, 384 }
 0x264   :  { %p8645_p3 = scmp.ne.s32.totalorder %s8643_s20, %s8644_s3  ;;  %p8647_p4 = scmp.lt.s32.totalorder %s8643_s20, %s11245_s7 }
 0x265   :  { %p8648_p5 = scmp.lt.s32.totalorder %s8646_s22, %s8644_s3 }
 0x267   :  { %s657_s8 = sshll.u32 %s11246_s21, 4  ;;  %p8649_p6 = por %p8648_p5, %p8647_p4  ;;  %s658_s8 = int_to_ptr.hbm [resolvable:$true] %s657_s8 }
 0x269   :  { %p8650_p7 = pnand %p8649_p6, %p8645_p3 }
 0x26b   :  { %8653 = shalt.err (!%p8650_p7)
}
 0x26c   :  { %s11247_s23 = sld [smem:[#allocation140_spill]]  ;;  %s8926_s30 = smov [#allocation58]  }
 0x26d   :  { %640 = dma.hbm_to_vmem [thread:$0]  %s9497_s10, 6144, %s635_s29, [#allocation54], %s8894_s15, %s8894_s15, %s8895_s16  }
 0x26e   :  { %s659_s26 = sshll.u32 %s8926_s30, 4  ;;  %s8666_s18 = sshra.s32 %s658_s8, 4  ;;  %s660_s26 = int_to_ptr.vmem [resolvable:$true] %s659_s26  ;;  %s8667_s18 = int_to_ptr.hbm [resolvable:$true] %s8666_s18 }
 0x26f   :  { %s8668_s19 = scalar_lea.hbm %s8667_s18, 1  ;;  %s8670_s13 = scalar_lea.hbm %s11246_s21, 1 }
 0x270   :  { %p8669_p8 = scmp.ne.s32.totalorder %s8667_s18, %s8668_s19  ;;  %p8671_p9 = scmp.lt.s32.totalorder %s8667_s18, %s11246_s21 }
 0x271   :  { %p8672_p10 = scmp.lt.s32.totalorder %s8670_s13, %s8668_s19 }
 0x272   :  { %s681_s5 = sshll.u32 %s11247_s23, 4  ;;  %s682_s5 = int_to_ptr.hbm [resolvable:$true] %s681_s5 }
 0x273   :  { %p8673_p11 = por %p8672_p10, %p8671_p9 }
 0x275   :  { %p8674_p12 = pnand %p8673_p11, %p8669_p8 }
 0x277   :  { %8677 = shalt.err (!%p8674_p12)
}
 0x278   :  { %662 = dma.hbm_to_vmem [thread:$0]  %s658_s8, 16, %s660_s26, [#allocation57]  }
 0x279   :  { %s8927_s28 = smov [#allocation61]   ;;  %s722_s4 = sshll.u32 %s9324_s9, 4  ;;  %s723_s4 = int_to_ptr.hbm [resolvable:$true] %s722_s4 }
 0x27a   :  { %s683_s1 = sshll.u32 %s8927_s28, 4  ;;  %s8690_s2 = sshra.s32 %s682_s5, 4  ;;  %s684_s1 = int_to_ptr.vmem [resolvable:$true] %s683_s1  ;;  %s8691_s2 = int_to_ptr.hbm [resolvable:$true] %s8690_s2 }
 0x27b   :  { %s8692_s24 = scalar_lea.hbm %s8691_s2, 1  ;;  %s8694_s7 = scalar_lea.hbm %s11247_s23, 1 }
 0x27c   :  { %p8693_p13 = scmp.ne.s32.totalorder %s8691_s2, %s8692_s24  ;;  %p8695_p0 = scmp.lt.s32.totalorder %s8691_s2, %s11247_s23 }
 0x27d   :  { %p8696_p1 = scmp.lt.s32.totalorder %s8694_s7, %s8692_s24 }
 0x27f   :  { %p8697_p2 = por %p8696_p1, %p8695_p0 }
 0x281   :  { %p8698_p3 = pnand %p8697_p2, %p8693_p13 }
 0x283   :  { %8701 = shalt.err (!%p8698_p3)
}
 0x284   :  { %686 = dma.hbm_to_vmem [thread:$0]  %s682_s5, 16, %s684_s1, [#allocation60]  }
 0x285   :  { %s8928_s10 = smov [#allocation64]   ;;  %s8714_s27 = sshra.s32 %s723_s4, 4  ;;  %s8715_s27 = int_to_ptr.hbm [resolvable:$true] %s8714_s27 }
 0x286   :  { %s724_s6 = sshll.u32 %s8928_s10, 4  ;;  %s8716_s17 = scalar_lea.hbm %s8715_s27, 96  ;;  %s725_s6 = int_to_ptr.vmem [resolvable:$true] %s724_s6 }
 0x287   :  { %p8717_p4 = scmp.ne.s32.totalorder %s8715_s27, %s8716_s17  ;;  %s8718_s14 = scalar_lea.hbm %s9324_s9, 96 }
 0x288   :  { %p8719_p5 = scmp.lt.s32.totalorder %s8715_s27, %s9324_s9  ;;  %p8720_p6 = scmp.lt.s32.totalorder %s8718_s14, %s8716_s17 }
 0x28a   :  { %p8721_p7 = por %p8720_p6, %p8719_p5 }
 0x28c   :  { %p8722_p8 = pnand %p8721_p7, %p8717_p4 }
 0x28e   :  { %8725 = shalt.err (!%p8722_p8)
}
 0x28f   :  { %730 = dma.hbm_to_vmem [thread:$0]  %s723_s4, 1536, %s725_s6, [#allocation63], %s8894_s15, %s8894_s15, %s8895_s16  }
 0x290   :  { %8762 = dma.done.wait [#allocation3], 16  }
 0x291   :  { %8763 = vsyncadd [#allocation3], 4294967280 }
 0x292   :  { %8764 = dma.done.wait [#allocation6], 32  }
 0x293   :  { %8765 = vsyncadd [#allocation6], 4294967264 }
 0x294   :  { %8766 = dma.done.wait [#allocation9], 208  }
 0x295   :  { %8767 = vsyncadd [#allocation9], 4294967088 }
 0x296   :  { %8768 = dma.done.wait [#allocation12], 32  }
 0x297   :  { %8769 = vsyncadd [#allocation12], 4294967264 }
 0x298   :  { %8770 = dma.done.wait [#allocation15], 1552  }
 0x299   :  { %8771 = vsyncadd [#allocation15], 4294965744 }
 0x29a   :  { %8772 = dma.done.wait [#allocation18], 32  }
 0x29b   :  { %8773 = vsyncadd [#allocation18], 4294967264 }
 0x29c   :  { %8774 = dma.done.wait [#allocation21], 32  }
 0x29d   :  { %8775 = vsyncadd [#allocation21], 4294967264 }
 0x29e   :  { %8776 = dma.done.wait [#allocation24], 32  }
 0x29f   :  { %8777 = vsyncadd [#allocation24], 4294967264 }
 0x2a0   :  { %8778 = dma.done.wait [#allocation27], 2048  }
 0x2a1   :  { %8779 = vsyncadd [#allocation27], 4294965248 }
 0x2a2   :  { %8780 = dma.done.wait [#allocation30], 32  }
 0x2a3   :  { %8781 = vsyncadd [#allocation30], 4294967264 }
 0x2a4   :  { %8782 = dma.done.wait [#allocation33], 32  }
 0x2a5   :  { %8783 = vsyncadd [#allocation33], 4294967264 }
 0x2a6   :  { %8784 = dma.done.wait [#allocation36], 6144  }
 0x2a7   :  { %8785 = vsyncadd [#allocation36], 4294961152 }
 0x2a8   :  { %8786 = dma.done.wait [#allocation39], 32  }
 0x2a9   :  { %8787 = vsyncadd [#allocation39], 4294967264 }
 0x2aa   :  { %8788 = dma.done.wait [#allocation42], 32  }
 0x2ab   :  { %8789 = vsyncadd [#allocation42], 4294967264 }
 0x2ac   :  { %8790 = dma.done.wait [#allocation45], 32  }
 0x2ad   :  { %8791 = vsyncadd [#allocation45], 4294967264 }
 0x2ae   :  { %8792 = dma.done.wait [#allocation48], 3088  }
 0x2af   :  { %8793 = vsyncadd [#allocation48], 4294964208 }
 0x2b0   :  { %8794 = dma.done.wait [#allocation51], 32  }
 0x2b1   :  { %8795 = vsyncadd [#allocation51], 4294967264 }
 0x2b2   :  { %8796 = dma.done.wait [#allocation54], 6160  }
 0x2b3   :  { %8797 = vsyncadd [#allocation54], 4294961136 }
 0x2b4   :  { %8798 = dma.done.wait [#allocation57], 32  }
 0x2b5   :  { %8799 = vsyncadd [#allocation57], 4294967264 }
 0x2b6   :  { %8800 = dma.done.wait [#allocation60], 1552  }
 0x2b7   :  { %8801 = vsyncadd [#allocation60], 4294965744 }
 0x2b8   :  { %8802 = dma.done.wait [#allocation63], 3072  }
 0x2b9   :  { %8803 = vsyncadd [#allocation63], 4294964224  ;;  %s11248_s9 = sld [smem:[#allocation89_spill]]  ;;  %v8929_v0 = vmov 0   ;;  %v1003_v9 = vld [vmem:[#allocation8 + $0x4] sm:$0x7]  ;;  %v937_v13 = vlaneseq }
 0x2ba   :  { %s11249_s15 = sld [smem:[#allocation92_spill]]  ;;  %7654 = vset.pattern.permute.xlu1 %v8929_v0  ;;  %7653 = vset.pattern.permute.xlu0 %v8929_v0  ;;  %vm1017_vm0 = vcmask 1042432   ;;  %v1001_v10 = vld [vmem:[#allocation8] sm:$0x7]  ;;  %vm1004_vm1 = vcmask 23552   ;;  %vm1144_vm4 = vcmask 261120  }
 0x2bb   :  { %7655 = vset.pattern.permute.xlu2 %v8929_v0  ;;  %s11250_s16 = sld [smem:[#allocation88_spill]]  ;;  %7053 = vmatpush.msk.msra.mxu0 %vm1017_vm0, %v1003_v9  ;;  %v1095_v12 = vld [vmem:[#allocation8 + $0x8] sm:$0x7]  ;;  %v9548_v18 = vshrl.u32 %v937_v13, 7  ;;  %vm1192_vm5 = vcmask 254976   ;;  %vm1227_vm6 = vcmask 1041408  }
 0x2bc   :  { %7058 = vmatpush.msk.msra.mxu1 %vm1017_vm0, %v1001_v10  ;;  %7063 = vmatpush.msk.msra.mxu2 %vm1017_vm0, %v1095_v12  ;;  %s11251_s11 = sld [smem:[#allocation99_spill]]  ;;  %vm1214_vm7 = vcmask 15360  }
 0x2bd   :  { %7527 = vmatpush.msk.msra.mxu3 %vm1017_vm0, %v1095_v12  ;;  %vm972_vm2 = vcmp.lt.s32.totalorder %v9548_v18, 7  ;;  %vm939_vm3 = vcmp.lt.s32.totalorder %v9548_v18, 1  ;;  %s11252_s21 = sld [smem:[#allocation96_spill]] }
 0x2be   :  { %s11253_s0 = sld [smem:[#allocation111_spill]] }
 0x2bf   :  { %v896_v1 = vld [vmem:[%s11248_s9 + $0x8] sm:$0xff]  ;;  %v895_v2 = vld [vmem:[%s11248_s9] sm:$0xff]  ;;  %v897_v3 = vld [vmem:[%s11248_s9 + $0x10] sm:$0xff]  ;;  %s11254_s29 = sld [smem:[#allocation106_spill]] }
 0x2c0   :  { %951 = vperm.xlu1 %7654, %v896_v1   ;;  %946 = vperm.xlu0 %7653, %v895_v2   ;;  %v903_v4 = vld [vmem:[%s11249_s15 + $0x8] sm:$0xff]  ;;  %v902_v5 = vld [vmem:[%s11249_s15] sm:$0xff]  ;;  %v905_v6 = vld [vmem:[%s11249_s15 + $0x18] sm:$0xff]  ;;  %s11255_s8 = sld [smem:[#allocation112_spill]] }
 0x2c1   :  { %956 = vperm.xlu2 %7655, %v897_v3   ;;  %v898_v7 = vld [vmem:[%s11248_s9 + $0x18] sm:$0xff]  ;;  %v904_v8 = vld [vmem:[%s11249_s15 + $0x10] sm:$0xff]  ;;  %v9531_v11 = vld [vmem:[%s11250_s16] sm:$0xff]  ;;  %s11256_s20 = sld [smem:[#allocation115_spill]] }
 0x2c2   :  { %7054 = vmatmul.msk.f32.vlgmr.msra.gmra.mxu0 %vm1004_vm1, %v9531_v11  ;;  %v9537_v14 = vld [vmem:[%s11250_s16 + $0x8] sm:$0xff]  ;;  %v9545_v16 = vld [vmem:[%s11250_s16 + $0x18] sm:$0xff]  ;;  %v968_v19 = vrot.slane %v9531_v11, 1  ;;  %v9555_v21 = vld [vmem:[%s11250_s16 + $0x10] sm:$0xff]  ;;  %v933_v24 = vrot.slane %v9531_v11, 7  ;;  %s11257_s3 = sld [smem:[#allocation107_spill]] }
 0x2c3   :  { %v971_v17 = vrot.slane %v9545_v16, 1  ;;  %v936_v25 = vrot.slane %v9545_v16, 7  ;;  %v934_v28 = vrot.slane %v9537_v14, 7  ;;  %v969_v31 = vrot.slane %v9537_v14, 1  ;;  %s11258_s22 = sld [smem:[#allocation108_spill]] }
 0x2c4   :  { %v935_v37 = vrot.slane %v9555_v21, 7  ;;  %v970_v38 = vrot.slane %v9555_v21, 1  ;;  %s11259_s23 = sld [smem:[#allocation103_spill]] }
 0x2c5   :  { %v976_v20 = vsel %vm972_vm2, %v971_v17, %v968_v19  ;;  %v943_v26 = vsel %vm939_vm3, %v936_v25, %v933_v24  ;;  %v942_v32 = vsel %vm939_vm3, %v933_v24, %v934_v28  ;;  %v975_v33 = vsel %vm972_vm2, %v968_v19, %v969_v31  ;;  %v9642_v24 = vld [vmem:[%s11252_s21] sm:$0xff]  ;;  %s11260_s5 = sld [smem:[#allocation101_spill]] }
 0x2c6   :  { %v941_v40 = vsel %vm939_vm3, %v934_v28, %v935_v37  ;;  %v974_v41 = vsel %vm972_vm2, %v969_v31, %v970_v38  ;;  %v940_v46 = vsel %vm939_vm3, %v935_v37, %v936_v25  ;;  %v973_v47 = vsel %vm972_vm2, %v970_v38, %v971_v17  ;;  %v9658_v38 = vld [vmem:[%s11252_s21 + $0x18] sm:$0xff]  ;;  %s11261_s30 = sld [smem:[#allocation91_spill]] }
 0x2c7   :  { %s11262_s26 = sld [smem:[#allocation94_spill]] }
 0x2c8   :  { %984 = vperm.xlu1 %7654, %v903_v4   ;;  %979 = vperm.xlu0 %7653, %v902_v5   ;;  %s11263_s18 = sld [smem:[#allocation98_spill]] }
 0x2c9   :  { %994 = vperm.xlu2 %7655, %v905_v6   ;;  %v9624_v6 = vld [vmem:[%s11251_s11] sm:$0x3]  ;;  %s11264_s19 = sld [smem:[#allocation120_spill]] }
 0x2ca   :  { %7055 = vmatmul.msk.f32.gmra.mxu0 %vm1004_vm1, %v9537_v14  ;;  %s11265_s13 = sld [smem:[#allocation102_spill]] }
 0x2cb   :  { %s11266_s28 = sld [smem:[#allocation100_spill]] }
 0x2cc   :  { %s11267_s1 = sld [smem:[#allocation93_spill]] }
 0x2cd   :  { %s11268_s4 = sld [smem:[#allocation97_spill]] }
 0x2ce   :  { %s11269_s2 = sld [smem:[#allocation90_spill]] }
 0x2cf   :  { %s11270_s24 = sld [smem:[#allocation129_spill]] }
 0x2d0   :  { %961 = vperm.xlu1 %7654, %v898_v7   ;;  %989 = vperm.xlu0 %7653, %v904_v8   ;;  %s11271_s7 = sld [smem:[#allocation130_spill]] }
 0x2d1   :  { %s11272_s10 = sld [smem:[#allocation135_spill]] }
 0x2d2   :  { %7056 = vmatmul.msk.f32.gmra.mxu0 %vm1004_vm1, %v9555_v21  ;;  %s11273_s6 = sld [smem:[#allocation145_spill]] }
 0x2d3   :  { %s11274_s27 = sld [smem:[#allocation142_spill]] }
 0x2d4   :  { %s11275_s17 = sld [smem:[#allocation144_spill]] }
 0x2d5   :  { %s11276_s14 = sld [smem:[#allocation143_spill]] }
 0x2d6   :  { %s11277_s9 = sld [smem:[#allocation105_spill]] }
 0x2d7   :  { %s11278_s15 = sld [smem:[#allocation141_spill]] }
 0x2d8   :  { %s11279_s16 = sld [smem:[#allocation104_spill]] }
 0x2da   :  { %7057 = vmatmul.msk.f32.gmra.mxu0 %vm1004_vm1, %v9545_v16 }
 0x31b   :  { %v9540_v15 = vpop.permute.xlu2 %956 }
 0x31c   :  { %v966_v42 = vmul.f32 %v9540_v15, %v941_v40 }
 0x323   :  { %v9557_v22 = vpop.permute.xlu2 %994 }
 0x324   :  { %v1000_v23 = vmul.f32 %v9557_v22, %v976_v20 }
 0x326   :  { %7067 = vmatmul.msk.f32.vlgmr.msra.gmra.mxu3 %vm1004_vm1, %v1000_v23 }
 0x332   :  { %v9570_v27 = vpop.permute.xlu0 %946  ;;  %v9574_v30 = vpop.permute.xlu1 %951 }
 0x333   :  { %v964_v29 = vmul.f32 %v9570_v27, %v943_v26  ;;  %v965_v34 = vmul.f32 %v9574_v30, %v942_v32 }
 0x335   :  { %7059 = vmatmul.msk.f32.vlgmr.msra.gmra.mxu1 %vm1004_vm1, %v964_v29  ;;  %v9648_v29 = vld [vmem:[%s11252_s21 + $0x8] sm:$0xff] }
 0x33a   :  { %v9583_v35 = vpop.permute.xlu0 %979  ;;  %v9590_v39 = vpop.permute.xlu1 %984 }
 0x33b   :  { %v997_v36 = vmul.f32 %v9583_v35, %v975_v33  ;;  %v998_v43 = vmul.f32 %v9590_v39, %v974_v41  ;;  %v9653_v33 = vld [vmem:[%s11252_s21 + $0x10] sm:$0xff] }
 0x33d   :  { %7060 = vmatmul.msk.f32.gmra.mxu1 %vm1004_vm1, %v965_v34  ;;  %7064 = vmatmul.msk.f32.vlgmr.msra.gmra.mxu2 %vm1004_vm1, %v997_v36 }
 0x33f   :  { %v1038_v50 = vpop.f32.mrf.mxu0 }
 0x342   :  { %v9600_v44 = vpop.permute.xlu1 %961  ;;  %v9602_v45 = vpop.permute.xlu0 %989 }
 0x343   :  { %v967_v48 = vmul.f32 %v9600_v44, %v940_v46  ;;  %v999_v49 = vmul.f32 %v9602_v45, %v973_v47 }
 0x345   :  { %7061 = vmatmul.msk.f32.gmra.mxu1 %vm1004_vm1, %v966_v42  ;;  %7065 = vmatmul.msk.f32.gmra.mxu2 %vm1004_vm1, %v998_v43 }
 0x347   :  { %v1041_v52 = vpop.f32.mrf.mxu0 }
 0x34d   :  { %7062 = vmatmul.msk.f32.gmra.mxu1 %vm1004_vm1, %v967_v48  ;;  %7066 = vmatmul.msk.f32.gmra.mxu2 %vm1004_vm1, %v999_v49 }
 0x34f   :  { %v1044_v54 = vpop.f32.mrf.mxu0 }
 0x357   :  { %v1047_v58 = vpop.f32.mrf.mxu0 }
 0x3a9   :  { %v1137_v61 = vpop.f32.mrf.mxu3 }
 0x3b2   :  { %v1082_v51 = vpop.f32.mrf.mxu1 }
 0x3b3   :  { %v1083_v3 = vadd.f32 %v1082_v51, %v1038_v50 }
 0x3ba   :  { %v1085_v53 = vpop.f32.mrf.mxu1 }
 0x3bb   :  { %v1086_v1 = vadd.f32 %v1085_v53, %v1041_v52 }
 0x3c0   :  { %v1128_v55 = vpop.f32.mrf.mxu2 }
 0x3c1   :  { %v9620_v5 = vadd.f32 %v1128_v55, %v1083_v3  ;;  %v7082_v55 = vld [vmem:[%s11253_s0 + $0x30] sm:$0xff]  ;;  %v1387_v3 = vld [vmem:[%s11253_s0 + $0x18] sm:$0xff] }
 0x3c2   :  { %v1088_v56 = vpop.f32.mrf.mxu1  ;;  %1458 = vmatpush.msrb.mxu2 %v1387_v3 }
 0x3c3   :  { %v1089_v63 = vadd.f32 %v1088_v56, %v1044_v54  ;;  %v1168_v10 = vmul.f32 %v9620_v5, %v9620_v5  ;;  %v7083_v54 = vld [vmem:[%s11253_s0 + $0x38] sm:$0xff] }
 0x3c4   :  { %1417 = vmatpush.msrb.mxu1 %v7083_v54 }
 0x3c6   :  { %1418 = vmatpush.msrb.mxu1 %v7082_v55 }
 0x3c8   :  { %v1131_v57 = vpop.f32.mrf.mxu2 }
 0x3c9   :  { %v9617_v4 = vadd.f32 %v1131_v57, %v1086_v1  ;;  %v7081_v57 = vld [vmem:[%s11253_s0 + $0x28] sm:$0xff] }
 0x3ca   :  { %v1091_v59 = vpop.f32.mrf.mxu1  ;;  %1419 = vmatpush.msrb.mxu1 %v7081_v57 }
 0x3cb   :  { %v1092_v60 = vadd.f32 %v1091_v59, %v1047_v58  ;;  %v1169_v9 = vmul.f32 %v9617_v4, %v9617_v4  ;;  %v7095_v58 = vld [vmem:[%s11253_s0 + $0x58] sm:$0xff]  ;;  %v7080_v59 = vld [vmem:[%s11253_s0 + $0x20] sm:$0xff] }
 0x3cc   :  { %1420 = vmatpush.msrb.mxu1 %v7080_v59 }
 0x3cd   :  { %v9612_v62 = vadd.f32 %v1137_v61, %v1092_v60  ;;  %v7094_v60 = vld [vmem:[%s11253_s0 + $0x50] sm:$0xff]  ;;  %v7093_v61 = vld [vmem:[%s11253_s0 + $0x48] sm:$0xff] }
 0x3cf   :  { %1160 = vmatpush.msrb.mxu3 %v9612_v62  ;;  %v1171_v7 = vmul.f32 %v9612_v62, %v9612_v62 }
 0x3d0   :  { %v1134_v0 = vpop.f32.mrf.mxu2 }
 0x3d1   :  { %v9615_v2 = vadd.f32 %v1134_v0, %v1089_v63  ;;  %v7092_v63 = vld [vmem:[%s11253_s0 + $0x40] sm:$0xff] }
 0x3d3   :  { %1161 = vmatpush.msrb.mxu3 %v9615_v2  ;;  %v1170_v8 = vmul.f32 %v9615_v2, %v9615_v2 }
 0x3d5   :  { %1162 = vmatpush.msrb.mxu3 %v9617_v4 }
 0x3d7   :  { %1163 = vmatpush.msrb.mxu3 %v9620_v5 }
 0x3d8   :  { %7068 = vmatmul.msk.f32.vlgmr.msrb.gmra.mxu3 %vm1144_vm4, %v9624_v6 }
 0x3d9   :  { %1184 = vmatpush.msra.mxu3 %v1171_v7 }
 0x3db   :  { %1185 = vmatpush.msra.mxu3 %v1170_v8 }
 0x3dd   :  { %1186 = vmatpush.msra.mxu3 %v1169_v9  ;;  %v7656_v9 = vld [vmem:[#allocation2] ss:$0 sm:$0xff] }
 0x3df   :  { %1187 = vmatpush.msra.mxu3 %v1168_v10 }
 0x3e0   :  { %7069 = vmatmul.msk.f32.vlgmr.msra.gmra.mxu3 %vm1144_vm4, %v9624_v6 }
 0x45b   :  { %v1165_v12 = vpop.f32.mrf.mxu3 }
 0x45c   :  { %v1193_v13 = vsel %vm1192_vm5, %v1165_v12, 0.0  ;;  %v1386_v12 = vld [vmem:[%s11253_s0 + $0x10] sm:$0xff] }
 0x45d   :  { %1194 = vadd.xlane.f32.xlu2 %v1193_v13  ;;  %1459 = vmatpush.msrb.mxu2 %v1386_v12  ;;  %v1385_v13 = vld [vmem:[%s11253_s0 + $0x8] sm:$0xff] }
 0x45f   :  { %1460 = vmatpush.msrb.mxu2 %v1385_v13 }
 0x463   :  { %v1189_v17 = vpop.f32.mrf.mxu3 }
 0x464   :  { %v1197_v19 = vsel %vm1192_vm5, %v1189_v17, 0.0  ;;  %v7657_v17 = vld [vmem:[%s11254_s29] ss:$0 sm:$0xff]  ;;  %s11283_s29 = sld [smem:[#allocation95_spill]] }
 0x465   :  { %1198 = vadd.xlane.f32.xlu0 %v1197_v19 }
 0x4d0   :  { %v1195_v20 = vpop.xlane.xlu2 %1194 }
 0x4d1   :  { %v1196_v23 = vmul.f32 0.001953125, %v1195_v20  ;;  %v1384_v20 = vld [vmem:[%s11253_s0] sm:$0xff]  ;;  %s11282_s0 = sld [smem:[#allocation147_spill]] }
 0x4d2   :  { %1461 = vmatpush.msrb.mxu2 %v1384_v20 }
 0x4d3   :  { %7070 = vmatpush.msk.msrb.mxu3 %vm1227_vm6, %v1196_v23  ;;  %v1201_v26 = vmul.f32 %v1196_v23, %v1196_v23 }
 0x4d4   :  { %7071 = vmatmul.msk.f32.vlgmr.msrb.gmra.mxu3 %vm1214_vm7, %v9642_v24 }
 0x4d5   :  { %1504 = vmatpush.msra.mxu3 %v7095_v58 }
 0x4d7   :  { %1505 = vmatpush.msra.mxu3 %v7094_v60 }
 0x4d8   :  { %v1199_v25 = vpop.xlane.xlu0 %1198 }
 0x4d9   :  { %v1200_v28 = vmul.f32 0.001953125, %v1199_v25  ;;  %1506 = vmatpush.msra.mxu3 %v7093_v61 }
 0x4db   :  { %v1202_v31 = vsub.f32 %v1200_v28, %v1201_v26  ;;  %1507 = vmatpush.msra.mxu3 %v7092_v63 }
 0x4dc   :  { %7072 = vmatmul.msk.f32.gmra.mxu3 %vm1214_vm7, %v9648_v29 }
 0x4dd   :  { %v1203_v32 = vadd.f32 1e-05, %v1202_v31 }
 0x4df   :  { %7696 = vrsqrt.f32 %v1203_v32  ;;  %vm1210_vm9 = vweird.f32 %v1203_v32 }
 0x4e4   :  { %7073 = vmatmul.msk.f32.gmra.mxu3 %vm1214_vm7, %v9653_v33 }
 0x4e5   :  { %v7697_v34 = vpop.eup %7696 }
 0x4e6   :  { %v1205_v36 = vmul.f32 %v7697_v34, %v1203_v32  ;;  %vm1211_vm8 = vweird.f32 %v7697_v34 }
 0x4e7   :  { %vm1212_vm10 = vmor %vm1210_vm9, %vm1211_vm8 }
 0x4e8   :  { %v1206_v37 = vmul.f32 %v7697_v34, %v1205_v36 }
 0x4ea   :  { %v1207_v40 = vmul.f32 0.5, %v1206_v37 }
 0x4ec   :  { %7074 = vmatmul.msk.f32.gmra.mxu3 %vm1214_vm7, %v9658_v38  ;;  %v1208_v41 = vsub.f32 1.5, %v1207_v40 }
 0x4ee   :  { %v1209_v42 = vmul.f32 %v7697_v34, %v1208_v41 }
 0x4f0   :  { %v1213_v43 = vsel %vm1212_vm10, %v7697_v34, %v1209_v42 }
 0x4f1   :  { %7075 = vmatpush.msk.msrb.mxu0 %vm1227_vm6, %v1213_v43 }
 0x4f2   :  { %7076 = vmatmul.msk.f32.vlgmr.msrb.gmra.mxu0 %vm1214_vm7, %v9642_v24 }
 0x4fa   :  { %7077 = vmatmul.msk.f32.gmra.mxu0 %vm1214_vm7, %v9648_v29 }
 0x502   :  { %7078 = vmatmul.msk.f32.gmra.mxu0 %vm1214_vm7, %v9653_v33 }
 0x50a   :  { %7079 = vmatmul.msk.f32.gmra.mxu0 %vm1214_vm7, %v9658_v38 }
 0x557   :  { %v1248_v46 = vpop.f32.mrf.mxu3 }
 0x558   :  { %1294 = vperm.xlu1 %7654, %v1248_v46  }
 0x55f   :  { %v1251_v47 = vpop.f32.mrf.mxu3 }
 0x560   :  { %1299 = vperm.xlu1 %7654, %v1251_v47  }
 0x567   :  { %v1254_v48 = vpop.f32.mrf.mxu3 }
 0x56f   :  { %v1257_v49 = vpop.f32.mrf.mxu3  ;;  %v1280_v50 = vpop.f32.mrf.mxu0 }
 0x570   :  { %1309 = vperm.xlu1 %7654, %v1257_v49  }
 0x577   :  { %v1283_v51 = vpop.f32.mrf.mxu0 }
 0x578   :  { %1318 = vperm.xlu1 %7654, %v1280_v50   ;;  %1323 = vperm.xlu2 %7655, %v1283_v51  }
 0x57f   :  { %v1286_v52 = vpop.f32.mrf.mxu0 }
 0x580   :  { %1328 = vperm.xlu0 %7653, %v1286_v52  }
 0x587   :  { %v1289_v53 = vpop.f32.mrf.mxu0 }
 0x588   :  { %1333 = vperm.xlu1 %7654, %v1289_v53  }
 0x590   :  { %1304 = vperm.xlu1 %7654, %v1254_v48  }
 0x5ca   :  { %v1295_v56 = vpop.permute.xlu1 %1294 }
 0x5cb   :  { %v1312_v23 = vsub.f32 %v9620_v5, %v1295_v56 }
 0x5d2   :  { %v1300_v0 = vpop.permute.xlu1 %1299  ;;  %v1324_v7 = vpop.permute.xlu2 %1323 }
 0x5d3   :  { %v1313_v1 = vsub.f32 %v9617_v4, %v1300_v0 }
 0x5d5   :  { %v1337_v10 = vmul.f32 %v1324_v7, %v1313_v1 }
 0x5d7   :  { %v1345_v19 = vmul.f32 %v7656_v9, %v1337_v10 }
 0x5d9   :  { %v1353_v26 = vadd.f32 %v7657_v17, %v1345_v19 }
 0x5db   :  { %v1357_v31 = vmax.f32 %v1353_v26, 0.0 }
 0x5dd   :  { %v1373_v36 = vrot.slane %v1357_v31, 1  ;;  %v1361_v58 = vrot.slane %v1357_v31, 7 }
 0x5e2   :  { %v1310_v8 = vpop.permute.xlu1 %1309 }
 0x5e3   :  { %v1315_v5 = vsub.f32 %v9612_v62, %v1310_v8 }
 0x5ea   :  { %v1319_v25 = vpop.permute.xlu1 %1318 }
 0x5eb   :  { %v1336_v28 = vmul.f32 %v1319_v25, %v1312_v23 }
 0x5ed   :  { %v1344_v4 = vmul.f32 %v7656_v9, %v1336_v28 }
 0x5ef   :  { %v1352_v32 = vadd.f32 %v7657_v17, %v1344_v4 }
 0x5f1   :  { %v1356_v34 = vmax.f32 %v1352_v32, 0.0 }
 0x5f2   :  { %v1329_v53 = vpop.permute.xlu0 %1328 }
 0x5f3   :  { %v1372_v37 = vrot.slane %v1356_v34, 1  ;;  %7084 = vmatmul.msk.f32.vlgmr.msrb.gmra.mxu1 %vm1144_vm4, %v1356_v34  ;;  %v1360_v50 = vrot.slane %v1356_v34, 7 }
 0x5f5   :  { %v1378_v40 = vsel %vm972_vm2, %v1372_v37, %v1373_v36  ;;  %v1366_v60 = vsel %vm939_vm3, %v1360_v50, %v1361_v58 }
 0x5f6   :  { %v1380_v41 = vmul.f32 %v1378_v40, %v9583_v35 }
 0x5f8   :  { %7096 = vmatmul.msk.f32.vlgmr.msra.gmra.mxu3 %vm1144_vm4, %v1380_v41 }
 0x5fa   :  { %v1334_v42 = vpop.permute.xlu1 %1333 }
 0x5fb   :  { %v1339_v43 = vmul.f32 %v1334_v42, %v1315_v5  ;;  %7085 = vmatmul.msk.f32.gmra.mxu1 %vm1144_vm4, %v1357_v31 }
 0x5fd   :  { %v1347_v46 = vmul.f32 %v7656_v9, %v1339_v43 }
 0x5ff   :  { %v1355_v47 = vadd.f32 %v7657_v17, %v1347_v46 }
 0x601   :  { %v1359_v48 = vmax.f32 %v1355_v47, 0.0 }
 0x602   :  { %v1305_v49 = vpop.permute.xlu1 %1304 }
 0x603   :  { %v1363_v51 = vrot.slane %v1359_v48, 7  ;;  %v1314_v52 = vsub.f32 %v9615_v2, %v1305_v49  ;;  %v1369_v2 = vmul.f32 %v1366_v60, %v9574_v30  ;;  %v1375_v7 = vrot.slane %v1359_v48, 1 }
 0x605   :  { %v1338_v54 = vmul.f32 %v1329_v53, %v1314_v52  ;;  %v1367_v55 = vsel %vm939_vm3, %v1363_v51, %v1360_v50  ;;  %v1379_v13 = vsel %vm972_vm2, %v1375_v7, %v1372_v37 }
 0x606   :  { %v1368_v56 = vmul.f32 %v1367_v55, %v9570_v27  ;;  %v1383_v19 = vmul.f32 %v1379_v13, %v9557_v22 }
 0x607   :  { %v1346_v62 = vmul.f32 %v7656_v9, %v1338_v54  ;;  %v1718_v54 = vld [vmem:[%s11255_s8] sm:$0x7] }
 0x608   :  { %7088 = vmatmul.msk.f32.vlgmr.msrb.gmra.mxu2 %vm1144_vm4, %v1368_v56 }
 0x609   :  { %v1354_v57 = vadd.f32 %v7657_v17, %v1346_v62 }
 0x60b   :  { %v1358_v59 = vmax.f32 %v1354_v57, 0.0 }
 0x60d   :  { %v1374_v61 = vrot.slane %v1358_v59, 1  ;;  %7086 = vmatmul.msk.f32.gmra.mxu1 %vm1144_vm4, %v1358_v59  ;;  %v1362_v63 = vrot.slane %v1358_v59, 7 }
 0x60f   :  { %v1377_v0 = vsel %vm972_vm2, %v1373_v36, %v1374_v61  ;;  %v1365_v3 = vsel %vm939_vm3, %v1361_v58, %v1362_v63  ;;  %v1376_v8 = vsel %vm972_vm2, %v1374_v61, %v1375_v7  ;;  %v1364_v12 = vsel %vm939_vm3, %v1362_v63, %v1363_v51 }
 0x610   :  { %7089 = vmatmul.msk.f32.gmra.mxu2 %vm1144_vm4, %v1369_v2  ;;  %v1381_v1 = vmul.f32 %v1377_v0, %v9590_v39  ;;  %v1370_v9 = vmul.f32 %v1365_v3, %v9540_v15  ;;  %v1382_v10 = vmul.f32 %v1376_v8, %v9602_v45  ;;  %v1371_v17 = vmul.f32 %v1364_v12, %v9600_v44 }
 0x612   :  { %7097 = vmatmul.msk.f32.gmra.mxu3 %vm1144_vm4, %v1381_v1 }
 0x615   :  { %7087 = vmatmul.msk.f32.gmra.mxu1 %vm1144_vm4, %v1359_v48 }
 0x618   :  { %7090 = vmatmul.msk.f32.gmra.mxu2 %vm1144_vm4, %v1370_v9 }
 0x61a   :  { %7098 = vmatmul.msk.f32.gmra.mxu3 %vm1144_vm4, %v1382_v10 }
 0x620   :  { %7091 = vmatmul.msk.f32.gmra.mxu2 %vm1144_vm4, %v1371_v17 }
 0x622   :  { %7099 = vmatmul.msk.f32.gmra.mxu3 %vm1144_vm4, %v1383_v19 }
 0x670   :  { %v1422_v20 = vpop.f32.mrf.mxu1 }
 0x678   :  { %v1425_v26 = vpop.f32.mrf.mxu1 }
 0x67b   :  { %v1509_v25 = vpop.f32.mrf.mxu3 }
 0x68a   :  { %v1428_v31 = vpop.f32.mrf.mxu1 }
 0x68b   :  { %v1463_v23 = vpop.f32.mrf.mxu2 }
 0x68c   :  { %v1464_v43 = vadd.f32 %v1463_v23, %v1422_v20 }
 0x68e   :  { %v9733_v50 = vadd.f32 %v1509_v25, %v1464_v43 }
 0x690   :  { %v1545_v53 = vmul.f32 %v9733_v50, %v9733_v50 }
 0x692   :  { %v1431_v40 = vpop.f32.mrf.mxu1 }
 0x693   :  { %v1466_v28 = vpop.f32.mrf.mxu2 }
 0x694   :  { %v1467_v41 = vadd.f32 %v1466_v28, %v1425_v26 }
 0x695   :  { %v1512_v4 = vpop.f32.mrf.mxu3 }
 0x696   :  { %v9728_v48 = vadd.f32 %v1512_v4, %v1467_v41 }
 0x698   :  { %v1546_v52 = vmul.f32 %v9728_v48, %v9728_v48 }
 0x69b   :  { %v1469_v32 = vpop.f32.mrf.mxu2 }
 0x69c   :  { %v1470_v36 = vadd.f32 %v1469_v32, %v1428_v31 }
 0x69d   :  { %v1515_v34 = vpop.f32.mrf.mxu3 }
 0x69e   :  { %v9724_v46 = vadd.f32 %v1515_v34, %v1470_v36 }
 0x6a0   :  { %v1547_v51 = vmul.f32 %v9724_v46, %v9724_v46 }
 0x6a3   :  { %v1472_v37 = vpop.f32.mrf.mxu2 }
 0x6a4   :  { %v1473_v5 = vadd.f32 %v1472_v37, %v1431_v40 }
 0x6a5   :  { %v1518_v42 = vpop.f32.mrf.mxu3 }
 0x6a6   :  { %v9726_v47 = vadd.f32 %v1518_v42, %v1473_v5 }
 0x6a8   :  { %v1548_v49 = vmul.f32 %v9726_v47, %v9726_v47  ;;  %1537 = vmatpush.msra.mxu0 %v9726_v47 }
 0x6aa   :  { %1538 = vmatpush.msra.mxu0 %v9724_v46  ;;  %1561 = vmatpush.msra.mxu1 %v1548_v49 }
 0x6ac   :  { %1539 = vmatpush.msra.mxu0 %v9728_v48  ;;  %1562 = vmatpush.msra.mxu1 %v1547_v51 }
 0x6ae   :  { %1540 = vmatpush.msra.mxu0 %v9733_v50  ;;  %1563 = vmatpush.msra.mxu1 %v1546_v52 }
 0x6af   :  { %7100 = vmatmul.msk.f32.vlgmr.msra.gmra.mxu0 %vm1144_vm4, %v9624_v6 }
 0x6b0   :  { %1564 = vmatpush.msra.mxu1 %v1545_v53 }
 0x6b1   :  { %7101 = vmatmul.msk.f32.vlgmr.msra.gmra.mxu1 %vm1144_vm4, %v9624_v6 }
 0x6b2   :  { %7112 = vmatpush.msk.msrb.mxu1 %vm1017_vm0, %v1718_v54 }
 0x6b9   :  { %7113 = vmatmul.msk.f32.vlgmr.msrb.gmra.mxu1 %vm1004_vm1, %v9531_v11 }
 0x6c1   :  { %7114 = vmatmul.msk.f32.gmra.mxu1 %vm1004_vm1, %v9537_v14 }
 0x6c9   :  { %7115 = vmatmul.msk.f32.gmra.mxu1 %vm1004_vm1, %v9555_v21 }
 0x6d1   :  { %7116 = vmatmul.msk.f32.gmra.mxu1 %vm1004_vm1, %v9545_v16 }
 0x72c   :  { %v1542_v55 = vpop.f32.mrf.mxu0 }
 0x72d   :  { %v1569_v56 = vsel %vm1192_vm5, %v1542_v55, 0.0 }
 0x72e   :  { %v1566_v62 = vpop.f32.mrf.mxu1  ;;  %1570 = vadd.xlane.f32.xlu1 %v1569_v56 }
 0x72f   :  { %v1573_v57 = vsel %vm1192_vm5, %v1566_v62, 0.0 }
 0x736   :  { %v9760_v58 = vpop.f32.mrf.mxu1  ;;  %1574 = vadd.xlane.f32.xlu1 %v1573_v57 }
 0x737   :  { %v1771_v61 = vmul.f32 %v9760_v58, %v9760_v58 }
 0x73e   :  { %v9762_v11 = vpop.f32.mrf.mxu1 }
 0x73f   :  { %v1772_v60 = vmul.f32 %v9762_v11, %v9762_v11 }
 0x746   :  { %v9764_v59 = vpop.f32.mrf.mxu1 }
 0x747   :  { %v1773_v21 = vmul.f32 %v9764_v59, %v9764_v59 }
 0x74e   :  { %v9766_v14 = vpop.f32.mrf.mxu1 }
 0x74f   :  { %1763 = vmatpush.msrb.mxu3 %v9766_v14  ;;  %v1774_v16 = vmul.f32 %v9766_v14, %v9766_v14 }
 0x751   :  { %1764 = vmatpush.msrb.mxu3 %v9764_v59 }
 0x753   :  { %1765 = vmatpush.msrb.mxu3 %v9762_v11 }
 0x755   :  { %1766 = vmatpush.msrb.mxu3 %v9760_v58 }
 0x756   :  { %7117 = vmatmul.msk.f32.vlgmr.msrb.gmra.mxu3 %vm1144_vm4, %v9624_v6 }
 0x757   :  { %1787 = vmatpush.msra.mxu3 %v1774_v16 }
 0x759   :  { %1788 = vmatpush.msra.mxu3 %v1773_v21 }
 0x75b   :  { %1789 = vmatpush.msra.mxu3 %v1772_v60 }
 0x75d   :  { %1790 = vmatpush.msra.mxu3 %v1771_v61 }
 0x75e   :  { %7118 = vmatmul.msk.f32.vlgmr.msra.gmra.mxu3 %vm1144_vm4, %v9624_v6 }
 0x7a1   :  { %v1571_v2 = vpop.xlane.xlu1 %1570 }
 0x7a2   :  { %v1572_v63 = vmul.f32 0.001953125, %v1571_v2 }
 0x7a4   :  { %7102 = vmatpush.msk.msra.mxu2 %vm1227_vm6, %v1572_v63  ;;  %v1577_v0 = vmul.f32 %v1572_v63, %v1572_v63 }
 0x7a5   :  { %7103 = vmatmul.msk.f32.vlgmr.msra.gmra.mxu2 %vm1214_vm7, %v9642_v24 }
 0x7a9   :  { %v1575_v1 = vpop.xlane.xlu1 %1574 }
 0x7aa   :  { %v1576_v3 = vmul.f32 0.001953125, %v1575_v1 }
 0x7ac   :  { %v1578_v7 = vsub.f32 %v1576_v3, %v1577_v0 }
 0x7ad   :  { %7104 = vmatmul.msk.f32.gmra.mxu2 %vm1214_vm7, %v9648_v29 }
 0x7ae   :  { %v1579_v8 = vadd.f32 1e-05, %v1578_v7 }
 0x7b0   :  { %7698 = vrsqrt.f32 %v1579_v8  ;;  %vm1586_vm12 = vweird.f32 %v1579_v8 }
 0x7b5   :  { %7105 = vmatmul.msk.f32.gmra.mxu2 %vm1214_vm7, %v9653_v33 }
 0x7b6   :  { %v7699_v9 = vpop.eup %7698 }
 0x7b7   :  { %v1581_v10 = vmul.f32 %v7699_v9, %v1579_v8  ;;  %vm1587_vm11 = vweird.f32 %v7699_v9 }
 0x7b8   :  { %vm1588_vm13 = vmor %vm1586_vm12, %vm1587_vm11 }
 0x7b9   :  { %v1582_v12 = vmul.f32 %v7699_v9, %v1581_v10  ;;  %v7131_v10 = vld [vmem:[%s11256_s20 + $0x30] sm:$0xff] }
 0x7bb   :  { %v1583_v13 = vmul.f32 0.5, %v1582_v12 }
 0x7bd   :  { %v1584_v17 = vsub.f32 1.5, %v1583_v13  ;;  %7106 = vmatmul.msk.f32.gmra.mxu2 %vm1214_vm7, %v9658_v38  ;;  %v7130_v13 = vld [vmem:[%s11256_s20 + $0x28] sm:$0xff] }
 0x7bf   :  { %v1585_v19 = vmul.f32 %v7699_v9, %v1584_v17 }
 0x7c1   :  { %v1589_v20 = vsel %vm1588_vm13, %v7699_v9, %v1585_v19  ;;  %v7132_v9 = vld [vmem:[%s11256_s20 + $0x38] sm:$0xff]  ;;  %v7129_v19 = vld [vmem:[%s11256_s20 + $0x20] sm:$0xff]  ;;  %vm2874_vm13 = vcmask 130048  }
 0x7c2   :  { %7107 = vmatpush.msk.msrb.mxu0 %vm1227_vm6, %v1589_v20 }
 0x7c3   :  { %7108 = vmatmul.msk.f32.vlgmr.msrb.gmra.mxu0 %vm1214_vm7, %v9642_v24 }
 0x7c4   :  { %2009 = vmatpush.msra.mxu0 %v7132_v9 }
 0x7c6   :  { %2010 = vmatpush.msra.mxu0 %v7131_v10 }
 0x7c8   :  { %2011 = vmatpush.msra.mxu0 %v7130_v13 }
 0x7ca   :  { %2012 = vmatpush.msra.mxu0 %v7129_v19 }
 0x7cb   :  { %7109 = vmatmul.msk.f32.gmra.mxu0 %vm1214_vm7, %v9648_v29 }
 0x7d3   :  { %7110 = vmatmul.msk.f32.gmra.mxu0 %vm1214_vm7, %v9653_v33 }
 0x7d9   :  { %v1768_v23 = vpop.f32.mrf.mxu3 }
 0x7da   :  { %v1795_v25 = vsel %vm1192_vm5, %v1768_v23, 0.0 }
 0x7db   :  { %1796 = vadd.xlane.f32.xlu2 %v1795_v25  ;;  %7111 = vmatmul.msk.f32.gmra.mxu0 %vm1214_vm7, %v9658_v38 }
 0x7e1   :  { %v1792_v26 = vpop.f32.mrf.mxu3 }
 0x7e2   :  { %v1799_v28 = vsel %vm1192_vm5, %v1792_v26, 0.0 }
 0x7e3   :  { %1800 = vadd.xlane.f32.xlu0 %v1799_v28 }
 0x828   :  { %v1610_v4 = vpop.f32.mrf.mxu2 }
 0x829   :  { %1656 = vperm.xlu1 %7654, %v1610_v4  }
 0x830   :  { %v1613_v31 = vpop.f32.mrf.mxu2 }
 0x831   :  { %1661 = vperm.xlu2 %7655, %v1613_v31  }
 0x838   :  { %v1616_v32 = vpop.f32.mrf.mxu2 }
 0x839   :  { %1666 = vperm.xlu2 %7655, %v1616_v32   ;;  %v9829_v32 = vld [vmem:[#allocation5] ss:$0 sm:$0xff] }
 0x840   :  { %v1619_v34 = vpop.f32.mrf.mxu2  ;;  %v1642_v36 = vpop.f32.mrf.mxu0 }
 0x841   :  { %1671 = vperm.xlu0 %7653, %v1619_v34   ;;  %1680 = vperm.xlu1 %7654, %v1642_v36  }
 0x848   :  { %v1645_v40 = vpop.f32.mrf.mxu0 }
 0x849   :  { %1685 = vperm.xlu0 %7653, %v1645_v40   ;;  %v7660_v40 = vld [vmem:[#allocation7] ss:$0 sm:$0xff] }
 0x84e   :  { %v1797_v37 = vpop.xlane.xlu2 %1796 }
 0x84f   :  { %v1798_v41 = vmul.f32 0.001953125, %v1797_v37 }
 0x850   :  { %v1648_v5 = vpop.f32.mrf.mxu0 }
 0x851   :  { %7119 = vmatpush.msk.msrb.mxu2 %vm1227_vm6, %v1798_v41  ;;  %v1803_v43 = vmul.f32 %v1798_v41, %v1798_v41  ;;  %v9833_v41 = vld [vmem:[%s11257_s3] ss:$0 sm:$0xff] }
 0x852   :  { %7120 = vmatmul.msk.f32.vlgmr.msrb.gmra.mxu2 %vm1214_vm7, %v9642_v24 }
 0x856   :  { %v1801_v42 = vpop.xlane.xlu0 %1800 }
 0x857   :  { %v1802_v49 = vmul.f32 0.001953125, %v1801_v42  ;;  %v9837_v42 = vld [vmem:[%s11258_s22] ss:$0 sm:$0xff] }
 0x858   :  { %v1651_v51 = vpop.f32.mrf.mxu0 }
 0x859   :  { %v1804_v52 = vsub.f32 %v1802_v49, %v1803_v43  ;;  %1695 = vperm.xlu1 %7654, %v1651_v51  }
 0x85a   :  { %7121 = vmatmul.msk.f32.gmra.mxu2 %vm1214_vm7, %v9648_v29 }
 0x85b   :  { %v1805_v53 = vadd.f32 1e-05, %v1804_v52 }
 0x85d   :  { %7700 = vrsqrt.f32 %v1805_v53  ;;  %vm1812_vm15 = vweird.f32 %v1805_v53 }
 0x862   :  { %7122 = vmatmul.msk.f32.gmra.mxu2 %vm1214_vm7, %v9653_v33 }
 0x863   :  { %v7701_v54 = vpop.eup %7700 }
 0x864   :  { %v1807_v55 = vmul.f32 %v7701_v54, %v1805_v53  ;;  %vm1813_vm14 = vweird.f32 %v7701_v54 }
 0x865   :  { %vm1814_vm0 = vmor %vm1812_vm15, %vm1813_vm14  ;;  %vm2920_vm14 = vcmask 517120  }
 0x866   :  { %v1808_v56 = vmul.f32 %v7701_v54, %v1807_v55  ;;  %v7142_v55 = vld [vmem:[%s11256_s20 + $0x48] sm:$0xff] }
 0x868   :  { %v1809_v62 = vmul.f32 0.5, %v1808_v56  ;;  %v7141_v56 = vld [vmem:[%s11256_s20 + $0x40] sm:$0xff] }
 0x86a   :  { %v1810_v57 = vsub.f32 1.5, %v1809_v62  ;;  %7123 = vmatmul.msk.f32.gmra.mxu2 %vm1214_vm7, %v9658_v38 }
 0x86c   :  { %v1811_v16 = vmul.f32 %v7701_v54, %v1810_v57  ;;  %v1979_v57 = vld [vmem:[%s11256_s20 + $0x18] sm:$0xff] }
 0x86d   :  { %2050 = vmatpush.msra.mxu1 %v1979_v57 }
 0x86e   :  { %v1815_v21 = vsel %vm1814_vm0, %v7701_v54, %v1811_v16  ;;  %v7143_v54 = vld [vmem:[%s11256_s20 + $0x50] sm:$0xff] }
 0x86f   :  { %7124 = vmatpush.msk.msrb.mxu3 %vm1227_vm6, %v1815_v21  ;;  %v1978_v21 = vld [vmem:[%s11256_s20 + $0x10] sm:$0xff] }
 0x870   :  { %7125 = vmatmul.msk.f32.vlgmr.msrb.gmra.mxu3 %vm1214_vm7, %v9642_v24  ;;  %2051 = vmatpush.msra.mxu1 %v1978_v21 }
 0x878   :  { %7126 = vmatmul.msk.f32.gmra.mxu3 %vm1214_vm7, %v9648_v29 }
 0x880   :  { %7127 = vmatmul.msk.f32.gmra.mxu3 %vm1214_vm7, %v9653_v33 }
 0x888   :  { %7128 = vmatmul.msk.f32.gmra.mxu3 %vm1214_vm7, %v9658_v38 }
 0x88b   :  { %v1662_v8 = vpop.permute.xlu2 %1661 }
 0x88c   :  { %v1675_v16 = vsub.f32 %v9728_v48, %v1662_v8 }
 0x893   :  { %v9824_v12 = vpop.permute.xlu2 %1666 }
 0x89b   :  { %v1657_v23 = vpop.permute.xlu1 %1656 }
 0x89c   :  { %v1674_v4 = vsub.f32 %v9733_v50, %v1657_v23 }
 0x8b3   :  { %v1672_v17 = vpop.permute.xlu0 %1671  ;;  %v1681_v28 = vpop.permute.xlu1 %1680 }
 0x8b4   :  { %v1698_v34 = vmul.f32 %v1681_v28, %v1674_v4  ;;  %v1677_v8 = vsub.f32 %v9726_v47, %v1672_v17 }
 0x8bb   :  { %v1686_v25 = vpop.permute.xlu0 %1685 }
 0x8cb   :  { %v1696_v62 = vpop.permute.xlu1 %1695 }
 0x8d5   :  { %v1836_v60 = vpop.f32.mrf.mxu2 }
 0x8d6   :  { %1882 = vperm.xlu0 %7653, %v1836_v60   ;;  %v1699_v60 = vmul.f32 %v1686_v25, %v1675_v16 }
 0x8dd   :  { %v1839_v61 = vpop.f32.mrf.mxu2 }
 0x8de   :  { %1887 = vperm.xlu2 %7655, %v1839_v61   ;;  %v1977_v61 = vld [vmem:[%s11256_s20 + $0x8] sm:$0xff] }
 0x8df   :  { %2052 = vmatpush.msra.mxu1 %v1977_v61 }
 0x8e5   :  { %v1842_v2 = vpop.f32.mrf.mxu2 }
 0x8ed   :  { %v1845_v63 = vpop.f32.mrf.mxu2 }
 0x8ee   :  { %1897 = vperm.xlu2 %7655, %v1845_v63   ;;  %v1976_v63 = vld [vmem:[%s11256_s20] sm:$0xff] }
 0x8ef   :  { %2053 = vmatpush.msra.mxu1 %v1976_v63 }
 0x8f3   :  { %v1868_v0 = vpop.f32.mrf.mxu3 }
 0x8f6   :  { %1906 = vperm.xlu2 %7655, %v1868_v0  }
 0x8fb   :  { %v1871_v1 = vpop.f32.mrf.mxu3 }
 0x8fc   :  { %1911 = vperm.xlu1 %7654, %v1871_v1   ;;  %v1707_v1 = vmul.f32 %v9829_v32, %v1699_v60 }
 0x8fe   :  { %v1715_v9 = vadd.f32 %v9833_v41, %v1707_v1 }
 0x903   :  { %v1874_v3 = vpop.f32.mrf.mxu3 }
 0x904   :  { %1916 = vperm.xlu2 %7655, %v1874_v3   ;;  %1892 = vperm.xlu1 %7654, %v1842_v2  }
 0x90b   :  { %v1877_v7 = vpop.f32.mrf.mxu3 }
 0x90c   :  { %1921 = vperm.xlu0 %7653, %v1877_v7  }
 0x914   :  { %1690 = vperm.xlu0 %7653, %v1648_v5   ;;  %v1706_v5 = vmul.f32 %v9829_v32, %v1698_v34 }
 0x916   :  { %v1714_v49 = vadd.f32 %v9833_v41, %v1706_v5 }
 0x938   :  { %v1888_v20 = vpop.permute.xlu2 %1887 }
 0x939   :  { %v1901_v2 = vsub.f32 %v9762_v11, %v1888_v20  ;;  %v1701_v20 = vmul.f32 %v1696_v62, %v1677_v8 }
 0x93b   :  { %v1709_v47 = vmul.f32 %v9829_v32, %v1701_v20 }
 0x93d   :  { %v1717_v5 = vadd.f32 %v9833_v41, %v1709_v47 }
 0x948   :  { %v1898_v26 = vpop.permute.xlu2 %1897  ;;  %v1883_v31 = vpop.permute.xlu0 %1882 }
 0x949   :  { %v1900_v36 = vsub.f32 %v9760_v58, %v1883_v31  ;;  %v7144_v58 = vld [vmem:[%s11256_s20 + $0x58] sm:$0xff]  ;;  %v1903_v4 = vsub.f32 %v9766_v14, %v1898_v26  ;;  %s6945_s20 = sshll.u32 %s9329_s25, 4  ;;  %s6946_s20 = int_to_ptr.hbm [resolvable:$true] %s6945_s20 }
 0x94a   :  { %2096 = vmatpush.msra.mxu2 %v7144_v58  ;;  %s8750_s3 = sshra.s32 %s6946_s20, 4  ;;  %s8751_s3 = int_to_ptr.hbm [resolvable:$true] %s8750_s3 }
 0x94b   :  { %s8752_s22 = scalar_lea.hbm %s8751_s3, 2  ;;  %p8755_p10 = scmp.lt.s32.totalorder %s8751_s3, %s9329_s25 }
 0x94c   :  { %2097 = vmatpush.msra.mxu2 %v7143_v54  ;;  %p8753_p9 = scmp.ne.s32.totalorder %s8751_s3, %s8752_s22 }
 0x94e   :  { %2098 = vmatpush.msra.mxu2 %v7142_v55 }
 0x950   :  { %v1907_v37 = vpop.permute.xlu2 %1906  ;;  %2099 = vmatpush.msra.mxu2 %v7141_v56 }
 0x951   :  { %v1924_v43 = vmul.f32 %v1907_v37, %v1900_v36 }
 0x953   :  { %v1932_v50 = vmul.f32 %v7660_v40, %v1924_v43 }
 0x955   :  { %v1940_v51 = vadd.f32 %v9837_v42, %v1932_v50 }
 0x957   :  { %v1944_v52 = vadd.f32 %v1940_v51, %v1714_v49  ;;  %v1676_v49 = vsub.f32 %v9724_v46, %v9824_v12 }
 0x959   :  { %v9842_v53 = vmax.f32 %v1944_v52, 0.0 }
 0x95b   :  { %7133 = vmatmul.msk.f32.vlgmr.msra.gmra.mxu0 %vm1144_vm4, %v9842_v53  ;;  %v1964_v19 = vrot.slane %v9842_v53, 1  ;;  %v1952_v54 = vrot.slane %v9842_v53, 7 }
 0x95e   :  { %v1917_v37 = vpop.permute.xlu2 %1916 }
 0x96e   :  { %v1912_v0 = vpop.permute.xlu1 %1911 }
 0x96f   :  { %v1925_v3 = vmul.f32 %v1912_v0, %v1901_v2 }
 0x971   :  { %v1933_v7 = vmul.f32 %v7660_v40, %v1925_v3 }
 0x973   :  { %v1941_v10 = vadd.f32 %v9837_v42, %v1933_v7 }
 0x975   :  { %v1945_v13 = vadd.f32 %v1941_v10, %v1715_v9 }
 0x976   :  { %v1893_v25 = vpop.permute.xlu1 %1892 }
 0x977   :  { %v9858_v48 = vmax.f32 %v1945_v13, 0.0  ;;  %v1902_v17 = vsub.f32 %v9764_v59, %v1893_v25 }
 0x979   :  { %v1965_v11 = vrot.slane %v9858_v48, 1  ;;  %7134 = vmatmul.msk.f32.gmra.mxu0 %vm1144_vm4, %v9858_v48  ;;  %v1926_v43 = vmul.f32 %v1917_v37, %v1902_v17 }
 0x97b   :  { %v1970_v23 = vsel %vm972_vm2, %v1964_v19, %v1965_v11  ;;  %v1934_v26 = vmul.f32 %v7660_v40, %v1926_v43 }
 0x97c   :  { %v1972_v28 = vmul.f32 %v1970_v23, %v9583_v35 }
 0x97d   :  { %v1942_v56 = vadd.f32 %v9837_v42, %v1934_v26 }
 0x97e   :  { %v1922_v31 = vpop.permute.xlu0 %1921  ;;  %7145 = vmatmul.msk.f32.vlgmr.msra.gmra.mxu2 %vm1144_vm4, %v1972_v28 }
 0x97f   :  { %v1927_v34 = vmul.f32 %v1922_v31, %v1903_v4 }
 0x981   :  { %v1935_v36 = vmul.f32 %v7660_v40, %v1927_v34  ;;  %v1953_v40 = vrot.slane %v9858_v48, 7 }
 0x983   :  { %v1943_v50 = vadd.f32 %v9837_v42, %v1935_v36 }
 0x985   :  { %v1947_v51 = vadd.f32 %v1943_v50, %v1717_v5 }
 0x986   :  { %v1691_v14 = vpop.permute.xlu0 %1690 }
 0x987   :  { %v9876_v52 = vmax.f32 %v1947_v51, 0.0  ;;  %v1700_v58 = vmul.f32 %v1691_v14, %v1676_v49 }
 0x989   :  { %v1955_v59 = vrot.slane %v9876_v52, 7  ;;  %v1708_v55 = vmul.f32 %v9829_v32, %v1700_v58  ;;  %v1958_v32 = vsel %vm939_vm3, %v1952_v54, %v1953_v40  ;;  %v1967_v2 = vrot.slane %v9876_v52, 1 }
 0x98a   :  { %v1961_v21 = vmul.f32 %v1958_v32, %v9574_v30 }
 0x98b   :  { %v1716_v62 = vadd.f32 %v9833_v41, %v1708_v55  ;;  %v1959_v57 = vsel %vm939_vm3, %v1955_v59, %v1952_v54  ;;  %v1971_v9 = vsel %vm972_vm2, %v1967_v2, %v1964_v19 }
 0x98c   :  { %v1960_v46 = vmul.f32 %v1959_v57, %v9570_v27  ;;  %v1975_v13 = vmul.f32 %v1971_v9, %v9557_v22 }
 0x98d   :  { %v1946_v12 = vadd.f32 %v1942_v56, %v1716_v62 }
 0x98e   :  { %7137 = vmatmul.msk.f32.vlgmr.msra.gmra.mxu1 %vm1144_vm4, %v1960_v46 }
 0x98f   :  { %v9888_v16 = vmax.f32 %v1946_v12, 0.0 }
 0x991   :  { %7135 = vmatmul.msk.f32.gmra.mxu0 %vm1144_vm4, %v9888_v16  ;;  %v1966_v41 = vrot.slane %v9888_v16, 1  ;;  %v1954_v61 = vrot.slane %v9888_v16, 7 }
 0x993   :  { %v1969_v42 = vsel %vm972_vm2, %v1965_v11, %v1966_v41  ;;  %v1957_v63 = vsel %vm939_vm3, %v1953_v40, %v1954_v61  ;;  %v1968_v0 = vsel %vm972_vm2, %v1966_v41, %v1967_v2  ;;  %v1956_v7 = vsel %vm939_vm3, %v1954_v61, %v1955_v59 }
 0x994   :  { %v1973_v60 = vmul.f32 %v1969_v42, %v9590_v39  ;;  %v1962_v1 = vmul.f32 %v1957_v63, %v9540_v15  ;;  %v1974_v3 = vmul.f32 %v1968_v0, %v9602_v45  ;;  %v1963_v10 = vmul.f32 %v1956_v7, %v9600_v44 }
 0x996   :  { %7138 = vmatmul.msk.f32.gmra.mxu1 %vm1144_vm4, %v1961_v21  ;;  %7146 = vmatmul.msk.f32.gmra.mxu2 %vm1144_vm4, %v1973_v60 }
 0x999   :  { %7136 = vmatmul.msk.f32.gmra.mxu0 %vm1144_vm4, %v9876_v52 }
 0x99e   :  { %7139 = vmatmul.msk.f32.gmra.mxu1 %vm1144_vm4, %v1962_v1  ;;  %7147 = vmatmul.msk.f32.gmra.mxu2 %vm1144_vm4, %v1974_v3 }
 0x9a6   :  { %7140 = vmatmul.msk.f32.gmra.mxu1 %vm1144_vm4, %v1963_v10  ;;  %7148 = vmatmul.msk.f32.gmra.mxu2 %vm1144_vm4, %v1975_v13 }
 0x9d8   :  { %v2014_v11 = vpop.f32.mrf.mxu0 }
 0x9f6   :  { %v2017_v25 = vpop.f32.mrf.mxu0 }
 0xa01   :  { %v2101_v20 = vpop.f32.mrf.mxu2 }
 0xa0b   :  { %v2055_v8 = vpop.f32.mrf.mxu1 }
 0xa0c   :  { %v2056_v5 = vadd.f32 %v2055_v8, %v2014_v11 }
 0xa0e   :  { %v2020_v31 = vpop.f32.mrf.mxu0  ;;  %v9930_v26 = vadd.f32 %v2101_v20, %v2056_v5  ;;  %v2343_v20 = vld [vmem:[#allocation16 + $0x20] sm:$0xff] }
 0xa0f   :  { %v2338_v5 = vld [vmem:[#allocation16] sm:$0xff] }
 0xa10   :  { %v2137_v59 = vmul.f32 %v9930_v26, %v9930_v26 }
 0xa13   :  { %v2058_v23 = vpop.f32.mrf.mxu1 }
 0xa14   :  { %v2059_v43 = vadd.f32 %v2058_v23, %v2017_v25 }
 0xa16   :  { %v2023_v34 = vpop.f32.mrf.mxu0 }
 0xa19   :  { %v2104_v28 = vpop.f32.mrf.mxu2 }
 0xa1a   :  { %v9925_v51 = vadd.f32 %v2104_v28, %v2059_v43  ;;  %v2341_v28 = vld [vmem:[#allocation16 + $0x18] sm:$0xff] }
 0xa1b   :  { %v2061_v4 = vpop.f32.mrf.mxu1  ;;  %2412 = vmatpush.msrb.mxu2 %v2341_v28 }
 0xa1c   :  { %v2062_v19 = vadd.f32 %v2061_v4, %v2020_v31  ;;  %v2138_v54 = vmul.f32 %v9925_v51, %v9925_v51  ;;  %v7662_v31 = vld [vmem:[#allocation13] ss:$0 sm:$0xff] }
 0xa21   :  { %v2107_v47 = vpop.f32.mrf.mxu2 }
 0xa22   :  { %v9921_v50 = vadd.f32 %v2107_v47, %v2062_v19  ;;  %v2340_v47 = vld [vmem:[#allocation16 + $0x10] sm:$0xff] }
 0xa23   :  { %v2064_v17 = vpop.f32.mrf.mxu1  ;;  %2413 = vmatpush.msrb.mxu2 %v2340_v47 }
 0xa24   :  { %v2065_v36 = vadd.f32 %v2064_v17, %v2023_v34  ;;  %v2139_v58 = vmul.f32 %v9921_v50, %v9921_v50  ;;  %v7663_v34 = vld [vmem:[#allocation10] ss:$0 sm:$0xff] }
 0xa29   :  { %v2110_v37 = vpop.f32.mrf.mxu2 }
 0xa2a   :  { %v9923_v49 = vadd.f32 %v2110_v37, %v2065_v36  ;;  %v2339_v36 = vld [vmem:[#allocation16 + $0x8] sm:$0xff] }
 0xa2b   :  { %2414 = vmatpush.msrb.mxu2 %v2339_v36 }
 0xa2c   :  { %v2140_v14 = vmul.f32 %v9923_v49, %v9923_v49  ;;  %2129 = vmatpush.msra.mxu3 %v9923_v49 }
 0xa2d   :  { %2415 = vmatpush.msrb.mxu2 %v2338_v5 }
 0xa2e   :  { %2130 = vmatpush.msra.mxu3 %v9921_v50  ;;  %2153 = vmatpush.msrb.mxu0 %v2140_v14 }
 0xa30   :  { %2131 = vmatpush.msra.mxu3 %v9925_v51  ;;  %2154 = vmatpush.msrb.mxu0 %v2139_v58  ;;  %v2433_v58 = vld [vmem:[#allocation16 + $0x58] sm:$0xff] }
 0xa32   :  { %2132 = vmatpush.msra.mxu3 %v9930_v26  ;;  %2155 = vmatpush.msrb.mxu0 %v2138_v54  ;;  %v2431_v54 = vld [vmem:[#allocation16 + $0x48] sm:$0xff] }
 0xa33   :  { %7149 = vmatmul.msk.f32.vlgmr.msra.gmra.mxu3 %vm1144_vm4, %v9624_v6 }
 0xa34   :  { %2156 = vmatpush.msrb.mxu0 %v2137_v59  ;;  %v2430_v59 = vld [vmem:[#allocation16 + $0x40] sm:$0xff] }
 0xa35   :  { %7150 = vmatmul.msk.f32.vlgmr.msrb.gmra.mxu0 %vm1144_vm4, %v9624_v6 }
 0xab2   :  { %v2158_v55 = vpop.f32.mrf.mxu0 }
 0xab3   :  { %v2165_v56 = vsel %vm1192_vm5, %v2158_v55, 0.0 }
 0xab4   :  { %2166 = vadd.xlane.f32.xlu0 %v2165_v56 }
 0xab6   :  { %v2134_v62 = vpop.f32.mrf.mxu3 }
 0xab7   :  { %v2161_v57 = vsel %vm1192_vm5, %v2134_v62, 0.0 }
 0xab8   :  { %2162 = vadd.xlane.f32.xlu1 %v2161_v57 }
 0xb27   :  { %v2167_v46 = vpop.xlane.xlu0 %2166 }
 0xb28   :  { %v2168_v32 = vmul.f32 0.001953125, %v2167_v46 }
 0xb2b   :  { %v2163_v12 = vpop.xlane.xlu1 %2162 }
 0xb2c   :  { %v2164_v40 = vmul.f32 0.001953125, %v2163_v12 }
 0xb2e   :  { %v2169_v41 = vmul.f32 %v2164_v40, %v2164_v40  ;;  %7151 = vmatpush.msk.msrb.mxu1 %vm1227_vm6, %v2164_v40 }
 0xb2f   :  { %7152 = vmatmul.msk.f32.vlgmr.msrb.gmra.mxu1 %vm1214_vm7, %v9642_v24 }
 0xb30   :  { %v2170_v42 = vsub.f32 %v2168_v32, %v2169_v41  ;;  %2458 = vmatpush.msra.mxu1 %v2433_v58 }
 0xb32   :  { %v2171_v6 = vadd.f32 1e-05, %v2170_v42 }
 0xb34   :  { %7702 = vrsqrt.f32 %v2171_v6  ;;  %vm2178_vm8 = vweird.f32 %v2171_v6 }
 0xb37   :  { %7153 = vmatmul.msk.f32.gmra.mxu1 %vm1214_vm7, %v9648_v29 }
 0xb3a   :  { %v7703_v21 = vpop.eup %7702 }
 0xb3b   :  { %v2173_v60 = vmul.f32 %v7703_v21, %v2171_v6  ;;  %vm2179_vm1 = vweird.f32 %v7703_v21 }
 0xb3c   :  { %vm2180_vm9 = vmor %vm2178_vm8, %vm2179_vm1  ;;  %vm3087_vm8 = vcmask 523264  }
 0xb3d   :  { %v2174_v61 = vmul.f32 %v7703_v21, %v2173_v60 }
 0xb3f   :  { %v2175_v2 = vmul.f32 0.5, %v2174_v61  ;;  %7154 = vmatmul.msk.f32.gmra.mxu1 %vm1214_vm7, %v9653_v33 }
 0xb41   :  { %v2176_v63 = vsub.f32 1.5, %v2175_v2 }
 0xb43   :  { %v2177_v0 = vmul.f32 %v7703_v21, %v2176_v63 }
 0xb45   :  { %v2181_v1 = vsel %vm2180_vm9, %v7703_v21, %v2177_v0 }
 0xb46   :  { %7156 = vmatpush.msk.msrb.mxu3 %vm1227_vm6, %v2181_v1 }
 0xb47   :  { %7155 = vmatmul.msk.f32.gmra.mxu1 %vm1214_vm7, %v9658_v38  ;;  %7157 = vmatmul.msk.f32.vlgmr.msrb.gmra.mxu3 %vm1214_vm7, %v9642_v24 }
 0xb4f   :  { %7158 = vmatmul.msk.f32.gmra.mxu3 %vm1214_vm7, %v9648_v29  ;;  %v2346_v29 = vld [vmem:[#allocation16 + $0x38] sm:$0xff] }
 0xb50   :  { %2371 = vmatpush.msra.mxu0 %v2346_v29 }
 0xb57   :  { %7159 = vmatmul.msk.f32.gmra.mxu3 %vm1214_vm7, %v9653_v33  ;;  %v2345_v33 = vld [vmem:[#allocation16 + $0x30] sm:$0xff] }
 0xb58   :  { %2372 = vmatpush.msra.mxu0 %v2345_v33 }
 0xb5f   :  { %7160 = vmatmul.msk.f32.gmra.mxu3 %vm1214_vm7, %v9658_v38  ;;  %v2344_v38 = vld [vmem:[#allocation16 + $0x28] sm:$0xff] }
 0xb60   :  { %2373 = vmatpush.msra.mxu0 %v2344_v38 }
 0xb62   :  { %2374 = vmatpush.msra.mxu0 %v2343_v20 }
 0xbac   :  { %v2202_v3 = vpop.f32.mrf.mxu1 }
 0xbad   :  { %2248 = vperm.xlu2 %7655, %v2202_v3  }
 0xbb4   :  { %v2205_v7 = vpop.f32.mrf.mxu1 }
 0xbbc   :  { %v2208_v9 = vpop.f32.mrf.mxu1 }
 0xbbd   :  { %2258 = vperm.xlu0 %7653, %v2208_v9  }
 0xbc4   :  { %v2211_v10 = vpop.f32.mrf.mxu1 }
 0xbc5   :  { %2263 = vperm.xlu2 %7655, %v2211_v10  }
 0xbca   :  { %v2234_v13 = vpop.f32.mrf.mxu3 }
 0xbcd   :  { %2272 = vperm.xlu2 %7655, %v2234_v13  }
 0xbd2   :  { %v2237_v8 = vpop.f32.mrf.mxu3 }
 0xbd3   :  { %2277 = vperm.xlu1 %7654, %v2237_v8  }
 0xbda   :  { %v2240_v24 = vpop.f32.mrf.mxu3 }
 0xbe2   :  { %v2243_v11 = vpop.f32.mrf.mxu3 }
 0xbe3   :  { %2287 = vperm.xlu2 %7655, %v2243_v11  }
 0xbeb   :  { %2253 = vperm.xlu2 %7655, %v2205_v7  }
 0xbf3   :  { %2282 = vperm.xlu2 %7655, %v2240_v24  }
 0xc07   :  { %v2249_v23 = vpop.permute.xlu2 %2248 }
 0xc08   :  { %v2266_v4 = vsub.f32 %v9930_v26, %v2249_v23  ;;  %v2432_v26 = vld [vmem:[#allocation16 + $0x50] sm:$0xff] }
 0xc09   :  { %2459 = vmatpush.msra.mxu1 %v2432_v26 }
 0xc0b   :  { %2460 = vmatpush.msra.mxu1 %v2431_v54 }
 0xc0d   :  { %2461 = vmatpush.msra.mxu1 %v2430_v59 }
 0xc1f   :  { %v2264_v25 = vpop.permute.xlu2 %2263 }
 0xc20   :  { %v2269_v55 = vsub.f32 %v9923_v49, %v2264_v25 }
 0xc27   :  { %v2273_v17 = vpop.permute.xlu2 %2272 }
 0xc28   :  { %v2290_v19 = vmul.f32 %v2273_v17, %v2266_v4 }
 0xc2a   :  { %v2298_v37 = vmul.f32 %v7662_v31, %v2290_v19 }
 0xc2c   :  { %v2306_v43 = vadd.f32 %v7663_v34, %v2298_v37 }
 0xc2e   :  { %v9966_v14 = vmax.f32 %v2306_v43, 0.0 }
 0xc2f   :  { %v2259_v61 = vpop.permute.xlu0 %2258 }
 0xc30   :  { %7161 = vmatmul.msk.f32.vlgmr.msra.gmra.mxu0 %vm1144_vm4, %v9966_v14  ;;  %v2314_v32 = vrot.slane %v9966_v14, 7  ;;  %v2268_v63 = vsub.f32 %v9921_v50, %v2259_v61  ;;  %v2326_v9 = vrot.slane %v9966_v14, 1 }
 0xc3d   :  { %v2288_v56 = vpop.permute.xlu2 %2287 }
 0xc3e   :  { %v2293_v62 = vmul.f32 %v2288_v56, %v2269_v55 }
 0xc40   :  { %v2301_v57 = vmul.f32 %v7662_v31, %v2293_v62 }
 0xc42   :  { %v2309_v46 = vadd.f32 %v7663_v34, %v2301_v57 }
 0xc44   :  { %v2313_v12 = vmax.f32 %v2309_v46, 0.0 }
 0xc45   :  { %v2254_v40 = vpop.permute.xlu2 %2253  ;;  %v2278_v6 = vpop.permute.xlu1 %2277 }
 0xc46   :  { %v2317_v41 = vrot.slane %v2313_v12, 7  ;;  %v2267_v42 = vsub.f32 %v9925_v51, %v2254_v40 }
 0xc48   :  { %v2291_v21 = vmul.f32 %v2278_v6, %v2267_v42  ;;  %v2321_v60 = vsel %vm939_vm3, %v2317_v41, %v2314_v32 }
 0xc49   :  { %v2322_v2 = vmul.f32 %v2321_v60, %v9570_v27 }
 0xc4a   :  { %v2299_v49 = vmul.f32 %v7662_v31, %v2291_v21 }
 0xc4b   :  { %7165 = vmatmul.msk.f32.vlgmr.msrb.gmra.mxu2 %vm1144_vm4, %v2322_v2 }
 0xc4c   :  { %v2307_v0 = vadd.f32 %v7663_v34, %v2299_v49 }
 0xc4d   :  { %v2283_v1 = vpop.permute.xlu2 %2282 }
 0xc4e   :  { %v2292_v3 = vmul.f32 %v2283_v1, %v2268_v63  ;;  %v2311_v7 = vmax.f32 %v2307_v0, 0.0  ;;  %v7736_v0 = vld [vmem:[%s11251_s11] sm:$0x3] }
 0xc50   :  { %v2300_v51 = vmul.f32 %v7662_v31, %v2292_v3  ;;  %v2315_v10 = vrot.slane %v2311_v7, 7  ;;  %v2327_v13 = vrot.slane %v2311_v7, 1  ;;  %7162 = vmatmul.msk.f32.gmra.mxu0 %vm1144_vm4, %v2311_v7  ;;  %v2329_v31 = vrot.slane %v2313_v12, 1 }
 0xc52   :  { %v2320_v8 = vsel %vm939_vm3, %v2314_v32, %v2315_v10  ;;  %v2332_v24 = vsel %vm972_vm2, %v2326_v9, %v2327_v13  ;;  %v2308_v11 = vadd.f32 %v7663_v34, %v2300_v51  ;;  %v2333_v36 = vsel %vm972_vm2, %v2329_v31, %v2326_v9 }
 0xc53   :  { %v2323_v50 = vmul.f32 %v2320_v8, %v9574_v30  ;;  %v2334_v29 = vmul.f32 %v2332_v24, %v9583_v35  ;;  %v2337_v37 = vmul.f32 %v2333_v36, %v9557_v22 }
 0xc54   :  { %v2312_v33 = vmax.f32 %v2308_v11, 0.0  ;;  %v7737_v11 = vld [vmem:[%s11252_s21] sm:$0xff] }
 0xc55   :  { %7166 = vmatmul.msk.f32.gmra.mxu2 %vm1144_vm4, %v2323_v50  ;;  %7169 = vmatmul.msk.f32.vlgmr.msra.gmra.mxu1 %vm1144_vm4, %v2334_v29 }
 0xc56   :  { %v2316_v38 = vrot.slane %v2312_v33, 7  ;;  %v2328_v20 = vrot.slane %v2312_v33, 1 }
 0xc58   :  { %7163 = vmatmul.msk.f32.gmra.mxu0 %vm1144_vm4, %v2312_v33  ;;  %v2319_v23 = vsel %vm939_vm3, %v2315_v10, %v2316_v38  ;;  %v2331_v25 = vsel %vm972_vm2, %v2327_v13, %v2328_v20  ;;  %v2318_v47 = vsel %vm939_vm3, %v2316_v38, %v2317_v41  ;;  %v2330_v17 = vsel %vm972_vm2, %v2328_v20, %v2329_v31  ;;  %v7738_v33 = vld [vmem:[%s11252_s21 + $0x8] sm:$0xff] }
 0xc59   :  { %v2324_v28 = vmul.f32 %v2319_v23, %v9540_v15  ;;  %v2335_v4 = vmul.f32 %v2331_v25, %v9590_v39  ;;  %v2325_v34 = vmul.f32 %v2318_v47, %v9600_v44  ;;  %v2336_v19 = vmul.f32 %v2330_v17, %v9602_v45  ;;  %v7740_v17 = vld [vmem:[%s11252_s21 + $0x18] sm:$0xff] }
 0xc5d   :  { %7167 = vmatmul.msk.f32.gmra.mxu2 %vm1144_vm4, %v2324_v28  ;;  %7170 = vmatmul.msk.f32.gmra.mxu1 %vm1144_vm4, %v2335_v4  ;;  %v7739_v28 = vld [vmem:[%s11252_s21 + $0x10] sm:$0xff] }
 0xc60   :  { %7164 = vmatmul.msk.f32.gmra.mxu0 %vm1144_vm4, %v2313_v12 }
 0xc65   :  { %7168 = vmatmul.msk.f32.gmra.mxu2 %vm1144_vm4, %v2325_v34  ;;  %7171 = vmatmul.msk.f32.gmra.mxu1 %vm1144_vm4, %v2336_v19 }
 0xc6d   :  { %7172 = vmatmul.msk.f32.gmra.mxu1 %vm1144_vm4, %v2337_v37 }
 0xcad   :  { %v2376_v5 = vpop.f32.mrf.mxu0 }
 0xccd   :  { %v2379_v58 = vpop.f32.mrf.mxu0 }
 0xcce   :  { %v2417_v43 = vpop.f32.mrf.mxu2 }
 0xccf   :  { %v2418_v6 = vadd.f32 %v2417_v43, %v2376_v5 }
 0xcd2   :  { %v2463_v14 = vpop.f32.mrf.mxu1 }
 0xcd3   :  { %v10019_v61 = vadd.f32 %v2463_v14, %v2418_v6  ;;  %v7664_v6 = vld [vmem:[#allocation14] ss:$0 sm:$0xff] }
 0xcd5   :  { %v2382_v59 = vpop.f32.mrf.mxu0  ;;  %v2499_v63 = vmul.f32 %v10019_v61, %v10019_v61 }
 0xcd8   :  { %v2420_v26 = vpop.f32.mrf.mxu2 }
 0xcd9   :  { %v2421_v12 = vadd.f32 %v2420_v26, %v2379_v58  ;;  %v2712_v26 = vld [vmem:[#allocation26 + $0x38] sm:$0xff] }
 0xcda   :  { %v2466_v54 = vpop.f32.mrf.mxu1  ;;  %2737 = vmatpush.msra.mxu2 %v2712_v26 }
 0xcdb   :  { %v10014_v21 = vadd.f32 %v2466_v54, %v2421_v12  ;;  %v2711_v54 = vld [vmem:[#allocation26 + $0x30] sm:$0xff]  ;;  %v2796_v12 = vld [vmem:[#allocation26 + $0x40] sm:$0xff] }
 0xcdc   :  { %2738 = vmatpush.msra.mxu2 %v2711_v54 }
 0xcdd   :  { %v2385_v57 = vpop.f32.mrf.mxu0  ;;  %v2500_v49 = vmul.f32 %v10014_v21, %v10014_v21 }
 0xce0   :  { %v2423_v55 = vpop.f32.mrf.mxu2 }
 0xce1   :  { %v2424_v62 = vadd.f32 %v2423_v55, %v2382_v59  ;;  %v2710_v59 = vld [vmem:[#allocation26 + $0x28] sm:$0xff]  ;;  %v2709_v55 = vld [vmem:[#allocation26 + $0x20] sm:$0xff] }
 0xce2   :  { %v2469_v56 = vpop.f32.mrf.mxu1  ;;  %2739 = vmatpush.msra.mxu2 %v2710_v59 }
 0xce3   :  { %v10010_v41 = vadd.f32 %v2469_v56, %v2424_v62  ;;  %v2799_v62 = vld [vmem:[#allocation26 + $0x58] sm:$0xff] }
 0xce4   :  { %2740 = vmatpush.msra.mxu2 %v2709_v55 }
 0xce5   :  { %v2501_v2 = vmul.f32 %v10010_v41, %v10010_v41 }
 0xce8   :  { %v2426_v46 = vpop.f32.mrf.mxu2 }
 0xce9   :  { %v2427_v40 = vadd.f32 %v2426_v46, %v2385_v57  ;;  %v2798_v57 = vld [vmem:[#allocation26 + $0x50] sm:$0xff]  ;;  %v2797_v46 = vld [vmem:[#allocation26 + $0x48] sm:$0xff] }
 0xcea   :  { %v2472_v32 = vpop.f32.mrf.mxu1 }
 0xceb   :  { %v10012_v42 = vadd.f32 %v2472_v32, %v2427_v40 }
 0xced   :  { %v2502_v60 = vmul.f32 %v10012_v42, %v10012_v42  ;;  %2491 = vmatpush.msra.mxu3 %v10012_v42 }
 0xcef   :  { %2492 = vmatpush.msra.mxu3 %v10010_v41  ;;  %2515 = vmatpush.msrb.mxu0 %v2502_v60 }
 0xcf1   :  { %2493 = vmatpush.msra.mxu3 %v10014_v21  ;;  %2516 = vmatpush.msrb.mxu0 %v2501_v2  ;;  %v7665_v2 = vld [vmem:[#allocation11] ss:$0 sm:$0xff] }
 0xcf3   :  { %2494 = vmatpush.msra.mxu3 %v10019_v61  ;;  %2517 = vmatpush.msrb.mxu0 %v2500_v49 }
 0xcf4   :  { %7173 = vmatmul.msk.f32.vlgmr.msra.gmra.mxu3 %vm1144_vm4, %v7736_v0 }
 0xcf5   :  { %2518 = vmatpush.msrb.mxu0 %v2499_v63  ;;  %v2707_v63 = vld [vmem:[#allocation26 + $0x18] sm:$0xff] }
 0xcf6   :  { %7174 = vmatmul.msk.f32.vlgmr.msrb.gmra.mxu0 %vm1144_vm4, %v7736_v0  ;;  %2778 = vmatpush.msrb.mxu1 %v2707_v63 }
 0xd73   :  { %v2520_v1 = vpop.f32.mrf.mxu0 }
 0xd74   :  { %v2527_v3 = vsel %vm1192_vm5, %v2520_v1, 0.0  ;;  %v2706_v1 = vld [vmem:[#allocation26 + $0x10] sm:$0xff] }
 0xd75   :  { %2528 = vadd.xlane.f32.xlu0 %v2527_v3  ;;  %2779 = vmatpush.msrb.mxu1 %v2706_v1 }
 0xd77   :  { %v2496_v7 = vpop.f32.mrf.mxu3 }
 0xd78   :  { %v2523_v9 = vsel %vm1192_vm5, %v2496_v7, 0.0  ;;  %v2705_v7 = vld [vmem:[#allocation26 + $0x8] sm:$0xff] }
 0xd79   :  { %2524 = vadd.xlane.f32.xlu2 %v2523_v9  ;;  %2780 = vmatpush.msrb.mxu1 %v2705_v7 }
 0xde8   :  { %v2529_v51 = vpop.xlane.xlu0 %2528 }
 0xde9   :  { %v2530_v8 = vmul.f32 0.001953125, %v2529_v51 }
 0xdec   :  { %v2525_v10 = vpop.xlane.xlu2 %2524 }
 0xded   :  { %v2526_v13 = vmul.f32 0.001953125, %v2525_v10  ;;  %v2704_v10 = vld [vmem:[#allocation26] sm:$0xff] }
 0xdee   :  { %2781 = vmatpush.msrb.mxu1 %v2704_v10 }
 0xdef   :  { %v2531_v24 = vmul.f32 %v2526_v13, %v2526_v13  ;;  %7175 = vmatpush.msk.msrb.mxu3 %vm1227_vm6, %v2526_v13 }
 0xdf0   :  { %7176 = vmatmul.msk.f32.vlgmr.msrb.gmra.mxu3 %vm1214_vm7, %v7737_v11 }
 0xdf1   :  { %v2532_v50 = vsub.f32 %v2530_v8, %v2531_v24  ;;  %2824 = vmatpush.msra.mxu3 %v2799_v62 }
 0xdf3   :  { %v2533_v29 = vadd.f32 1e-05, %v2532_v50  ;;  %2825 = vmatpush.msra.mxu3 %v2798_v57 }
 0xdf5   :  { %7704 = vrsqrt.f32 %v2533_v29  ;;  %vm2540_vm11 = vweird.f32 %v2533_v29  ;;  %2826 = vmatpush.msra.mxu3 %v2797_v46 }
 0xdf7   :  { %2827 = vmatpush.msra.mxu3 %v2796_v12 }
 0xdf8   :  { %7177 = vmatmul.msk.f32.gmra.mxu3 %vm1214_vm7, %v7738_v33 }
 0xdfb   :  { %v7705_v38 = vpop.eup %7704 }
 0xdfc   :  { %v2535_v20 = vmul.f32 %v7705_v38, %v2533_v29  ;;  %vm2541_vm10 = vweird.f32 %v7705_v38 }
 0xdfd   :  { %vm2542_vm12 = vmor %vm2540_vm11, %vm2541_vm10 }
 0xdfe   :  { %v2536_v23 = vmul.f32 %v7705_v38, %v2535_v20 }
 0xe00   :  { %v2537_v25 = vmul.f32 0.5, %v2536_v23  ;;  %7178 = vmatmul.msk.f32.gmra.mxu3 %vm1214_vm7, %v7739_v28 }
 0xe02   :  { %v2538_v4 = vsub.f32 1.5, %v2537_v25 }
 0xe04   :  { %v2539_v31 = vmul.f32 %v7705_v38, %v2538_v4 }
 0xe06   :  { %v2543_v47 = vsel %vm2542_vm12, %v7705_v38, %v2539_v31 }
 0xe07   :  { %7180 = vmatpush.msk.msra.mxu0 %vm1227_vm6, %v2543_v47 }
 0xe08   :  { %7179 = vmatmul.msk.f32.gmra.mxu3 %vm1214_vm7, %v7740_v17  ;;  %7181 = vmatmul.msk.f32.vlgmr.msra.gmra.mxu0 %vm1214_vm7, %v7737_v11 }
 0xe10   :  { %7182 = vmatmul.msk.f32.gmra.mxu0 %vm1214_vm7, %v7738_v33 }
 0xe18   :  { %7183 = vmatmul.msk.f32.gmra.mxu0 %vm1214_vm7, %v7739_v28 }
 0xe20   :  { %7184 = vmatmul.msk.f32.gmra.mxu0 %vm1214_vm7, %v7740_v17 }
 0xe73   :  { %v2564_v34 = vpop.f32.mrf.mxu3 }
 0xe74   :  { %2610 = vperm.xlu1 %7654, %v2564_v34  }
 0xe7b   :  { %v2567_v19 = vpop.f32.mrf.mxu3 }
 0xe7c   :  { %2615 = vperm.xlu1 %7654, %v2567_v19  }
 0xe83   :  { %v2570_v36 = vpop.f32.mrf.mxu3 }
 0xe84   :  { %2620 = vperm.xlu0 %7653, %v2570_v36  }
 0xe85   :  { %v2596_v37 = vpop.f32.mrf.mxu0 }
 0xe86   :  { %2634 = vperm.xlu1 %7654, %v2596_v37  }
 0xe8b   :  { %v2573_v5 = vpop.f32.mrf.mxu3 }
 0xe8c   :  { %2625 = vperm.xlu2 %7655, %v2573_v5  }
 0xe8d   :  { %v2599_v43 = vpop.f32.mrf.mxu0 }
 0xe8e   :  { %2639 = vperm.xlu1 %7654, %v2599_v43  }
 0xe95   :  { %v2602_v14 = vpop.f32.mrf.mxu0 }
 0xe9d   :  { %v2605_v58 = vpop.f32.mrf.mxu0 }
 0xe9e   :  { %2649 = vperm.xlu1 %7654, %v2605_v58  }
 0xea6   :  { %2644 = vperm.xlu1 %7654, %v2602_v14  }
 0xee6   :  { %v2611_v56 = vpop.permute.xlu1 %2610 }
 0xee7   :  { %v2628_v32 = vsub.f32 %v10019_v61, %v2611_v56 }
 0xeee   :  { %v2616_v40 = vpop.permute.xlu1 %2615 }
 0xeef   :  { %v2629_v9 = vsub.f32 %v10014_v21, %v2616_v40 }
 0xef6   :  { %v2621_v4 = vpop.permute.xlu0 %2620 }
 0xef7   :  { %v2630_v47 = vsub.f32 %v10010_v41, %v2621_v4  ;;  %v10143_v4 = vld [vmem:[%s11259_s23 + $0x8] sm:$0xff] }
 0xef8   :  { %v2635_v60 = vpop.permute.xlu1 %2634 }
 0xef9   :  { %v2652_v49 = vmul.f32 %v2635_v60, %v2628_v32 }
 0xefb   :  { %v2660_v0 = vmul.f32 %v7664_v6, %v2652_v49 }
 0xefd   :  { %v2668_v3 = vadd.f32 %v7665_v2, %v2660_v0 }
 0xeff   :  { %v2672_v51 = vadd.f32 %v2668_v3, %v9842_v53  ;;  %v2626_v53 = vpop.permute.xlu2 %2625 }
 0xf00   :  { %v2640_v13 = vpop.permute.xlu1 %2639  ;;  %v2631_v23 = vsub.f32 %v10012_v42, %v2626_v53 }
 0xf01   :  { %v10052_v61 = vmax.f32 %v2672_v51, 0.0  ;;  %v2653_v8 = vmul.f32 %v2640_v13, %v2629_v9 }
 0xf03   :  { %v2661_v24 = vmul.f32 %v7664_v6, %v2653_v8  ;;  %7185 = vmatmul.msk.f32.vlgmr.msra.gmra.mxu2 %vm1144_vm4, %v10052_v61  ;;  %v2692_v33 = vrot.slane %v10052_v61, 1  ;;  %v2680_v37 = vrot.slane %v10052_v61, 7 }
 0xf05   :  { %v2669_v11 = vadd.f32 %v7665_v2, %v2661_v24 }
 0xf07   :  { %v2673_v50 = vadd.f32 %v2669_v11, %v9858_v48 }
 0xf09   :  { %v10057_v29 = vmax.f32 %v2673_v50, 0.0 }
 0xf0b   :  { %v2693_v21 = vrot.slane %v10057_v29, 1  ;;  %7186 = vmatmul.msk.f32.gmra.mxu2 %vm1144_vm4, %v10057_v29 }
 0xf0d   :  { %v2698_v38 = vsel %vm972_vm2, %v2692_v33, %v2693_v21 }
 0xf0e   :  { %v10066_v20 = vmul.f32 %v2698_v38, %v9583_v35 }
 0xf10   :  { %7193 = vmatmul.msk.f32.vlgmr.msra.gmra.mxu3 %vm1144_vm4, %v10066_v20  ;;  %v2650_v48 = vpop.permute.xlu1 %2649 }
 0xf11   :  { %v2655_v25 = vmul.f32 %v2650_v48, %v2631_v23 }
 0xf13   :  { %v2663_v28 = vmul.f32 %v7664_v6, %v2655_v25 }
 0xf15   :  { %v2671_v31 = vadd.f32 %v7665_v2, %v2663_v28  ;;  %v10138_v28 = vld [vmem:[%s11259_s23] sm:$0xff]  ;;  %s8754_s23 = scalar_lea.hbm %s9329_s25, 2 }
 0xf16   :  { %p8756_p11 = scmp.lt.s32.totalorder %s8754_s23, %s8752_s22 }
 0xf17   :  { %v2675_v17 = vadd.f32 %v2671_v31, %v9876_v52  ;;  %v2681_v52 = vrot.slane %v10057_v29, 7 }
 0xf18   :  { %v2645_v34 = vpop.permute.xlu1 %2644  ;;  %p8757_p12 = por %p8756_p11, %p8755_p10 }
 0xf19   :  { %v10073_v19 = vmax.f32 %v2675_v17, 0.0  ;;  %v2654_v36 = vmul.f32 %v2645_v34, %v2630_v47  ;;  %v2686_v54 = vsel %vm939_vm3, %v2680_v37, %v2681_v52  ;;  %v10155_v34 = vld [vmem:[%s11260_s5] sm:$0x3] }
 0xf1a   :  { %p8758_p13 = pnand %p8757_p12, %p8753_p9 }
 0xf1b   :  { %v2683_v42 = vrot.slane %v10073_v19, 7  ;;  %v2662_v5 = vmul.f32 %v7664_v6, %v2654_v36  ;;  %v2695_v57 = vrot.slane %v10073_v19, 1 }
 0xf1d   :  { %v2670_v43 = vadd.f32 %v7665_v2, %v2662_v5  ;;  %v2687_v14 = vsel %vm939_vm3, %v2683_v42, %v2680_v37  ;;  %v2699_v60 = vsel %vm972_vm2, %v2695_v57, %v2692_v33 }
 0xf1e   :  { %v10080_v58 = vmul.f32 %v2687_v14, %v9570_v27  ;;  %v10131_v49 = vmul.f32 %v2699_v60, %v9557_v22  ;;  %v901_v14 = vld [vmem:[%s11261_s30 + $0x8] sm:$0xff] }
 0xf1f   :  { %v2674_v41 = vadd.f32 %v2670_v43, %v9888_v16  ;;  %v10096_v16 = vmul.f32 %v2686_v54, %v9574_v30  ;;  %v7224_v60 = vld [vmem:[%s11264_s19 + $0xa8] sm:$0xff] }
 0xf20   :  { %7189 = vmatmul.msk.f32.vlgmr.msrb.gmra.mxu1 %vm1144_vm4, %v10080_v58 }
 0xf21   :  { %v10086_v26 = vmax.f32 %v2674_v41, 0.0  ;;  %v907_v41 = vld [vmem:[%s11262_s26] sm:$0xff] }
 0xf23   :  { %7187 = vmatmul.msk.f32.gmra.mxu2 %vm1144_vm4, %v10086_v26  ;;  %v2694_v59 = vrot.slane %v10086_v26, 1  ;;  %v2682_v62 = vrot.slane %v10086_v26, 7 }
 0xf25   :  { %v2697_v55 = vsel %vm972_vm2, %v2693_v21, %v2694_v59  ;;  %v2685_v46 = vsel %vm939_vm3, %v2681_v52, %v2682_v62  ;;  %v2696_v12 = vsel %vm972_vm2, %v2694_v59, %v2695_v57  ;;  %v2684_v6 = vsel %vm939_vm3, %v2682_v62, %v2683_v42  ;;  %v10169_v62 = vld [vmem:[%s11263_s18] sm:$0xff]  ;;  %v7226_v57 = vld [vmem:[%s11264_s19 + $0xb8] sm:$0xff] }
 0xf26   :  { %v10099_v56 = vmul.f32 %v2697_v55, %v9590_v39  ;;  %v10114_v40 = vmul.f32 %v2685_v46, %v9540_v15  ;;  %v10117_v32 = vmul.f32 %v2696_v12, %v9602_v45  ;;  %v10128_v2 = vmul.f32 %v2684_v6, %v9600_v44  ;;  %v7225_v12 = vld [vmem:[%s11264_s19 + $0xb0] sm:$0xff] }
 0xf28   :  { %7190 = vmatmul.msk.f32.gmra.mxu1 %vm1144_vm4, %v10096_v16  ;;  %7194 = vmatmul.msk.f32.gmra.mxu3 %vm1144_vm4, %v10099_v56 }
 0xf2b   :  { %7188 = vmatmul.msk.f32.gmra.mxu2 %vm1144_vm4, %v10073_v19 }
 0xf30   :  { %7191 = vmatmul.msk.f32.gmra.mxu1 %vm1144_vm4, %v10114_v40  ;;  %7195 = vmatmul.msk.f32.gmra.mxu3 %vm1144_vm4, %v10117_v32 }
 0xf38   :  { %7192 = vmatmul.msk.f32.gmra.mxu1 %vm1144_vm4, %v10128_v2  ;;  %7196 = vmatmul.msk.f32.gmra.mxu3 %vm1144_vm4, %v10131_v49 }
 0xf86   :  { %v2742_v63 = vpop.f32.mrf.mxu2 }
 0xf8e   :  { %v2745_v7 = vpop.f32.mrf.mxu2 }
 0xf93   :  { %v2829_v1 = vpop.f32.mrf.mxu3 }
 0xf9d   :  { %v2783_v0 = vpop.f32.mrf.mxu1 }
 0xf9e   :  { %v2784_v53 = vadd.f32 %v2783_v0, %v2742_v63  ;;  %v7223_v0 = vld [vmem:[%s11264_s19 + $0xa0] sm:$0xff] }
 0xfa0   :  { %v2841_v25 = vadd.f32 %v2829_v1, %v2784_v53  ;;  %v10179_v1 = vld [vmem:[%s11263_s18 + $0x8] sm:$0xff] }
 0xfa5   :  { %v2786_v3 = vpop.f32.mrf.mxu1 }
 0xfa6   :  { %v2748_v10 = vpop.f32.mrf.mxu2  ;;  %v2787_v38 = vadd.f32 %v2786_v3, %v2745_v7  ;;  %v7222_v3 = vld [vmem:[%s11264_s19 + $0x98] sm:$0xff]  ;;  %v7221_v7 = vld [vmem:[%s11264_s19 + $0x90] sm:$0xff] }
 0xfab   :  { %v2832_v9 = vpop.f32.mrf.mxu3 }
 0xfac   :  { %v2842_v48 = vadd.f32 %v2832_v9, %v2787_v38  ;;  %v7220_v9 = vld [vmem:[%s11264_s19 + $0x88] sm:$0xff] }
 0xfad   :  { %v2789_v51 = vpop.f32.mrf.mxu1 }
 0xfae   :  { %v2751_v24 = vpop.f32.mrf.mxu2  ;;  %v2790_v33 = vadd.f32 %v2789_v51, %v2748_v10 }
 0xfb3   :  { %v2835_v13 = vpop.f32.mrf.mxu3 }
 0xfb4   :  { %v2843_v23 = vadd.f32 %v2835_v13, %v2790_v33  ;;  %v7219_v13 = vld [vmem:[%s11264_s19 + $0x80] sm:$0xff] }
 0xfb5   :  { %v2792_v8 = vpop.f32.mrf.mxu1 }
 0xfb6   :  { %v2793_v11 = vadd.f32 %v2792_v8, %v2751_v24 }
 0xfbb   :  { %v2838_v50 = vpop.f32.mrf.mxu3 }
 0xfbc   :  { %v2844_v21 = vadd.f32 %v2838_v50, %v2793_v11 }
 0xfbe   :  { %2863 = vmatpush.msrb.mxu0 %v2844_v21 }
 0xfc0   :  { %2864 = vmatpush.msrb.mxu0 %v2843_v23 }
 0xfc2   :  { %2865 = vmatpush.msrb.mxu0 %v2842_v48  ;;  %v900_v48 = vld [vmem:[%s11261_s30] sm:$0xff] }
 0xfc4   :  { %2866 = vmatpush.msrb.mxu0 %v2841_v25  ;;  %v908_v25 = vld [vmem:[%s11262_s26 + $0x8] sm:$0xff] }
 0xfc5   :  { %7197 = vmatmul.msk.f32.vlgmr.msrb.gmra.mxu0 %vm1144_vm4, %v10138_v28 }
 0xfcd   :  { %7198 = vmatmul.msk.f32.gmra.mxu0 %vm1144_vm4, %v10143_v4 }
0x1042   :  { %v10147_v31 = vpop.f32.mrf.mxu0 }
0x1043   :  { %v2898_v36 = vmul.f32 %v10147_v31, %v10147_v31 }
0x104a   :  { %v10149_v47 = vpop.f32.mrf.mxu0 }
0x104b   :  { %v2899_v17 = vmul.f32 %v10149_v47, %v10149_v47  ;;  %2892 = vmatpush.msrb.mxu2 %v10149_v47 }
0x104d   :  { %2893 = vmatpush.msrb.mxu2 %v10147_v31  ;;  %2914 = vmatpush.msra.mxu0 %v2899_v17  ;;  %v7214_v17 = vld [vmem:[%s11264_s19 + $0x78] sm:$0xff] }
0x104e   :  { %7199 = vmatmul.msk.f32.vlgmr.msrb.gmra.mxu2 %vm2874_vm13, %v10155_v34  ;;  %3102 = vmatpush.msrb.mxu3 %v7214_v17 }
0x104f   :  { %2915 = vmatpush.msra.mxu0 %v2898_v36  ;;  %v7213_v36 = vld [vmem:[%s11264_s19 + $0x70] sm:$0xff] }
0x1050   :  { %7200 = vmatmul.msk.f32.vlgmr.msra.gmra.mxu0 %vm2874_vm13, %v10155_v34  ;;  %3103 = vmatpush.msrb.mxu3 %v7213_v36 }
0x10cd   :  { %v2917_v37 = vpop.f32.mrf.mxu0 }
0x10ce   :  { %v2925_v42 = vsel %vm2920_vm14, %v2917_v37, 0.0  ;;  %v7212_v37 = vld [vmem:[%s11264_s19 + $0x68] sm:$0xff] }
0x10cf   :  { %2926 = vadd.xlane.f32.xlu2 %v2925_v42  ;;  %v7211_v42 = vld [vmem:[%s11264_s19 + $0x60] sm:$0xff]  ;;  %3104 = vmatpush.msrb.mxu3 %v7212_v37 }
0x10d1   :  { %v2895_v5 = vpop.f32.mrf.mxu2  ;;  %3105 = vmatpush.msrb.mxu3 %v7211_v42 }
0x10d2   :  { %v2921_v43 = vsel %vm2920_vm14, %v2895_v5, 0.0  ;;  %v7210_v5 = vld [vmem:[%s11264_s19 + $0x58] sm:$0xff] }
0x10d3   :  { %2922 = vadd.xlane.f32.xlu1 %v2921_v43  ;;  %3106 = vmatpush.msrb.mxu3 %v7210_v5  ;;  %v7209_v43 = vld [vmem:[%s11264_s19 + $0x50] sm:$0xff] }
0x10d5   :  { %3107 = vmatpush.msrb.mxu3 %v7209_v43 }
0x10e7   :  { %3049 = vperm.xlu2 %7655, %v901_v14   ;;  %v7208_v14 = vld [vmem:[%s11264_s19 + $0x48] sm:$0xff] }
0x10e8   :  { %3108 = vmatpush.msrb.mxu3 %v7208_v14 }
0x10ec   :  { %3060 = vperm.xlu1 %7654, %v907_v41   ;;  %v3077_v41 = vld [vmem:[%s11264_s19 + $0x38] sm:$0xff] }
0x10ed   :  { %3131 = vmatpush.msrb.mxu0 %v3077_v41 }
0x1142   :  { %v2927_v52 = vpop.xlane.xlu2 %2926 }
0x1143   :  { %v2928_v59 = vmul.f32 0.001953125, %v2927_v52  ;;  %v7207_v52 = vld [vmem:[%s11264_s19 + $0x40] sm:$0xff] }
0x1144   :  { %3109 = vmatpush.msrb.mxu3 %v7207_v52 }
0x1146   :  { %v2923_v54 = vpop.xlane.xlu1 %2922 }
0x1147   :  { %v2924_v55 = vmul.f32 0.001953125, %v2923_v54  ;;  %v3076_v54 = vld [vmem:[%s11264_s19 + $0x30] sm:$0xff] }
0x1148   :  { %3132 = vmatpush.msrb.mxu0 %v3076_v54 }
0x1149   :  { %v2929_v46 = vmul.f32 %v2924_v55, %v2924_v55  ;;  %7201 = vmatpush.msk.msra.mxu1 %vm1227_vm6, %v2924_v55  ;;  %v3074_v55 = vld [vmem:[%s11264_s19 + $0x20] sm:$0xff] }
0x114a   :  { %7202 = vmatmul.msk.f32.vlgmr.msra.gmra.mxu1 %vm1214_vm7, %v10169_v62  ;;  %v10234_v14 = vpop.permute.xlu2 %3049 }
0x114b   :  { %v2930_v6 = vsub.f32 %v2928_v59, %v2929_v46  ;;  %3169 = vmatpush.msrb.mxu1 %v7226_v57  ;;  %v3075_v59 = vld [vmem:[%s11264_s19 + $0x28] sm:$0xff]  ;;  %v3073_v46 = vld [vmem:[%s11264_s19 + $0x18] sm:$0xff] }
0x114c   :  { %3133 = vmatpush.msrb.mxu0 %v3075_v59 }
0x114d   :  { %v2931_v63 = vadd.f32 1e-05, %v2930_v6  ;;  %3170 = vmatpush.msrb.mxu1 %v7225_v12  ;;  %v3072_v12 = vld [vmem:[%s11264_s19 + $0x10] sm:$0xff]  ;;  %v3071_v6 = vld [vmem:[%s11264_s19 + $0x8] sm:$0xff] }
0x114e   :  { %3134 = vmatpush.msrb.mxu0 %v3074_v55 }
0x114f   :  { %7706 = vrsqrt.f32 %v2931_v63  ;;  %3171 = vmatpush.msrb.mxu1 %v7224_v60  ;;  %vm2938_vm0 = vweird.f32 %v2931_v63  ;;  %v3070_v60 = vld [vmem:[%s11264_s19] sm:$0xff] }
0x1150   :  { %3135 = vmatpush.msrb.mxu0 %v3073_v46 }
0x1151   :  { %3172 = vmatpush.msrb.mxu1 %v7223_v0 }
0x1152   :  { %7203 = vmatmul.msk.f32.gmra.mxu1 %vm1214_vm7, %v10179_v1  ;;  %3136 = vmatpush.msrb.mxu0 %v3072_v12 }
0x1153   :  { %3173 = vmatpush.msrb.mxu1 %v7222_v3  ;;  %v7666_v3 = vld [vmem:[#allocation22] ss:$0 sm:$0xff] }
0x1154   :  { %3137 = vmatpush.msrb.mxu0 %v3071_v6 }
0x1155   :  { %v7707_v51 = vpop.eup %7706  ;;  %3174 = vmatpush.msrb.mxu1 %v7221_v7 }
0x1156   :  { %v2933_v10 = vmul.f32 %v7707_v51, %v2931_v63  ;;  %vm2939_vm15 = vweird.f32 %v7707_v51  ;;  %3138 = vmatpush.msrb.mxu0 %v3070_v60 }
0x1157   :  { %3175 = vmatpush.msrb.mxu1 %v7220_v9  ;;  %vm2940_vm1 = vmor %vm2938_vm0, %vm2939_vm15  ;;  %v7667_v9 = vld [vmem:[#allocation17] ss:$0 sm:$0xff] }
0x1158   :  { %v2934_v8 = vmul.f32 %v7707_v51, %v2933_v10 }
0x1159   :  { %3176 = vmatpush.msrb.mxu1 %v7219_v13 }
0x115a   :  { %v2935_v24 = vmul.f32 0.5, %v2934_v8 }
0x115b   :  { %3349 = vmatpush.msra.mxu1 %v10073_v19 }
0x115c   :  { %v2936_v11 = vsub.f32 1.5, %v2935_v24 }
0x115d   :  { %3350 = vmatpush.msra.mxu1 %v10086_v26 }
0x115e   :  { %v2937_v50 = vmul.f32 %v7707_v51, %v2936_v11  ;;  %v10220_v17 = vpop.permute.xlu1 %3060 }
0x115f   :  { %3351 = vmatpush.msra.mxu1 %v10057_v29 }
0x1160   :  { %v2941_v33 = vsel %vm2940_vm1, %v7707_v51, %v2937_v50 }
0x1161   :  { %3352 = vmatpush.msra.mxu1 %v10052_v61  ;;  %7204 = vmatpush.msk.msra.mxu2 %vm1227_vm6, %v2941_v33 }
0x1162   :  { %7205 = vmatmul.msk.f32.vlgmr.msra.gmra.mxu2 %vm1214_vm7, %v10169_v62 }
0x116a   :  { %7206 = vmatmul.msk.f32.gmra.mxu2 %vm1214_vm7, %v10179_v1 }
0x11c7   :  { %v2968_v21 = vpop.f32.mrf.mxu1 }
0x11c8   :  { %3002 = vperm.xlu0 %7653, %v2968_v21  }
0x11cf   :  { %v2971_v53 = vpop.f32.mrf.mxu1 }
0x11d0   :  { %3007 = vperm.xlu0 %7653, %v2971_v53  }
0x11e5   :  { %v2994_v38 = vpop.f32.mrf.mxu2 }
0x11e6   :  { %3014 = vperm.xlu0 %7653, %v2994_v38  }
0x11ed   :  { %v2997_v23 = vpop.f32.mrf.mxu2 }
0x11ee   :  { %3019 = vperm.xlu0 %7653, %v2997_v23  }
0x11f6   :  { %3044 = vperm.xlu0 %7653, %v900_v48  }
0x11fe   :  { %3065 = vperm.xlu0 %7653, %v908_v25  }
0x123a   :  { %v3003_v57 = vpop.permute.xlu0 %3002 }
0x123b   :  { %v3010_v0 = vsub.f32 %v10147_v31, %v3003_v57 }
0x1242   :  { %v3008_v63 = vpop.permute.xlu0 %3007 }
0x1243   :  { %v3011_v8 = vsub.f32 %v10149_v47, %v3008_v63 }
0x1258   :  { %v3015_v7 = vpop.permute.xlu0 %3014 }
0x1259   :  { %v3022_v51 = vmul.f32 %v3015_v7, %v3010_v0 }
0x125b   :  { %v3028_v10 = vmul.f32 %v7666_v3, %v3022_v51  ;;  %v3361_v51 = vld [vmem:[#allocation28 + $0x8] sm:$0xff] }
0x125d   :  { %v3034_v13 = vadd.f32 %v7667_v9, %v3028_v10  ;;  %v3360_v10 = vld [vmem:[#allocation28] sm:$0xff] }
0x125f   :  { %v3036_v24 = vmax.f32 %v3034_v13, 0.0 }
0x1260   :  { %v3020_v11 = vpop.permute.xlu0 %3019 }
0x1261   :  { %v3023_v50 = vmul.f32 %v3020_v11, %v3011_v8  ;;  %7215 = vmatmul.msk.f32.vlgmr.msrb.gmra.mxu3 %vm3087_vm8, %v3036_v24  ;;  %v3038_v31 = vrot.slane %v3036_v24, 7  ;;  %v3054_v23 = vrot.slane %v3036_v24, 1 }
0x1263   :  { %v3029_v33 = vmul.f32 %v7666_v3, %v3023_v50 }
0x1265   :  { %v3035_v21 = vadd.f32 %v7667_v9, %v3029_v33  ;;  %v3362_v9 = vld [vmem:[#allocation28 + $0x10] sm:$0xff] }
0x1267   :  { %v3037_v53 = vmax.f32 %v3035_v21, 0.0 }
0x1268   :  { %v10217_v38 = vpop.permute.xlu0 %3044 }
0x1269   :  { %v3039_v48 = vrot.slane %v3037_v53, 7  ;;  %v3055_v25 = vrot.slane %v3037_v53, 1  ;;  %7216 = vmatmul.msk.f32.gmra.mxu3 %vm3087_vm8, %v3037_v53 }
0x126b   :  { %v3056_v47 = vsel %vm972_vm2, %v3054_v23, %v3055_v25  ;;  %v3041_v36 = vsel %vm939_vm3, %v3039_v48, %v3038_v31  ;;  %v3040_v43 = vsel %vm939_vm3, %v3038_v31, %v3039_v48  ;;  %v3057_v41 = vsel %vm972_vm2, %v3055_v25, %v3054_v23 }
0x126c   :  { %v3068_v37 = vmul.f32 %v10220_v17, %v3056_v47  ;;  %v3052_v42 = vmul.f32 %v10217_v38, %v3041_v36  ;;  %v3053_v54 = vmul.f32 %v10234_v14, %v3040_v43 }
0x126e   :  { %7217 = vmatmul.msk.f32.vlgmr.msrb.gmra.mxu0 %vm3087_vm8, %v3052_v42  ;;  %7227 = vmatmul.msk.f32.vlgmr.msrb.gmra.mxu1 %vm3087_vm8, %v3068_v37 }
0x1270   :  { %v10230_v5 = vpop.permute.xlu0 %3065 }
0x1271   :  { %v3069_v52 = vmul.f32 %v10230_v5, %v3057_v41 }
0x1276   :  { %7218 = vmatmul.msk.f32.gmra.mxu0 %vm3087_vm8, %v3053_v54  ;;  %7228 = vmatmul.msk.f32.gmra.mxu1 %vm3087_vm8, %v3069_v52 }
0x127e   :  { %7237 = vmatmul.msk.f32.vlgmr.msra.gmra.mxu1 %vm1144_vm4, %v10138_v28 }
0x1286   :  { %7238 = vmatmul.msk.f32.gmra.mxu1 %vm1144_vm4, %v10143_v4  ;;  %v3363_v4 = vld [vmem:[#allocation28 + $0x18] sm:$0xff] }
0x12e4   :  { %v3111_v59 = vpop.f32.mrf.mxu3 }
0x12eb   :  { %v3140_v55 = vpop.f32.mrf.mxu0  ;;  %v3178_v57 = vpop.f32.mrf.mxu1 }
0x12ec   :  { %v3114_v46 = vpop.f32.mrf.mxu3  ;;  %v3141_v6 = vadd.f32 %v3140_v55, %v3111_v59 }
0x12ee   :  { %v10248_v3 = vadd.f32 %v3178_v57, %v3141_v6 }
0x12f0   :  { %v3206_v28 = vmul.f32 %v10248_v3, %v10248_v3 }
0x12f3   :  { %v3143_v12 = vpop.f32.mrf.mxu0  ;;  %v3181_v63 = vpop.f32.mrf.mxu1 }
0x12f4   :  { %v3144_v60 = vadd.f32 %v3143_v12, %v3114_v46 }
0x12f6   :  { %v10246_v0 = vadd.f32 %v3181_v63, %v3144_v60 }
0x12f8   :  { %v3207_v7 = vmul.f32 %v10246_v0, %v10246_v0  ;;  %3200 = vmatpush.msrb.mxu2 %v10246_v0 }
0x12fa   :  { %3201 = vmatpush.msrb.mxu2 %v10248_v3 }
0x12fb   :  { %7229 = vmatmul.msk.f32.vlgmr.msrb.gmra.mxu2 %vm2874_vm13, %v10155_v34  ;;  %v3354_v13 = vpop.f32.mrf.mxu1 }
0x12fc   :  { %3222 = vmatpush.msra.mxu2 %v3207_v7 }
0x12fe   :  { %3223 = vmatpush.msra.mxu2 %v3206_v28 }
0x1300   :  { %3382 = vmatpush.msrb.mxu2 %v3363_v4 }
0x1302   :  { %3383 = vmatpush.msrb.mxu2 %v3362_v9 }
0x1303   :  { %7230 = vmatmul.msk.f32.vlgmr.msra.gmra.mxu2 %vm2874_vm13, %v10155_v34  ;;  %v3357_v8 = vpop.f32.mrf.mxu1 }
0x1304   :  { %3384 = vmatpush.msrb.mxu2 %v3361_v51 }
0x1306   :  { %3385 = vmatpush.msrb.mxu2 %v3360_v10 }
0x130b   :  { %7239 = vmatmul.msk.f32.vlgmr.msrb.gmra.mxu2 %vm1144_vm4, %v3354_v13 }
0x1313   :  { %7240 = vmatmul.msk.f32.gmra.mxu2 %vm1144_vm4, %v3357_v8 }
0x137e   :  { %v3203_v24 = vpop.f32.mrf.mxu2 }
0x137f   :  { %v3228_v11 = vsel %vm2920_vm14, %v3203_v24, 0.0 }
0x1380   :  { %3229 = vadd.xlane.f32.xlu0 %v3228_v11 }
0x1386   :  { %v3225_v50 = vpop.f32.mrf.mxu2 }
0x1387   :  { %v3232_v33 = vsel %vm2920_vm14, %v3225_v50, 0.0 }
0x1388   :  { %3233 = vadd.xlane.f32.xlu1 %v3232_v33 }
0x138e   :  { %v10264_v21 = vpop.f32.mrf.mxu2 }
0x138f   :  { %v3413_v46 = vmul.f32 %v10264_v21, %v10264_v21 }
0x1396   :  { %v10266_v53 = vpop.f32.mrf.mxu2 }
0x1397   :  { %3407 = vmatpush.msrb.mxu1 %v10266_v53  ;;  %v3414_v55 = vmul.f32 %v10266_v53, %v10266_v53 }
0x1399   :  { %3408 = vmatpush.msrb.mxu1 %v10264_v21 }
0x139a   :  { %7241 = vmatmul.msk.f32.vlgmr.msrb.gmra.mxu1 %vm2874_vm13, %v10155_v34 }
0x13f3   :  { %v3230_v31 = vpop.xlane.xlu0 %3229 }
0x13f4   :  { %v3231_v23 = vmul.f32 0.001953125, %v3230_v31 }
0x13f6   :  { %7231 = vmatpush.msk.msra.mxu3 %vm1227_vm6, %v3231_v23  ;;  %v3236_v25 = vmul.f32 %v3231_v23, %v3231_v23 }
0x13f7   :  { %7232 = vmatmul.msk.f32.vlgmr.msra.gmra.mxu3 %vm1214_vm7, %v10169_v62 }
0x13fb   :  { %v3234_v48 = vpop.xlane.xlu1 %3233 }
0x13fc   :  { %v3235_v47 = vmul.f32 0.001953125, %v3234_v48 }
0x13fe   :  { %v3237_v36 = vsub.f32 %v3235_v47, %v3236_v25 }
0x13ff   :  { %7233 = vmatmul.msk.f32.gmra.mxu3 %vm1214_vm7, %v10179_v1 }
0x1400   :  { %v3238_v37 = vadd.f32 1e-05, %v3237_v36 }
0x1402   :  { %7708 = vrsqrt.f32 %v3238_v37  ;;  %vm3245_vm10 = vweird.f32 %v3238_v37 }
0x1408   :  { %v7709_v42 = vpop.eup %7708 }
0x1409   :  { %v3240_v43 = vmul.f32 %v7709_v42, %v3238_v37  ;;  %vm3246_vm9 = vweird.f32 %v7709_v42 }
0x140a   :  { %vm3247_vm11 = vmor %vm3245_vm10, %vm3246_vm9 }
0x140b   :  { %v3241_v41 = vmul.f32 %v7709_v42, %v3240_v43  ;;  %v3576_v43 = vld [vmem:[#allocation35 + $0x78] sm:$0xff] }
0x140c   :  { %3591 = vmatpush.msrb.mxu3 %v3576_v43  ;;  %v3564_v43 = vld [vmem:[#allocation35 + $0x20] sm:$0xff] }
0x140d   :  { %v3242_v52 = vmul.f32 0.5, %v3241_v41  ;;  %v3575_v41 = vld [vmem:[#allocation35 + $0x70] sm:$0xff] }
0x140e   :  { %3592 = vmatpush.msrb.mxu3 %v3575_v41  ;;  %v3640_v41 = vld [vmem:[#allocation35 + $0xa0] sm:$0xff] }
0x140f   :  { %v3243_v54 = vsub.f32 1.5, %v3242_v52  ;;  %v3574_v52 = vld [vmem:[#allocation35 + $0x68] sm:$0xff] }
0x1410   :  { %3593 = vmatpush.msrb.mxu3 %v3574_v52 }
0x1411   :  { %v3244_v59 = vmul.f32 %v7709_v42, %v3243_v54 }
0x1413   :  { %v3248_v57 = vsel %vm3247_vm11, %v7709_v42, %v3244_v59 }
0x1414   :  { %7234 = vmatpush.msk.msra.mxu0 %vm1227_vm6, %v3248_v57  ;;  %v3572_v57 = vld [vmem:[#allocation35 + $0x58] sm:$0xff] }
0x1415   :  { %7235 = vmatmul.msk.f32.vlgmr.msra.gmra.mxu0 %vm1214_vm7, %v10169_v62 }
0x1416   :  { %3429 = vmatpush.msrb.mxu0 %v3414_v55  ;;  %v3573_v55 = vld [vmem:[#allocation35 + $0x60] sm:$0xff] }
0x1417   :  { %v3410_v12 = vpop.f32.mrf.mxu1  ;;  %3594 = vmatpush.msrb.mxu3 %v3573_v55  ;;  %v3562_v55 = vld [vmem:[#allocation35 + $0x10] sm:$0xff] }
0x1418   :  { %v3435_v6 = vsel %vm2920_vm14, %v3410_v12, 0.0  ;;  %3430 = vmatpush.msrb.mxu0 %v3413_v46  ;;  %v3571_v46 = vld [vmem:[#allocation35 + $0x50] sm:$0xff]  ;;  %v3570_v12 = vld [vmem:[#allocation35 + $0x48] sm:$0xff] }
0x1419   :  { %3436 = vadd.xlane.f32.xlu2 %v3435_v6  ;;  %3595 = vmatpush.msrb.mxu3 %v3572_v57  ;;  %v3569_v6 = vld [vmem:[#allocation35 + $0x40] sm:$0xff]  ;;  %v3638_v57 = vld [vmem:[#allocation35 + $0x90] sm:$0xff] }
0x141b   :  { %3596 = vmatpush.msrb.mxu3 %v3571_v46  ;;  %v3561_v46 = vld [vmem:[#allocation35 + $0x8] sm:$0xff] }
0x141d   :  { %7236 = vmatmul.msk.f32.gmra.mxu0 %vm1214_vm7, %v10179_v1  ;;  %3597 = vmatpush.msrb.mxu3 %v3570_v12  ;;  %v3637_v12 = vld [vmem:[#allocation35 + $0x88] sm:$0xff] }
0x141f   :  { %3598 = vmatpush.msrb.mxu3 %v3569_v6  ;;  %v3560_v6 = vld [vmem:[#allocation35] sm:$0xff] }
0x1425   :  { %7242 = vmatmul.msk.f32.vlgmr.msrb.gmra.mxu0 %vm2874_vm13, %v10155_v34 }
0x147a   :  { %v3269_v60 = vpop.f32.mrf.mxu3 }
0x1482   :  { %v3272_v63 = vpop.f32.mrf.mxu3 }
0x1483   :  { %3308 = vperm.xlu2 %7655, %v3272_v63  }
0x148c   :  { %v3437_v7 = vpop.xlane.xlu2 %3436 }
0x148d   :  { %v3438_v28 = vmul.f32 0.001953125, %v3437_v7 }
0x148f   :  { %7243 = vmatpush.msk.msra.mxu1 %vm1227_vm6, %v3438_v28  ;;  %v3443_v24 = vmul.f32 %v3438_v28, %v3438_v28 }
0x1490   :  { %7244 = vmatmul.msk.f32.vlgmr.msra.gmra.mxu1 %vm1214_vm7, %v10169_v62 }
0x1492   :  { %v3295_v4 = vpop.f32.mrf.mxu0 }
0x1493   :  { %3315 = vperm.xlu1 %7654, %v3295_v4  }
0x1498   :  { %7245 = vmatmul.msk.f32.gmra.mxu1 %vm1214_vm7, %v10179_v1 }
0x149a   :  { %v3298_v9 = vpop.f32.mrf.mxu0 }
0x14a2   :  { %v3432_v51 = vpop.f32.mrf.mxu0 }
0x14a3   :  { %v3439_v10 = vsel %vm2920_vm14, %v3432_v51, 0.0 }
0x14a4   :  { %3440 = vadd.xlane.f32.xlu0 %v3439_v10 }
0x14b8   :  { %3303 = vperm.xlu0 %7653, %v3269_v60  }
0x14dd   :  { %v3309_v7 = vpop.permute.xlu2 %3308 }
0x1505   :  { %v3316_v60 = vpop.permute.xlu1 %3315 }
0x150d   :  { %v3476_v13 = vpop.f32.mrf.mxu1 }
0x150e   :  { %3510 = vperm.xlu1 %7654, %v3476_v13   ;;  %v7670_v13 = vld [vmem:[#allocation25] ss:$0 sm:$0xff] }
0x1515   :  { %v3479_v8 = vpop.f32.mrf.mxu1 }
0x1516   :  { %3515 = vperm.xlu0 %7653, %v3479_v8   ;;  %v7669_v8 = vld [vmem:[#allocation19] ss:$0 sm:$0xff] }
0x1517   :  { %v3441_v11 = vpop.xlane.xlu0 %3440 }
0x1518   :  { %v3442_v50 = vmul.f32 0.001953125, %v3441_v11 }
0x151a   :  { %v3444_v33 = vsub.f32 %v3442_v50, %v3443_v24  ;;  %v7671_v50 = vld [vmem:[#allocation20] ss:$0 sm:$0xff] }
0x151c   :  { %v3445_v31 = vadd.f32 1e-05, %v3444_v33 }
0x151e   :  { %7710 = vrsqrt.f32 %v3445_v31  ;;  %3320 = vperm.xlu0 %7653, %v3298_v9   ;;  %vm3452_vm15 = vweird.f32 %v3445_v31  ;;  %v7668_v9 = vld [vmem:[#allocation23] ss:$0 sm:$0xff] }
0x1524   :  { %v7711_v23 = vpop.eup %7710 }
0x1525   :  { %v3447_v48 = vmul.f32 %v7711_v23, %v3445_v31  ;;  %vm3453_vm12 = vweird.f32 %v7711_v23  ;;  %v3567_v31 = vld [vmem:[#allocation35 + $0x38] sm:$0xff] }
0x1526   :  { %vm3454_vm0 = vmor %vm3452_vm15, %vm3453_vm12  ;;  %3620 = vmatpush.msra.mxu0 %v3567_v31  ;;  %vm4260_vm15 = vcmask 64512  }
0x1527   :  { %v3448_v25 = vmul.f32 %v7711_v23, %v3447_v48 }
0x1529   :  { %v3449_v47 = vmul.f32 0.5, %v3448_v25  ;;  %v3566_v25 = vld [vmem:[#allocation35 + $0x30] sm:$0xff] }
0x152a   :  { %v3304_v63 = vpop.permute.xlu0 %3303  ;;  %3621 = vmatpush.msra.mxu0 %v3566_v25 }
0x152b   :  { %v3450_v36 = vsub.f32 1.5, %v3449_v47  ;;  %v3311_v28 = vsub.f32 %v10248_v3, %v3304_v63  ;;  %v3642_v47 = vld [vmem:[#allocation35 + $0xb0] sm:$0xff] }
0x152d   :  { %v3451_v37 = vmul.f32 %v7711_v23, %v3450_v36  ;;  %v3323_v51 = vmul.f32 %v3316_v60, %v3311_v28  ;;  %v3636_v60 = vld [vmem:[#allocation35 + $0x80] sm:$0xff] }
0x152f   :  { %v3455_v42 = vsel %vm3454_vm0, %v7711_v23, %v3451_v37  ;;  %v3329_v11 = vmul.f32 %v7668_v9, %v3323_v51  ;;  %v3643_v23 = vld [vmem:[#allocation35 + $0xb8] sm:$0xff]  ;;  %v3565_v37 = vld [vmem:[#allocation35 + $0x28] sm:$0xff] }
0x1530   :  { %7246 = vmatpush.msk.msra.mxu2 %vm1227_vm6, %v3455_v42  ;;  %3658 = vmatpush.msrb.mxu1 %v3643_v23  ;;  %v3641_v42 = vld [vmem:[#allocation35 + $0xa8] sm:$0xff] }
0x1531   :  { %7247 = vmatmul.msk.f32.vlgmr.msra.gmra.mxu2 %vm1214_vm7, %v10169_v62  ;;  %v3335_v3 = vadd.f32 %v7669_v8, %v3329_v11  ;;  %3622 = vmatpush.msra.mxu0 %v3565_v37 }
0x1532   :  { %3659 = vmatpush.msrb.mxu1 %v3642_v47 }
0x1533   :  { %3623 = vmatpush.msra.mxu0 %v3564_v43 }
0x1534   :  { %3660 = vmatpush.msrb.mxu1 %v3641_v42 }
0x1536   :  { %3661 = vmatpush.msrb.mxu1 %v3640_v41 }
0x1539   :  { %7248 = vmatmul.msk.f32.gmra.mxu2 %vm1214_vm7, %v10179_v1 }
0x1580   :  { %v3511_v4 = vpop.permute.xlu1 %3510 }
0x1581   :  { %v3518_v10 = vsub.f32 %v10264_v21, %v3511_v4  ;;  %v3312_v4 = vsub.f32 %v10246_v0, %v3309_v7 }
0x1588   :  { %v3516_v63 = vpop.permute.xlu0 %3515 }
0x1590   :  { %v3321_v28 = vpop.permute.xlu0 %3320 }
0x1591   :  { %v3324_v51 = vmul.f32 %v3321_v28, %v3312_v4 }
0x1593   :  { %v3330_v11 = vmul.f32 %v7668_v9, %v3324_v51 }
0x1595   :  { %v3336_v23 = vadd.f32 %v7669_v8, %v3330_v11 }
0x15b4   :  { %v3502_v54 = vpop.f32.mrf.mxu2 }
0x15b5   :  { %3522 = vperm.xlu2 %7655, %v3502_v54   ;;  %v3563_v54 = vld [vmem:[#allocation35 + $0x18] sm:$0xff] }
0x15b6   :  { %3624 = vmatpush.msra.mxu0 %v3563_v54 }
0x15b8   :  { %3625 = vmatpush.msra.mxu0 %v3562_v55 }
0x15ba   :  { %3626 = vmatpush.msra.mxu0 %v3561_v46 }
0x15bc   :  { %v3505_v59 = vpop.f32.mrf.mxu2  ;;  %3627 = vmatpush.msra.mxu0 %v3560_v6 }
0x15bd   :  { %3527 = vperm.xlu1 %7654, %v3505_v59   ;;  %v3639_v59 = vld [vmem:[#allocation35 + $0x98] sm:$0xff] }
0x15be   :  { %3662 = vmatpush.msrb.mxu1 %v3639_v59 }
0x15c0   :  { %3663 = vmatpush.msrb.mxu1 %v3638_v57 }
0x15c2   :  { %3664 = vmatpush.msrb.mxu1 %v3637_v12 }
0x15c4   :  { %3665 = vmatpush.msrb.mxu1 %v3636_v60 }
0x160f   :  { %v3523_v24 = vpop.permute.xlu2 %3522 }
0x1610   :  { %v3530_v33 = vmul.f32 %v3523_v24, %v3518_v10  ;;  %v3519_v10 = vsub.f32 %v10266_v53, %v3516_v63 }
0x1612   :  { %v3536_v48 = vmul.f32 %v7670_v13, %v3530_v33 }
0x1614   :  { %v3542_v36 = vadd.f32 %v7671_v50, %v3536_v48 }
0x1616   :  { %v3544_v21 = vadd.f32 %v3542_v36, %v3335_v3 }
0x1618   :  { %v10302_v52 = vmax.f32 %v3544_v21, 0.0 }
0x161a   :  { %7249 = vmatmul.msk.f32.vlgmr.msrb.gmra.mxu3 %vm3087_vm8, %v10302_v52  ;;  %v3548_v3 = vrot.slane %v10302_v52, 7  ;;  %v3554_v36 = vrot.slane %v10302_v52, 1 }
0x162f   :  { %v3528_v24 = vpop.permute.xlu1 %3527 }
0x1630   :  { %v3531_v33 = vmul.f32 %v3528_v24, %v3519_v10 }
0x1632   :  { %v3537_v31 = vmul.f32 %v7670_v13, %v3531_v33 }
0x1634   :  { %v3543_v48 = vadd.f32 %v7671_v50, %v3537_v31 }
0x1636   :  { %v3545_v25 = vadd.f32 %v3543_v48, %v3336_v23 }
0x1638   :  { %v10308_v47 = vmax.f32 %v3545_v25, 0.0 }
0x163a   :  { %v3549_v37 = vrot.slane %v10308_v47, 7  ;;  %v3555_v0 = vrot.slane %v10308_v47, 1  ;;  %7250 = vmatmul.msk.f32.gmra.mxu3 %vm3087_vm8, %v10308_v47 }
0x163c   :  { %v3551_v53 = vsel %vm939_vm3, %v3549_v37, %v3548_v3  ;;  %v3556_v7 = vsel %vm972_vm2, %v3554_v36, %v3555_v0  ;;  %v3550_v8 = vsel %vm939_vm3, %v3548_v3, %v3549_v37  ;;  %v3557_v50 = vsel %vm972_vm2, %v3555_v0, %v3554_v36 }
0x163d   :  { %v3552_v9 = vmul.f32 %v3551_v53, %v10217_v38  ;;  %v3558_v13 = vmul.f32 %v3556_v7, %v10220_v17  ;;  %v3553_v42 = vmul.f32 %v3550_v8, %v10234_v14  ;;  %v3559_v21 = vmul.f32 %v3557_v50, %v10230_v5 }
0x163f   :  { %7251 = vmatmul.msk.f32.vlgmr.msra.gmra.mxu0 %vm3087_vm8, %v3552_v9  ;;  %7253 = vmatmul.msk.f32.vlgmr.msrb.gmra.mxu1 %vm3087_vm8, %v3558_v13 }
0x1647   :  { %7252 = vmatmul.msk.f32.gmra.mxu0 %vm3087_vm8, %v3553_v42  ;;  %7254 = vmatmul.msk.f32.gmra.mxu1 %vm3087_vm8, %v3559_v21  ;;  %v3856_v21 = vld [vmem:[#allocation37 + $0x78] sm:$0xff] }
0x1648   :  { %3871 = vmatpush.msra.mxu1 %v3856_v21 }
0x169d   :  { %v3600_v43 = vpop.f32.mrf.mxu3 }
0x16bc   :  { %v3629_v41 = vpop.f32.mrf.mxu0  ;;  %v3667_v54 = vpop.f32.mrf.mxu1 }
0x16bd   :  { %v3603_v59 = vpop.f32.mrf.mxu3  ;;  %v3630_v57 = vadd.f32 %v3629_v41, %v3600_v43  ;;  %v3855_v43 = vld [vmem:[#allocation37 + $0x70] sm:$0xff]  ;;  %v3854_v41 = vld [vmem:[#allocation37 + $0x68] sm:$0xff] }
0x16be   :  { %3872 = vmatpush.msra.mxu1 %v3855_v43 }
0x16bf   :  { %v10334_v60 = vadd.f32 %v3667_v54, %v3630_v57  ;;  %v3853_v54 = vld [vmem:[#allocation37 + $0x60] sm:$0xff]  ;;  %v3850_v57 = vld [vmem:[#allocation37 + $0x48] sm:$0xff] }
0x16c0   :  { %3873 = vmatpush.msra.mxu1 %v3854_v41 }
0x16c1   :  { %v3695_v28 = vmul.f32 %v10334_v60, %v10334_v60 }
0x16c2   :  { %3874 = vmatpush.msra.mxu1 %v3853_v54 }
0x16c4   :  { %v3632_v55 = vpop.f32.mrf.mxu0  ;;  %v3670_v12 = vpop.f32.mrf.mxu1 }
0x16c5   :  { %v3633_v46 = vadd.f32 %v3632_v55, %v3603_v59  ;;  %v3852_v59 = vld [vmem:[#allocation37 + $0x58] sm:$0xff]  ;;  %v3851_v55 = vld [vmem:[#allocation37 + $0x50] sm:$0xff] }
0x16c6   :  { %3875 = vmatpush.msra.mxu1 %v3852_v59 }
0x16c7   :  { %v10332_v6 = vadd.f32 %v3670_v12, %v3633_v46  ;;  %v3847_v46 = vld [vmem:[#allocation37 + $0x38] sm:$0xff] }
0x16c8   :  { %3876 = vmatpush.msra.mxu1 %v3851_v55  ;;  %v3923_v12 = vld [vmem:[#allocation37 + $0xb8] sm:$0xff] }
0x16c9   :  { %v3696_v63 = vmul.f32 %v10332_v6, %v10332_v6  ;;  %3689 = vmatpush.msrb.mxu2 %v10332_v6 }
0x16ca   :  { %3877 = vmatpush.msra.mxu1 %v3850_v57 }
0x16cb   :  { %3690 = vmatpush.msrb.mxu2 %v10334_v60 }
0x16cc   :  { %7255 = vmatmul.msk.f32.vlgmr.msrb.gmra.mxu2 %vm2874_vm13, %v10155_v34 }
0x16cd   :  { %3711 = vmatpush.msra.mxu2 %v3696_v63  ;;  %v3849_v63 = vld [vmem:[#allocation37 + $0x40] sm:$0xff] }
0x16ce   :  { %3878 = vmatpush.msra.mxu1 %v3849_v63 }
0x16cf   :  { %3712 = vmatpush.msra.mxu2 %v3695_v28  ;;  %v3846_v28 = vld [vmem:[#allocation37 + $0x30] sm:$0xff] }
0x16d1   :  { %3900 = vmatpush.msrb.mxu2 %v3847_v46 }
0x16d3   :  { %3901 = vmatpush.msrb.mxu2 %v3846_v28 }
0x16d4   :  { %7256 = vmatmul.msk.f32.vlgmr.msra.gmra.mxu2 %vm2874_vm13, %v10155_v34 }
0x174f   :  { %v3692_v4 = vpop.f32.mrf.mxu2 }
0x1750   :  { %v3717_v51 = vsel %vm2920_vm14, %v3692_v4, 0.0  ;;  %v3922_v4 = vld [vmem:[#allocation37 + $0xb0] sm:$0xff] }
0x1751   :  { %3718 = vadd.xlane.f32.xlu2 %v3717_v51  ;;  %v3845_v51 = vld [vmem:[#allocation37 + $0x28] sm:$0xff] }
0x1752   :  { %3902 = vmatpush.msrb.mxu2 %v3845_v51 }
0x1757   :  { %v3714_v10 = vpop.f32.mrf.mxu2 }
0x1758   :  { %v3721_v24 = vsel %vm2920_vm14, %v3714_v10, 0.0  ;;  %v3921_v10 = vld [vmem:[#allocation37 + $0xa8] sm:$0xff] }
0x1759   :  { %3722 = vadd.xlane.f32.xlu0 %v3721_v24  ;;  %v3844_v24 = vld [vmem:[#allocation37 + $0x20] sm:$0xff] }
0x175a   :  { %3903 = vmatpush.msrb.mxu2 %v3844_v24 }
0x17c4   :  { %v3719_v11 = vpop.xlane.xlu2 %3718 }
0x17c5   :  { %v3720_v33 = vmul.f32 0.001953125, %v3719_v11  ;;  %v3920_v11 = vld [vmem:[#allocation37 + $0xa0] sm:$0xff] }
0x17c7   :  { %7257 = vmatpush.msk.msra.mxu3 %vm1227_vm6, %v3720_v33  ;;  %v3725_v23 = vmul.f32 %v3720_v33, %v3720_v33 }
0x17c8   :  { %7258 = vmatmul.msk.f32.vlgmr.msra.gmra.mxu3 %vm1214_vm7, %v10169_v62 }
0x17c9   :  { %3938 = vmatpush.msrb.mxu3 %v3923_v12 }
0x17cb   :  { %3939 = vmatpush.msrb.mxu3 %v3922_v4 }
0x17cc   :  { %v3723_v31 = vpop.xlane.xlu0 %3722 }
0x17cd   :  { %v3724_v48 = vmul.f32 0.001953125, %v3723_v31  ;;  %3940 = vmatpush.msrb.mxu3 %v3921_v10  ;;  %v3843_v31 = vld [vmem:[#allocation37 + $0x18] sm:$0xff] }
0x17ce   :  { %3904 = vmatpush.msrb.mxu2 %v3843_v31 }
0x17cf   :  { %v3726_v25 = vsub.f32 %v3724_v48, %v3725_v23  ;;  %3941 = vmatpush.msrb.mxu3 %v3920_v11  ;;  %v3919_v23 = vld [vmem:[#allocation37 + $0x98] sm:$0xff]  ;;  %v3842_v48 = vld [vmem:[#allocation37 + $0x10] sm:$0xff] }
0x17d0   :  { %7259 = vmatmul.msk.f32.gmra.mxu3 %vm1214_vm7, %v10179_v1  ;;  %3905 = vmatpush.msrb.mxu2 %v3842_v48 }
0x17d1   :  { %v3727_v34 = vadd.f32 1e-05, %v3726_v25  ;;  %3942 = vmatpush.msrb.mxu3 %v3919_v23  ;;  %v3918_v25 = vld [vmem:[#allocation37 + $0x90] sm:$0xff] }
0x17d3   :  { %7712 = vrsqrt.f32 %v3727_v34  ;;  %vm3734_vm9 = vweird.f32 %v3727_v34  ;;  %3943 = vmatpush.msrb.mxu3 %v3918_v25 }
0x17d9   :  { %v7713_v3 = vpop.eup %7712 }
0x17da   :  { %v3729_v36 = vmul.f32 %v7713_v3, %v3727_v34  ;;  %vm3735_vm1 = vweird.f32 %v7713_v3  ;;  %v3841_v34 = vld [vmem:[#allocation37 + $0x8] sm:$0xff] }
0x17db   :  { %vm3736_vm10 = vmor %vm3734_vm9, %vm3735_vm1  ;;  %3906 = vmatpush.msrb.mxu2 %v3841_v34 }
0x17dc   :  { %v3730_v37 = vmul.f32 %v7713_v3, %v3729_v36  ;;  %v3840_v36 = vld [vmem:[#allocation37] sm:$0xff] }
0x17dd   :  { %3907 = vmatpush.msrb.mxu2 %v3840_v36 }
0x17de   :  { %v3731_v0 = vmul.f32 0.5, %v3730_v37  ;;  %v3916_v37 = vld [vmem:[#allocation37 + $0x80] sm:$0xff] }
0x17e0   :  { %v3732_v53 = vsub.f32 1.5, %v3731_v0 }
0x17e2   :  { %v3733_v7 = vmul.f32 %v7713_v3, %v3732_v53 }
0x17e4   :  { %v3737_v9 = vsel %vm3736_vm10, %v7713_v3, %v3733_v7  ;;  %v3917_v3 = vld [vmem:[#allocation37 + $0x88] sm:$0xff]  ;;  %v7672_v7 = vld [vmem:[#allocation32] ss:$0 sm:$0xff] }
0x17e5   :  { %7260 = vmatpush.msk.msrb.mxu0 %vm1227_vm6, %v3737_v9  ;;  %3944 = vmatpush.msrb.mxu3 %v3917_v3 }
0x17e6   :  { %7261 = vmatmul.msk.f32.vlgmr.msrb.gmra.mxu0 %vm1214_vm7, %v10169_v62 }
0x17e7   :  { %3945 = vmatpush.msrb.mxu3 %v3916_v37 }
0x17ee   :  { %7262 = vmatmul.msk.f32.gmra.mxu0 %vm1214_vm7, %v10179_v1 }
0x184b   :  { %v3758_v13 = vpop.f32.mrf.mxu3 }
0x184c   :  { %3792 = vperm.xlu1 %7654, %v3758_v13   ;;  %v7673_v13 = vld [vmem:[#allocation29] ss:$0 sm:$0xff] }
0x1853   :  { %v3761_v8 = vpop.f32.mrf.mxu3 }
0x1854   :  { %3797 = vperm.xlu1 %7654, %v3761_v8  }
0x1863   :  { %v3784_v50 = vpop.f32.mrf.mxu0 }
0x1864   :  { %3804 = vperm.xlu1 %7654, %v3784_v50  }
0x186b   :  { %v3787_v42 = vpop.f32.mrf.mxu0 }
0x186c   :  { %3809 = vperm.xlu1 %7654, %v3787_v42  }
0x18be   :  { %v3793_v33 = vpop.permute.xlu1 %3792 }
0x18bf   :  { %v3800_v53 = vsub.f32 %v10334_v60, %v3793_v33 }
0x18c6   :  { %v3798_v0 = vpop.permute.xlu1 %3797 }
0x18c7   :  { %v3801_v21 = vsub.f32 %v10332_v6, %v3798_v0 }
0x18d6   :  { %v3805_v9 = vpop.permute.xlu1 %3804 }
0x18d7   :  { %v3812_v8 = vmul.f32 %v3805_v9, %v3800_v53 }
0x18d9   :  { %v3818_v50 = vmul.f32 %v7672_v7, %v3812_v8 }
0x18db   :  { %v3824_v42 = vadd.f32 %v7673_v13, %v3818_v50 }
0x18dd   :  { %v3826_v43 = vmax.f32 %v3824_v42, 0.0 }
0x18de   :  { %v3810_v41 = vpop.permute.xlu1 %3809 }
0x18df   :  { %v3813_v54 = vmul.f32 %v3810_v41, %v3801_v21  ;;  %7263 = vmatmul.msk.f32.vlgmr.msra.gmra.mxu1 %vm3087_vm8, %v3826_v43  ;;  %v3828_v46 = vrot.slane %v3826_v43, 7  ;;  %v3834_v12 = vrot.slane %v3826_v43, 1 }
0x18e1   :  { %v3819_v59 = vmul.f32 %v7672_v7, %v3813_v54 }
0x18e3   :  { %v3825_v55 = vadd.f32 %v7673_v13, %v3819_v59  ;;  %v7741_v13 = vld [vmem:[%s11260_s5] sm:$0x3] }
0x18e5   :  { %v3827_v57 = vmax.f32 %v3825_v55, 0.0 }
0x18e7   :  { %v3829_v63 = vrot.slane %v3827_v57, 7  ;;  %v3835_v60 = vrot.slane %v3827_v57, 1  ;;  %7264 = vmatmul.msk.f32.gmra.mxu1 %vm3087_vm8, %v3827_v57 }
0x18e9   :  { %v3831_v28 = vsel %vm939_vm3, %v3829_v63, %v3828_v46  ;;  %v3836_v6 = vsel %vm972_vm2, %v3834_v12, %v3835_v60  ;;  %v3830_v10 = vsel %vm939_vm3, %v3828_v46, %v3829_v63  ;;  %v3837_v24 = vsel %vm972_vm2, %v3835_v60, %v3834_v12 }
0x18ea   :  { %v3832_v4 = vmul.f32 %v3831_v28, %v10217_v38  ;;  %v3838_v51 = vmul.f32 %v3836_v6, %v10220_v17  ;;  %v3833_v11 = vmul.f32 %v3830_v10, %v10234_v14  ;;  %v3839_v33 = vmul.f32 %v3837_v24, %v10230_v5  ;;  %v7743_v10 = vld [vmem:[%s11263_s18 + $0x8] sm:$0xff] }
0x18ec   :  { %7265 = vmatmul.msk.f32.vlgmr.msrb.gmra.mxu2 %vm3087_vm8, %v3832_v4  ;;  %7267 = vmatmul.msk.f32.vlgmr.msrb.gmra.mxu3 %vm3087_vm8, %v3838_v51 }
0x18f4   :  { %7266 = vmatmul.msk.f32.gmra.mxu2 %vm3087_vm8, %v3833_v11  ;;  %7268 = vmatmul.msk.f32.gmra.mxu3 %vm3087_vm8, %v3839_v33 }
0x195c   :  { %v3880_v31 = vpop.f32.mrf.mxu1 }
0x1964   :  { %v3883_v34 = vpop.f32.mrf.mxu1 }
0x196f   :  { %v3909_v23 = vpop.f32.mrf.mxu2  ;;  %v3947_v48 = vpop.f32.mrf.mxu3 }
0x1970   :  { %v3910_v25 = vadd.f32 %v3909_v23, %v3880_v31  ;;  %v4138_v31 = vld [vmem:[#allocation47 + $0x78] sm:$0xff]  ;;  %v4137_v23 = vld [vmem:[#allocation47 + $0x70] sm:$0xff] }
0x1971   :  { %4153 = vmatpush.msra.mxu2 %v4138_v31 }
0x1972   :  { %v10378_v0 = vadd.f32 %v3947_v48, %v3910_v25  ;;  %v4136_v48 = vld [vmem:[#allocation47 + $0x68] sm:$0xff]  ;;  %v4135_v25 = vld [vmem:[#allocation47 + $0x60] sm:$0xff] }
0x1973   :  { %4154 = vmatpush.msra.mxu2 %v4137_v23 }
0x1974   :  { %v3975_v9 = vmul.f32 %v10378_v0, %v10378_v0 }
0x1975   :  { %4155 = vmatpush.msra.mxu2 %v4136_v48 }
0x1977   :  { %v3912_v3 = vpop.f32.mrf.mxu2  ;;  %v3950_v37 = vpop.f32.mrf.mxu3  ;;  %4156 = vmatpush.msra.mxu2 %v4135_v25 }
0x1978   :  { %v3913_v36 = vadd.f32 %v3912_v3, %v3883_v34  ;;  %v4134_v34 = vld [vmem:[#allocation47 + $0x58] sm:$0xff]  ;;  %v4133_v3 = vld [vmem:[#allocation47 + $0x50] sm:$0xff] }
0x1979   :  { %4157 = vmatpush.msra.mxu2 %v4134_v34 }
0x197a   :  { %v10380_v53 = vadd.f32 %v3950_v37, %v3913_v36  ;;  %v4132_v36 = vld [vmem:[#allocation47 + $0x48] sm:$0xff]  ;;  %v4129_v37 = vld [vmem:[#allocation47 + $0x38] sm:$0xff] }
0x197b   :  { %4158 = vmatpush.msra.mxu2 %v4133_v3  ;;  %4182 = vmatpush.msra.mxu3 %v4129_v37 }
0x197c   :  { %v3976_v7 = vmul.f32 %v10380_v53, %v10380_v53  ;;  %3969 = vmatpush.msra.mxu0 %v10380_v53 }
0x197d   :  { %4159 = vmatpush.msra.mxu2 %v4132_v36 }
0x197e   :  { %3970 = vmatpush.msra.mxu0 %v10378_v0  ;;  %3991 = vmatpush.msrb.mxu1 %v3976_v7  ;;  %v4205_v7 = vld [vmem:[#allocation47 + $0xb8] sm:$0xff] }
0x197f   :  { %7269 = vmatmul.msk.f32.vlgmr.msra.gmra.mxu0 %vm2874_vm13, %v7741_v13 }
0x1980   :  { %3992 = vmatpush.msrb.mxu1 %v3975_v9  ;;  %v4131_v9 = vld [vmem:[#allocation47 + $0x40] sm:$0xff] }
0x1981   :  { %7270 = vmatmul.msk.f32.vlgmr.msrb.gmra.mxu1 %vm2874_vm13, %v7741_v13  ;;  %4160 = vmatpush.msra.mxu2 %v4131_v9  ;;  %v4128_v13 = vld [vmem:[#allocation47 + $0x30] sm:$0xff] }
0x1982   :  { %4183 = vmatpush.msra.mxu3 %v4128_v13 }
0x19fc   :  { %v3972_v8 = vpop.f32.mrf.mxu0 }
0x19fd   :  { %v3997_v50 = vsel %vm2920_vm14, %v3972_v8, 0.0  ;;  %v4204_v8 = vld [vmem:[#allocation47 + $0xb0] sm:$0xff] }
0x19fe   :  { %v3994_v42 = vpop.f32.mrf.mxu1  ;;  %3998 = vadd.xlane.f32.xlu1 %v3997_v50  ;;  %v4127_v50 = vld [vmem:[#allocation47 + $0x28] sm:$0xff] }
0x19ff   :  { %v4001_v21 = vsel %vm2920_vm14, %v3994_v42, 0.0  ;;  %v4203_v42 = vld [vmem:[#allocation47 + $0xa8] sm:$0xff]  ;;  %4184 = vmatpush.msra.mxu3 %v4127_v50 }
0x1a00   :  { %4002 = vadd.xlane.f32.xlu2 %v4001_v21  ;;  %v4126_v21 = vld [vmem:[#allocation47 + $0x20] sm:$0xff] }
0x1a01   :  { %4185 = vmatpush.msra.mxu3 %v4126_v21 }
0x1a71   :  { %v3999_v43 = vpop.xlane.xlu1 %3998 }
0x1a72   :  { %v4000_v41 = vmul.f32 0.001953125, %v3999_v43  ;;  %v4202_v43 = vld [vmem:[#allocation47 + $0xa0] sm:$0xff] }
0x1a73   :  { %v4003_v54 = vpop.xlane.xlu2 %4002 }
0x1a74   :  { %v4005_v59 = vmul.f32 %v4000_v41, %v4000_v41  ;;  %v4004_v55 = vmul.f32 0.001953125, %v4003_v54  ;;  %7271 = vmatpush.msk.msrb.mxu0 %vm1227_vm6, %v4000_v41  ;;  %v4125_v41 = vld [vmem:[#allocation47 + $0x18] sm:$0xff] }
0x1a75   :  { %7272 = vmatmul.msk.f32.vlgmr.msrb.gmra.mxu0 %vm1214_vm7, %v10169_v62  ;;  %v7742_v62 = vld [vmem:[%s11263_s18] sm:$0xff]  ;;  %v4201_v54 = vld [vmem:[#allocation47 + $0x98] sm:$0xff]  ;;  %4186 = vmatpush.msra.mxu3 %v4125_v41 }
0x1a76   :  { %v4006_v57 = vsub.f32 %v4004_v55, %v4005_v59  ;;  %4220 = vmatpush.msra.mxu0 %v4205_v7  ;;  %v4124_v59 = vld [vmem:[#allocation47 + $0x10] sm:$0xff] }
0x1a77   :  { %v4200_v55 = vld [vmem:[#allocation47 + $0x90] sm:$0xff]  ;;  %4187 = vmatpush.msra.mxu3 %v4124_v59 }
0x1a78   :  { %v4007_v46 = vadd.f32 1e-05, %v4006_v57  ;;  %4221 = vmatpush.msra.mxu0 %v4204_v8  ;;  %v4123_v57 = vld [vmem:[#allocation47 + $0x8] sm:$0xff] }
0x1a79   :  { %4188 = vmatpush.msra.mxu3 %v4123_v57 }
0x1a7a   :  { %7714 = vrsqrt.f32 %v4007_v46  ;;  %vm4014_vm11 = vweird.f32 %v4007_v46  ;;  %4222 = vmatpush.msra.mxu0 %v4203_v42 }
0x1a7c   :  { %4223 = vmatpush.msra.mxu0 %v4202_v43 }
0x1a7d   :  { %7273 = vmatmul.msk.f32.gmra.mxu0 %vm1214_vm7, %v10179_v1 }
0x1a7e   :  { %4224 = vmatpush.msra.mxu0 %v4201_v54 }
0x1a80   :  { %v7715_v12 = vpop.eup %7714  ;;  %4225 = vmatpush.msra.mxu0 %v4200_v55 }
0x1a81   :  { %v4009_v63 = vmul.f32 %v7715_v12, %v4007_v46  ;;  %vm4015_vm14 = vweird.f32 %v7715_v12  ;;  %v4199_v46 = vld [vmem:[#allocation47 + $0x88] sm:$0xff] }
0x1a82   :  { %vm4016_vm12 = vmor %vm4014_vm11, %vm4015_vm14  ;;  %4226 = vmatpush.msra.mxu0 %v4199_v46 }
0x1a83   :  { %v4010_v60 = vmul.f32 %v7715_v12, %v4009_v63  ;;  %v4198_v63 = vld [vmem:[#allocation47 + $0x80] sm:$0xff] }
0x1a84   :  { %4227 = vmatpush.msra.mxu0 %v4198_v63 }
0x1a85   :  { %v4011_v28 = vmul.f32 0.5, %v4010_v60 }
0x1a87   :  { %v4012_v6 = vsub.f32 1.5, %v4011_v28 }
0x1a89   :  { %v4013_v4 = vmul.f32 %v7715_v12, %v4012_v6  ;;  %v7674_v6 = vld [vmem:[#allocation34] ss:$0 sm:$0xff] }
0x1a8b   :  { %v4017_v51 = vsel %vm4016_vm12, %v7715_v12, %v4013_v4  ;;  %v4122_v12 = vld [vmem:[#allocation47] sm:$0xff] }
0x1a8c   :  { %7274 = vmatpush.msk.msra.mxu1 %vm1227_vm6, %v4017_v51  ;;  %4189 = vmatpush.msra.mxu3 %v4122_v12  ;;  %v7675_v51 = vld [vmem:[#allocation31] ss:$0 sm:$0xff]  ;;  %v10453_v12 = vld [vmem:[%s11266_s28] sm:$0x3] }
0x1a8d   :  { %7275 = vmatmul.msk.f32.vlgmr.msra.gmra.mxu1 %vm1214_vm7, %v7742_v62 }
0x1a95   :  { %7276 = vmatmul.msk.f32.gmra.mxu1 %vm1214_vm7, %v7743_v10 }
0x1af2   :  { %v4038_v24 = vpop.f32.mrf.mxu0 }
0x1af3   :  { %4072 = vperm.xlu0 %7653, %v4038_v24  }
0x1afa   :  { %v4041_v1 = vpop.f32.mrf.mxu0 }
0x1afb   :  { %4077 = vperm.xlu2 %7655, %v4041_v1  }
0x1b0a   :  { %v4064_v11 = vpop.f32.mrf.mxu1 }
0x1b0b   :  { %4084 = vperm.xlu0 %7653, %v4064_v11  }
0x1b12   :  { %v4067_v33 = vpop.f32.mrf.mxu1 }
0x1b13   :  { %4089 = vperm.xlu0 %7653, %v4067_v33  }
0x1b55   :  { %v4078_v24 = vpop.permute.xlu2 %4077 }
0x1b56   :  { %v4081_v11 = vsub.f32 %v10380_v53, %v4078_v24 }
0x1b65   :  { %v4073_v60 = vpop.permute.xlu0 %4072 }
0x1b66   :  { %v4080_v28 = vsub.f32 %v10378_v0, %v4073_v60 }
0x1b7d   :  { %v4085_v4 = vpop.permute.xlu0 %4084 }
0x1b7e   :  { %v4092_v62 = vmul.f32 %v4085_v4, %v4080_v28 }
0x1b80   :  { %v4098_v10 = vmul.f32 %v7674_v6, %v4092_v62  ;;  %v906_v62 = vld [vmem:[%s11267_s1] sm:$0xff] }
0x1b82   :  { %v4104_v1 = vadd.f32 %v7675_v51, %v4098_v10 }
0x1b84   :  { %v4106_v33 = vadd.f32 %v4104_v1, %v10302_v52  ;;  %v10468_v1 = vld [vmem:[%s11268_s4] sm:$0xff] }
0x1b85   :  { %v4090_v31 = vpop.permute.xlu0 %4089 }
0x1b86   :  { %v10406_v23 = vmax.f32 %v4106_v33, 0.0  ;;  %v4093_v48 = vmul.f32 %v4090_v31, %v4081_v11 }
0x1b88   :  { %v4099_v25 = vmul.f32 %v7674_v6, %v4093_v48  ;;  %7277 = vmatmul.msk.f32.vlgmr.msra.gmra.mxu2 %vm3087_vm8, %v10406_v23  ;;  %v4110_v36 = vrot.slane %v10406_v23, 7  ;;  %v4116_v37 = vrot.slane %v10406_v23, 1 }
0x1b8a   :  { %v4105_v0 = vadd.f32 %v7675_v51, %v4099_v25 }
0x1b8c   :  { %v4107_v34 = vadd.f32 %v4105_v0, %v10308_v47 }
0x1b8e   :  { %v10411_v3 = vmax.f32 %v4107_v34, 0.0 }
0x1b90   :  { %v4111_v53 = vrot.slane %v10411_v3, 7  ;;  %v4117_v52 = vrot.slane %v10411_v3, 1  ;;  %7278 = vmatmul.msk.f32.gmra.mxu2 %vm3087_vm8, %v10411_v3 }
0x1b92   :  { %v4113_v7 = vsel %vm939_vm3, %v4111_v53, %v4110_v36  ;;  %v4118_v9 = vsel %vm972_vm2, %v4116_v37, %v4117_v52  ;;  %v4112_v8 = vsel %vm939_vm3, %v4110_v36, %v4111_v53  ;;  %v4119_v50 = vsel %vm972_vm2, %v4117_v52, %v4116_v37 }
0x1b93   :  { %v10424_v47 = vmul.f32 %v4113_v7, %v10217_v38  ;;  %v10427_v13 = vmul.f32 %v4118_v9, %v10220_v17  ;;  %v10438_v42 = vmul.f32 %v4112_v8, %v10234_v14  ;;  %v10441_v38 = vmul.f32 %v4119_v50, %v10230_v5  ;;  %v10448_v5 = vld [vmem:[%s11265_s13] sm:$0xff] }
0x1b94   :  { %v899_v50 = vld [vmem:[%s11269_s2] sm:$0xff] }
0x1b95   :  { %7279 = vmatmul.msk.f32.vlgmr.msra.gmra.mxu3 %vm3087_vm8, %v10424_v47  ;;  %7281 = vmatmul.msk.f32.vlgmr.msra.gmra.mxu0 %vm3087_vm8, %v10427_v13 }
0x1b9d   :  { %7280 = vmatmul.msk.f32.gmra.mxu3 %vm3087_vm8, %v10438_v42  ;;  %7282 = vmatmul.msk.f32.gmra.mxu0 %vm3087_vm8, %v10441_v38 }
0x1c0b   :  { %v4162_v17 = vpop.f32.mrf.mxu2 }
0x1c12   :  { %v4229_v21 = vpop.f32.mrf.mxu0 }
0x1c13   :  { %v4165_v41 = vpop.f32.mrf.mxu2 }
0x1c18   :  { %v4191_v43 = vpop.f32.mrf.mxu3 }
0x1c19   :  { %v4192_v59 = vadd.f32 %v4191_v43, %v4162_v17  ;;  %v7305_v17 = vld [vmem:[%s11270_s24 + $0xf8] sm:$0xff] }
0x1c1a   :  { %v4232_v57 = vpop.f32.mrf.mxu0  ;;  %4445 = vmatpush.msrb.mxu0 %v7305_v17  ;;  %v4427_v43 = vld [vmem:[%s11270_s24 + $0x78] sm:$0xff]  ;;  %v4417_v17 = vld [vmem:[%s11270_s24 + $0x28] sm:$0xff] }
0x1c1b   :  { %v4235_v46 = vadd.f32 %v4229_v21, %v4192_v59  ;;  %v7304_v21 = vld [vmem:[%s11270_s24 + $0xf0] sm:$0xff] }
0x1c1c   :  { %v4426_v59 = vld [vmem:[%s11270_s24 + $0x70] sm:$0xff]  ;;  %4446 = vmatpush.msrb.mxu0 %v7304_v21  ;;  %v7311_v21 = vld [vmem:[%s11270_s24 + $0x128] sm:$0xff] }
0x1c20   :  { %v4194_v54 = vpop.f32.mrf.mxu3 }
0x1c21   :  { %v4195_v55 = vadd.f32 %v4194_v54, %v4165_v41  ;;  %v7321_v41 = vld [vmem:[%s11270_s24 + $0x178] sm:$0xff]  ;;  %v7303_v54 = vld [vmem:[%s11270_s24 + $0xe8] sm:$0xff] }
0x1c22   :  { %4447 = vmatpush.msrb.mxu0 %v7303_v54  ;;  %v7310_v54 = vld [vmem:[%s11270_s24 + $0x120] sm:$0xff] }
0x1c23   :  { %v4236_v14 = vadd.f32 %v4232_v57, %v4195_v55  ;;  %v7320_v55 = vld [vmem:[%s11270_s24 + $0x170] sm:$0xff]  ;;  %v4425_v57 = vld [vmem:[%s11270_s24 + $0x68] sm:$0xff] }
0x1c25   :  { %4254 = vmatpush.msrb.mxu1 %v4236_v14  ;;  %v7319_v14 = vld [vmem:[%s11270_s24 + $0x168] sm:$0xff] }
0x1c27   :  { %4255 = vmatpush.msrb.mxu1 %v4235_v46  ;;  %v7302_v46 = vld [vmem:[%s11270_s24 + $0xe0] sm:$0xff] }
0x1c28   :  { %7283 = vmatmul.msk.f32.vlgmr.msrb.gmra.mxu1 %vm2874_vm13, %v10448_v5  ;;  %4448 = vmatpush.msrb.mxu0 %v7302_v46  ;;  %v4414_v46 = vld [vmem:[%s11270_s24 + $0x10] sm:$0xff] }
0x1ca5   :  { %v10455_v63 = vpop.f32.mrf.mxu1 }
0x1ca6   :  { %v4284_v60 = vmul.f32 %v10455_v63, %v10455_v63  ;;  %4279 = vmatpush.msrb.mxu2 %v10455_v63 }
0x1ca7   :  { %7284 = vmatmul.msk.f32.vlgmr.msrb.gmra.mxu2 %vm4260_vm15, %v10453_v12 }
0x1ca8   :  { %4300 = vmatpush.msrb.mxu3 %v4284_v60  ;;  %v4424_v60 = vld [vmem:[%s11270_s24 + $0x60] sm:$0xff] }
0x1ca9   :  { %7285 = vmatmul.msk.f32.vlgmr.msrb.gmra.mxu3 %vm4260_vm15, %v10453_v12 }
0x1caa   :  { %4465 = vmatpush.msra.mxu3 %v4427_v43  ;;  %v7292_v43 = vld [vmem:[%s11270_s24 + $0x90] sm:$0xff] }
0x1cac   :  { %4466 = vmatpush.msra.mxu3 %v4426_v59  ;;  %v7291_v59 = vld [vmem:[%s11270_s24 + $0x88] sm:$0xff] }
0x1cae   :  { %4467 = vmatpush.msra.mxu3 %v4425_v57  ;;  %v7309_v57 = vld [vmem:[%s11270_s24 + $0x118] sm:$0xff] }
0x1cb0   :  { %4468 = vmatpush.msra.mxu3 %v4424_v60  ;;  %v7308_v60 = vld [vmem:[%s11270_s24 + $0x110] sm:$0xff] }
0x1d2a   :  { %v4281_v28 = vpop.f32.mrf.mxu2 }
0x1d2b   :  { %v4305_v6 = vsel %vm1227_vm6, %v4281_v28, 0.0  ;;  %v7318_v28 = vld [vmem:[%s11270_s24 + $0x160] sm:$0xff] }
0x1d2c   :  { %v4302_v4 = vpop.f32.mrf.mxu3  ;;  %4306 = vadd.xlane.f32.xlu2 %v4305_v6  ;;  %v7301_v6 = vld [vmem:[%s11270_s24 + $0xd8] sm:$0xff] }
0x1d2d   :  { %v4309_v51 = vsel %vm1227_vm6, %v4302_v4, 0.0  ;;  %v4423_v4 = vld [vmem:[%s11270_s24 + $0x58] sm:$0xff]  ;;  %4449 = vmatpush.msrb.mxu0 %v7301_v6  ;;  %v7307_v6 = vld [vmem:[%s11270_s24 + $0x108] sm:$0xff] }
0x1d2e   :  { %4310 = vadd.xlane.f32.xlu0 %v4309_v51  ;;  %v7317_v51 = vld [vmem:[%s11270_s24 + $0x158] sm:$0xff]  ;;  %4469 = vmatpush.msra.mxu3 %v4423_v4  ;;  %v4412_v4 = vld [vmem:[%s11270_s24] sm:$0xff] }
0x1d44   :  { %4408 = vperm.xlu2 %7655, %v906_v62   ;;  %v7300_v62 = vld [vmem:[%s11270_s24 + $0xd0] sm:$0xff] }
0x1d45   :  { %4450 = vmatpush.msrb.mxu0 %v7300_v62 }
0x1d9f   :  { %v4307_v10 = vpop.xlane.xlu2 %4306 }
0x1da0   :  { %v4308_v24 = vmul.f32 0.001953125, %v4307_v10  ;;  %v4422_v10 = vld [vmem:[%s11270_s24 + $0x50] sm:$0xff] }
0x1da1   :  { %v4311_v11 = vpop.xlane.xlu0 %4310  ;;  %4470 = vmatpush.msra.mxu3 %v4422_v10 }
0x1da2   :  { %v4313_v33 = vmul.f32 %v4308_v24, %v4308_v24  ;;  %v4312_v31 = vmul.f32 0.001953125, %v4311_v11  ;;  %7286 = vmatpush.msk.msra.mxu1 %vm1227_vm6, %v4308_v24  ;;  %v7316_v24 = vld [vmem:[%s11270_s24 + $0x150] sm:$0xff]  ;;  %v7299_v11 = vld [vmem:[%s11270_s24 + $0xc8] sm:$0xff] }
0x1da3   :  { %7287 = vmatmul.msk.f32.vlgmr.msra.gmra.mxu1 %vm1214_vm7, %v10468_v1  ;;  %4451 = vmatpush.msrb.mxu0 %v7299_v11 }
0x1da4   :  { %v4314_v48 = vsub.f32 %v4312_v31, %v4313_v33  ;;  %4502 = vmatpush.msrb.mxu1 %v7321_v41  ;;  %v4421_v33 = vld [vmem:[%s11270_s24 + $0x48] sm:$0xff]  ;;  %v4416_v41 = vld [vmem:[%s11270_s24 + $0x20] sm:$0xff] }
0x1da5   :  { %v7315_v31 = vld [vmem:[%s11270_s24 + $0x148] sm:$0xff]  ;;  %4471 = vmatpush.msra.mxu3 %v4421_v33 }
0x1da6   :  { %v4315_v25 = vadd.f32 1e-05, %v4314_v48  ;;  %4503 = vmatpush.msrb.mxu1 %v7320_v55  ;;  %v7298_v48 = vld [vmem:[%s11270_s24 + $0xc0] sm:$0xff]  ;;  %v4415_v55 = vld [vmem:[%s11270_s24 + $0x18] sm:$0xff]  ;;  %v7677_v33 = vld [vmem:[#allocation38] ss:$0 sm:$0xff] }
0x1da7   :  { %4452 = vmatpush.msrb.mxu0 %v7298_v48 }
0x1da8   :  { %7716 = vrsqrt.f32 %v4315_v25  ;;  %vm4322_vm1 = vweird.f32 %v4315_v25  ;;  %4504 = vmatpush.msrb.mxu1 %v7319_v14  ;;  %v7290_v14 = vld [vmem:[%s11270_s24 + $0x80] sm:$0xff] }
0x1daa   :  { %4505 = vmatpush.msrb.mxu1 %v7318_v28  ;;  %v4413_v28 = vld [vmem:[%s11270_s24 + $0x8] sm:$0xff] }
0x1dac   :  { %4506 = vmatpush.msrb.mxu1 %v7317_v51  ;;  %v7306_v51 = vld [vmem:[%s11270_s24 + $0x100] sm:$0xff] }
0x1dae   :  { %v7717_v0 = vpop.eup %7716  ;;  %4507 = vmatpush.msrb.mxu1 %v7316_v24  ;;  %v7676_v24 = vld [vmem:[#allocation43] ss:$0 sm:$0xff] }
0x1daf   :  { %v4317_v34 = vmul.f32 %v7717_v0, %v4315_v25  ;;  %vm4323_vm0 = vweird.f32 %v7717_v0  ;;  %v4420_v25 = vld [vmem:[%s11270_s24 + $0x40] sm:$0xff] }
0x1db0   :  { %vm4324_vm9 = vmor %vm4322_vm1, %vm4323_vm0  ;;  %4508 = vmatpush.msrb.mxu1 %v7315_v31  ;;  %4472 = vmatpush.msra.mxu3 %v4420_v25 }
0x1db1   :  { %v4318_v36 = vmul.f32 %v7717_v0, %v4317_v34  ;;  %v7297_v34 = vld [vmem:[%s11270_s24 + $0xb8] sm:$0xff] }
0x1db2   :  { %4453 = vmatpush.msrb.mxu0 %v7297_v34 }
0x1db3   :  { %v4319_v37 = vmul.f32 0.5, %v4318_v36  ;;  %v4419_v36 = vld [vmem:[%s11270_s24 + $0x38] sm:$0xff] }
0x1db4   :  { %4473 = vmatpush.msra.mxu3 %v4419_v36 }
0x1db5   :  { %v4320_v53 = vsub.f32 1.5, %v4319_v37  ;;  %v7313_v37 = vld [vmem:[%s11270_s24 + $0x138] sm:$0xff] }
0x1db7   :  { %v4321_v52 = vmul.f32 %v7717_v0, %v4320_v53  ;;  %v7296_v53 = vld [vmem:[%s11270_s24 + $0xb0] sm:$0xff] }
0x1db8   :  { %4454 = vmatpush.msrb.mxu0 %v7296_v53 }
0x1db9   :  { %v4325_v7 = vsel %vm4324_vm9, %v7717_v0, %v4321_v52  ;;  %v7314_v0 = vld [vmem:[%s11270_s24 + $0x140] sm:$0xff]  ;;  %v4418_v52 = vld [vmem:[%s11270_s24 + $0x30] sm:$0xff] }
0x1dba   :  { %7288 = vmatpush.msk.msra.mxu2 %vm1227_vm6, %v4325_v7  ;;  %4509 = vmatpush.msrb.mxu1 %v7314_v0  ;;  %v7312_v7 = vld [vmem:[%s11270_s24 + $0x130] sm:$0xff] }
0x1dbb   :  { %7289 = vmatmul.msk.f32.vlgmr.msra.gmra.mxu2 %vm1214_vm7, %v10468_v1  ;;  %4474 = vmatpush.msra.mxu3 %v4418_v52 }
0x1dbc   :  { %4510 = vmatpush.msrb.mxu1 %v7313_v37  ;;  %v10526_v37 = vpop.permute.xlu2 %4408 }
0x1dbd   :  { %4475 = vmatpush.msra.mxu3 %v4417_v17 }
0x1dbe   :  { %4511 = vmatpush.msrb.mxu1 %v7312_v7 }
0x1dbf   :  { %4476 = vmatpush.msra.mxu3 %v4416_v41 }
0x1dc0   :  { %4512 = vmatpush.msrb.mxu1 %v7311_v21 }
0x1dc1   :  { %4477 = vmatpush.msra.mxu3 %v4415_v55 }
0x1dc2   :  { %4513 = vmatpush.msrb.mxu1 %v7310_v54 }
0x1dc3   :  { %4478 = vmatpush.msra.mxu3 %v4414_v46  ;;  %v4679_v46 = vld [vmem:[%s11271_s7 + $0x30] sm:$0xff] }
0x1dc4   :  { %4514 = vmatpush.msrb.mxu1 %v7309_v57 }
0x1dc5   :  { %4479 = vmatpush.msra.mxu3 %v4413_v28 }
0x1dc6   :  { %4515 = vmatpush.msrb.mxu1 %v7308_v60  ;;  %v4678_v60 = vld [vmem:[%s11271_s7 + $0x28] sm:$0xff] }
0x1dc7   :  { %4480 = vmatpush.msra.mxu3 %v4412_v4 }
0x1dc8   :  { %4516 = vmatpush.msrb.mxu1 %v7307_v6 }
0x1dca   :  { %4517 = vmatpush.msrb.mxu1 %v7306_v51 }
0x1e20   :  { %v4349_v9 = vpop.f32.mrf.mxu1 }
0x1e21   :  { %4377 = vperm.xlu1 %7654, %v4349_v9   ;;  %v7295_v9 = vld [vmem:[%s11270_s24 + $0xa8] sm:$0xff] }
0x1e22   :  { %4455 = vmatpush.msrb.mxu0 %v7295_v9 }
0x1e3e   :  { %v4372_v8 = vpop.f32.mrf.mxu2 }
0x1e3f   :  { %4383 = vperm.xlu1 %7654, %v4372_v8   ;;  %v7294_v8 = vld [vmem:[%s11270_s24 + $0xa0] sm:$0xff] }
0x1e40   :  { %4456 = vmatpush.msrb.mxu0 %v7294_v8 }
0x1e47   :  { %4401 = vperm.xlu1 %7654, %v899_v50   ;;  %v7293_v50 = vld [vmem:[%s11270_s24 + $0x98] sm:$0xff] }
0x1e48   :  { %4457 = vmatpush.msrb.mxu0 %v7293_v50 }
0x1e4a   :  { %4458 = vmatpush.msrb.mxu0 %v7292_v43 }
0x1e4c   :  { %4459 = vmatpush.msrb.mxu0 %v7291_v59 }
0x1e4e   :  { %4460 = vmatpush.msrb.mxu0 %v7290_v14  ;;  %v4680_v14 = vld [vmem:[%s11271_s7 + $0x38] sm:$0xff] }
0x1e4f   :  { %4692 = vmatpush.msrb.mxu3 %v4680_v14 }
0x1e51   :  { %4693 = vmatpush.msrb.mxu3 %v4679_v46 }
0x1e53   :  { %4694 = vmatpush.msrb.mxu3 %v4678_v60 }
0x1e93   :  { %v4378_v62 = vpop.permute.xlu1 %4377 }
0x1e94   :  { %v4380_v10 = vsub.f32 %v10455_v63, %v4378_v62 }
0x1eb1   :  { %v4384_v11 = vpop.permute.xlu1 %4383 }
0x1eb2   :  { %v4386_v31 = vmul.f32 %v4384_v11, %v4380_v10 }
0x1eb4   :  { %v4391_v48 = vmul.f32 %v7676_v24, %v4386_v31 }
0x1eb6   :  { %v4396_v25 = vadd.f32 %v7677_v33, %v4391_v48 }
0x1eb8   :  { %v4397_v0 = vmax.f32 %v4396_v25, 0.0 }
0x1eb9   :  { %v10528_v53 = vpop.permute.xlu1 %4401 }
0x1eba   :  { %v4405_v34 = vrot.slane %v4397_v0, 1  ;;  %v4398_v36 = vrot.slane %v4397_v0, 7  ;;  %4461 = vmatmul.f32.vlgmr.msrb.gmra.mxu0 %v4397_v0  ;;  %v4676_v0 = vld [vmem:[%s11271_s7 + $0x18] sm:$0xff] }
0x1ebc   :  { %v4411_v52 = vmul.f32 %v10526_v37, %v4405_v34  ;;  %v4404_v7 = vmul.f32 %v10528_v53, %v4398_v36  ;;  %v4675_v34 = vld [vmem:[%s11271_s7 + $0x10] sm:$0xff]  ;;  %v4674_v36 = vld [vmem:[%s11271_s7 + $0x8] sm:$0xff] }
0x1ebe   :  { %4481 = vmatmul.f32.vlgmr.msra.gmra.mxu3 %v4404_v7  ;;  %4518 = vmatmul.f32.vlgmr.msrb.gmra.mxu1 %v4411_v52  ;;  %v4673_v52 = vld [vmem:[%s11271_s7] sm:$0xff] }
0x1f37   :  { %v4462_v63 = vpop.f32.mrf.mxu0 }
0x1f3b   :  { %v4519_v50 = vpop.f32.mrf.mxu1 }
0x1f41   :  { %v4482_v9 = vpop.f32.mrf.mxu3 }
0x1f42   :  { %v4483_v8 = vadd.f32 %v4482_v9, %v4462_v63 }
0x1f44   :  { %v10532_v17 = vadd.f32 %v4519_v50, %v4483_v8 }
0x1f46   :  { %4538 = vmatpush.msrb.mxu2 %v10532_v17  ;;  %v4543_v21 = vmul.f32 %v10532_v17, %v10532_v17 }
0x1f47   :  { %7322 = vmatmul.msk.f32.vlgmr.msrb.gmra.mxu2 %vm4260_vm15, %v10453_v12 }
0x1f48   :  { %4559 = vmatpush.msra.mxu2 %v4543_v21 }
0x1f4f   :  { %7323 = vmatmul.msk.f32.vlgmr.msra.gmra.mxu2 %vm4260_vm15, %v10453_v12 }
0x1fca   :  { %v4540_v43 = vpop.f32.mrf.mxu2 }
0x1fcb   :  { %v4564_v41 = vsel %vm1227_vm6, %v4540_v43, 0.0 }
0x1fcc   :  { %4565 = vadd.xlane.f32.xlu0 %v4564_v41 }
0x1fd2   :  { %v4561_v54 = vpop.f32.mrf.mxu2 }
0x1fd3   :  { %v4568_v59 = vsel %vm1227_vm6, %v4561_v54, 0.0 }
0x1fd4   :  { %4569 = vadd.xlane.f32.xlu1 %v4568_v59 }
0x203f   :  { %v4566_v55 = vpop.xlane.xlu0 %4565 }
0x2040   :  { %v4567_v57 = vmul.f32 0.001953125, %v4566_v55 }
0x2042   :  { %7324 = vmatpush.msk.msrb.mxu2 %vm1227_vm6, %v4567_v57  ;;  %v4572_v6 = vmul.f32 %v4567_v57, %v4567_v57 }
0x2043   :  { %7325 = vmatmul.msk.f32.vlgmr.msrb.gmra.mxu2 %vm1214_vm7, %v10468_v1 }
0x2044   :  { %4667 = vmatpush.msra.mxu2 %v10411_v3 }
0x2046   :  { %4668 = vmatpush.msra.mxu2 %v10406_v23 }
0x2047   :  { %v4570_v28 = vpop.xlane.xlu1 %4569 }
0x2048   :  { %v4571_v4 = vmul.f32 0.001953125, %v4570_v28 }
0x204a   :  { %v4573_v51 = vsub.f32 %v4571_v4, %v4572_v6 }
0x204b   :  { %7328 = vmatmul.msk.f32.vlgmr.msra.gmra.mxu2 %vm2874_vm13, %v10448_v5  ;;  %v4677_v5 = vld [vmem:[%s11271_s7 + $0x20] sm:$0xff] }
0x204c   :  { %v4574_v62 = vadd.f32 1e-05, %v4573_v51  ;;  %4695 = vmatpush.msrb.mxu3 %v4677_v5  ;;  %v7349_v5 = vld [vmem:[%s11272_s10 + $0xe8] sm:$0xff] }
0x204e   :  { %7718 = vrsqrt.f32 %v4574_v62  ;;  %vm4581_vm14 = vweird.f32 %v4574_v62  ;;  %4696 = vmatpush.msrb.mxu3 %v4676_v0  ;;  %v4854_v0 = vld [vmem:[%s11272_s10 + $0x70] sm:$0xff] }
0x2050   :  { %4697 = vmatpush.msrb.mxu3 %v4675_v34  ;;  %v7366_v34 = vld [vmem:[%s11272_s10 + $0x170] sm:$0xff] }
0x2052   :  { %4698 = vmatpush.msrb.mxu3 %v4674_v36  ;;  %v4853_v36 = vld [vmem:[%s11272_s10 + $0x68] sm:$0xff] }
0x2054   :  { %v7719_v10 = vpop.eup %7718  ;;  %4699 = vmatpush.msrb.mxu3 %v4673_v52  ;;  %v7365_v52 = vld [vmem:[%s11272_s10 + $0x168] sm:$0xff] }
0x2055   :  { %v4576_v24 = vmul.f32 %v7719_v10, %v4574_v62  ;;  %vm4582_vm10 = vweird.f32 %v7719_v10 }
0x2056   :  { %vm4583_vm11 = vmor %vm4581_vm14, %vm4582_vm10 }
0x2057   :  { %v4577_v11 = vmul.f32 %v7719_v10, %v4576_v24 }
0x2059   :  { %v4578_v33 = vmul.f32 0.5, %v4577_v11 }
0x205b   :  { %v4579_v31 = vsub.f32 1.5, %v4578_v33  ;;  %v7351_v33 = vld [vmem:[%s11272_s10 + $0xf8] sm:$0xff] }
0x205d   :  { %v4580_v48 = vmul.f32 %v7719_v10, %v4579_v31  ;;  %v7350_v31 = vld [vmem:[%s11272_s10 + $0xf0] sm:$0xff] }
0x205f   :  { %v4584_v25 = vsel %vm4583_vm11, %v7719_v10, %v4580_v48  ;;  %v4855_v48 = vld [vmem:[%s11272_s10 + $0x78] sm:$0xff] }
0x2060   :  { %7326 = vmatpush.msk.msra.mxu0 %vm1227_vm6, %v4584_v25  ;;  %v7367_v25 = vld [vmem:[%s11272_s10 + $0x178] sm:$0xff] }
0x2061   :  { %7327 = vmatmul.msk.f32.vlgmr.msra.gmra.mxu0 %vm1214_vm7, %v10468_v1  ;;  %4930 = vmatpush.msra.mxu3 %v7367_v25  ;;  %v7339_v25 = vld [vmem:[%s11272_s10 + $0x98] sm:$0xff] }
0x2063   :  { %4931 = vmatpush.msra.mxu3 %v7366_v34  ;;  %v7338_v34 = vld [vmem:[%s11272_s10 + $0x90] sm:$0xff] }
0x2065   :  { %4932 = vmatpush.msra.mxu3 %v7365_v52  ;;  %v7356_v52 = vld [vmem:[%s11272_s10 + $0x120] sm:$0xff] }
0x20c6   :  { %v4605_v7 = vpop.f32.mrf.mxu2 }
0x20c7   :  { %4633 = vperm.xlu2 %7655, %v4605_v7   ;;  %v7348_v7 = vld [vmem:[%s11272_s10 + $0xe0] sm:$0xff] }
0x20ce   :  { %v4670_v63 = vpop.f32.mrf.mxu2 }
0x20cf   :  { %7329 = vmatmul.msk.f32.vlgmr.msrb.gmra.mxu3 %vm3087_vm8, %v4670_v63  ;;  %v4852_v63 = vld [vmem:[%s11272_s10 + $0x60] sm:$0xff] }
0x20de   :  { %v4628_v9 = vpop.f32.mrf.mxu0 }
0x20df   :  { %4639 = vperm.xlu2 %7655, %v4628_v9   ;;  %v7347_v9 = vld [vmem:[%s11272_s10 + $0xd8] sm:$0xff] }
0x2152   :  { %v10562_v8 = vpop.f32.mrf.mxu3 }
0x2153   :  { %v4724_v50 = vmul.f32 %v10562_v8, %v10562_v8  ;;  %4719 = vmatpush.msrb.mxu0 %v10562_v8 }
0x2154   :  { %7330 = vmatmul.msk.f32.vlgmr.msrb.gmra.mxu0 %vm4260_vm15, %v10453_v12 }
0x2155   :  { %4740 = vmatpush.msra.mxu1 %v4724_v50  ;;  %v7364_v50 = vld [vmem:[%s11272_s10 + $0x160] sm:$0xff] }
0x2156   :  { %7331 = vmatmul.msk.f32.vlgmr.msra.gmra.mxu1 %vm4260_vm15, %v10453_v12  ;;  %4933 = vmatpush.msra.mxu3 %v7364_v50  ;;  %v7336_v50 = vld [vmem:[%s11272_s10 + $0x80] sm:$0xff] }
0x2157   :  { %4873 = vmatpush.msrb.mxu1 %v7351_v33  ;;  %v7340_v33 = vld [vmem:[%s11272_s10 + $0xa0] sm:$0xff] }
0x2159   :  { %4874 = vmatpush.msrb.mxu1 %v7350_v31  ;;  %v4846_v31 = vld [vmem:[%s11272_s10 + $0x30] sm:$0xff] }
0x215b   :  { %4875 = vmatpush.msrb.mxu1 %v7349_v5  ;;  %v4845_v5 = vld [vmem:[%s11272_s10 + $0x28] sm:$0xff] }
0x215d   :  { %4876 = vmatpush.msrb.mxu1 %v7348_v7  ;;  %v7337_v7 = vld [vmem:[%s11272_s10 + $0x88] sm:$0xff] }
0x215f   :  { %4877 = vmatpush.msrb.mxu1 %v7347_v9  ;;  %v7355_v9 = vld [vmem:[%s11272_s10 + $0x118] sm:$0xff] }
0x21d1   :  { %v4721_v21 = vpop.f32.mrf.mxu0 }
0x21d2   :  { %v4745_v43 = vsel %vm1227_vm6, %v4721_v21, 0.0 }
0x21d3   :  { %4746 = vadd.xlane.f32.xlu0 %v4745_v43  ;;  %v4742_v41 = vpop.f32.mrf.mxu1  ;;  %v4851_v43 = vld [vmem:[%s11272_s10 + $0x58] sm:$0xff] }
0x21d4   :  { %v4749_v54 = vsel %vm1227_vm6, %v4742_v41, 0.0  ;;  %v7346_v41 = vld [vmem:[%s11272_s10 + $0xd0] sm:$0xff] }
0x21d5   :  { %4878 = vmatpush.msrb.mxu1 %v7346_v41  ;;  %v4841_v41 = vld [vmem:[%s11272_s10 + $0x8] sm:$0xff] }
0x21db   :  { %4750 = vadd.xlane.f32.xlu0 %v4749_v54  ;;  %v7363_v54 = vld [vmem:[%s11272_s10 + $0x158] sm:$0xff] }
0x21dc   :  { %4934 = vmatpush.msra.mxu3 %v7363_v54  ;;  %v7353_v54 = vld [vmem:[%s11272_s10 + $0x108] sm:$0xff] }
0x2246   :  { %v4747_v59 = vpop.xlane.xlu0 %4746 }
0x2247   :  { %v4748_v55 = vmul.f32 0.001953125, %v4747_v59  ;;  %v4850_v59 = vld [vmem:[%s11272_s10 + $0x50] sm:$0xff] }
0x2249   :  { %7332 = vmatpush.msk.msrb.mxu2 %vm1227_vm6, %v4748_v55  ;;  %v4753_v14 = vmul.f32 %v4748_v55, %v4748_v55  ;;  %v7345_v55 = vld [vmem:[%s11272_s10 + $0xc8] sm:$0xff] }
0x224a   :  { %7333 = vmatmul.msk.f32.vlgmr.msrb.gmra.mxu2 %vm1214_vm7, %v10468_v1  ;;  %4879 = vmatpush.msrb.mxu1 %v7345_v55  ;;  %v7352_v55 = vld [vmem:[%s11272_s10 + $0x100] sm:$0xff] }
0x224b   :  { %4893 = vmatpush.msra.mxu2 %v4855_v48  ;;  %v7358_v48 = vld [vmem:[%s11272_s10 + $0x130] sm:$0xff] }
0x224d   :  { %4894 = vmatpush.msra.mxu2 %v4854_v0  ;;  %v7357_v0 = vld [vmem:[%s11272_s10 + $0x128] sm:$0xff] }
0x224e   :  { %v4751_v57 = vpop.xlane.xlu0 %4750 }
0x224f   :  { %v4752_v46 = vmul.f32 0.001953125, %v4751_v57  ;;  %4895 = vmatpush.msra.mxu2 %v4853_v36  ;;  %v7362_v57 = vld [vmem:[%s11272_s10 + $0x150] sm:$0xff]  ;;  %v4844_v36 = vld [vmem:[%s11272_s10 + $0x20] sm:$0xff] }
0x2250   :  { %4935 = vmatpush.msra.mxu3 %v7362_v57  ;;  %v4634_v57 = vpop.permute.xlu2 %4633 }
0x2251   :  { %v4754_v60 = vsub.f32 %v4752_v46, %v4753_v14  ;;  %4896 = vmatpush.msra.mxu2 %v4852_v63  ;;  %v4849_v14 = vld [vmem:[%s11272_s10 + $0x48] sm:$0xff]  ;;  %v7344_v46 = vld [vmem:[%s11272_s10 + $0xc0] sm:$0xff]  ;;  %v4843_v63 = vld [vmem:[%s11272_s10 + $0x18] sm:$0xff] }
0x2252   :  { %4880 = vmatpush.msrb.mxu1 %v7344_v46  ;;  %v4636_v46 = vsub.f32 %v10532_v17, %v4634_v57 }
0x2253   :  { %v4755_v28 = vadd.f32 1e-05, %v4754_v60  ;;  %4897 = vmatpush.msra.mxu2 %v4851_v43  ;;  %v7361_v60 = vld [vmem:[%s11272_s10 + $0x148] sm:$0xff]  ;;  %v7354_v43 = vld [vmem:[%s11272_s10 + $0x110] sm:$0xff] }
0x2254   :  { %4936 = vmatpush.msra.mxu3 %v7361_v60  ;;  %v7678_v60 = vld [vmem:[#allocation44] ss:$0 sm:$0xff] }
0x2255   :  { %7720 = vrsqrt.f32 %v4755_v28  ;;  %vm4762_vm0 = vweird.f32 %v4755_v28  ;;  %4898 = vmatpush.msra.mxu2 %v4850_v59  ;;  %v4840_v59 = vld [vmem:[%s11272_s10] sm:$0xff] }
0x2257   :  { %4899 = vmatpush.msra.mxu2 %v4849_v14 }
0x2258   :  { %v4640_v14 = vpop.permute.xlu2 %4639 }
0x225b   :  { %v7721_v6 = vpop.eup %7720 }
0x225c   :  { %v4757_v4 = vmul.f32 %v7721_v6, %v4755_v28  ;;  %vm4763_vm12 = vweird.f32 %v7721_v6  ;;  %v4848_v28 = vld [vmem:[%s11272_s10 + $0x40] sm:$0xff] }
0x225d   :  { %vm4764_vm1 = vmor %vm4762_vm0, %vm4763_vm12  ;;  %4900 = vmatpush.msra.mxu2 %v4848_v28  ;;  %v4642_v28 = vmul.f32 %v4640_v14, %v4636_v46 }
0x225e   :  { %v4758_v51 = vmul.f32 %v7721_v6, %v4757_v4  ;;  %v7360_v4 = vld [vmem:[%s11272_s10 + $0x140] sm:$0xff] }
0x225f   :  { %4937 = vmatpush.msra.mxu3 %v7360_v4  ;;  %v7680_v4 = vld [vmem:[#allocation46] ss:$0 sm:$0xff] }
0x2260   :  { %v4759_v62 = vmul.f32 0.5, %v4758_v51  ;;  %v7342_v51 = vld [vmem:[%s11272_s10 + $0xb0] sm:$0xff] }
0x2262   :  { %v4760_v10 = vsub.f32 1.5, %v4759_v62 }
0x2264   :  { %v4761_v24 = vmul.f32 %v7721_v6, %v4760_v10  ;;  %v7341_v10 = vld [vmem:[%s11272_s10 + $0xa8] sm:$0xff] }
0x2266   :  { %v4765_v11 = vsel %vm4764_vm1, %v7721_v6, %v4761_v24  ;;  %v7343_v6 = vld [vmem:[%s11272_s10 + $0xb8] sm:$0xff] }
0x2267   :  { %7334 = vmatpush.msk.msra.mxu0 %vm1227_vm6, %v4765_v11  ;;  %4881 = vmatpush.msrb.mxu1 %v7343_v6  ;;  %v4847_v24 = vld [vmem:[%s11272_s10 + $0x38] sm:$0xff] }
0x2268   :  { %7335 = vmatmul.msk.f32.vlgmr.msra.gmra.mxu0 %vm1214_vm7, %v10468_v1  ;;  %v7359_v11 = vld [vmem:[%s11272_s10 + $0x138] sm:$0xff]  ;;  %4901 = vmatpush.msra.mxu2 %v4847_v24  ;;  %v4647_v24 = vmul.f32 %v7678_v60, %v4642_v28 }
0x2269   :  { %4882 = vmatpush.msrb.mxu1 %v7342_v51  ;;  %4938 = vmatpush.msra.mxu3 %v7359_v11  ;;  %v7681_v11 = vld [vmem:[#allocation41] ss:$0 sm:$0xff] }
0x226a   :  { %4902 = vmatpush.msra.mxu2 %v4846_v31 }
0x226b   :  { %4883 = vmatpush.msrb.mxu1 %v7341_v10  ;;  %4939 = vmatpush.msra.mxu3 %v7358_v48  ;;  %v7679_v10 = vld [vmem:[#allocation40] ss:$0 sm:$0xff] }
0x226c   :  { %4903 = vmatpush.msra.mxu2 %v4845_v5  ;;  %v4652_v48 = vadd.f32 %v7679_v10, %v4647_v24 }
0x226d   :  { %4884 = vmatpush.msrb.mxu1 %v7340_v33  ;;  %4940 = vmatpush.msra.mxu3 %v7357_v0 }
0x226e   :  { %4904 = vmatpush.msra.mxu2 %v4844_v36 }
0x226f   :  { %4885 = vmatpush.msrb.mxu1 %v7339_v25  ;;  %4941 = vmatpush.msra.mxu3 %v7356_v52 }
0x2270   :  { %4905 = vmatpush.msra.mxu2 %v4843_v63 }
0x2271   :  { %4886 = vmatpush.msrb.mxu1 %v7338_v34  ;;  %4942 = vmatpush.msra.mxu3 %v7355_v9 }
0x2273   :  { %4887 = vmatpush.msrb.mxu1 %v7337_v7  ;;  %4943 = vmatpush.msra.mxu3 %v7354_v43 }
0x2275   :  { %4888 = vmatpush.msrb.mxu1 %v7336_v50  ;;  %4944 = vmatpush.msra.mxu3 %v7353_v54 }
0x2277   :  { %4945 = vmatpush.msra.mxu3 %v7352_v55 }
0x22cd   :  { %v4786_v21 = vpop.f32.mrf.mxu2 }
0x22ce   :  { %4814 = vperm.xlu0 %7653, %v4786_v21   ;;  %v4842_v21 = vld [vmem:[%s11272_s10 + $0x10] sm:$0xff] }
0x22cf   :  { %4906 = vmatpush.msra.mxu2 %v4842_v21 }
0x22d1   :  { %4907 = vmatpush.msra.mxu2 %v4841_v41 }
0x22d3   :  { %4908 = vmatpush.msra.mxu2 %v4840_v59 }
0x22e5   :  { %v4809_v62 = vpop.f32.mrf.mxu0 }
0x22e6   :  { %4820 = vperm.xlu2 %7655, %v4809_v62  }
0x2340   :  { %v4815_v6 = vpop.permute.xlu0 %4814  ;;  %v4821_v62 = vpop.permute.xlu2 %4820 }
0x2341   :  { %v4817_v51 = vsub.f32 %v10562_v8, %v4815_v6 }
0x2343   :  { %v4823_v33 = vmul.f32 %v4821_v62, %v4817_v51 }
0x2345   :  { %v4828_v31 = vmul.f32 %v7680_v4, %v4823_v33 }
0x2347   :  { %v4833_v25 = vadd.f32 %v7681_v11, %v4828_v31 }
0x2349   :  { %v4834_v5 = vadd.f32 %v4833_v25, %v4652_v48  ;;  %v5118_v48 = vld [vmem:[#allocation55 + $0xf8] sm:$0xff]  ;;  %v5117_v25 = vld [vmem:[#allocation55 + $0xf0] sm:$0xff] }
0x234a   :  { %5119 = vmatpush.msra.mxu1 %v5118_v48  ;;  %v5091_v48 = vld [vmem:[#allocation55 + $0x28] sm:$0xff] }
0x234b   :  { %v10629_v0 = vmax.f32 %v4834_v5, 0.0  ;;  %v5101_v5 = vld [vmem:[#allocation55 + $0x78] sm:$0xff] }
0x234c   :  { %5139 = vmatpush.msrb.mxu2 %v5101_v5  ;;  %5120 = vmatpush.msra.mxu1 %v5117_v25  ;;  %v5165_v25 = vld [vmem:[#allocation55 + $0x128] sm:$0xff]  ;;  %v5105_v5 = vld [vmem:[#allocation55 + $0x90] sm:$0xff] }
0x234d   :  { %4889 = vmatmul.f32.vlgmr.msrb.gmra.mxu1 %v10629_v0  ;;  %v4836_v17 = vrot.slane %v10629_v0, 7  ;;  %v4838_v34 = vrot.slane %v10629_v0, 1 }
0x234f   :  { %v4837_v36 = vmul.f32 %v4836_v17, %v10528_v53  ;;  %v4839_v8 = vmul.f32 %v4838_v34, %v10526_v37  ;;  %v5175_v17 = vld [vmem:[#allocation55 + $0x178] sm:$0xff]  ;;  %v5116_v34 = vld [vmem:[#allocation55 + $0xe8] sm:$0xff] }
0x2350   :  { %5176 = vmatpush.msrb.mxu3 %v5175_v17  ;;  %5121 = vmatpush.msra.mxu1 %v5116_v34  ;;  %v5090_v17 = vld [vmem:[#allocation55 + $0x20] sm:$0xff] }
0x2351   :  { %4909 = vmatmul.f32.vlgmr.msra.gmra.mxu2 %v4837_v36  ;;  %4946 = vmatmul.f32.vlgmr.msra.gmra.mxu3 %v4839_v8  ;;  %v5100_v36 = vld [vmem:[#allocation55 + $0x70] sm:$0xff]  ;;  %v5164_v34 = vld [vmem:[#allocation55 + $0x120] sm:$0xff] }
0x2352   :  { %v5174_v8 = vld [vmem:[#allocation55 + $0x170] sm:$0xff]  ;;  %5140 = vmatpush.msrb.mxu2 %v5100_v36  ;;  %v5104_v36 = vld [vmem:[#allocation55 + $0x88] sm:$0xff] }
0x2353   :  { %5177 = vmatpush.msrb.mxu3 %v5174_v8  ;;  %v5089_v8 = vld [vmem:[#allocation55 + $0x18] sm:$0xff] }
0x23ca   :  { %v4890_v52 = vpop.f32.mrf.mxu1 }
0x23d4   :  { %v4910_v7 = vpop.f32.mrf.mxu2  ;;  %v4947_v9 = vpop.f32.mrf.mxu3 }
0x23d5   :  { %v4911_v63 = vadd.f32 %v4910_v7, %v4890_v52  ;;  %v5099_v52 = vld [vmem:[#allocation55 + $0x68] sm:$0xff] }
0x23d6   :  { %v5173_v7 = vld [vmem:[#allocation55 + $0x168] sm:$0xff]  ;;  %5141 = vmatpush.msrb.mxu2 %v5099_v52  ;;  %v5163_v52 = vld [vmem:[#allocation55 + $0x118] sm:$0xff] }
0x23d7   :  { %v10636_v50 = vadd.f32 %v4947_v9, %v4911_v63  ;;  %v5115_v63 = vld [vmem:[#allocation55 + $0xe0] sm:$0xff]  ;;  %5178 = vmatpush.msrb.mxu3 %v5173_v7 }
0x23d8   :  { %v5172_v9 = vld [vmem:[#allocation55 + $0x160] sm:$0xff]  ;;  %5122 = vmatpush.msra.mxu1 %v5115_v63  ;;  %v5088_v63 = vld [vmem:[#allocation55 + $0x10] sm:$0xff] }
0x23d9   :  { %v4971_v21 = vmul.f32 %v10636_v50, %v10636_v50  ;;  %4966 = vmatpush.msrb.mxu0 %v10636_v50  ;;  %5179 = vmatpush.msrb.mxu3 %v5172_v9  ;;  %v5103_v7 = vld [vmem:[#allocation55 + $0x80] sm:$0xff]  ;;  %v5087_v9 = vld [vmem:[#allocation55 + $0x8] sm:$0xff] }
0x23da   :  { %7368 = vmatmul.msk.f32.vlgmr.msrb.gmra.mxu0 %vm4260_vm15, %v10453_v12 }
0x23db   :  { %4987 = vmatpush.msra.mxu0 %v4971_v21  ;;  %v5114_v21 = vld [vmem:[#allocation55 + $0xd8] sm:$0xff] }
0x23dc   :  { %5123 = vmatpush.msra.mxu1 %v5114_v21  ;;  %v5161_v21 = vld [vmem:[#allocation55 + $0x108] sm:$0xff] }
0x23e2   :  { %7369 = vmatmul.msk.f32.vlgmr.msra.gmra.mxu0 %vm4260_vm15, %v10453_v12 }
0x2457   :  { %v4968_v43 = vpop.f32.mrf.mxu0 }
0x2458   :  { %v4992_v41 = vsel %vm1227_vm6, %v4968_v43, 0.0  ;;  %v5097_v43 = vld [vmem:[#allocation55 + $0x58] sm:$0xff] }
0x2459   :  { %4993 = vadd.xlane.f32.xlu2 %v4992_v41  ;;  %v5171_v41 = vld [vmem:[#allocation55 + $0x158] sm:$0xff] }
0x245a   :  { %5180 = vmatpush.msrb.mxu3 %v5171_v41  ;;  %v5160_v41 = vld [vmem:[#allocation55 + $0x100] sm:$0xff] }
0x245f   :  { %v4989_v54 = vpop.f32.mrf.mxu0 }
0x2460   :  { %v4996_v59 = vsel %vm1227_vm6, %v4989_v54, 0.0  ;;  %v5113_v54 = vld [vmem:[#allocation55 + $0xd0] sm:$0xff] }
0x2461   :  { %4997 = vadd.xlane.f32.xlu1 %v4996_v59  ;;  %v5096_v59 = vld [vmem:[#allocation55 + $0x50] sm:$0xff]  ;;  %5124 = vmatpush.msra.mxu1 %v5113_v54 }
0x24cc   :  { %v4994_v55 = vpop.xlane.xlu2 %4993 }
0x24cd   :  { %v4995_v57 = vmul.f32 0.001953125, %v4994_v55  ;;  %v5170_v55 = vld [vmem:[#allocation55 + $0x150] sm:$0xff] }
0x24ce   :  { %5181 = vmatpush.msrb.mxu3 %v5170_v55  ;;  %v7682_v55 = vld [vmem:[#allocation52] ss:$0 sm:$0xff] }
0x24cf   :  { %7370 = vmatpush.msk.msrb.mxu0 %vm1227_vm6, %v4995_v57  ;;  %v5000_v46 = vmul.f32 %v4995_v57, %v4995_v57  ;;  %v5112_v57 = vld [vmem:[#allocation55 + $0xc8] sm:$0xff] }
0x24d0   :  { %7371 = vmatmul.msk.f32.vlgmr.msrb.gmra.mxu0 %vm1214_vm7, %v10468_v1  ;;  %5125 = vmatpush.msra.mxu1 %v5112_v57 }
0x24d4   :  { %v4998_v14 = vpop.xlane.xlu1 %4997 }
0x24d5   :  { %v4999_v60 = vmul.f32 0.001953125, %v4998_v14  ;;  %v5095_v14 = vld [vmem:[#allocation55 + $0x48] sm:$0xff] }
0x24d7   :  { %v5001_v28 = vsub.f32 %v4999_v60, %v5000_v46  ;;  %v5169_v46 = vld [vmem:[#allocation55 + $0x148] sm:$0xff]  ;;  %v5111_v60 = vld [vmem:[#allocation55 + $0xc0] sm:$0xff] }
0x24d8   :  { %5182 = vmatpush.msrb.mxu3 %v5169_v46  ;;  %5126 = vmatpush.msra.mxu1 %v5111_v60 }
0x24d9   :  { %v5002_v12 = vadd.f32 1e-05, %v5001_v28  ;;  %v5094_v28 = vld [vmem:[#allocation55 + $0x40] sm:$0xff] }
0x24db   :  { %7722 = vrsqrt.f32 %v5002_v12  ;;  %vm5009_vm10 = vweird.f32 %v5002_v12 }
0x24e1   :  { %v7723_v6 = vpop.eup %7722 }
0x24e2   :  { %v5004_v4 = vmul.f32 %v7723_v6, %v5002_v12  ;;  %vm5010_vm9 = vweird.f32 %v7723_v6  ;;  %v5168_v12 = vld [vmem:[#allocation55 + $0x140] sm:$0xff] }
0x24e3   :  { %vm5011_vm14 = vmor %vm5009_vm10, %vm5010_vm9  ;;  %5183 = vmatpush.msrb.mxu3 %v5168_v12 }
0x24e4   :  { %v5005_v51 = vmul.f32 %v7723_v6, %v5004_v4  ;;  %v5093_v4 = vld [vmem:[#allocation55 + $0x38] sm:$0xff] }
0x24e6   :  { %v5006_v62 = vmul.f32 0.5, %v5005_v51  ;;  %v5167_v51 = vld [vmem:[#allocation55 + $0x138] sm:$0xff] }
0x24e7   :  { %5184 = vmatpush.msrb.mxu3 %v5167_v51 }
0x24e8   :  { %v5007_v10 = vsub.f32 1.5, %v5006_v62  ;;  %v5109_v62 = vld [vmem:[#allocation55 + $0xb0] sm:$0xff] }
0x24ea   :  { %v5008_v24 = vmul.f32 %v7723_v6, %v5007_v10  ;;  %v5092_v10 = vld [vmem:[#allocation55 + $0x30] sm:$0xff] }
0x24ec   :  { %v5012_v11 = vsel %vm5011_vm14, %v7723_v6, %v5008_v24  ;;  %v5110_v6 = vld [vmem:[#allocation55 + $0xb8] sm:$0xff]  ;;  %v5166_v24 = vld [vmem:[#allocation55 + $0x130] sm:$0xff] }
0x24ed   :  { %7372 = vmatpush.msk.msra.mxu0 %vm1227_vm6, %v5012_v11  ;;  %5127 = vmatpush.msra.mxu1 %v5110_v6  ;;  %v5108_v11 = vld [vmem:[#allocation55 + $0xa8] sm:$0xff] }
0x24ee   :  { %7373 = vmatmul.msk.f32.vlgmr.msra.gmra.mxu0 %vm1214_vm7, %v10468_v1  ;;  %v5098_v1 = vld [vmem:[#allocation55 + $0x60] sm:$0xff]  ;;  %5185 = vmatpush.msrb.mxu3 %v5166_v24 }
0x24ef   :  { %5142 = vmatpush.msrb.mxu2 %v5098_v1  ;;  %5128 = vmatpush.msra.mxu1 %v5109_v62  ;;  %v5162_v1 = vld [vmem:[#allocation55 + $0x110] sm:$0xff] }
0x24f0   :  { %5186 = vmatpush.msrb.mxu3 %v5165_v25 }
0x24f1   :  { %5143 = vmatpush.msrb.mxu2 %v5097_v43  ;;  %5129 = vmatpush.msra.mxu1 %v5108_v11  ;;  %v5086_v43 = vld [vmem:[#allocation55] sm:$0xff] }
0x24f2   :  { %5187 = vmatpush.msrb.mxu3 %v5164_v34 }
0x24f3   :  { %5144 = vmatpush.msrb.mxu2 %v5096_v59 }
0x24f4   :  { %5188 = vmatpush.msrb.mxu3 %v5163_v52  ;;  %v10672_v52 = vld [vmem:[%s11268_s4] sm:$0xff] }
0x24f5   :  { %5145 = vmatpush.msrb.mxu2 %v5095_v14  ;;  %v7683_v14 = vld [vmem:[#allocation49] ss:$0 sm:$0xff] }
0x24f6   :  { %5189 = vmatpush.msrb.mxu3 %v5162_v1 }
0x24f7   :  { %5146 = vmatpush.msrb.mxu2 %v5094_v28 }
0x24f8   :  { %5190 = vmatpush.msrb.mxu3 %v5161_v21 }
0x24f9   :  { %5147 = vmatpush.msrb.mxu2 %v5093_v4 }
0x24fa   :  { %5191 = vmatpush.msrb.mxu3 %v5160_v41 }
0x24fb   :  { %5148 = vmatpush.msrb.mxu2 %v5092_v10 }
0x24fd   :  { %5149 = vmatpush.msrb.mxu2 %v5091_v48  ;;  %v10662_v48 = vld [vmem:[%s11266_s28] sm:$0x3] }
0x24ff   :  { %5150 = vmatpush.msrb.mxu2 %v5090_v17 }
0x2501   :  { %5151 = vmatpush.msrb.mxu2 %v5089_v8 }
0x2503   :  { %5152 = vmatpush.msrb.mxu2 %v5088_v63 }
0x2505   :  { %5153 = vmatpush.msrb.mxu2 %v5087_v9 }
0x2507   :  { %5154 = vmatpush.msrb.mxu2 %v5086_v43 }
0x254d   :  { %v5033_v33 = vpop.f32.mrf.mxu0 }
0x254e   :  { %5061 = vperm.xlu0 %7653, %v5033_v33   ;;  %v5107_v33 = vld [vmem:[#allocation55 + $0xa0] sm:$0xff] }
0x254f   :  { %5130 = vmatpush.msra.mxu1 %v5107_v33 }
0x256b   :  { %v5056_v31 = vpop.f32.mrf.mxu0 }
0x256c   :  { %5067 = vperm.xlu1 %7654, %v5056_v31   ;;  %v5106_v31 = vld [vmem:[#allocation55 + $0x98] sm:$0xff] }
0x256d   :  { %5131 = vmatpush.msra.mxu1 %v5106_v31 }
0x256f   :  { %5132 = vmatpush.msra.mxu1 %v5105_v5 }
0x2571   :  { %5133 = vmatpush.msra.mxu1 %v5104_v36 }
0x2573   :  { %5134 = vmatpush.msra.mxu1 %v5103_v7 }
0x25c0   :  { %v5062_v54 = vpop.permute.xlu0 %5061 }
0x25c1   :  { %v5064_v59 = vsub.f32 %v10636_v50, %v5062_v54 }
0x25de   :  { %v5068_v57 = vpop.permute.xlu1 %5067 }
0x25df   :  { %v5070_v46 = vmul.f32 %v5068_v57, %v5064_v59 }
0x25e1   :  { %v5075_v60 = vmul.f32 %v7682_v55, %v5070_v46 }
0x25e3   :  { %v5080_v28 = vadd.f32 %v7683_v14, %v5075_v60 }
0x25e5   :  { %v5081_v12 = vmax.f32 %v5080_v28, 0.0  ;;  %v7395_v28 = vld [vmem:[%s11273_s6 + $0xf8] sm:$0xff] }
0x25e6   :  { %5366 = vmatpush.msrb.mxu1 %v7395_v28  ;;  %v5338_v28 = vld [vmem:[%s11273_s6 + $0x28] sm:$0xff] }
0x25e7   :  { %v5082_v6 = vrot.slane %v5081_v12, 7  ;;  %v5084_v4 = vrot.slane %v5081_v12, 1  ;;  %5135 = vmatmul.f32.vlgmr.msra.gmra.mxu1 %v5081_v12  ;;  %v7394_v12 = vld [vmem:[%s11273_s6 + $0xf0] sm:$0xff] }
0x25e8   :  { %5367 = vmatpush.msrb.mxu1 %v7394_v12  ;;  %v7401_v12 = vld [vmem:[%s11273_s6 + $0x128] sm:$0xff] }
0x25e9   :  { %v5083_v51 = vmul.f32 %v5082_v6, %v10528_v53  ;;  %v5085_v62 = vmul.f32 %v5084_v4, %v10526_v37  ;;  %v5348_v6 = vld [vmem:[%s11273_s6 + $0x78] sm:$0xff] }
0x25ea   :  { %v7411_v4 = vld [vmem:[%s11273_s6 + $0x178] sm:$0xff]  ;;  %5386 = vmatpush.msra.mxu2 %v5348_v6  ;;  %v7384_v6 = vld [vmem:[%s11273_s6 + $0xa0] sm:$0xff] }
0x25eb   :  { %5155 = vmatmul.f32.vlgmr.msrb.gmra.mxu2 %v5083_v51  ;;  %5192 = vmatmul.f32.vlgmr.msrb.gmra.mxu3 %v5085_v62  ;;  %v7393_v51 = vld [vmem:[%s11273_s6 + $0xe8] sm:$0xff]  ;;  %v5347_v62 = vld [vmem:[%s11273_s6 + $0x70] sm:$0xff] }
0x25ec   :  { %5423 = vmatpush.msra.mxu3 %v7411_v4  ;;  %5387 = vmatpush.msra.mxu2 %v5347_v62  ;;  %v5337_v4 = vld [vmem:[%s11273_s6 + $0x20] sm:$0xff]  ;;  %v7383_v62 = vld [vmem:[%s11273_s6 + $0x98] sm:$0xff] }
0x25ed   :  { %5368 = vmatpush.msrb.mxu1 %v7393_v51  ;;  %v7400_v51 = vld [vmem:[%s11273_s6 + $0x120] sm:$0xff] }
0x2664   :  { %v5136_v10 = vpop.f32.mrf.mxu1 }
0x266e   :  { %v5156_v24 = vpop.f32.mrf.mxu2  ;;  %v5193_v11 = vpop.f32.mrf.mxu3 }
0x266f   :  { %v5157_v50 = vadd.f32 %v5156_v24, %v5136_v10  ;;  %v7410_v10 = vld [vmem:[%s11273_s6 + $0x170] sm:$0xff]  ;;  %v5346_v24 = vld [vmem:[%s11273_s6 + $0x68] sm:$0xff] }
0x2670   :  { %5424 = vmatpush.msra.mxu3 %v7410_v10  ;;  %5388 = vmatpush.msra.mxu2 %v5346_v24  ;;  %v7382_v10 = vld [vmem:[%s11273_s6 + $0x90] sm:$0xff]  ;;  %v7381_v24 = vld [vmem:[%s11273_s6 + $0x88] sm:$0xff] }
0x2671   :  { %v10656_v33 = vadd.f32 %v5193_v11, %v5157_v50  ;;  %v7409_v50 = vld [vmem:[%s11273_s6 + $0x168] sm:$0xff]  ;;  %v7392_v11 = vld [vmem:[%s11273_s6 + $0xe0] sm:$0xff] }
0x2672   :  { %5425 = vmatpush.msra.mxu3 %v7409_v50  ;;  %5369 = vmatpush.msrb.mxu1 %v7392_v11  ;;  %v5336_v50 = vld [vmem:[%s11273_s6 + $0x18] sm:$0xff] }
0x2673   :  { %v5217_v31 = vmul.f32 %v10656_v33, %v10656_v33  ;;  %5212 = vmatpush.msrb.mxu0 %v10656_v33  ;;  %v7399_v11 = vld [vmem:[%s11273_s6 + $0x118] sm:$0xff] }
0x2674   :  { %7374 = vmatmul.msk.f32.vlgmr.msrb.gmra.mxu0 %vm4260_vm15, %v10662_v48 }
0x2675   :  { %5233 = vmatpush.msra.mxu0 %v5217_v31  ;;  %v5345_v31 = vld [vmem:[%s11273_s6 + $0x60] sm:$0xff] }
0x2676   :  { %5389 = vmatpush.msra.mxu2 %v5345_v31  ;;  %v7380_v31 = vld [vmem:[%s11273_s6 + $0x80] sm:$0xff] }
0x267c   :  { %7375 = vmatmul.msk.f32.vlgmr.msra.gmra.mxu0 %vm4260_vm15, %v10662_v48 }
0x26f1   :  { %v5214_v25 = vpop.f32.mrf.mxu0 }
0x26f2   :  { %v5238_v5 = vsel %vm1227_vm6, %v5214_v25, 0.0  ;;  %v7408_v25 = vld [vmem:[%s11273_s6 + $0x160] sm:$0xff] }
0x26f3   :  { %5239 = vadd.xlane.f32.xlu0 %v5238_v5  ;;  %v7391_v5 = vld [vmem:[%s11273_s6 + $0xd8] sm:$0xff]  ;;  %5426 = vmatpush.msra.mxu3 %v7408_v25  ;;  %v5335_v25 = vld [vmem:[%s11273_s6 + $0x10] sm:$0xff] }
0x26f4   :  { %5370 = vmatpush.msrb.mxu1 %v7391_v5  ;;  %v7398_v5 = vld [vmem:[%s11273_s6 + $0x110] sm:$0xff] }
0x26f9   :  { %v5235_v17 = vpop.f32.mrf.mxu0 }
0x26fa   :  { %v5242_v34 = vsel %vm1227_vm6, %v5235_v17, 0.0  ;;  %v5344_v17 = vld [vmem:[%s11273_s6 + $0x58] sm:$0xff] }
0x26fb   :  { %5243 = vadd.xlane.f32.xlu1 %v5242_v34  ;;  %v7407_v34 = vld [vmem:[%s11273_s6 + $0x158] sm:$0xff]  ;;  %5390 = vmatpush.msra.mxu2 %v5344_v17 }
0x26fc   :  { %5427 = vmatpush.msra.mxu3 %v7407_v34  ;;  %v7425_v17 = vld [vmem:[%s11274_s27 + $0x78] sm:$0xff]  ;;  %v5334_v34 = vld [vmem:[%s11273_s6 + $0x8] sm:$0xff] }
0x2766   :  { %v5240_v36 = vpop.xlane.xlu0 %5239 }
0x2767   :  { %v5241_v8 = vmul.f32 0.001953125, %v5240_v36  ;;  %v7390_v36 = vld [vmem:[%s11273_s6 + $0xd0] sm:$0xff] }
0x2768   :  { %5371 = vmatpush.msrb.mxu1 %v7390_v36  ;;  %v7397_v36 = vld [vmem:[%s11273_s6 + $0x108] sm:$0xff] }
0x2769   :  { %7376 = vmatpush.msk.msrb.mxu0 %vm1227_vm6, %v5241_v8  ;;  %v5246_v63 = vmul.f32 %v5241_v8, %v5241_v8  ;;  %v5343_v8 = vld [vmem:[%s11273_s6 + $0x50] sm:$0xff] }
0x276a   :  { %7377 = vmatmul.msk.f32.vlgmr.msrb.gmra.mxu0 %vm1214_vm7, %v10672_v52  ;;  %5391 = vmatpush.msra.mxu2 %v5343_v8  ;;  %v7424_v8 = vld [vmem:[%s11274_s27 + $0x70] sm:$0xff] }
0x276e   :  { %v5244_v7 = vpop.xlane.xlu1 %5243 }
0x276f   :  { %v5245_v1 = vmul.f32 0.001953125, %v5244_v7  ;;  %v7406_v7 = vld [vmem:[%s11273_s6 + $0x150] sm:$0xff] }
0x2770   :  { %5428 = vmatpush.msra.mxu3 %v7406_v7  ;;  %v5333_v7 = vld [vmem:[%s11273_s6] sm:$0xff] }
0x2771   :  { %v5247_v9 = vsub.f32 %v5245_v1, %v5246_v63  ;;  %v7389_v63 = vld [vmem:[%s11273_s6 + $0xc8] sm:$0xff] }
0x2772   :  { %v5342_v1 = vld [vmem:[%s11273_s6 + $0x48] sm:$0xff]  ;;  %5372 = vmatpush.msrb.mxu1 %v7389_v63  ;;  %v7396_v63 = vld [vmem:[%s11273_s6 + $0x100] sm:$0xff] }
0x2773   :  { %v5248_v21 = vadd.f32 1e-05, %v5247_v9  ;;  %v7405_v9 = vld [vmem:[%s11273_s6 + $0x148] sm:$0xff]  ;;  %5392 = vmatpush.msra.mxu2 %v5342_v1 }
0x2774   :  { %5429 = vmatpush.msra.mxu3 %v7405_v9  ;;  %v7423_v1 = vld [vmem:[%s11274_s27 + $0x68] sm:$0xff]  ;;  %v5581_v9 = vld [vmem:[%s11274_s27 + $0x38] sm:$0xff] }
0x2775   :  { %7724 = vrsqrt.f32 %v5248_v21  ;;  %vm5255_vm12 = vweird.f32 %v5248_v21 }
0x277b   :  { %v7725_v43 = vpop.eup %7724 }
0x277c   :  { %v5250_v41 = vmul.f32 %v7725_v43, %v5248_v21  ;;  %vm5256_vm11 = vweird.f32 %v7725_v43  ;;  %v7388_v21 = vld [vmem:[%s11273_s6 + $0xc0] sm:$0xff] }
0x277d   :  { %vm5257_vm0 = vmor %vm5255_vm12, %vm5256_vm11  ;;  %5373 = vmatpush.msrb.mxu1 %v7388_v21  ;;  %v7437_v21 = vld [vmem:[%s11274_s27 + $0xb8] sm:$0xff] }
0x277e   :  { %v5251_v54 = vmul.f32 %v7725_v43, %v5250_v41  ;;  %v7404_v41 = vld [vmem:[%s11273_s6 + $0x140] sm:$0xff] }
0x277f   :  { %5430 = vmatpush.msra.mxu3 %v7404_v41  ;;  %v5580_v41 = vld [vmem:[%s11274_s27 + $0x30] sm:$0xff] }
0x2780   :  { %v5252_v59 = vmul.f32 0.5, %v5251_v54  ;;  %v7387_v54 = vld [vmem:[%s11273_s6 + $0xb8] sm:$0xff] }
0x2781   :  { %5374 = vmatpush.msrb.mxu1 %v7387_v54  ;;  %v7436_v54 = vld [vmem:[%s11274_s27 + $0xb0] sm:$0xff] }
0x2782   :  { %v5253_v55 = vsub.f32 1.5, %v5252_v59  ;;  %v5340_v59 = vld [vmem:[%s11273_s6 + $0x38] sm:$0xff] }
0x2784   :  { %v5254_v57 = vmul.f32 %v7725_v43, %v5253_v55  ;;  %v7403_v55 = vld [vmem:[%s11273_s6 + $0x138] sm:$0xff] }
0x2785   :  { %5431 = vmatpush.msra.mxu3 %v7403_v55  ;;  %v5579_v55 = vld [vmem:[%s11274_s27 + $0x28] sm:$0xff] }
0x2786   :  { %v5258_v14 = vsel %vm5257_vm0, %v7725_v43, %v5254_v57  ;;  %v5341_v43 = vld [vmem:[%s11273_s6 + $0x40] sm:$0xff]  ;;  %v7386_v57 = vld [vmem:[%s11273_s6 + $0xb0] sm:$0xff] }
0x2787   :  { %7378 = vmatpush.msk.msra.mxu0 %vm1227_vm6, %v5258_v14  ;;  %5393 = vmatpush.msra.mxu2 %v5341_v43  ;;  %v5339_v14 = vld [vmem:[%s11273_s6 + $0x30] sm:$0xff]  ;;  %v7422_v43 = vld [vmem:[%s11274_s27 + $0x60] sm:$0xff] }
0x2788   :  { %7379 = vmatmul.msk.f32.vlgmr.msra.gmra.mxu0 %vm1214_vm7, %v10672_v52  ;;  %5375 = vmatpush.msrb.mxu1 %v7386_v57  ;;  %v7435_v57 = vld [vmem:[%s11274_s27 + $0xa8] sm:$0xff] }
0x2789   :  { %5394 = vmatpush.msra.mxu2 %v5340_v59  ;;  %v7421_v59 = vld [vmem:[%s11274_s27 + $0x58] sm:$0xff] }
0x278b   :  { %5395 = vmatpush.msra.mxu2 %v5339_v14  ;;  %v7420_v14 = vld [vmem:[%s11274_s27 + $0x50] sm:$0xff] }
0x278d   :  { %5396 = vmatpush.msra.mxu2 %v5338_v28  ;;  %v7419_v28 = vld [vmem:[%s11274_s27 + $0x48] sm:$0xff] }
0x278f   :  { %5397 = vmatpush.msra.mxu2 %v5337_v4  ;;  %v7418_v4 = vld [vmem:[%s11274_s27 + $0x40] sm:$0xff] }
0x2791   :  { %5398 = vmatpush.msra.mxu2 %v5336_v50  ;;  %v5574_v50 = vld [vmem:[%s11274_s27] sm:$0xff] }
0x2793   :  { %5399 = vmatpush.msra.mxu2 %v5335_v25 }
0x2795   :  { %5400 = vmatpush.msra.mxu2 %v5334_v34  ;;  %v7685_v34 = vld [vmem:[#allocation50] ss:$0 sm:$0xff] }
0x2797   :  { %5401 = vmatpush.msra.mxu2 %v5333_v7 }
0x2799   :  { %5622 = vmatpush.msrb.mxu2 %v5581_v9 }
0x279b   :  { %5623 = vmatpush.msrb.mxu2 %v5580_v41 }
0x279d   :  { %5624 = vmatpush.msrb.mxu2 %v5579_v55  ;;  %v5856_v55 = vld [vmem:[#allocation59 + $0x20] sm:$0xff] }
0x27e7   :  { %v5279_v46 = vpop.f32.mrf.mxu0 }
0x27e8   :  { %5307 = vperm.xlu2 %7655, %v5279_v46   ;;  %v7402_v46 = vld [vmem:[%s11273_s6 + $0x130] sm:$0xff] }
0x27e9   :  { %5432 = vmatpush.msra.mxu3 %v7402_v46  ;;  %v5578_v46 = vld [vmem:[%s11274_s27 + $0x20] sm:$0xff] }
0x27ea   :  { %5625 = vmatpush.msrb.mxu2 %v5578_v46 }
0x27eb   :  { %5433 = vmatpush.msra.mxu3 %v7401_v12  ;;  %v5577_v12 = vld [vmem:[%s11274_s27 + $0x18] sm:$0xff] }
0x27ec   :  { %5626 = vmatpush.msrb.mxu2 %v5577_v12 }
0x27ed   :  { %5434 = vmatpush.msra.mxu3 %v7400_v51  ;;  %v5576_v51 = vld [vmem:[%s11274_s27 + $0x10] sm:$0xff] }
0x27ee   :  { %5627 = vmatpush.msrb.mxu2 %v5576_v51 }
0x27ef   :  { %5435 = vmatpush.msra.mxu3 %v7399_v11  ;;  %v7430_v11 = vld [vmem:[%s11274_s27 + $0x80] sm:$0xff] }
0x27f1   :  { %5436 = vmatpush.msra.mxu3 %v7398_v5  ;;  %v7684_v5 = vld [vmem:[#allocation53] ss:$0 sm:$0xff] }
0x27f3   :  { %5437 = vmatpush.msra.mxu3 %v7397_v36 }
0x27f5   :  { %5438 = vmatpush.msra.mxu3 %v7396_v63 }
0x27f7   :  { %5654 = vmatpush.msrb.mxu3 %v7437_v21 }
0x27f9   :  { %5655 = vmatpush.msrb.mxu3 %v7436_v54  ;;  %v5859_v54 = vld [vmem:[#allocation59 + $0x38] sm:$0xff] }
0x27fb   :  { %5656 = vmatpush.msrb.mxu3 %v7435_v57 }
0x2805   :  { %v5302_v60 = vpop.f32.mrf.mxu0 }
0x2806   :  { %5313 = vperm.xlu0 %7653, %v5302_v60   ;;  %v7385_v60 = vld [vmem:[%s11273_s6 + $0xa8] sm:$0xff] }
0x2807   :  { %5376 = vmatpush.msrb.mxu1 %v7385_v60  ;;  %v7434_v60 = vld [vmem:[%s11274_s27 + $0xa0] sm:$0xff] }
0x2808   :  { %5657 = vmatpush.msrb.mxu3 %v7434_v60 }
0x2809   :  { %5377 = vmatpush.msrb.mxu1 %v7384_v6  ;;  %v7433_v6 = vld [vmem:[%s11274_s27 + $0x98] sm:$0xff] }
0x280a   :  { %5658 = vmatpush.msrb.mxu3 %v7433_v6 }
0x280b   :  { %5378 = vmatpush.msrb.mxu1 %v7383_v62  ;;  %v7432_v62 = vld [vmem:[%s11274_s27 + $0x90] sm:$0xff] }
0x280c   :  { %5659 = vmatpush.msrb.mxu3 %v7432_v62 }
0x280d   :  { %5379 = vmatpush.msrb.mxu1 %v7382_v10  ;;  %v5575_v10 = vld [vmem:[%s11274_s27 + $0x8] sm:$0xff] }
0x280e   :  { %5628 = vmatpush.msrb.mxu2 %v5575_v10 }
0x280f   :  { %5380 = vmatpush.msrb.mxu1 %v7381_v24  ;;  %v7431_v24 = vld [vmem:[%s11274_s27 + $0x88] sm:$0xff] }
0x2810   :  { %5660 = vmatpush.msrb.mxu3 %v7431_v24  ;;  %5629 = vmatpush.msrb.mxu2 %v5574_v50 }
0x2811   :  { %5381 = vmatpush.msrb.mxu1 %v7380_v31 }
0x2812   :  { %5661 = vmatpush.msrb.mxu3 %v7430_v11 }
0x2813   :  { %5599 = vmatpush.msra.mxu1 %v7425_v17 }
0x2815   :  { %5600 = vmatpush.msra.mxu1 %v7424_v8 }
0x2817   :  { %5601 = vmatpush.msra.mxu1 %v7423_v1 }
0x2819   :  { %5602 = vmatpush.msra.mxu1 %v7422_v43 }
0x281b   :  { %5603 = vmatpush.msra.mxu1 %v7421_v59  ;;  %v5857_v59 = vld [vmem:[#allocation59 + $0x28] sm:$0xff] }
0x281d   :  { %5604 = vmatpush.msra.mxu1 %v7420_v14 }
0x281f   :  { %5605 = vmatpush.msra.mxu1 %v7419_v28 }
0x2821   :  { %5606 = vmatpush.msra.mxu1 %v7418_v4 }
0x2842   :  { %v5308_v31 = vpop.permute.xlu2 %5307 }
0x2843   :  { %v5310_v25 = vsub.f32 %v10656_v33, %v5308_v31  ;;  %v5858_v33 = vld [vmem:[#allocation59 + $0x30] sm:$0xff] }
0x2878   :  { %v5314_v17 = vpop.permute.xlu0 %5313 }
0x2879   :  { %v5316_v36 = vmul.f32 %v5314_v17, %v5310_v25 }
0x287b   :  { %v5321_v8 = vmul.f32 %v7684_v5, %v5316_v36 }
0x287d   :  { %v5326_v7 = vadd.f32 %v7685_v34, %v5321_v8 }
0x287f   :  { %v5327_v63 = vadd.f32 %v5326_v7, %v10629_v0 }
0x2881   :  { %v5328_v1 = vmax.f32 %v5327_v63, 0.0  ;;  %v7746_v63 = vld [vmem:[%s11260_s5] sm:$0x3] }
0x2883   :  { %v5329_v9 = vrot.slane %v5328_v1, 7  ;;  %v5331_v21 = vrot.slane %v5328_v1, 1  ;;  %5382 = vmatmul.f32.vlgmr.msrb.gmra.mxu1 %v5328_v1 }
0x2885   :  { %v5330_v43 = vmul.f32 %v5329_v9, %v10528_v53  ;;  %v5332_v41 = vmul.f32 %v5331_v21, %v10526_v37 }
0x2887   :  { %5402 = vmatmul.f32.vlgmr.msra.gmra.mxu2 %v5330_v43  ;;  %5439 = vmatmul.f32.vlgmr.msra.gmra.mxu3 %v5332_v41 }
0x2888   :  { %5872 = vmatpush.msra.mxu3 %v5859_v54 }
0x288a   :  { %5873 = vmatpush.msra.mxu3 %v5858_v33 }
0x288b   :  { %7426 = vmatmul.msk.f32.vlgmr.msra.gmra.mxu1 %vm3087_vm8, %v10406_v23 }
0x288c   :  { %5874 = vmatpush.msra.mxu3 %v5857_v59  ;;  %v5854_v59 = vld [vmem:[#allocation59 + $0x18] sm:$0xff] }
0x288e   :  { %5875 = vmatpush.msra.mxu3 %v5856_v55  ;;  %v7747_v55 = vld [vmem:[%s11263_s18] sm:$0xff] }
0x288f   :  { %7428 = vmatmul.msk.f32.vlgmr.msrb.gmra.mxu2 %vm3087_vm8, %v10424_v47  ;;  %7438 = vmatmul.msk.f32.vlgmr.msrb.gmra.mxu3 %vm3087_vm8, %v10427_v13 }
0x2893   :  { %7427 = vmatmul.msk.f32.gmra.mxu1 %vm3087_vm8, %v10411_v3 }
0x2897   :  { %7429 = vmatmul.msk.f32.gmra.mxu2 %vm3087_vm8, %v10438_v42  ;;  %7439 = vmatmul.msk.f32.gmra.mxu3 %vm3087_vm8, %v10441_v38 }
0x289f   :  { %7450 = vmatmul.msk.f32.vlgmr.msra.gmra.mxu3 %vm1144_vm4, %v10052_v61 }
0x28a7   :  { %7451 = vmatmul.msk.f32.gmra.mxu3 %vm1144_vm4, %v10057_v29 }
0x28af   :  { %7452 = vmatmul.msk.f32.gmra.mxu3 %vm1144_vm4, %v10086_v26 }
0x28b7   :  { %7453 = vmatmul.msk.f32.gmra.mxu3 %vm1144_vm4, %v10073_v19 }
0x2900   :  { %v5383_v23 = vpop.f32.mrf.mxu1 }
0x2908   :  { %v5608_v28 = vpop.f32.mrf.mxu1 }
0x290a   :  { %v5403_v3 = vpop.f32.mrf.mxu2  ;;  %v5440_v13 = vpop.f32.mrf.mxu3 }
0x290b   :  { %v5404_v47 = vadd.f32 %v5403_v3, %v5383_v23  ;;  %v5853_v23 = vld [vmem:[#allocation59 + $0x10] sm:$0xff]  ;;  %v5852_v3 = vld [vmem:[#allocation59 + $0x8] sm:$0xff] }
0x290d   :  { %v10775_v42 = vadd.f32 %v5440_v13, %v5404_v47  ;;  %v5851_v13 = vld [vmem:[#allocation59] sm:$0xff] }
0x290f   :  { %v5464_v38 = vmul.f32 %v10775_v42, %v10775_v42  ;;  %5459 = vmatpush.msrb.mxu0 %v10775_v42 }
0x2910   :  { %7412 = vmatmul.msk.f32.vlgmr.msrb.gmra.mxu0 %vm4260_vm15, %v10662_v48  ;;  %v5611_v24 = vpop.f32.mrf.mxu1 }
0x2911   :  { %5480 = vmatpush.msra.mxu0 %v5464_v38 }
0x2912   :  { %v5631_v60 = vpop.f32.mrf.mxu2  ;;  %v5663_v6 = vpop.f32.mrf.mxu3 }
0x2913   :  { %v5632_v31 = vadd.f32 %v5631_v60, %v5608_v28  ;;  %v5922_v28 = vld [vmem:[#allocation59 + $0x58] sm:$0xff] }
0x2915   :  { %v10792_v36 = vadd.f32 %v5663_v6, %v5632_v31  ;;  %v927_v31 = vld [vmem:[%s11277_s9] sm:$0xff] }
0x2917   :  { %v5691_v7 = vmul.f32 %v10792_v36, %v10792_v36 }
0x2918   :  { %7413 = vmatmul.msk.f32.vlgmr.msra.gmra.mxu0 %vm4260_vm15, %v10662_v48 }
0x291a   :  { %v5634_v62 = vpop.f32.mrf.mxu2  ;;  %v5666_v5 = vpop.f32.mrf.mxu3 }
0x291b   :  { %v5635_v50 = vadd.f32 %v5634_v62, %v5611_v24  ;;  %v5919_v24 = vld [vmem:[#allocation59 + $0x40] sm:$0xff] }
0x291d   :  { %v10789_v17 = vadd.f32 %v5666_v5, %v5635_v50 }
0x291f   :  { %v5692_v8 = vmul.f32 %v10789_v17, %v10789_v17 }
0x298d   :  { %v5461_v61 = vpop.f32.mrf.mxu0 }
0x298e   :  { %v5485_v29 = vsel %vm1192_vm5, %v5461_v61, 0.0 }
0x298f   :  { %5486 = vadd.xlane.f32.xlu2 %v5485_v29 }
0x2995   :  { %v5482_v19 = vpop.f32.mrf.mxu0 }
0x2996   :  { %v5489_v26 = vsel %vm1192_vm5, %v5482_v19, 0.0  ;;  %v7748_v19 = vld [vmem:[%s11263_s18 + $0x8] sm:$0xff] }
0x2997   :  { %5490 = vadd.xlane.f32.xlu0 %v5489_v26 }
0x2a02   :  { %v5487_v37 = vpop.xlane.xlu2 %5486 }
0x2a03   :  { %v5488_v53 = vmul.f32 0.0078125, %v5487_v37 }
0x2a05   :  { %7414 = vmatpush.msk.msrb.mxu0 %vm1227_vm6, %v5488_v53  ;;  %v5493_v57 = vmul.f32 %v5488_v53, %v5488_v53 }
0x2a06   :  { %7415 = vmatmul.msk.f32.vlgmr.msrb.gmra.mxu0 %vm1214_vm7, %v10672_v52 }
0x2a0a   :  { %v5491_v0 = vpop.xlane.xlu0 %5490 }
0x2a0b   :  { %v5492_v14 = vmul.f32 0.0078125, %v5491_v0 }
0x2a0d   :  { %v5494_v46 = vsub.f32 %v5492_v14, %v5493_v57 }
0x2a0f   :  { %v5495_v48 = vadd.f32 1e-05, %v5494_v46 }
0x2a11   :  { %7726 = vrsqrt.f32 %v5495_v48  ;;  %vm5502_vm1 = vweird.f32 %v5495_v48 }
0x2a17   :  { %v7727_v12 = vpop.eup %7726 }
0x2a18   :  { %v5497_v4 = vmul.f32 %v7727_v12, %v5495_v48  ;;  %vm5503_vm8 = vweird.f32 %v7727_v12 }
0x2a19   :  { %vm5504_vm9 = vmor %vm5502_vm1, %vm5503_vm8 }
0x2a1a   :  { %v5498_v51 = vmul.f32 %v7727_v12, %v5497_v4  ;;  %v5921_v4 = vld [vmem:[#allocation59 + $0x50] sm:$0xff] }
0x2a1c   :  { %v5499_v10 = vmul.f32 0.5, %v5498_v51  ;;  %v7687_v51 = vld [vmem:[%s11276_s14] ss:$0 sm:$0xff] }
0x2a1e   :  { %v5500_v11 = vsub.f32 1.5, %v5499_v10 }
0x2a20   :  { %v5501_v25 = vmul.f32 %v7727_v12, %v5500_v11 }
0x2a22   :  { %v5505_v34 = vsel %vm5504_vm9, %v7727_v12, %v5501_v25  ;;  %v7686_v12 = vld [vmem:[%s11275_s17] ss:$0 sm:$0xff]  ;;  %v5877_v25 = vpop.f32.mrf.mxu3 }
0x2a23   :  { %7416 = vmatpush.msk.msra.mxu0 %vm1227_vm6, %v5505_v34 }
0x2a24   :  { %7417 = vmatmul.msk.f32.vlgmr.msra.gmra.mxu0 %vm1214_vm7, %v10672_v52 }
0x2a25   :  { %5685 = vmatpush.msrb.mxu0 %v10789_v17 }
0x2a27   :  { %5686 = vmatpush.msrb.mxu0 %v10792_v36 }
0x2a29   :  { %5707 = vmatpush.msra.mxu0 %v5692_v8 }
0x2a2b   :  { %5708 = vmatpush.msra.mxu0 %v5691_v7 }
0x2a2c   :  { %7440 = vmatmul.msk.f32.vlgmr.msrb.gmra.mxu0 %vm2874_vm13, %v7746_v63 }
0x2a34   :  { %7441 = vmatmul.msk.f32.vlgmr.msra.gmra.mxu0 %vm2874_vm13, %v7746_v63 }
0x2a83   :  { %v5526_v1 = vpop.f32.mrf.mxu0 }
0x2aa1   :  { %v5549_v52 = vpop.f32.mrf.mxu0 }
0x2aa2   :  { %5560 = vperm.xlu2 %7655, %v5549_v52  }
0x2aa9   :  { %v5688_v9 = vpop.f32.mrf.mxu0 }
0x2aaa   :  { %v5713_v21 = vsel %vm1192_vm5, %v5688_v9, 0.0 }
0x2aab   :  { %5714 = vadd.xlane.f32.xlu1 %v5713_v21 }
0x2ab1   :  { %v5710_v43 = vpop.f32.mrf.mxu0 }
0x2ab2   :  { %v5717_v41 = vsel %vm1192_vm5, %v5710_v43, 0.0 }
0x2ab3   :  { %5718 = vadd.xlane.f32.xlu1 %v5717_v41 }
0x2acc   :  { %5554 = vperm.xlu1 %7654, %v5526_v1  }
0x2b1e   :  { %v5715_v54 = vpop.xlane.xlu1 %5714 }
0x2b1f   :  { %v5716_v33 = vmul.f32 0.00390625, %v5715_v54 }
0x2b21   :  { %7442 = vmatpush.msk.msrb.mxu0 %vm1227_vm6, %v5716_v33  ;;  %v5721_v38 = vmul.f32 %v5716_v33, %v5716_v33 }
0x2b22   :  { %7443 = vmatmul.msk.f32.vlgmr.msrb.gmra.mxu0 %vm1214_vm7, %v7747_v55 }
0x2b23   :  { %5901 = vmatpush.msra.mxu0 %v5854_v59 }
0x2b25   :  { %5902 = vmatpush.msra.mxu0 %v5853_v23 }
0x2b26   :  { %v5719_v47 = vpop.xlane.xlu1 %5718 }
0x2b27   :  { %v5720_v61 = vmul.f32 0.00390625, %v5719_v47  ;;  %5903 = vmatpush.msra.mxu0 %v5852_v3  ;;  %v10853_v47 = vld [vmem:[%s11251_s11] sm:$0x3]  ;;  %s11280_s11 = sld [smem:[#allocation148_spill]] }
0x2b29   :  { %v5722_v29 = vsub.f32 %v5720_v61, %v5721_v38  ;;  %5904 = vmatpush.msra.mxu0 %v5851_v13 }
0x2b2a   :  { %7444 = vmatmul.msk.f32.gmra.mxu0 %vm1214_vm7, %v7748_v19 }
0x2b2b   :  { %v5723_v26 = vadd.f32 1e-05, %v5722_v29 }
0x2b2d   :  { %7728 = vrsqrt.f32 %v5723_v26  ;;  %vm5730_vm14 = vweird.f32 %v5723_v26 }
0x2b32   :  { %7454 = vmatmul.msk.f32.vlgmr.msra.gmra.mxu0 %vm1144_vm4, %v10080_v58  ;;  %v5561_v58 = vpop.permute.xlu2 %5560 }
0x2b33   :  { %v7729_v37 = vpop.eup %7728 }
0x2b34   :  { %v5725_v53 = vmul.f32 %v7729_v37, %v5723_v26  ;;  %vm5731_vm10 = vweird.f32 %v7729_v37 }
0x2b35   :  { %vm5732_vm11 = vmor %vm5730_vm14, %vm5731_vm10 }
0x2b36   :  { %v5726_v0 = vmul.f32 %v7729_v37, %v5725_v53 }
0x2b38   :  { %v5727_v57 = vmul.f32 0.5, %v5726_v0 }
0x2b3a   :  { %v5728_v14 = vsub.f32 1.5, %v5727_v57  ;;  %7455 = vmatmul.msk.f32.gmra.mxu0 %vm1144_vm4, %v10096_v16  ;;  %v5920_v16 = vld [vmem:[#allocation59 + $0x48] sm:$0xff] }
0x2b3c   :  { %v5729_v46 = vmul.f32 %v7729_v37, %v5728_v14 }
0x2b3e   :  { %v5555_v48 = vpop.permute.xlu1 %5554  ;;  %v5733_v60 = vsel %vm5732_vm11, %v7729_v37, %v5729_v46  ;;  %v10869_v46 = vld [vmem:[%s11252_s21] sm:$0xff] }
0x2b3f   :  { %v5557_v6 = vsub.f32 %v10775_v42, %v5555_v48  ;;  %7445 = vmatpush.msk.msrb.mxu1 %vm1227_vm6, %v5733_v60 }
0x2b40   :  { %7446 = vmatmul.msk.f32.vlgmr.msrb.gmra.mxu1 %vm1214_vm7, %v7747_v55 }
0x2b41   :  { %v5563_v62 = vmul.f32 %v5561_v58, %v5557_v6  ;;  %5935 = vmatpush.msra.mxu1 %v5922_v28  ;;  %v10874_v6 = vld [vmem:[%s11252_s21 + $0x8] sm:$0xff] }
0x2b42   :  { %7456 = vmatmul.msk.f32.gmra.mxu0 %vm1144_vm4, %v10114_v40 }
0x2b43   :  { %v5568_v10 = vmul.f32 %v7686_v12, %v5563_v62  ;;  %5936 = vmatpush.msra.mxu1 %v5921_v4  ;;  %v7688_v62 = vld [vmem:[%s11278_s15] ss:$0 sm:$0xff] }
0x2b45   :  { %v5573_v50 = vadd.f32 %v7687_v51, %v5568_v10  ;;  %5937 = vmatpush.msra.mxu1 %v5920_v16  ;;  %v10881_v10 = vld [vmem:[%s11252_s21 + $0x10] sm:$0xff] }
0x2b47   :  { %5843 = vmatpush.msra.mxu2 %v5573_v50  ;;  %5938 = vmatpush.msra.mxu1 %v5919_v24 }
0x2b48   :  { %7447 = vmatmul.msk.f32.gmra.mxu1 %vm1214_vm7, %v7748_v19  ;;  %7448 = vmatmul.msk.f32.vlgmr.msra.gmra.mxu2 %vm4260_vm15, %v927_v31 }
0x2b4a   :  { %7457 = vmatmul.msk.f32.gmra.mxu0 %vm1144_vm4, %v10128_v2 }
0x2b50   :  { %7458 = vmatmul.msk.f32.vlgmr.msra.gmra.mxu1 %vm1144_vm4, %v10066_v20  ;;  %v928_v20 = vld [vmem:[%s11277_s9 + $0x8] sm:$0xff] }
0x2b51   :  { %7449 = vmatmul.msk.f32.gmra.mxu2 %vm4260_vm15, %v928_v20 }
0x2b58   :  { %7459 = vmatmul.msk.f32.gmra.mxu1 %vm1144_vm4, %v10099_v56 }
0x2b60   :  { %7460 = vmatmul.msk.f32.gmra.mxu1 %vm1144_vm4, %v10117_v32  ;;  %v5880_v32 = vpop.f32.mrf.mxu3 }
0x2b68   :  { %7461 = vmatmul.msk.f32.gmra.mxu1 %vm1144_vm4, %v10131_v49  ;;  %v5883_v49 = vpop.f32.mrf.mxu3 }
0x2b70   :  { %v5886_v52 = vpop.f32.mrf.mxu3 }
0x2b9f   :  { %v5754_v40 = vpop.f32.mrf.mxu0 }
0x2ba0   :  { %5788 = vperm.xlu2 %7655, %v5754_v40  }
0x2ba7   :  { %v5757_v42 = vpop.f32.mrf.mxu0 }
0x2baf   :  { %v5906_v2 = vpop.f32.mrf.mxu0 }
0x2bb0   :  { %v5907_v59 = vadd.f32 %v5906_v2, %v5877_v25 }
0x2bb7   :  { %v5909_v56 = vpop.f32.mrf.mxu0 }
0x2bb8   :  { %v5910_v54 = vadd.f32 %v5909_v56, %v5880_v32  ;;  %v10887_v32 = vld [vmem:[%s11252_s21 + $0x18] sm:$0xff]  ;;  %s11281_s21 = sld [smem:[#allocation146_spill]] }
0x2bbd   :  { %v5780_v11 = vpop.f32.mrf.mxu1 }
0x2bbf   :  { %v5912_v7 = vpop.f32.mrf.mxu0 }
0x2bc0   :  { %v5913_v43 = vadd.f32 %v5912_v7, %v5883_v49 }
0x2bc5   :  { %v5783_v5 = vpop.f32.mrf.mxu1 }
0x2bc6   :  { %5805 = vperm.xlu2 %7655, %v5783_v5  }
0x2bc7   :  { %v5915_v1 = vpop.f32.mrf.mxu0 }
0x2bc8   :  { %v5916_v9 = vadd.f32 %v5915_v1, %v5886_v52  ;;  %v923_v52 = vld [vmem:[%s11279_s16] sm:$0xff] }
0x2bcb   :  { %v5845_v29 = vpop.f32.mrf.mxu2 }
0x2bcd   :  { %v5940_v34 = vpop.f32.mrf.mxu1 }
0x2bce   :  { %v10846_v23 = vadd.f32 %v5940_v34, %v5907_v59  ;;  %v926_v59 = vld [vmem:[%s11279_s16 + $0x18] sm:$0xff] }
0x2bd0   :  { %v5976_v61 = vmul.f32 %v10846_v23, %v10846_v23 }
0x2bd4   :  { %v5848_v19 = vpop.f32.mrf.mxu2 }
0x2bd5   :  { %v5943_v8 = vpop.f32.mrf.mxu1 }
0x2bd6   :  { %v10843_v55 = vadd.f32 %v5943_v8, %v5910_v54 }
0x2bd8   :  { %v5977_v38 = vmul.f32 %v10843_v55, %v10843_v55 }
0x2bdd   :  { %v5946_v63 = vpop.f32.mrf.mxu1 }
0x2bde   :  { %v10840_v33 = vadd.f32 %v5946_v63, %v5913_v43  ;;  %v925_v43 = vld [vmem:[%s11279_s16 + $0x10] sm:$0xff] }
0x2be0   :  { %v5978_v13 = vmul.f32 %v10840_v33, %v10840_v33 }
0x2be5   :  { %v5949_v21 = vpop.f32.mrf.mxu1 }
0x2be6   :  { %v10838_v41 = vadd.f32 %v5949_v21, %v5916_v9  ;;  %v924_v9 = vld [vmem:[%s11279_s16 + $0x8] sm:$0xff] }
0x2be8   :  { %5968 = vmatpush.msrb.mxu2 %v10838_v41  ;;  %v5979_v3 = vmul.f32 %v10838_v41, %v10838_v41 }
0x2bea   :  { %5969 = vmatpush.msrb.mxu2 %v10840_v33 }
0x2bec   :  { %5970 = vmatpush.msrb.mxu2 %v10843_v55 }
0x2bee   :  { %5971 = vmatpush.msrb.mxu2 %v10846_v23 }
0x2bef   :  { %7462 = vmatmul.msk.f32.vlgmr.msrb.gmra.mxu2 %vm1144_vm4, %v10853_v47 }
0x2bf0   :  { %5992 = vmatpush.msra.mxu2 %v5979_v3 }
0x2bf2   :  { %5993 = vmatpush.msra.mxu2 %v5978_v13 }
0x2bf4   :  { %5994 = vmatpush.msra.mxu2 %v5977_v38 }
0x2bf6   :  { %5995 = vmatpush.msra.mxu2 %v5976_v61 }
0x2bf7   :  { %7463 = vmatmul.msk.f32.vlgmr.msra.gmra.mxu2 %vm1144_vm4, %v10853_v47 }
0x2bfa   :  { %v5789_v58 = vpop.permute.xlu2 %5788 }
0x2bfb   :  { %v5796_v25 = vsub.f32 %v10792_v36, %v5789_v58 }
0x2c20   :  { %v5806_v50 = vpop.permute.xlu2 %5805 }
0x2c72   :  { %v5973_v26 = vpop.f32.mrf.mxu2 }
0x2c73   :  { %v6000_v37 = vsel %vm1192_vm5, %v5973_v26, 0.0  ;;  %v6222_v26 = vld [vmem:[#allocation62 + $0x38] sm:$0xff] }
0x2c74   :  { %6001 = vadd.xlane.f32.xlu0 %v6000_v37  ;;  %6247 = vmatpush.msrb.mxu1 %v6222_v26 }
0x2c7a   :  { %v5997_v53 = vpop.f32.mrf.mxu2 }
0x2c7b   :  { %v6004_v0 = vsel %vm1192_vm5, %v5997_v53, 0.0  ;;  %v6221_v53 = vld [vmem:[#allocation62 + $0x30] sm:$0xff] }
0x2c7c   :  { %6005 = vadd.xlane.f32.xlu1 %v6004_v0  ;;  %6248 = vmatpush.msrb.mxu1 %v6221_v53  ;;  %v6220_v0 = vld [vmem:[#allocation62 + $0x28] sm:$0xff] }
0x2c7e   :  { %6249 = vmatpush.msrb.mxu1 %v6220_v0 }
0x2c88   :  { %5793 = vperm.xlu0 %7653, %v5757_v42   ;;  %v7689_v42 = vld [vmem:[#allocation61] ss:$0 sm:$0xff] }
0x2c90   :  { %5800 = vperm.xlu0 %7653, %v5780_v11  }
0x2ce7   :  { %v6002_v57 = vpop.xlane.xlu0 %6001 }
0x2ce8   :  { %v6003_v14 = vmul.f32 0.001953125, %v6002_v57  ;;  %v6309_v57 = vld [vmem:[#allocation62 + $0x58] sm:$0xff] }
0x2cea   :  { %7464 = vmatpush.msk.msrb.mxu2 %vm1227_vm6, %v6003_v14  ;;  %v6008_v60 = vmul.f32 %v6003_v14, %v6003_v14  ;;  %v6219_v14 = vld [vmem:[#allocation62 + $0x20] sm:$0xff] }
0x2ceb   :  { %7465 = vmatmul.msk.f32.vlgmr.msrb.gmra.mxu2 %vm1214_vm7, %v10869_v46  ;;  %6250 = vmatpush.msrb.mxu1 %v6219_v14 }
0x2cef   :  { %v6006_v48 = vpop.xlane.xlu1 %6005 }
0x2cf0   :  { %v6007_v28 = vmul.f32 0.001953125, %v6006_v48  ;;  %v6308_v48 = vld [vmem:[#allocation62 + $0x50] sm:$0xff] }
0x2cf2   :  { %v6009_v12 = vsub.f32 %v6007_v28, %v6008_v60  ;;  %v6307_v60 = vld [vmem:[#allocation62 + $0x48] sm:$0xff]  ;;  %v6306_v28 = vld [vmem:[#allocation62 + $0x40] sm:$0xff] }
0x2cf3   :  { %7466 = vmatmul.msk.f32.gmra.mxu2 %vm1214_vm7, %v10874_v6 }
0x2cf4   :  { %v6010_v4 = vadd.f32 1e-05, %v6009_v12 }
0x2cf6   :  { %7730 = vrsqrt.f32 %v6010_v4  ;;  %vm6017_vm12 = vweird.f32 %v6010_v4 }
0x2cfa   :  { %v5794_v51 = vpop.permute.xlu0 %5793 }
0x2cfb   :  { %v5797_v16 = vsub.f32 %v10789_v17, %v5794_v51  ;;  %7467 = vmatmul.msk.f32.gmra.mxu2 %vm1214_vm7, %v10881_v10 }
0x2cfc   :  { %v7731_v24 = vpop.eup %7730 }
0x2cfd   :  { %v6012_v40 = vmul.f32 %v7731_v24, %v6010_v4  ;;  %v5809_v11 = vmul.f32 %v5806_v50, %v5797_v16  ;;  %vm6018_vm15 = vweird.f32 %v7731_v24  ;;  %v7690_v16 = vld [vmem:[#allocation58] ss:$0 sm:$0xff] }
0x2cfe   :  { %vm6019_vm0 = vmor %vm6017_vm12, %vm6018_vm15 }
0x2cff   :  { %v6013_v31 = vmul.f32 %v7731_v24, %v6012_v40  ;;  %v5815_v2 = vmul.f32 %v7688_v62, %v5809_v11  ;;  %v7691_v40 = vld [vmem:[#allocation56] ss:$0 sm:$0xff] }
0x2d01   :  { %v6014_v5 = vmul.f32 0.5, %v6013_v31  ;;  %v5821_v20 = vadd.f32 %v7689_v42, %v5815_v2  ;;  %v6216_v31 = vld [vmem:[#allocation62 + $0x10] sm:$0xff] }
0x2d02   :  { %v5801_v56 = vpop.permute.xlu0 %5800 }
0x2d03   :  { %v6015_v34 = vsub.f32 1.5, %v6014_v5  ;;  %v5808_v17 = vmul.f32 %v5801_v56, %v5796_v25  ;;  %7468 = vmatmul.msk.f32.gmra.mxu2 %vm1214_vm7, %v10887_v32  ;;  %v5849_v8 = vadd.f32 %v5848_v19, %v5821_v20  ;;  %v6215_v20 = vld [vmem:[#allocation62 + $0x8] sm:$0xff] }
0x2d05   :  { %v5814_v7 = vmul.f32 %v7688_v62, %v5808_v17  ;;  %6175 = vmatpush.msrb.mxu0 %v5849_v8  ;;  %v6016_v49 = vmul.f32 %v7731_v24, %v6015_v34  ;;  %v6214_v34 = vld [vmem:[#allocation62] sm:$0xff] }
0x2d07   :  { %v5820_v36 = vadd.f32 %v7689_v42, %v5814_v7  ;;  %v6020_v63 = vsel %vm6019_vm0, %v7731_v24, %v6016_v49  ;;  %v6217_v42 = vld [vmem:[#allocation62 + $0x18] sm:$0xff] }
0x2d08   :  { %7469 = vmatpush.msk.msrb.mxu3 %vm1227_vm6, %v6020_v63  ;;  %6288 = vmatpush.msra.mxu2 %v6217_v42 }
0x2d09   :  { %7470 = vmatmul.msk.f32.vlgmr.msrb.gmra.mxu3 %vm1214_vm7, %v10869_v46  ;;  %v5846_v1 = vadd.f32 %v5845_v29, %v5820_v36 }
0x2d0a   :  { %6334 = vmatpush.msra.mxu3 %v6309_v57  ;;  %6289 = vmatpush.msra.mxu2 %v6216_v31 }
0x2d0b   :  { %6176 = vmatpush.msrb.mxu0 %v5846_v1 }
0x2d0c   :  { %7474 = vmatmul.msk.f32.vlgmr.msrb.gmra.mxu0 %vm2874_vm13, %v923_v52  ;;  %6335 = vmatpush.msra.mxu3 %v6308_v48 }
0x2d0d   :  { %6290 = vmatpush.msra.mxu2 %v6215_v20 }
0x2d0e   :  { %6336 = vmatpush.msra.mxu3 %v6307_v60 }
0x2d0f   :  { %6291 = vmatpush.msra.mxu2 %v6214_v34 }
0x2d10   :  { %6337 = vmatpush.msra.mxu3 %v6306_v28 }
0x2d11   :  { %7471 = vmatmul.msk.f32.gmra.mxu3 %vm1214_vm7, %v10874_v6 }
0x2d14   :  { %7475 = vmatmul.msk.f32.gmra.mxu0 %vm2874_vm13, %v924_v9 }
0x2d19   :  { %7472 = vmatmul.msk.f32.gmra.mxu3 %vm1214_vm7, %v10881_v10 }
0x2d1c   :  { %7476 = vmatmul.msk.f32.gmra.mxu0 %vm2874_vm13, %v925_v43 }
0x2d21   :  { %7473 = vmatmul.msk.f32.gmra.mxu3 %vm1214_vm7, %v10887_v32 }
0x2d24   :  { %7477 = vmatmul.msk.f32.gmra.mxu0 %vm2874_vm13, %v926_v59 }
0x2d6e   :  { %v6041_v21 = vpop.f32.mrf.mxu2 }
0x2d6f   :  { %6087 = vperm.xlu2 %7655, %v6041_v21  }
0x2d76   :  { %v6044_v54 = vpop.f32.mrf.mxu2 }
0x2d77   :  { %6092 = vperm.xlu2 %7655, %v6044_v54  }
0x2d7e   :  { %v6047_v3 = vpop.f32.mrf.mxu2 }
0x2d86   :  { %v6050_v13 = vpop.f32.mrf.mxu2 }
0x2d87   :  { %6102 = vperm.xlu0 %7653, %v6050_v13  }
0x2d89   :  { %v6178_v51 = vpop.f32.mrf.mxu0 }
0x2d8c   :  { %v6073_v38 = vpop.f32.mrf.mxu3 }
0x2d8f   :  { %6111 = vperm.xlu0 %7653, %v6073_v38  }
0x2d91   :  { %v6181_v56 = vpop.f32.mrf.mxu0 }
0x2d94   :  { %v6076_v61 = vpop.f32.mrf.mxu3 }
0x2d95   :  { %6116 = vperm.xlu2 %7655, %v6076_v61  }
0x2d97   :  { %6097 = vperm.xlu0 %7653, %v6047_v3  }
0x2d99   :  { %v6184_v54 = vpop.f32.mrf.mxu0 }
0x2d9c   :  { %v6079_v29 = vpop.f32.mrf.mxu3 }
0x2d9d   :  { %6121 = vperm.xlu2 %7655, %v6079_v29  }
0x2da4   :  { %v6082_v19 = vpop.f32.mrf.mxu3 }
0x2da5   :  { %6126 = vperm.xlu1 %7654, %v6082_v19  }
0x2dc9   :  { %v6088_v37 = vpop.permute.xlu2 %6087 }
0x2dca   :  { %v6105_v11 = vsub.f32 %v10846_v23, %v6088_v37  ;;  %v6187_v37 = vpop.f32.mrf.mxu0 }
0x2dd1   :  { %v6093_v12 = vpop.permute.xlu2 %6092 }
0x2dd2   :  { %v6106_v4 = vsub.f32 %v10843_v55, %v6093_v12 }
0x2def   :  { %v6117_v58 = vpop.permute.xlu2 %6116 }
0x2df0   :  { %v6130_v24 = vmul.f32 %v6117_v58, %v6106_v4 }
0x2df2   :  { %v6138_v50 = vmul.f32 %v7690_v16, %v6130_v24 }
0x2df4   :  { %v6146_v25 = vadd.f32 %v7691_v40, %v6138_v50 }
0x2df6   :  { %v10910_v17 = vadd.f32 %v6181_v56, %v6146_v25 }
0x2df7   :  { %v6122_v1 = vpop.permute.xlu2 %6121 }
0x2df8   :  { %v6203_v36 = vrot.slane %v10910_v17, 1  ;;  %v6191_v58 = vrot.slane %v10910_v17, 7 }
0x2df9   :  { %v6103_v62 = vpop.permute.xlu0 %6102 }
0x2dfa   :  { %v6108_v13 = vsub.f32 %v10838_v41, %v6103_v62 }
0x2e01   :  { %v6112_v2 = vpop.permute.xlu0 %6111 }
0x2e02   :  { %v6129_v5 = vmul.f32 %v6112_v2, %v6105_v11 }
0x2e04   :  { %v6137_v55 = vmul.f32 %v7690_v16, %v6129_v5 }
0x2e06   :  { %v6145_v8 = vadd.f32 %v7691_v40, %v6137_v55 }
0x2e08   :  { %v10912_v7 = vadd.f32 %v6178_v51, %v6145_v8 }
0x2e09   :  { %v6098_v49 = vpop.permute.xlu0 %6097 }
0x2e0a   :  { %v6202_v23 = vrot.slane %v10912_v7, 1  ;;  %v6107_v63 = vsub.f32 %v10840_v33, %v6098_v49  ;;  %7478 = vmatmul.msk.f32.vlgmr.msrb.gmra.mxu1 %vm1144_vm4, %v10912_v7  ;;  %v6190_v57 = vrot.slane %v10912_v7, 7 }
0x2e0c   :  { %v6131_v52 = vmul.f32 %v6122_v1, %v6107_v63  ;;  %v6208_v9 = vsel %vm972_vm2, %v6202_v23, %v6203_v36  ;;  %v6196_v4 = vsel %vm939_vm3, %v6190_v57, %v6191_v58 }
0x2e0d   :  { %v6210_v21 = vmul.f32 %v6208_v9, %v9583_v35  ;;  %v6199_v62 = vmul.f32 %v6196_v4, %v9574_v30 }
0x2e0e   :  { %v6139_v43 = vmul.f32 %v7690_v16, %v6131_v52 }
0x2e0f   :  { %7486 = vmatmul.msk.f32.vlgmr.msra.gmra.mxu3 %vm1144_vm4, %v6210_v21 }
0x2e10   :  { %v6147_v59 = vadd.f32 %v7691_v40, %v6139_v43 }
0x2e12   :  { %v10923_v3 = vadd.f32 %v6184_v54, %v6147_v59  ;;  %7479 = vmatmul.msk.f32.gmra.mxu1 %vm1144_vm4, %v10910_v17 }
0x2e14   :  { %v6204_v33 = vrot.slane %v10923_v3, 1  ;;  %v6192_v24 = vrot.slane %v10923_v3, 7 }
0x2e16   :  { %v6207_v38 = vsel %vm972_vm2, %v6203_v36, %v6204_v33  ;;  %v6195_v50 = vsel %vm939_vm3, %v6191_v58, %v6192_v24 }
0x2e17   :  { %v6127_v61 = vpop.permute.xlu1 %6126  ;;  %v6211_v29 = vmul.f32 %v6207_v38, %v9590_v39 }
0x2e18   :  { %v6132_v19 = vmul.f32 %v6127_v61, %v6108_v13 }
0x2e19   :  { %7487 = vmatmul.msk.f32.gmra.mxu3 %vm1144_vm4, %v6211_v29 }
0x2e1a   :  { %v6140_v26 = vmul.f32 %v7690_v16, %v6132_v19  ;;  %7480 = vmatmul.msk.f32.gmra.mxu1 %vm1144_vm4, %v10923_v3 }
0x2e1c   :  { %v6148_v53 = vadd.f32 %v7691_v40, %v6140_v26  ;;  %v6200_v40 = vmul.f32 %v6195_v50, %v9540_v15 }
0x2e1e   :  { %v10935_v0 = vadd.f32 %v6187_v37, %v6148_v53 }
0x2e20   :  { %v6193_v41 = vrot.slane %v10935_v0, 7  ;;  %v6205_v14 = vrot.slane %v10935_v0, 1 }
0x2e22   :  { %v6197_v48 = vsel %vm939_vm3, %v6193_v41, %v6190_v57  ;;  %7481 = vmatmul.msk.f32.gmra.mxu1 %vm1144_vm4, %v10935_v0  ;;  %v6206_v60 = vsel %vm972_vm2, %v6204_v33, %v6205_v14  ;;  %v6209_v51 = vsel %vm972_vm2, %v6205_v14, %v6202_v23  ;;  %v6194_v42 = vsel %vm939_vm3, %v6192_v24, %v6193_v41 }
0x2e23   :  { %v6198_v28 = vmul.f32 %v6197_v48, %v9570_v27  ;;  %v6212_v12 = vmul.f32 %v6206_v60, %v9602_v45  ;;  %v6213_v16 = vmul.f32 %v6209_v51, %v9557_v22  ;;  %v6201_v11 = vmul.f32 %v6194_v42, %v9600_v44 }
0x2e25   :  { %7482 = vmatmul.msk.f32.vlgmr.msra.gmra.mxu2 %vm1144_vm4, %v6198_v28  ;;  %7488 = vmatmul.msk.f32.gmra.mxu3 %vm1144_vm4, %v6212_v12 }
0x2e2d   :  { %7483 = vmatmul.msk.f32.gmra.mxu2 %vm1144_vm4, %v6199_v62  ;;  %7489 = vmatmul.msk.f32.gmra.mxu3 %vm1144_vm4, %v6213_v16 }
0x2e35   :  { %7484 = vmatmul.msk.f32.gmra.mxu2 %vm1144_vm4, %v6200_v40 }
0x2e3d   :  { %7485 = vmatmul.msk.f32.gmra.mxu2 %vm1144_vm4, %v6201_v11 }
0x2e87   :  { %v6252_v31 = vpop.f32.mrf.mxu1 }
0x2e8f   :  { %v6255_v5 = vpop.f32.mrf.mxu1 }
0x2e92   :  { %v6339_v2 = vpop.f32.mrf.mxu3 }
0x2e97   :  { %v6258_v34 = vpop.f32.mrf.mxu1 }
0x2e9c   :  { %v6342_v20 = vpop.f32.mrf.mxu3 }
0x2e9f   :  { %v6261_v36 = vpop.f32.mrf.mxu1 }
0x2ea8   :  { %v6293_v25 = vpop.f32.mrf.mxu2  ;;  %v6345_v55 = vpop.f32.mrf.mxu3 }
0x2ea9   :  { %v6294_v9 = vadd.f32 %v6293_v25, %v6252_v31 }
0x2eab   :  { %v10977_v33 = vadd.f32 %v6339_v2, %v6294_v9  ;;  %v7692_v9 = vld [vmem:[%s11280_s11] ss:$0 sm:$0xff] }
0x2ead   :  { %v6375_v61 = vmul.f32 %v10977_v33, %v10977_v33 }
0x2eb0   :  { %v6296_v56 = vpop.f32.mrf.mxu2  ;;  %v6348_v52 = vpop.f32.mrf.mxu3 }
0x2eb1   :  { %v6297_v63 = vadd.f32 %v6296_v56, %v6255_v5  ;;  %v6583_v56 = vld [vmem:[#allocation64 + $0x30] sm:$0xff] }
0x2eb3   :  { %v10972_v54 = vadd.f32 %v6342_v20, %v6297_v63  ;;  %v6584_v20 = vld [vmem:[#allocation64 + $0x38] sm:$0xff]  ;;  %v6577_v63 = vld [vmem:[#allocation64 + $0x8] sm:$0xff] }
0x2eb4   :  { %6609 = vmatpush.msrb.mxu2 %v6584_v20 }
0x2eb5   :  { %v6376_v38 = vmul.f32 %v10972_v54, %v10972_v54 }
0x2eb6   :  { %6610 = vmatpush.msrb.mxu2 %v6583_v56 }
0x2eb8   :  { %v6299_v8 = vpop.f32.mrf.mxu2 }
0x2eb9   :  { %v6300_v49 = vadd.f32 %v6299_v8, %v6258_v34  ;;  %v6582_v34 = vld [vmem:[#allocation64 + $0x28] sm:$0xff] }
0x2eba   :  { %6611 = vmatpush.msrb.mxu2 %v6582_v34 }
0x2ebb   :  { %v10968_v21 = vadd.f32 %v6345_v55, %v6300_v49  ;;  %v6581_v55 = vld [vmem:[#allocation64 + $0x20] sm:$0xff]  ;;  %v6579_v49 = vld [vmem:[#allocation64 + $0x18] sm:$0xff] }
0x2ebc   :  { %6612 = vmatpush.msrb.mxu2 %v6581_v55  ;;  %6650 = vmatpush.msrb.mxu3 %v6579_v49 }
0x2ebd   :  { %v6377_v13 = vmul.f32 %v10968_v21, %v10968_v21 }
0x2ec0   :  { %v6302_v23 = vpop.f32.mrf.mxu2 }
0x2ec1   :  { %v6303_v1 = vadd.f32 %v6302_v23, %v6261_v36  ;;  %v6578_v23 = vld [vmem:[#allocation64 + $0x10] sm:$0xff] }
0x2ec2   :  { %6651 = vmatpush.msrb.mxu3 %v6578_v23 }
0x2ec3   :  { %v10970_v43 = vadd.f32 %v6348_v52, %v6303_v1  ;;  %v6576_v1 = vld [vmem:[#allocation64] sm:$0xff] }
0x2ec4   :  { %6652 = vmatpush.msrb.mxu3 %v6577_v63 }
0x2ec5   :  { %v6378_v59 = vmul.f32 %v10970_v43, %v10970_v43  ;;  %6367 = vmatpush.msra.mxu0 %v10970_v43 }
0x2ec6   :  { %6653 = vmatpush.msrb.mxu3 %v6576_v1 }
0x2ec7   :  { %6368 = vmatpush.msra.mxu0 %v10968_v21  ;;  %6391 = vmatpush.msra.mxu1 %v6378_v59  ;;  %v6671_v59 = vld [vmem:[#allocation64 + $0x58] sm:$0xff] }
0x2ec9   :  { %6369 = vmatpush.msra.mxu0 %v10972_v54  ;;  %6392 = vmatpush.msra.mxu1 %v6377_v13 }
0x2ecb   :  { %6370 = vmatpush.msra.mxu0 %v10977_v33  ;;  %6393 = vmatpush.msra.mxu1 %v6376_v38  ;;  %v7693_v38 = vld [vmem:[%s11281_s21] ss:$0 sm:$0xff] }
0x2ecc   :  { %7490 = vmatmul.msk.f32.vlgmr.msra.gmra.mxu0 %vm1144_vm4, %v10853_v47 }
0x2ecd   :  { %6394 = vmatpush.msra.mxu1 %v6375_v61 }
0x2ece   :  { %7491 = vmatmul.msk.f32.vlgmr.msra.gmra.mxu1 %vm1144_vm4, %v10853_v47 }
0x2f49   :  { %v6372_v29 = vpop.f32.mrf.mxu0 }
0x2f4a   :  { %v6399_v19 = vsel %vm1192_vm5, %v6372_v29, 0.0  ;;  %v6670_v29 = vld [vmem:[#allocation64 + $0x50] sm:$0xff] }
0x2f4b   :  { %v6396_v26 = vpop.f32.mrf.mxu1  ;;  %6400 = vadd.xlane.f32.xlu0 %v6399_v19 }
0x2f4c   :  { %v6403_v37 = vsel %vm1192_vm5, %v6396_v26, 0.0  ;;  %v6669_v26 = vld [vmem:[#allocation64 + $0x48] sm:$0xff] }
0x2f4d   :  { %6404 = vadd.xlane.f32.xlu2 %v6403_v37 }
0x2fbe   :  { %v6401_v53 = vpop.xlane.xlu0 %6400 }
0x2fbf   :  { %v6402_v57 = vmul.f32 0.001953125, %v6401_v53  ;;  %v6668_v53 = vld [vmem:[#allocation64 + $0x40] sm:$0xff] }
0x2fc0   :  { %v6405_v41 = vpop.xlane.xlu2 %6404 }
0x2fc1   :  { %v6407_v14 = vmul.f32 %v6402_v57, %v6402_v57  ;;  %v6406_v48 = vmul.f32 0.001953125, %v6405_v41  ;;  %7492 = vmatpush.msk.msrb.mxu0 %vm1227_vm6, %v6402_v57 }
0x2fc2   :  { %7493 = vmatmul.msk.f32.vlgmr.msrb.gmra.mxu0 %vm1214_vm7, %v10869_v46 }
0x2fc3   :  { %v6408_v60 = vsub.f32 %v6406_v48, %v6407_v14  ;;  %6696 = vmatpush.msra.mxu0 %v6671_v59 }
0x2fc5   :  { %v6409_v28 = vadd.f32 1e-05, %v6408_v60  ;;  %6697 = vmatpush.msra.mxu0 %v6670_v29 }
0x2fc7   :  { %7732 = vrsqrt.f32 %v6409_v28  ;;  %vm6416_vm8 = vweird.f32 %v6409_v28  ;;  %6698 = vmatpush.msra.mxu0 %v6669_v26 }
0x2fc9   :  { %6699 = vmatpush.msra.mxu0 %v6668_v53 }
0x2fca   :  { %7494 = vmatmul.msk.f32.gmra.mxu0 %vm1214_vm7, %v10874_v6 }
0x2fcd   :  { %v7733_v12 = vpop.eup %7732 }
0x2fce   :  { %v6411_v58 = vmul.f32 %v7733_v12, %v6409_v28  ;;  %vm6417_vm13 = vweird.f32 %v7733_v12 }
0x2fcf   :  { %vm6418_vm1 = vmor %vm6416_vm8, %vm6417_vm13 }
0x2fd0   :  { %v6412_v4 = vmul.f32 %v7733_v12, %v6411_v58 }
0x2fd2   :  { %v6413_v51 = vmul.f32 0.5, %v6412_v4  ;;  %7495 = vmatmul.msk.f32.gmra.mxu0 %vm1214_vm7, %v10881_v10 }
0x2fd4   :  { %v6414_v62 = vsub.f32 1.5, %v6413_v51 }
0x2fd6   :  { %v6415_v16 = vmul.f32 %v7733_v12, %v6414_v62 }
0x2fd8   :  { %v6419_v24 = vsel %vm6418_vm1, %v7733_v12, %v6415_v16 }
0x2fd9   :  { %7497 = vmatpush.msk.msrb.mxu1 %vm1227_vm6, %v6419_v24 }
0x2fda   :  { %7496 = vmatmul.msk.f32.gmra.mxu0 %vm1214_vm7, %v10887_v32  ;;  %7498 = vmatmul.msk.f32.vlgmr.msrb.gmra.mxu1 %vm1214_vm7, %v10869_v46 }
0x2fe2   :  { %7499 = vmatmul.msk.f32.gmra.mxu1 %vm1214_vm7, %v10874_v6 }
0x2fea   :  { %7500 = vmatmul.msk.f32.gmra.mxu1 %vm1214_vm7, %v10881_v10 }
0x2ff2   :  { %7501 = vmatmul.msk.f32.gmra.mxu1 %vm1214_vm7, %v10887_v32 }
0x303f   :  { %v6440_v50 = vpop.f32.mrf.mxu0 }
0x3040   :  { %6486 = vperm.xlu1 %7654, %v6440_v50  }
0x3047   :  { %v6443_v40 = vpop.f32.mrf.mxu0 }
0x3048   :  { %6491 = vperm.xlu0 %7653, %v6443_v40  }
0x304f   :  { %v6446_v42 = vpop.f32.mrf.mxu0 }
0x3050   :  { %6496 = vperm.xlu2 %7655, %v6446_v42  }
0x3057   :  { %v6449_v11 = vpop.f32.mrf.mxu0  ;;  %v6472_v31 = vpop.f32.mrf.mxu1 }
0x3058   :  { %6501 = vperm.xlu1 %7654, %v6449_v11  }
0x305f   :  { %v6475_v2 = vpop.f32.mrf.mxu1 }
0x3060   :  { %6510 = vperm.xlu1 %7654, %v6472_v31  }
0x3067   :  { %v6478_v25 = vpop.f32.mrf.mxu1 }
0x306f   :  { %v6481_v5 = vpop.f32.mrf.mxu1 }
0x3070   :  { %6525 = vperm.xlu1 %7654, %v6481_v5  }
0x3078   :  { %6515 = vperm.xlu1 %7654, %v6475_v2  }
0x3080   :  { %6520 = vperm.xlu1 %7654, %v6478_v25  }
0x30aa   :  { %v6497_v40 = vpop.permute.xlu2 %6496 }
0x30ab   :  { %v6506_v11 = vsub.f32 %v10968_v21, %v6497_v40 }
0x30b2   :  { %v6487_v8 = vpop.permute.xlu1 %6486 }
0x30b3   :  { %v6504_v52 = vsub.f32 %v10977_v33, %v6487_v8 }
0x30ba   :  { %v6492_v60 = vpop.permute.xlu0 %6491 }
0x30bb   :  { %v6505_v12 = vsub.f32 %v10972_v54, %v6492_v60 }
0x30ca   :  { %v6502_v36 = vpop.permute.xlu1 %6501 }
0x30cb   :  { %v6507_v41 = vsub.f32 %v10970_v43, %v6502_v36 }
0x30d2   :  { %v6511_v13 = vpop.permute.xlu1 %6510 }
0x30d3   :  { %v6528_v61 = vmul.f32 %v6511_v13, %v6504_v52 }
0x30d5   :  { %v6536_v19 = vmul.f32 %v7692_v9, %v6528_v61 }
0x30d7   :  { %v6544_v37 = vadd.f32 %v7693_v38, %v6536_v19 }
0x30d9   :  { %v6548_v57 = vmax.f32 %v6544_v37, 0.0 }
0x30db   :  { %7502 = vmatmul.msk.f32.vlgmr.msrb.gmra.mxu2 %vm1144_vm4, %v6548_v57  ;;  %v6552_v51 = vrot.slane %v6548_v57, 7  ;;  %v6564_v54 = vrot.slane %v6548_v57, 1 }
0x30e2   :  { %v6526_v33 = vpop.permute.xlu1 %6525 }
0x30e3   :  { %v6531_v14 = vmul.f32 %v6526_v33, %v6507_v41 }
0x30e5   :  { %v6539_v48 = vmul.f32 %v7692_v9, %v6531_v14 }
0x30e7   :  { %v6547_v28 = vadd.f32 %v7693_v38, %v6539_v48 }
0x30e9   :  { %v6551_v58 = vmax.f32 %v6547_v28, 0.0 }
0x30ea   :  { %v6516_v4 = vpop.permute.xlu1 %6515 }
0x30eb   :  { %v6555_v62 = vrot.slane %v6551_v58, 7  ;;  %v6529_v16 = vmul.f32 %v6516_v4, %v6505_v12  ;;  %v6567_v52 = vrot.slane %v6551_v58, 1 }
0x30ed   :  { %v6559_v24 = vsel %vm939_vm3, %v6555_v62, %v6552_v51  ;;  %v6537_v50 = vmul.f32 %v7692_v9, %v6529_v16 }
0x30ee   :  { %v6560_v42 = vmul.f32 %v6559_v24, %v9570_v27 }
0x30ef   :  { %v6545_v43 = vadd.f32 %v7693_v38, %v6537_v50 }
0x30f0   :  { %7506 = vmatmul.msk.f32.vlgmr.msrb.gmra.mxu3 %vm1144_vm4, %v6560_v42 }
0x30f1   :  { %v6549_v31 = vmax.f32 %v6545_v43, 0.0 }
0x30f2   :  { %v6521_v2 = vpop.permute.xlu1 %6520 }
0x30f3   :  { %v6553_v25 = vrot.slane %v6549_v31, 7  ;;  %v6565_v5 = vrot.slane %v6549_v31, 1  ;;  %v6530_v20 = vmul.f32 %v6521_v2, %v6506_v11  ;;  %7503 = vmatmul.msk.f32.gmra.mxu2 %vm1144_vm4, %v6549_v31 }
0x30f5   :  { %v6570_v56 = vsel %vm972_vm2, %v6564_v54, %v6565_v5  ;;  %v6538_v34 = vmul.f32 %v7692_v9, %v6530_v20  ;;  %v6558_v27 = vsel %vm939_vm3, %v6552_v51, %v6553_v25 }
0x30f6   :  { %v6572_v55 = vmul.f32 %v6570_v56, %v9583_v35  ;;  %v6561_v8 = vmul.f32 %v6558_v27, %v9574_v30 }
0x30f7   :  { %v6546_v21 = vadd.f32 %v7693_v38, %v6538_v34 }
0x30f8   :  { %7507 = vmatmul.msk.f32.gmra.mxu3 %vm1144_vm4, %v6561_v8  ;;  %7510 = vmatmul.msk.f32.vlgmr.msra.gmra.mxu0 %vm1144_vm4, %v6572_v55 }
0x30f9   :  { %v6550_v49 = vmax.f32 %v6546_v21, 0.0 }
0x30fb   :  { %v6554_v36 = vrot.slane %v6550_v49, 7  ;;  %v6566_v23 = vrot.slane %v6550_v49, 1  ;;  %7504 = vmatmul.msk.f32.gmra.mxu2 %vm1144_vm4, %v6550_v49 }
0x30fd   :  { %v6557_v63 = vsel %vm939_vm3, %v6553_v25, %v6554_v36  ;;  %v6569_v1 = vsel %vm972_vm2, %v6565_v5, %v6566_v23  ;;  %v6556_v9 = vsel %vm939_vm3, %v6554_v36, %v6555_v62  ;;  %v6568_v59 = vsel %vm972_vm2, %v6566_v23, %v6567_v52 }
0x30fe   :  { %v6562_v35 = vmul.f32 %v6557_v63, %v9540_v15  ;;  %v6573_v30 = vmul.f32 %v6569_v1, %v9590_v39  ;;  %v6563_v13 = vmul.f32 %v6556_v9, %v9600_v44  ;;  %v6574_v38 = vmul.f32 %v6568_v59, %v9602_v45  ;;  %v7694_v59 = vld [vmem:[%s9314_s12] ss:$0 sm:$0xff]  ;;  %s8930_s12 = smov [#allocation65]  }
0x30ff   :  { %v6571_v15 = vsel %vm972_vm2, %v6567_v52, %v6564_v54  ;;  %s6943_s8 = sshll.u32 %s8930_s12, 4  ;;  %s6944_s8 = int_to_ptr.vmem [resolvable:$true] %s6943_s8 }
0x3100   :  { %7508 = vmatmul.msk.f32.gmra.mxu3 %vm1144_vm4, %v6562_v35  ;;  %7511 = vmatmul.msk.f32.gmra.mxu0 %vm1144_vm4, %v6573_v30  ;;  %v6575_v39 = vmul.f32 %v6571_v15, %v9557_v22 }
0x3103   :  { %7505 = vmatmul.msk.f32.gmra.mxu2 %vm1144_vm4, %v6551_v58 }
0x3108   :  { %7509 = vmatmul.msk.f32.gmra.mxu3 %vm1144_vm4, %v6563_v13  ;;  %7512 = vmatmul.msk.f32.gmra.mxu0 %vm1144_vm4, %v6574_v38  ;;  %v7695_v38 = vld [vmem:[%s11282_s0] ss:$0 sm:$0xff] }
0x3110   :  { %7513 = vmatmul.msk.f32.gmra.mxu0 %vm1144_vm4, %v6575_v39 }
0x315e   :  { %v6614_v61 = vpop.f32.mrf.mxu2 }
0x3173   :  { %v6655_v29 = vpop.f32.mrf.mxu3 }
0x3174   :  { %v6656_v22 = vadd.f32 %v6655_v29, %v6614_v61 }
0x3175   :  { %v6701_v19 = vpop.f32.mrf.mxu0 }
0x3176   :  { %v6617_v26 = vpop.f32.mrf.mxu2  ;;  %v11062_v4 = vadd.f32 %v6701_v19, %v6656_v22 }
0x3178   :  { %v6737_v24 = vmul.f32 %v11062_v4, %v11062_v4 }
0x317b   :  { %v6658_v37 = vpop.f32.mrf.mxu3 }
0x317c   :  { %v6659_v18 = vadd.f32 %v6658_v37, %v6617_v26 }
0x317d   :  { %v6704_v53 = vpop.f32.mrf.mxu0 }
0x317e   :  { %v6620_v44 = vpop.f32.mrf.mxu2  ;;  %v11059_v58 = vadd.f32 %v6704_v53, %v6659_v18 }
0x3180   :  { %v6738_v16 = vmul.f32 %v11059_v58, %v11059_v58 }
0x3183   :  { %v6661_v57 = vpop.f32.mrf.mxu3 }
0x3184   :  { %v6662_v14 = vadd.f32 %v6661_v57, %v6620_v44 }
0x3185   :  { %v6707_v45 = vpop.f32.mrf.mxu0 }
0x3186   :  { %v6623_v41 = vpop.f32.mrf.mxu2  ;;  %v11056_v12 = vadd.f32 %v6707_v45, %v6662_v14 }
0x3188   :  { %v6739_v62 = vmul.f32 %v11056_v12, %v11056_v12 }
0x318b   :  { %v6664_v33 = vpop.f32.mrf.mxu3 }
0x318c   :  { %v6665_v48 = vadd.f32 %v6664_v33, %v6623_v41 }
0x318d   :  { %v6710_v60 = vpop.f32.mrf.mxu0 }
0x318e   :  { %v11054_v28 = vadd.f32 %v6710_v60, %v6665_v48 }
0x3190   :  { %6729 = vmatpush.msra.mxu1 %v11054_v28  ;;  %v6740_v51 = vmul.f32 %v11054_v28, %v11054_v28 }
0x3192   :  { %6730 = vmatpush.msra.mxu1 %v11056_v12 }
0x3194   :  { %6731 = vmatpush.msra.mxu1 %v11059_v58 }
0x3196   :  { %6732 = vmatpush.msra.mxu1 %v11062_v4 }
0x3197   :  { %7514 = vmatmul.msk.f32.vlgmr.msra.gmra.mxu1 %vm1144_vm4, %v10853_v47 }
0x3198   :  { %6753 = vmatpush.msrb.mxu1 %v6740_v51 }
0x319a   :  { %6754 = vmatpush.msrb.mxu1 %v6739_v62 }
0x319c   :  { %6755 = vmatpush.msrb.mxu1 %v6738_v16 }
0x319e   :  { %6756 = vmatpush.msrb.mxu1 %v6737_v24 }
0x319f   :  { %7515 = vmatmul.msk.f32.vlgmr.msrb.gmra.mxu1 %vm1144_vm4, %v10853_v47 }
0x3214   :  { %v6734_v50 = vpop.f32.mrf.mxu1 }
0x3215   :  { %v6761_v40 = vsel %vm1192_vm5, %v6734_v50, 0.0 }
0x3216   :  { %6762 = vadd.xlane.f32.xlu1 %v6761_v40 }
0x321c   :  { %v6758_v42 = vpop.f32.mrf.mxu1 }
0x321d   :  { %v6765_v43 = vsel %vm1192_vm5, %v6758_v42, 0.0 }
0x321e   :  { %6766 = vadd.xlane.f32.xlu0 %v6765_v43 }
0x3289   :  { %v6763_v11 = vpop.xlane.xlu1 %6762 }
0x328a   :  { %v6764_v31 = vmul.f32 0.001953125, %v6763_v11 }
0x328c   :  { %7516 = vmatpush.msk.msra.mxu2 %vm1227_vm6, %v6764_v31  ;;  %v6769_v54 = vmul.f32 %v6764_v31, %v6764_v31 }
0x328d   :  { %7517 = vmatmul.msk.f32.vlgmr.msra.gmra.mxu2 %vm1214_vm7, %v10869_v46 }
0x3291   :  { %v6767_v2 = vpop.xlane.xlu0 %6766 }
0x3292   :  { %v6768_v25 = vmul.f32 0.001953125, %v6767_v2 }
0x3294   :  { %v6770_v5 = vsub.f32 %v6768_v25, %v6769_v54 }
0x3295   :  { %7518 = vmatmul.msk.f32.gmra.mxu2 %vm1214_vm7, %v10874_v6 }
0x3296   :  { %v6771_v47 = vadd.f32 1e-05, %v6770_v5 }
0x3298   :  { %7734 = vrsqrt.f32 %v6771_v47  ;;  %vm6778_vm3 = vweird.f32 %v6771_v47 }
0x329d   :  { %7519 = vmatmul.msk.f32.gmra.mxu2 %vm1214_vm7, %v10881_v10 }
0x329e   :  { %v7735_v20 = vpop.eup %7734 }
0x329f   :  { %v6773_v56 = vmul.f32 %v7735_v20, %v6771_v47  ;;  %vm6779_vm2 = vweird.f32 %v7735_v20 }
0x32a0   :  { %vm6780_vm9 = vmor %vm6778_vm3, %vm6779_vm2 }
0x32a1   :  { %v6774_v34 = vmul.f32 %v7735_v20, %v6773_v56 }
0x32a3   :  { %v6775_v27 = vmul.f32 0.5, %v6774_v34 }
0x32a5   :  { %v6776_v55 = vsub.f32 1.5, %v6775_v27  ;;  %7520 = vmatmul.msk.f32.gmra.mxu2 %vm1214_vm7, %v10887_v32 }
0x32a7   :  { %v6777_v8 = vmul.f32 %v7735_v20, %v6776_v55 }
0x32a9   :  { %v6781_v21 = vsel %vm6780_vm9, %v7735_v20, %v6777_v8 }
0x32aa   :  { %7521 = vmatpush.msk.msra.mxu3 %vm1227_vm6, %v6781_v21 }
0x32ab   :  { %7522 = vmatmul.msk.f32.vlgmr.msra.gmra.mxu3 %vm1214_vm7, %v10869_v46 }
0x32b3   :  { %7523 = vmatmul.msk.f32.gmra.mxu3 %vm1214_vm7, %v10874_v6 }
0x32bb   :  { %7524 = vmatmul.msk.f32.gmra.mxu3 %vm1214_vm7, %v10881_v10 }
0x32c3   :  { %7525 = vmatmul.msk.f32.gmra.mxu3 %vm1214_vm7, %v10887_v32 }
0x3310   :  { %v6802_v49 = vpop.f32.mrf.mxu2 }
0x3318   :  { %v6805_v36 = vpop.f32.mrf.mxu2 }
0x3319   :  { %6853 = vperm.xlu2 %7655, %v6805_v36  }
0x3320   :  { %v6808_v23 = vpop.f32.mrf.mxu2 }
0x3321   :  { %6858 = vperm.xlu2 %7655, %v6808_v23  }
0x3328   :  { %v6811_v63 = vpop.f32.mrf.mxu2 }
0x3329   :  { %6863 = vperm.xlu2 %7655, %v6811_v63  }
0x332e   :  { %v6834_v1 = vpop.f32.mrf.mxu3 }
0x3331   :  { %6848 = vperm.xlu2 %7655, %v6802_v49  }
0x3336   :  { %v6837_v46 = vpop.f32.mrf.mxu3 }
0x3337   :  { %6877 = vperm.xlu0 %7653, %v6837_v46  }
0x333e   :  { %v6840_v6 = vpop.f32.mrf.mxu3 }
0x333f   :  { %6882 = vperm.xlu1 %7654, %v6840_v6  }
0x3346   :  { %v6843_v35 = vpop.f32.mrf.mxu3 }
0x3347   :  { %6887 = vperm.xlu2 %7655, %v6843_v35  }
0x334f   :  { %6872 = vperm.xlu2 %7655, %v6834_v1  }
0x3373   :  { %v6854_v10 = vpop.permute.xlu2 %6853 }
0x3374   :  { %v6867_v26 = vsub.f32 %v11059_v58, %v6854_v10 }
0x337b   :  { %v6859_v32 = vpop.permute.xlu2 %6858 }
0x337c   :  { %v6868_v57 = vsub.f32 %v11056_v12, %v6859_v32  ;;  %v909_v12 = vld [vmem:[%s11283_s29] sm:$0x3] }
0x3383   :  { %v6864_v30 = vpop.permute.xlu2 %6863 }
0x3384   :  { %v6869_v9 = vsub.f32 %v11054_v28, %v6864_v30 }
0x338b   :  { %v6849_v52 = vpop.permute.xlu2 %6848 }
0x338c   :  { %v6866_v53 = vsub.f32 %v11062_v4, %v6849_v52 }
0x33a1   :  { %v6888_v13 = vpop.permute.xlu2 %6887 }
0x33a2   :  { %v6893_v15 = vmul.f32 %v6888_v13, %v6869_v9 }
0x33a4   :  { %v6901_v39 = vmul.f32 %v7694_v59, %v6893_v15 }
0x33a6   :  { %v6909_v61 = vadd.f32 %v7695_v38, %v6901_v39 }
0x33a8   :  { %v6913_v29 = vadd.f32 %v6909_v61, %v10935_v0 }
0x33a9   :  { %v6878_v19 = vpop.permute.xlu0 %6877  ;;  %v6873_v37 = vpop.permute.xlu2 %6872 }
0x33aa   :  { %6929 = vmatpush.msra.mxu1 %v6913_v29  ;;  %v6891_v44 = vmul.f32 %v6878_v19, %v6867_v26  ;;  %v6890_v45 = vmul.f32 %v6873_v37, %v6866_v53 }
0x33ac   :  { %v6899_v33 = vmul.f32 %v7694_v59, %v6891_v44  ;;  %v6898_v48 = vmul.f32 %v7694_v59, %v6890_v45 }
0x33ae   :  { %v6907_v18 = vadd.f32 %v7695_v38, %v6899_v33  ;;  %v6906_v28 = vadd.f32 %v7695_v38, %v6898_v48 }
0x33b0   :  { %v6911_v58 = vadd.f32 %v6907_v18, %v10910_v17  ;;  %v6910_v4 = vadd.f32 %v6906_v28, %v10912_v7 }
0x33b1   :  { %v6883_v41 = vpop.permute.xlu1 %6882 }
0x33b2   :  { %v6892_v14 = vmul.f32 %v6883_v41, %v6868_v57 }
0x33b4   :  { %v6900_v60 = vmul.f32 %v7694_v59, %v6892_v14 }
0x33b6   :  { %v6908_v0 = vadd.f32 %v7695_v38, %v6900_v60 }
0x33b8   :  { %v6912_v22 = vadd.f32 %v6908_v0, %v10923_v3 }
0x33ba   :  { %6930 = vmatpush.msra.mxu1 %v6912_v22 }
0x33bc   :  { %6931 = vmatpush.msra.mxu1 %v6911_v58 }
0x33be   :  { %6932 = vmatpush.msra.mxu1 %v6910_v4 }
0x33bf   :  { %7526 = vmatmul.msk.f32.vlgmr.msra.gmra.mxu1 %vm1144_vm4, %v909_v12 }
0x343c   :  { %v6934_v51 = vpop.f32.mrf.mxu1 }
0x343d   :  { %6937 = vst.msk [vmem:[#allocation65] sm:$0x3] %vm1192_vm5, %v6934_v51 }
0x343e   :  { %8761 = shalt.err (!%p8758_p13)
}
0x343f   :  { %6948 = dma.vmem_to_hbm [thread:$0]  %s6944_s8, 32, %s6946_s20, [#allocation4]  }
0x3440   :  { %8804 = dma.done.wait [#allocation4], 32  }
0x3441   :  { %8805 = vsyncadd [#allocation4], 4294967264 }
0x3442   :  { %6953 = vsyncpa [#allocation3], 1 }
0x3443   :  { %6954 = vsyncpa [#allocation6], 1 }
0x3444   :  { %6955 = vsyncpa [#allocation9], 1 }
0x3445   :  { %6956 = vsyncpa [#allocation12], 1 }
0x3446   :  { %6957 = vsyncpa [#allocation15], 1 }
0x3447   :  { %6958 = vsyncpa [#allocation18], 1 }
0x3448   :  { %6959 = vsyncpa [#allocation21], 1 }
0x3449   :  { %6960 = vsyncpa [#allocation24], 1 }
0x344a   :  { %6961 = vsyncpa [#allocation27], 1 }
0x344b   :  { %6962 = vsyncpa [#allocation30], 1 }
0x344c   :  { %6963 = vsyncpa [#allocation33], 1 }
0x344d   :  { %6964 = vsyncpa [#allocation36], 1 }
0x344e   :  { %6965 = vsyncpa [#allocation39], 1 }
0x344f   :  { %6966 = vsyncpa [#allocation42], 1 }
0x3450   :  { %6967 = vsyncpa [#allocation45], 1 }
0x3451   :  { %6968 = vsyncpa [#allocation48], 1 }
0x3452   :  { %6969 = vsyncpa [#allocation51], 1 }
0x3453   :  { %6970 = vsyncpa [#allocation54], 1 }
0x3454   :  { %6971 = vsyncpa [#allocation57], 1 }
0x3455   :  { %6972 = vsyncpa [#allocation60], 1 }
0x3456   :  { %6973 = vsyncpa [#allocation63], 1 }
0x3457   :  { %6974 = vsyncpa [#allocation4], 1 }

</bundles_post_ra>
